<compile_context>
chip_gen: v6e
topology: v6e:2x2x1
jax: 0.10.0
libtpu: 0.0.40
codegen_flags: <defaults>
</compile_context>

<pallas_src>
import jax
import jax.numpy as jnp
from jax.experimental import pallas as pl
from jax.experimental.pallas import tpu as pltpu


# ------------- strip-tiled conv3x3(pad=1) + bias + ReLU + maxpool2x2 (one call) -------------
def _conv_strip_kernel(x_ref, w_ref, b_ref, o_ref):
    # x_ref: (1, TH+2, W+2, Cin)       one halo-padded row strip (halos built on host)
    # w_ref: (3, 3*Cin, Cout)          row index inside a ky slab = kx*Cin + cin
    # b_ref: (1, Cout)
    # o_ref: (1, TH//2, (W//2)*Cout)   lane-dense pooled output strip
    _, thp2, wp2, cin = x_ref.shape
    th, w = thp2 - 2, wp2 - 2
    cout = w_ref.shape[-1]

    x = x_ref[0]                                          # (TH+2, W+2, Cin) in VMEM
    acc = None
    for ky in range(3):                                   # 3 accumulated matmuls, K = 3*Cin
        slab = x[ky:ky + th]                              # contiguous-row slab (TH, W+2, Cin)
        col = jnp.concatenate([slab[:, kx:kx + w, :] for kx in range(3)], axis=-1)
        p = jnp.dot(col.reshape(th * w, 3 * cin), w_ref[ky],
                    preferred_element_type=jnp.float32)
        acc = p if acc is None else acc + p
    acc = jnp.maximum(acc + b_ref[...], 0.0)              # fused bias + ReLU

    # fused 2x2/2 maxpool while the activation is still in VMEM; lane-dense store.
    a = acc.reshape(th // 2, 2, w // 2, 2, cout)
    pooled = jnp.maximum(jnp.maximum(a[:, 0, :, 0], a[:, 0, :, 1]),
                         jnp.maximum(a[:, 1, :, 0], a[:, 1, :, 1]))
    o_ref[0] = pooled.reshape(th // 2, (w // 2) * cout).astype(o_ref.dtype)


def _pick_strip_rows(h):
    # Strip height (in this conv's input rows): bounds per-strip VMEM at real sizes,
    # still gives >=2 strips at small test sizes so seam handling is exercised.
    for t in (32, 16, 8):
        if h > t and h % t == 0:
            return t
    return h


def conv3x3_relu_pool(x_nhwc, w_col, b):
    n, h, w, cin = x_nhwc.shape
    cout = w_col.shape[-1]
    th = _pick_strip_rows(h)
    s = h // th

    # Host-side halo construction: zeros at true image borders, real neighbor rows at
    # strip seams.  The 2-duplicated-rows-per-strip are negligible layout plumbing.
    # TODO(synk): at very large H, pl.Element-indexed halo windows over the padded input
    # would avoid materializing the duplicated strips entirely.
    xp = jnp.pad(x_nhwc, ((0, 0), (1, 1), (1, 1), (0, 0)))
    strips = jnp.stack([xp[:, i * th:i * th + th + 2] for i in range(s)], axis=1)
    strips = strips.reshape(n * s, th + 2, w + 2, cin)

    out = pl.pallas_call(
        _conv_strip_kernel,
        out_shape=jax.ShapeDtypeStruct((n * s, th // 2, (w // 2) * cout), x_nhwc.dtype),
        grid=(n * s,),
        in_specs=[
            pl.BlockSpec((1, th + 2, w + 2, cin), lambda i: (i, 0, 0, 0)),
            pl.BlockSpec((3, 3 * cin, cout), lambda i: (0, 0, 0)),   # weights stay resident
            pl.BlockSpec((1, cout), lambda i: (0, 0)),
        ],
        out_specs=pl.BlockSpec((1, th // 2, (w // 2) * cout), lambda i: (i, 0, 0)),
        compiler_params=pltpu.CompilerParams(
            dimension_semantics=("parallel",),          # shards strips over v7x's 2 TCs
            vmem_limit_bytes=48 * 1024 * 1024),
    )(strips, w_col, b.reshape(1, cout))
    return out.reshape(n, h // 2, w // 2, cout)         # free reshape back to NHWC


# ------------------------- fused fc1 + ReLU + fc2 (K-tiled, bf16 weight stream) -------------------------
def _fc_stack_kernel(x_ref, w1_ref, b1_ref, w2_ref, b2_ref, o_ref, acc_ref):
    k = pl.program_id(0)

    @pl.when(k == 0)
    def _init():
        acc_ref[...] = jnp.zeros_like(acc_ref)

    acc_ref[...] += jnp.dot(x_ref[...], w1_ref[...].astype(jnp.float32),
                            preferred_element_type=jnp.float32)

    @pl.when(k == pl.num_programs(0) - 1)
    def _finalize():
        h = jnp.maximum(acc_ref[...] + b1_ref[...], 0.0)          # fc1 bias + ReLU
        y = jnp.dot(h, w2_ref[...], preferred_element_type=jnp.float32) + b2_ref[...]
        o_ref[...] = y.astype(o_ref.dtype)


def _pick_k_tile(k):
    # Real-size fc1 (K=131072, bf16 weight): 8192-wide tiles = 2 MiB per tile, 16 grid
    # steps (amortizes per-step overhead on v7x).  Small test sizes still get >=2 steps
    # so the accumulation path is exercised.
    for tk in (8192, 4096, 1024, 512, 256):
        if k % tk == 0 and tk < k:
            return tk
    return k


def fc_stack(x, w_fc1, b_fc1, w_fc2, b_fc2):
    n, k = x.shape
    mh = w_fc1.shape[1]              # fc1 out features (128)
    mo = w_fc2.shape[1]              # fc2 out features (2)
    tk = _pick_k_tile(k)
    # TODO(synk): on v7x, split the K reduction across the two TensorCores (leading
    # "parallel" grid axis of 2 with partial accumulators + tiny combine) and consider
    # fp8 weights if accuracy allows.
    return pl.pallas_call(
        _fc_stack_kernel,
        out_shape=jax.ShapeDtypeStruct((n, mo), x.dtype),
        grid=(k // tk,),
        in_specs=[
            pl.BlockSpec((n, tk), lambda i: (0, i)),
            pl.BlockSpec((tk, mh), lambda i: (i, 0)),    # bf16 weight stream from HBM
            pl.BlockSpec((1, mh), lambda i: (0, 0)),
            pl.BlockSpec((mh, mo), lambda i: (0, 0)),
            pl.BlockSpec((1, mo), lambda i: (0, 0)),
        ],
        out_specs=pl.BlockSpec((n, mo), lambda i: (0, 0)),
        scratch_shapes=[pltpu.VMEM((n, mh), jnp.float32)],
        compiler_params=pltpu.CompilerParams(
            dimension_semantics=("arbitrary",),
            vmem_limit_bytes=48 * 1024 * 1024),
    )(x, w_fc1, b_fc1.reshape(1, mh), w_fc2, b_fc2.reshape(1, mo))


# ----------------------------------- full forward -----------------------------------
def cnn_model_forward(x_nchw, params):
    n, cin = x_nchw.shape[0], x_nchw.shape[1]
    c0p = params["w1_col"].shape[1] // 3                          # conv1 Cin padded 3 -> 8
    x = jnp.transpose(x_nchw, (0, 2, 3, 1))                       # NCHW -> NHWC
    if c0p != cin:
        x = jnp.pad(x, ((0, 0), (0, 0), (0, 0), (0, c0p - cin)))
    p1 = conv3x3_relu_pool(x, params["w1_col"], params["b1"])     # (N, H/2, W/2, 16)
    p2 = conv3x3_relu_pool(p1, params["w2_col"], params["b2"])    # (N, H/4, W/4, 32)
    feat = p2.reshape(n, -1)                                      # free NHWC flatten
    return fc_stack(feat, params["w_fc1"], params["b_fc1"],
                    params["w_fc2"], params["b_fc2"])


# ------------------------------- pure-JAX reference ---------------------------------
def reference_forward(x_nchw, tp):
    hp = jax.lax.Precision.HIGHEST
    dn = ("NCHW", "OIHW", "NCHW")
    y = jax.lax.conv_general_dilated(x_nchw, tp["w1"], (1, 1), ((1, 1), (1, 1)),
                                     dimension_numbers=dn, precision=hp)
    y = jnp.maximum(y + tp["b1"][None, :, None, None], 0.0)
    y = jax.lax.reduce_window(y, -jnp.inf, jax.lax.max, (1, 1, 2, 2), (1, 1, 2, 2), "VALID")
    y = jax.lax.conv_general_dilated(y, tp["w2"], (1, 1), ((1, 1), (1, 1)),
                                     dimension_numbers=dn, precision=hp)
    y = jnp.maximum(y + tp["b2"][None, :, None, None], 0.0)
    y = jax.lax.reduce_window(y, -jnp.inf, jax.lax.max, (1, 1, 2, 2), (1, 1, 2, 2), "VALID")
    flat = y.reshape(y.shape[0], -1)                              # torch NCHW flatten
    h = jnp.maximum(jnp.dot(flat, tp["wf1"].T, precision=hp) + tp["bf1"], 0.0)
    return jnp.dot(h, tp["wf2"].T, precision=hp) + tp["bf2"]


if __name__ == "__main__":
    N, Cin, Hin, Win = 2, 3, 32, 32                     # small analogue of the 256x256 real size
    flat_dim = 32 * (Hin // 4) * (Win // 4)             # 2048 here; 131072 in the real module

    key = jax.random.PRNGKey(0)
    ks = jax.random.split(key, 9)
    x = jax.random.normal(ks[0], (N, Cin, Hin, Win), jnp.float32)

    # deterministic synthetic parameters, PyTorch-shaped
    torch_params = {
        "w1": jax.random.normal(ks[1], (16, 3, 3, 3), jnp.float32) * 0.05,
        "b1": jax.random.normal(ks[2], (16,), jnp.float32) * 0.05,
        "w2": jax.random.normal(ks[3], (32, 16, 3, 3), jnp.float32) * 0.05,
        "b2": jax.random.normal(ks[4], (32,), jnp.float32) * 0.05,
        "wf1": jax.random.normal(ks[5], (128, flat_dim), jnp.float32) * 0.02,
        "bf1": jax.random.normal(ks[6], (128,), jnp.float32) * 0.02,
        "wf2": jax.random.normal(ks[7], (2, 128), jnp.float32) * 0.05,
        "bf2": jax.random.normal(ks[8], (2,), jnp.float32) * 0.05,
    }

    # ----------------------- host-side kernel-layout packing -----------------------
    C0P = 8                                                       # conv1 Cin padded 3 -> 8
    w1_hwio = jnp.transpose(torch_params["w1"], (2, 3, 1, 0))     # OIHW -> (ky,kx,cin,cout)
    w1_hwio = jnp.pad(w1_hwio, ((0, 0), (0, 0), (0, C0P - Cin), (0, 0)))
    w2_hwio = jnp.transpose(torch_params["w2"], (2, 3, 1, 0))     # (3,3,16,32)

    # fc1: transpose to (in, out) and permute rows from torch's NCHW-flatten (c,h,w)
    # order to the kernel's NHWC-flatten (h,w,c) order; stream in bf16.
    Hq, Wq, C2 = Hin // 4, Win // 4, 32
    wf1_t = torch_params["wf1"].T                                 # (flat_dim, 128)
    w_fc1 = (wf1_t.reshape(C2, Hq, Wq, -1)
                  .transpose(1, 2, 0, 3)
                  .reshape(Hq * Wq * C2, -1)).astype(jnp.bfloat16)

    params = {
        "w1_col": w1_hwio.reshape(3, 3 * C0P, 16),                # (3, 24, 16)
        "b1": torch_params["b1"],
        "w2_col": w2_hwio.reshape(3, 3 * 16, 32),                 # (3, 48, 32)
        "b2": torch_params["b2"],
        "w_fc1": w_fc1,                                           # (2048, 128) bf16, NHWC rows
        "b_fc1": torch_params["bf1"],
        "w_fc2": torch_params["wf2"].T,                           # (128, 2)
        "b_fc2": torch_params["bf2"],
    }

    forward = jax.jit(cnn_model_forward)
    out = jax.block_until_ready(forward(x, params))
    assert out.shape == (N, 2), out.shape

    ref = jax.block_until_ready(reference_forward(x, torch_params))
    max_err = float(jnp.max(jnp.abs(out - ref)))
    # f32 path except bf16 fc1 weights -> tight tolerance catches layout/seam regressions.
    assert max_err < 5e-3, f"mismatch vs reference, max abs err = {max_err}"

    print("KERNEL_OK")
</pallas_src>

<mosaic_0001>
module attributes {stable_mosaic.version = 11 : i64} {
  func.func @_conv_strip_kernel(%arg0: i32, %arg1: memref<1x18x34x8xf32, #tpu.memory_space<vmem>>, %arg2: memref<3x24x16xf32, #tpu.memory_space<vmem>>, %arg3: memref<1x16xf32, #tpu.memory_space<vmem>>, %arg4: memref<1x8x256xf32, #tpu.memory_space<vmem>>) attributes {dimension_semantics = [#tpu.dimension_semantics<parallel>], iteration_bounds = array<i64: 4>, scalar_prefetch = 0 : i64, scratch_operands = 0 : i64, tpu.core_type = #tpu.core_type<tc>, window_params = [{transform_indices = @transform_0, window_bounds = array<i64: 1, 18, 34, 8>}, {pipeline_mode = #tpu.pipeline_mode<synchronous>, transform_indices = @transform_1, window_bounds = array<i64: 3, 24, 16>}, {pipeline_mode = #tpu.pipeline_mode<synchronous>, transform_indices = @transform_2, window_bounds = array<i64: 1, 16>}, {transform_indices = @transform_3, window_bounds = array<i64: 1, 8, 256>}]} {
    %c0 = arith.constant 0 : index
    %c0_0 = arith.constant 0 : index
    %c0_1 = arith.constant 0 : index
    %c0_2 = arith.constant 0 : index
    %0 = vector.load %arg1[%c0, %c0_0, %c0_1, %c0_2] : memref<1x18x34x8xf32, #tpu.memory_space<vmem>>, vector<1x18x34x8xf32>
    %1 = vector.shape_cast %0 : vector<1x18x34x8xf32> to vector<18x34x8xf32>
    %2 = vector.extract_strided_slice %1 {offsets = [0, 0, 0], sizes = [16, 34, 8], strides = [1, 1, 1]} : vector<18x34x8xf32> to vector<16x34x8xf32>
    %3 = vector.extract_strided_slice %2 {offsets = [0, 0, 0], sizes = [16, 32, 8], strides = [1, 1, 1]} : vector<16x34x8xf32> to vector<16x32x8xf32>
    %4 = vector.extract_strided_slice %2 {offsets = [0, 1, 0], sizes = [16, 32, 8], strides = [1, 1, 1]} : vector<16x34x8xf32> to vector<16x32x8xf32>
    %5 = vector.extract_strided_slice %2 {offsets = [0, 2, 0], sizes = [16, 32, 8], strides = [1, 1, 1]} : vector<16x34x8xf32> to vector<16x32x8xf32>
    %6 = tpu.concatenate %3, %4, %5 in 2 : vector<16x32x8xf32>, vector<16x32x8xf32>, vector<16x32x8xf32> -> vector<16x32x24xf32>
    %7 = vector.shape_cast %6 : vector<16x32x24xf32> to vector<512x24xf32>
    %c0_3 = arith.constant 0 : index
    %c0_4 = arith.constant 0 : index
    %c0_5 = arith.constant 0 : index
    %8 = vector.load %arg2[%c0_3, %c0_4, %c0_5] : memref<3x24x16xf32, #tpu.memory_space<vmem>>, vector<1x24x16xf32>
    %9 = vector.shape_cast %8 : vector<1x24x16xf32> to vector<24x16xf32>
    %cst = arith.constant dense<0.000000e+00> : vector<512x16xf32>
    %10 = tpu.matmul %7, %9, %cst {dimension_numbers = #tpu.dot_dimension_numbers<[1], [0], [0], [1], [0, 0, 1, 1], [], []>} : vector<512x24xf32>, vector<24x16xf32>, vector<512x16xf32> -> vector<512x16xf32>
    %11 = vector.extract_strided_slice %1 {offsets = [1, 0, 0], sizes = [16, 34, 8], strides = [1, 1, 1]} : vector<18x34x8xf32> to vector<16x34x8xf32>
    %12 = vector.extract_strided_slice %11 {offsets = [0, 0, 0], sizes = [16, 32, 8], strides = [1, 1, 1]} : vector<16x34x8xf32> to vector<16x32x8xf32>
    %13 = vector.extract_strided_slice %11 {offsets = [0, 1, 0], sizes = [16, 32, 8], strides = [1, 1, 1]} : vector<16x34x8xf32> to vector<16x32x8xf32>
    %14 = vector.extract_strided_slice %11 {offsets = [0, 2, 0], sizes = [16, 32, 8], strides = [1, 1, 1]} : vector<16x34x8xf32> to vector<16x32x8xf32>
    %15 = tpu.concatenate %12, %13, %14 in 2 : vector<16x32x8xf32>, vector<16x32x8xf32>, vector<16x32x8xf32> -> vector<16x32x24xf32>
    %16 = vector.shape_cast %15 : vector<16x32x24xf32> to vector<512x24xf32>
    %c1 = arith.constant 1 : index
    %c0_6 = arith.constant 0 : index
    %c0_7 = arith.constant 0 : index
    %17 = vector.load %arg2[%c1, %c0_6, %c0_7] : memref<3x24x16xf32, #tpu.memory_space<vmem>>, vector<1x24x16xf32>
    %18 = vector.shape_cast %17 : vector<1x24x16xf32> to vector<24x16xf32>
    %cst_8 = arith.constant dense<0.000000e+00> : vector<512x16xf32>
    %19 = tpu.matmul %16, %18, %cst_8 {dimension_numbers = #tpu.dot_dimension_numbers<[1], [0], [0], [1], [0, 0, 1, 1], [], []>} : vector<512x24xf32>, vector<24x16xf32>, vector<512x16xf32> -> vector<512x16xf32>
    %20 = arith.addf %10, %19 : vector<512x16xf32>
    %21 = vector.extract_strided_slice %1 {offsets = [2, 0, 0], sizes = [16, 34, 8], strides = [1, 1, 1]} : vector<18x34x8xf32> to vector<16x34x8xf32>
    %22 = vector.extract_strided_slice %21 {offsets = [0, 0, 0], sizes = [16, 32, 8], strides = [1, 1, 1]} : vector<16x34x8xf32> to vector<16x32x8xf32>
    %23 = vector.extract_strided_slice %21 {offsets = [0, 1, 0], sizes = [16, 32, 8], strides = [1, 1, 1]} : vector<16x34x8xf32> to vector<16x32x8xf32>
    %24 = vector.extract_strided_slice %21 {offsets = [0, 2, 0], sizes = [16, 32, 8], strides = [1, 1, 1]} : vector<16x34x8xf32> to vector<16x32x8xf32>
    %25 = tpu.concatenate %22, %23, %24 in 2 : vector<16x32x8xf32>, vector<16x32x8xf32>, vector<16x32x8xf32> -> vector<16x32x24xf32>
    %26 = vector.shape_cast %25 : vector<16x32x24xf32> to vector<512x24xf32>
    %c2 = arith.constant 2 : index
    %c0_9 = arith.constant 0 : index
    %c0_10 = arith.constant 0 : index
    %27 = vector.load %arg2[%c2, %c0_9, %c0_10] : memref<3x24x16xf32, #tpu.memory_space<vmem>>, vector<1x24x16xf32>
    %28 = vector.shape_cast %27 : vector<1x24x16xf32> to vector<24x16xf32>
    %cst_11 = arith.constant dense<0.000000e+00> : vector<512x16xf32>
    %29 = tpu.matmul %26, %28, %cst_11 {dimension_numbers = #tpu.dot_dimension_numbers<[1], [0], [0], [1], [0, 0, 1, 1], [], []>} : vector<512x24xf32>, vector<24x16xf32>, vector<512x16xf32> -> vector<512x16xf32>
    %30 = arith.addf %20, %29 : vector<512x16xf32>
    %c0_12 = arith.constant 0 : index
    %c0_13 = arith.constant 0 : index
    %31 = vector.load %arg3[%c0_12, %c0_13] : memref<1x16xf32, #tpu.memory_space<vmem>>, vector<1x16xf32>
    %32 = vector.broadcast %31 : vector<1x16xf32> to vector<512x16xf32>
    %33 = arith.addf %30, %32 : vector<512x16xf32>
    %cst_14 = arith.constant 0.000000e+00 : f32
    %34 = vector.broadcast %cst_14 : f32 to vector<512x16xf32>
    %35 = arith.maximumf %33, %34 : vector<512x16xf32>
    %36 = vector.shape_cast %35 : vector<512x16xf32> to vector<8x2x16x2x16xf32>
    %37 = vector.extract_strided_slice %36 {offsets = [0, 0, 0, 0, 0], sizes = [8, 1, 16, 1, 16], strides = [1, 1, 1, 1, 1]} : vector<8x2x16x2x16xf32> to vector<8x1x16x1x16xf32>
    %38 = vector.shape_cast %37 : vector<8x1x16x1x16xf32> to vector<8x16x16xf32>
    %39 = vector.extract_strided_slice %36 {offsets = [0, 0, 0, 1, 0], sizes = [8, 1, 16, 1, 16], strides = [1, 1, 1, 1, 1]} : vector<8x2x16x2x16xf32> to vector<8x1x16x1x16xf32>
    %40 = vector.shape_cast %39 : vector<8x1x16x1x16xf32> to vector<8x16x16xf32>
    %41 = arith.maximumf %38, %40 : vector<8x16x16xf32>
    %42 = vector.extract_strided_slice %36 {offsets = [0, 1, 0, 0, 0], sizes = [8, 1, 16, 1, 16], strides = [1, 1, 1, 1, 1]} : vector<8x2x16x2x16xf32> to vector<8x1x16x1x16xf32>
    %43 = vector.shape_cast %42 : vector<8x1x16x1x16xf32> to vector<8x16x16xf32>
    %44 = vector.extract_strided_slice %36 {offsets = [0, 1, 0, 1, 0], sizes = [8, 1, 16, 1, 16], strides = [1, 1, 1, 1, 1]} : vector<8x2x16x2x16xf32> to vector<8x1x16x1x16xf32>
    %45 = vector.shape_cast %44 : vector<8x1x16x1x16xf32> to vector<8x16x16xf32>
    %46 = arith.maximumf %43, %45 : vector<8x16x16xf32>
    %47 = arith.maximumf %41, %46 : vector<8x16x16xf32>
    %48 = vector.shape_cast %47 : vector<8x16x16xf32> to vector<8x256xf32>
    %c0_15 = arith.constant 0 : index
    %c0_16 = arith.constant 0 : index
    %c0_17 = arith.constant 0 : index
    %49 = vector.load %arg4[%c0_15, %c0_16, %c0_17] : memref<1x8x256xf32, #tpu.memory_space<vmem>>, vector<1x8x256xf32>
    %50 = vector.shape_cast %49 : vector<1x8x256xf32> to vector<8x256xf32>
    %51 = vector.shape_cast %48 : vector<8x256xf32> to vector<1x8x256xf32>
    tpu.vector_store %arg4[%c0_15, %c0_16, %c0_17], %51 {strides = array<i32>} : memref<1x8x256xf32, #tpu.memory_space<vmem>>, vector<1x8x256xf32>,
    return
  }
  func.func @transform_0(%arg0: i32) -> (i32, i32, i32, i32) {
    %c0_i32 = arith.constant 0 : i32
    %c0_i32_0 = arith.constant 0 : i32
    %c0_i32_1 = arith.constant 0 : i32
    %c0_i32_2 = arith.constant 0 : i32
    return %arg0, %c0_i32, %c0_i32_0, %c0_i32_1 : i32, i32, i32, i32
  }
  func.func @transform_1(%arg0: i32) -> (i32, i32, i32) {
    %c0_i32 = arith.constant 0 : i32
    %c0_i32_0 = arith.constant 0 : i32
    %c0_i32_1 = arith.constant 0 : i32
    %c0_i32_2 = arith.constant 0 : i32
    return %c0_i32, %c0_i32_0, %c0_i32_1 : i32, i32, i32
  }
  func.func @transform_2(%arg0: i32) -> (i32, i32) {
    %c0_i32 = arith.constant 0 : i32
    %c0_i32_0 = arith.constant 0 : i32
    %c0_i32_1 = arith.constant 0 : i32
    return %c0_i32, %c0_i32_0 : i32, i32
  }
  func.func @transform_3(%arg0: i32) -> (i32, i32, i32) {
    %c0_i32 = arith.constant 0 : i32
    %c0_i32_0 = arith.constant 0 : i32
    %c0_i32_1 = arith.constant 0 : i32
    return %arg0, %c0_i32, %c0_i32_0 : i32, i32, i32
  }
}

module attributes {stable_mosaic.version = 11 : i64} {
  func.func @_conv_strip_kernel(%arg0: i32, %arg1: memref<1x10x18x16xf32, #tpu.memory_space<vmem>>, %arg2: memref<3x48x32xf32, #tpu.memory_space<vmem>>, %arg3: memref<1x32xf32, #tpu.memory_space<vmem>>, %arg4: memref<1x4x256xf32, #tpu.memory_space<vmem>>) attributes {dimension_semantics = [#tpu.dimension_semantics<parallel>], iteration_bounds = array<i64: 4>, scalar_prefetch = 0 : i64, scratch_operands = 0 : i64, tpu.core_type = #tpu.core_type<tc>, window_params = [{transform_indices = @transform_0, window_bounds = array<i64: 1, 10, 18, 16>}, {pipeline_mode = #tpu.pipeline_mode<synchronous>, transform_indices = @transform_1, window_bounds = array<i64: 3, 48, 32>}, {pipeline_mode = #tpu.pipeline_mode<synchronous>, transform_indices = @transform_2, window_bounds = array<i64: 1, 32>}, {transform_indices = @transform_3, window_bounds = array<i64: 1, 4, 256>}]} {
    %c0 = arith.constant 0 : index
    %c0_0 = arith.constant 0 : index
    %c0_1 = arith.constant 0 : index
    %c0_2 = arith.constant 0 : index
    %0 = vector.load %arg1[%c0, %c0_0, %c0_1, %c0_2] : memref<1x10x18x16xf32, #tpu.memory_space<vmem>>, vector<1x10x18x16xf32>
    %1 = vector.shape_cast %0 : vector<1x10x18x16xf32> to vector<10x18x16xf32>
    %2 = vector.extract_strided_slice %1 {offsets = [0, 0, 0], sizes = [8, 18, 16], strides = [1, 1, 1]} : vector<10x18x16xf32> to vector<8x18x16xf32>
    %3 = vector.extract_strided_slice %2 {offsets = [0, 0, 0], sizes = [8, 16, 16], strides = [1, 1, 1]} : vector<8x18x16xf32> to vector<8x16x16xf32>
    %4 = vector.extract_strided_slice %2 {offsets = [0, 1, 0], sizes = [8, 16, 16], strides = [1, 1, 1]} : vector<8x18x16xf32> to vector<8x16x16xf32>
    %5 = vector.extract_strided_slice %2 {offsets = [0, 2, 0], sizes = [8, 16, 16], strides = [1, 1, 1]} : vector<8x18x16xf32> to vector<8x16x16xf32>
    %6 = tpu.concatenate %3, %4, %5 in 2 : vector<8x16x16xf32>, vector<8x16x16xf32>, vector<8x16x16xf32> -> vector<8x16x48xf32>
    %7 = vector.shape_cast %6 : vector<8x16x48xf32> to vector<128x48xf32>
    %c0_3 = arith.constant 0 : index
    %c0_4 = arith.constant 0 : index
    %c0_5 = arith.constant 0 : index
    %8 = vector.load %arg2[%c0_3, %c0_4, %c0_5] : memref<3x48x32xf32, #tpu.memory_space<vmem>>, vector<1x48x32xf32>
    %9 = vector.shape_cast %8 : vector<1x48x32xf32> to vector<48x32xf32>
    %cst = arith.constant dense<0.000000e+00> : vector<128x32xf32>
    %10 = tpu.matmul %7, %9, %cst {dimension_numbers = #tpu.dot_dimension_numbers<[1], [0], [0], [1], [0, 0, 1, 1], [], []>} : vector<128x48xf32>, vector<48x32xf32>, vector<128x32xf32> -> vector<128x32xf32>
    %11 = vector.extract_strided_slice %1 {offsets = [1, 0, 0], sizes = [8, 18, 16], strides = [1, 1, 1]} : vector<10x18x16xf32> to vector<8x18x16xf32>
    %12 = vector.extract_strided_slice %11 {offsets = [0, 0, 0], sizes = [8, 16, 16], strides = [1, 1, 1]} : vector<8x18x16xf32> to vector<8x16x16xf32>
    %13 = vector.extract_strided_slice %11 {offsets = [0, 1, 0], sizes = [8, 16, 16], strides = [1, 1, 1]} : vector<8x18x16xf32> to vector<8x16x16xf32>
    %14 = vector.extract_strided_slice %11 {offsets = [0, 2, 0], sizes = [8, 16, 16], strides = [1, 1, 1]} : vector<8x18x16xf32> to vector<8x16x16xf32>
    %15 = tpu.concatenate %12, %13, %14 in 2 : vector<8x16x16xf32>, vector<8x16x16xf32>, vector<8x16x16xf32> -> vector<8x16x48xf32>
    %16 = vector.shape_cast %15 : vector<8x16x48xf32> to vector<128x48xf32>
    %c1 = arith.constant 1 : index
    %c0_6 = arith.constant 0 : index
    %c0_7 = arith.constant 0 : index
    %17 = vector.load %arg2[%c1, %c0_6, %c0_7] : memref<3x48x32xf32, #tpu.memory_space<vmem>>, vector<1x48x32xf32>
    %18 = vector.shape_cast %17 : vector<1x48x32xf32> to vector<48x32xf32>
    %cst_8 = arith.constant dense<0.000000e+00> : vector<128x32xf32>
    %19 = tpu.matmul %16, %18, %cst_8 {dimension_numbers = #tpu.dot_dimension_numbers<[1], [0], [0], [1], [0, 0, 1, 1], [], []>} : vector<128x48xf32>, vector<48x32xf32>, vector<128x32xf32> -> vector<128x32xf32>
    %20 = arith.addf %10, %19 : vector<128x32xf32>
    %21 = vector.extract_strided_slice %1 {offsets = [2, 0, 0], sizes = [8, 18, 16], strides = [1, 1, 1]} : vector<10x18x16xf32> to vector<8x18x16xf32>
    %22 = vector.extract_strided_slice %21 {offsets = [0, 0, 0], sizes = [8, 16, 16], strides = [1, 1, 1]} : vector<8x18x16xf32> to vector<8x16x16xf32>
    %23 = vector.extract_strided_slice %21 {offsets = [0, 1, 0], sizes = [8, 16, 16], strides = [1, 1, 1]} : vector<8x18x16xf32> to vector<8x16x16xf32>
    %24 = vector.extract_strided_slice %21 {offsets = [0, 2, 0], sizes = [8, 16, 16], strides = [1, 1, 1]} : vector<8x18x16xf32> to vector<8x16x16xf32>
    %25 = tpu.concatenate %22, %23, %24 in 2 : vector<8x16x16xf32>, vector<8x16x16xf32>, vector<8x16x16xf32> -> vector<8x16x48xf32>
    %26 = vector.shape_cast %25 : vector<8x16x48xf32> to vector<128x48xf32>
    %c2 = arith.constant 2 : index
    %c0_9 = arith.constant 0 : index
    %c0_10 = arith.constant 0 : index
    %27 = vector.load %arg2[%c2, %c0_9, %c0_10] : memref<3x48x32xf32, #tpu.memory_space<vmem>>, vector<1x48x32xf32>
    %28 = vector.shape_cast %27 : vector<1x48x32xf32> to vector<48x32xf32>
    %cst_11 = arith.constant dense<0.000000e+00> : vector<128x32xf32>
    %29 = tpu.matmul %26, %28, %cst_11 {dimension_numbers = #tpu.dot_dimension_numbers<[1], [0], [0], [1], [0, 0, 1, 1], [], []>} : vector<128x48xf32>, vector<48x32xf32>, vector<128x32xf32> -> vector<128x32xf32>
    %30 = arith.addf %20, %29 : vector<128x32xf32>
    %c0_12 = arith.constant 0 : index
    %c0_13 = arith.constant 0 : index
    %31 = vector.load %arg3[%c0_12, %c0_13] : memref<1x32xf32, #tpu.memory_space<vmem>>, vector<1x32xf32>
    %32 = vector.broadcast %31 : vector<1x32xf32> to vector<128x32xf32>
    %33 = arith.addf %30, %32 : vector<128x32xf32>
    %cst_14 = arith.constant 0.000000e+00 : f32
    %34 = vector.broadcast %cst_14 : f32 to vector<128x32xf32>
    %35 = arith.maximumf %33, %34 : vector<128x32xf32>
    %36 = vector.shape_cast %35 : vector<128x32xf32> to vector<4x2x8x2x32xf32>
    %37 = vector.extract_strided_slice %36 {offsets = [0, 0, 0, 0, 0], sizes = [4, 1, 8, 1, 32], strides = [1, 1, 1, 1, 1]} : vector<4x2x8x2x32xf32> to vector<4x1x8x1x32xf32>
    %38 = vector.shape_cast %37 : vector<4x1x8x1x32xf32> to vector<4x8x32xf32>
    %39 = vector.extract_strided_slice %36 {offsets = [0, 0, 0, 1, 0], sizes = [4, 1, 8, 1, 32], strides = [1, 1, 1, 1, 1]} : vector<4x2x8x2x32xf32> to vector<4x1x8x1x32xf32>
    %40 = vector.shape_cast %39 : vector<4x1x8x1x32xf32> to vector<4x8x32xf32>
    %41 = arith.maximumf %38, %40 : vector<4x8x32xf32>
    %42 = vector.extract_strided_slice %36 {offsets = [0, 1, 0, 0, 0], sizes = [4, 1, 8, 1, 32], strides = [1, 1, 1, 1, 1]} : vector<4x2x8x2x32xf32> to vector<4x1x8x1x32xf32>
    %43 = vector.shape_cast %42 : vector<4x1x8x1x32xf32> to vector<4x8x32xf32>
    %44 = vector.extract_strided_slice %36 {offsets = [0, 1, 0, 1, 0], sizes = [4, 1, 8, 1, 32], strides = [1, 1, 1, 1, 1]} : vector<4x2x8x2x32xf32> to vector<4x1x8x1x32xf32>
    %45 = vector.shape_cast %44 : vector<4x1x8x1x32xf32> to vector<4x8x32xf32>
    %46 = arith.maximumf %43, %45 : vector<4x8x32xf32>
    %47 = arith.maximumf %41, %46 : vector<4x8x32xf32>
    %48 = vector.shape_cast %47 : vector<4x8x32xf32> to vector<4x256xf32>
    %c0_15 = arith.constant 0 : index
    %c0_16 = arith.constant 0 : index
    %c0_17 = arith.constant 0 : index
    %49 = vector.load %arg4[%c0_15, %c0_16, %c0_17] : memref<1x4x256xf32, #tpu.memory_space<vmem>>, vector<1x4x256xf32>
    %50 = vector.shape_cast %49 : vector<1x4x256xf32> to vector<4x256xf32>
    %51 = vector.shape_cast %48 : vector<4x256xf32> to vector<1x4x256xf32>
    tpu.vector_store %arg4[%c0_15, %c0_16, %c0_17], %51 {strides = array<i32>} : memref<1x4x256xf32, #tpu.memory_space<vmem>>, vector<1x4x256xf32>,
    return
  }
  func.func @transform_0(%arg0: i32) -> (i32, i32, i32, i32) {
    %c0_i32 = arith.constant 0 : i32
    %c0_i32_0 = arith.constant 0 : i32
    %c0_i32_1 = arith.constant 0 : i32
    %c0_i32_2 = arith.constant 0 : i32
    return %arg0, %c0_i32, %c0_i32_0, %c0_i32_1 : i32, i32, i32, i32
  }
  func.func @transform_1(%arg0: i32) -> (i32, i32, i32) {
    %c0_i32 = arith.constant 0 : i32
    %c0_i32_0 = arith.constant 0 : i32
    %c0_i32_1 = arith.constant 0 : i32
    %c0_i32_2 = arith.constant 0 : i32
    return %c0_i32, %c0_i32_0, %c0_i32_1 : i32, i32, i32
  }
  func.func @transform_2(%arg0: i32) -> (i32, i32) {
    %c0_i32 = arith.constant 0 : i32
    %c0_i32_0 = arith.constant 0 : i32
    %c0_i32_1 = arith.constant 0 : i32
    return %c0_i32, %c0_i32_0 : i32, i32
  }
  func.func @transform_3(%arg0: i32) -> (i32, i32, i32) {
    %c0_i32 = arith.constant 0 : i32
    %c0_i32_0 = arith.constant 0 : i32
    %c0_i32_1 = arith.constant 0 : i32
    return %arg0, %c0_i32, %c0_i32_0 : i32, i32, i32
  }
}

module attributes {stable_mosaic.version = 11 : i64} {
  func.func @_fc_stack_kernel(%arg0: i32, %arg1: memref<2x1024xf32, #tpu.memory_space<vmem>>, %arg2: memref<1024x128xbf16, #tpu.memory_space<vmem>>, %arg3: memref<1x128xf32, #tpu.memory_space<vmem>>, %arg4: memref<128x2xf32, #tpu.memory_space<vmem>>, %arg5: memref<1x2xf32, #tpu.memory_space<vmem>>, %arg6: memref<2x2xf32, #tpu.memory_space<vmem>>, %arg7: memref<2x128xf32, #tpu.memory_space<vmem>>) attributes {dimension_semantics = [#tpu.dimension_semantics<arbitrary>], iteration_bounds = array<i64: 2>, scalar_prefetch = 0 : i64, scratch_operands = 1 : i64, tpu.core_type = #tpu.core_type<tc>, window_params = [{transform_indices = @transform_0, window_bounds = array<i64: 2, 1024>}, {transform_indices = @transform_1, window_bounds = array<i64: 1024, 128>}, {pipeline_mode = #tpu.pipeline_mode<synchronous>, transform_indices = @transform_2, window_bounds = array<i64: 1, 128>}, {pipeline_mode = #tpu.pipeline_mode<synchronous>, transform_indices = @transform_3, window_bounds = array<i64: 128, 2>}, {pipeline_mode = #tpu.pipeline_mode<synchronous>, transform_indices = @transform_4, window_bounds = array<i64: 1, 2>}, {pipeline_mode = #tpu.pipeline_mode<synchronous>, transform_indices = @transform_5, window_bounds = array<i64: 2, 2>}]} {
    %c0_i32 = arith.constant 0 : i32
    %0 = arith.cmpi eq, %arg0, %c0_i32 : i32
    %1 = arith.extui %0 : i1 to i32
    %c0_i32_0 = arith.constant 0 : i32
    %2 = arith.cmpi ne, %1, %c0_i32_0 : i32
    scf.if %2 {
      %cst_9 = arith.constant 0.000000e+00 : f32
      %13 = vector.broadcast %cst_9 : f32 to vector<2x128xf32>
      %c0_10 = arith.constant 0 : index
      %c0_11 = arith.constant 0 : index
      %14 = vector.load %arg7[%c0_10, %c0_11] : memref<2x128xf32, #tpu.memory_space<vmem>>, vector<2x128xf32>
      tpu.vector_store %arg7[%c0_10, %c0_11], %13 {strides = array<i32>} : memref<2x128xf32, #tpu.memory_space<vmem>>, vector<2x128xf32>,
    } else {
    }
    %c0 = arith.constant 0 : index
    %c0_1 = arith.constant 0 : index
    %3 = vector.load %arg7[%c0, %c0_1] : memref<2x128xf32, #tpu.memory_space<vmem>>, vector<2x128xf32>
    %c0_2 = arith.constant 0 : index
    %c0_3 = arith.constant 0 : index
    %4 = vector.load %arg1[%c0_2, %c0_3] : memref<2x1024xf32, #tpu.memory_space<vmem>>, vector<2x1024xf32>
    %c0_4 = arith.constant 0 : index
    %c0_5 = arith.constant 0 : index
    %5 = vector.load %arg2[%c0_4, %c0_5] : memref<1024x128xbf16, #tpu.memory_space<vmem>>, vector<1024x128xbf16>
    %6 = arith.extf %5 : vector<1024x128xbf16> to vector<1024x128xf32>
    %cst = arith.constant dense<0.000000e+00> : vector<2x128xf32>
    %7 = tpu.matmul %4, %6, %cst {dimension_numbers = #tpu.dot_dimension_numbers<[1], [0], [0], [1], [0, 0, 1, 1], [], []>} : vector<2x1024xf32>, vector<1024x128xf32>, vector<2x128xf32> -> vector<2x128xf32>
    %8 = arith.addf %3, %7 : vector<2x128xf32>
    %c0_6 = arith.constant 0 : index
    %c0_7 = arith.constant 0 : index
    %9 = vector.load %arg7[%c0_6, %c0_7] : memref<2x128xf32, #tpu.memory_space<vmem>>, vector<2x128xf32>
    tpu.vector_store %arg7[%c0_6, %c0_7], %8 {strides = array<i32>} : memref<2x128xf32, #tpu.memory_space<vmem>>, vector<2x128xf32>,
    %c1_i32 = arith.constant 1 : i32
    %10 = arith.cmpi eq, %arg0, %c1_i32 : i32
    %11 = arith.extui %10 : i1 to i32
    %c0_i32_8 = arith.constant 0 : i32
    %12 = arith.cmpi ne, %11, %c0_i32_8 : i32
    scf.if %12 {
      %c0_9 = arith.constant 0 : index
      %c0_10 = arith.constant 0 : index
      %13 = vector.load %arg7[%c0_9, %c0_10] : memref<2x128xf32, #tpu.memory_space<vmem>>, vector<2x128xf32>
      %c0_11 = arith.constant 0 : index
      %c0_12 = arith.constant 0 : index
      %14 = vector.load %arg3[%c0_11, %c0_12] : memref<1x128xf32, #tpu.memory_space<vmem>>, vector<1x128xf32>
      %15 = vector.broadcast %14 : vector<1x128xf32> to vector<2x128xf32>
      %16 = arith.addf %13, %15 : vector<2x128xf32>
      %cst_13 = arith.constant 0.000000e+00 : f32
      %17 = vector.broadcast %cst_13 : f32 to vector<2x128xf32>
      %18 = arith.maximumf %16, %17 : vector<2x128xf32>
      %c0_14 = arith.constant 0 : index
      %c0_15 = arith.constant 0 : index
      %19 = vector.load %arg4[%c0_14, %c0_15] : memref<128x2xf32, #tpu.memory_space<vmem>>, vector<128x2xf32>
      %cst_16 = arith.constant dense<0.000000e+00> : vector<2x2xf32>
      %20 = tpu.matmul %18, %19, %cst_16 {dimension_numbers = #tpu.dot_dimension_numbers<[1], [0], [0], [1], [0, 0, 1, 1], [], []>} : vector<2x128xf32>, vector<128x2xf32>, vector<2x2xf32> -> vector<2x2xf32>
      %c0_17 = arith.constant 0 : index
      %c0_18 = arith.constant 0 : index
      %21 = vector.load %arg5[%c0_17, %c0_18] : memref<1x2xf32, #tpu.memory_space<vmem>>, vector<1x2xf32>
      %22 = vector.broadcast %21 : vector<1x2xf32> to vector<2x2xf32>
      %23 = arith.addf %20, %22 : vector<2x2xf32>
      %c0_19 = arith.constant 0 : index
      %c0_20 = arith.constant 0 : index
      %24 = vector.load %arg6[%c0_19, %c0_20] : memref<2x2xf32, #tpu.memory_space<vmem>>, vector<2x2xf32>
      tpu.vector_store %arg6[%c0_19, %c0_20], %23 {strides = array<i32>} : memref<2x2xf32, #tpu.memory_space<vmem>>, vector<2x2xf32>,
    } else {
    }
    return
  }
  func.func @transform_0(%arg0: i32) -> (i32, i32) {
    %c0_i32 = arith.constant 0 : i32
    %c0_i32_0 = arith.constant 0 : i32
    return %c0_i32, %arg0 : i32, i32
  }
  func.func @transform_1(%arg0: i32) -> (i32, i32) {
    %c0_i32 = arith.constant 0 : i32
    %c0_i32_0 = arith.constant 0 : i32
    return %arg0, %c0_i32 : i32, i32
  }
  func.func @transform_2(%arg0: i32) -> (i32, i32) {
    %c0_i32 = arith.constant 0 : i32
    %c0_i32_0 = arith.constant 0 : i32
    %c0_i32_1 = arith.constant 0 : i32
    return %c0_i32, %c0_i32_0 : i32, i32
  }
  func.func @transform_3(%arg0: i32) -> (i32, i32) {
    %c0_i32 = arith.constant 0 : i32
    %c0_i32_0 = arith.constant 0 : i32
    %c0_i32_1 = arith.constant 0 : i32
    return %c0_i32, %c0_i32_0 : i32, i32
  }
  func.func @transform_4(%arg0: i32) -> (i32, i32) {
    %c0_i32 = arith.constant 0 : i32
    %c0_i32_0 = arith.constant 0 : i32
    %c0_i32_1 = arith.constant 0 : i32
    return %c0_i32, %c0_i32_0 : i32, i32
  }
  func.func @transform_5(%arg0: i32) -> (i32, i32) {
    %c0_i32 = arith.constant 0 : i32
    %c0_i32_0 = arith.constant 0 : i32
    %c0_i32_1 = arith.constant 0 : i32
    return %c0_i32, %c0_i32_0 : i32, i32
  }
}

</mosaic_0001>

<bundles_post_ra>
// kernel: cnn_model_forward.5
= control target key start
LH: loop header
LB: loop body
LE: loop exit
PB: predicated region body
PF: predicated region fallthrough
CT: control target
= control target key end

     0   :  { %10 = vsyncpa [#allocation4], 0  ;;  %s1611_s18 = smov 0   ;;  %s1776_s0 = inlined_call_operand.vmem [shape: f32[2,2048], index: 0, kind: input, shape index: {}]   ;;  %s1777_s1 = inlined_call_operand.vmem [shape: bf16[2048,128], index: 1, kind: input, shape index: {}]   ;;  %s1778_s2 = inlined_call_operand.vmem [shape: f32[1,128], index: 2, kind: input, shape index: {}]   ;;  %s1779_s3 = inlined_call_operand.vmem [shape: f32[128,2], index: 3, kind: input, shape index: {}]   ;;  %s1780_s4 = inlined_call_operand.vmem [shape: f32[1,2], index: 4, kind: input, shape index: {}]   ;;  %s1781_s5 = inlined_call_operand.hbm [shape: f32[2,2], index: 5, kind: output, shape index: {}]  }
   0x1 LB: > { %s1617_s19 = sadd.s32 4294967295, %s1574_s18   ;;  %p995_p0 = scmp.ge.s32.totalorder %s1574_s18, 1  ;;  %s1574_s18 = sphi %s1611_s18, %s16_s18  }
   0x2   : > { %p195_p1 = scmp.lt.s32.totalorder %s1574_s18, 3 }
   0x4   : > { %p196_p2 = pnand %p995_p0, %p195_p1 }
   0x5   : > { %s996_s20 = sshll.u32 (!%p196_p2), %s1617_s19, 3  ;;  %s998_s21 = sshll.u32 (!%p196_p2), %s1617_s19, 7 }
   0x6   : > { %199 = sbr.rel (%p196_p2) target bundleno = 540 (0x21c), region = 40  ;;  %p224_p3 = scmp.lt.s32.totalorder (!%p196_p2), %s996_s20, 15 }
   0x7   : > { %p230_p4 = scmp.lt.s32.totalorder (!%p196_p2), %s998_s21, 255  ;;  %p1000_p5 = scmp.ne.s32.totalorder (!%p196_p2), %s1617_s19, 0 }
   0xb   : > { %s1783_s20 = smov (!%p224_p3, %s996_s20), 15  ;;  %s1785_s21 = smov (!%p230_p4, %s998_s21), 255 }
   0xc   : > { %s997_s22 = sshll.u32 %s1783_s20, 1  ;;  %s999_s26 = sshll.u32 %s1785_s21, 2 }
   0xd   : > { %s1626_s25 = scalar_lea.vmem %s1776_s0, %s997_s22  ;;  %s1631_s29 = scalar_lea.vmem %s1777_s1, %s999_s26 }
   0xe   : > { %238 = sbr.rel (%p1000_p5) target bundleno = 21 (0x15), region = 44 }
  0x13   : > { %v1576_v0 = vmov 0.0  }
  0x14   : > { %239 = vst [vmem:[#allocation2] sm:$0x3] %v1576_v0 }
  0x15 PF: > { %v1278_v1 = vld [vmem:[%s1631_s29 + $0x78] sm:$0xff]   ;;  %v1277_v9 = vld [vmem:[%s1631_s29 + $0x70] sm:$0xff]   ;;  %v1276_v21 = vld [vmem:[%s1631_s29 + $0x68] sm:$0xff]   ;;  %v505_v53 = vlaneseq  ;;  %v1577_v60 = vmov 1983009808   ;;  %p1001_p6 = scmp.ne.s32.totalorder %s1617_s19, 1 }
  0x16   : > { %v1294_v2 = vld [vmem:[%s1631_s29 + $0xf8] sm:$0xff]   ;;  %v1070_v4 = vunpack.c.l.bf16 %v1278_v1  ;;  %v1071_v5 = vunpack.c.h.bf16 %v1278_v1  ;;  %v1293_v10 = vld [vmem:[%s1631_s29 + $0xf0] sm:$0xff]   ;;  %v1067_v17 = vunpack.c.h.bf16 %v1277_v9  ;;  %v1292_v22 = vld [vmem:[%s1631_s29 + $0xe8] sm:$0xff]   ;;  %v1066_v23 = vunpack.c.l.bf16 %v1277_v9 }
  0x17   : > { %v1270_v3 = vld [vmem:[%s1631_s29 + $0x38] sm:$0xff]   ;;  %v1134_v6 = vunpack.c.l.bf16 %v1294_v2  ;;  %v1135_v7 = vunpack.c.h.bf16 %v1294_v2  ;;  %v1269_v15 = vld [vmem:[%s1631_s29 + $0x30] sm:$0xff]   ;;  %v1131_v18 = vunpack.c.h.bf16 %v1293_v10  ;;  %v1130_v24 = vunpack.c.l.bf16 %v1293_v10  ;;  %v1268_v25 = vld [vmem:[%s1631_s29 + $0x28] sm:$0xff]  }
  0x18   : > { %v1286_v8 = vld [vmem:[%s1631_s29 + $0xb8] sm:$0xff]   ;;  %v1038_v11 = vunpack.c.l.bf16 %v1270_v3  ;;  %v1039_v12 = vunpack.c.h.bf16 %v1270_v3  ;;  %v1285_v16 = vld [vmem:[%s1631_s29 + $0xb0] sm:$0xff]   ;;  %1327 = vmatprep.subr.mxu0 %v1071_v5  ;;  %v1035_v19 = vunpack.c.h.bf16 %v1269_v15  ;;  %v1284_v26 = vld [vmem:[%s1631_s29 + $0xa8] sm:$0xff]   ;;  %v1034_v27 = vunpack.c.l.bf16 %v1269_v15 }
  0x19   : > { %v1102_v13 = vunpack.c.l.bf16 %v1286_v8  ;;  %v1103_v14 = vunpack.c.h.bf16 %v1286_v8  ;;  %1362 = vmatprep.subr.mxu1 %v1135_v7  ;;  %v1099_v20 = vunpack.c.h.bf16 %v1285_v16  ;;  %v1098_v28 = vunpack.c.l.bf16 %v1285_v16  ;;  %v1275_v33 = vld [vmem:[%s1631_s29 + $0x60] sm:$0xff]   ;;  %v1274_v45 = vld [vmem:[%s1631_s29 + $0x58] sm:$0xff]   ;;  %v1273_v58 = vld [vmem:[%s1631_s29 + $0x50] sm:$0xff]  }
  0x1a   : > { %1328 = vmatpush3.msra.mxu0 %v1039_v12  ;;  %v1063_v29 = vunpack.c.h.bf16 %v1276_v21  ;;  %v1127_v30 = vunpack.c.h.bf16 %v1292_v22  ;;  %v1031_v31 = vunpack.c.h.bf16 %v1268_v25  ;;  %v1095_v32 = vunpack.c.h.bf16 %v1284_v26  ;;  %v1291_v34 = vld [vmem:[%s1631_s29 + $0xe0] sm:$0xff]   ;;  %v1290_v46 = vld [vmem:[%s1631_s29 + $0xd8] sm:$0xff]   ;;  %v1289_v59 = vld [vmem:[%s1631_s29 + $0xd0] sm:$0xff]  }
  0x1b   : > { %1363 = vmatpush3.msra.mxu1 %v1103_v14  ;;  %1329 = vmatprep.subr.mxu0 %v1070_v4  ;;  %v1062_v35 = vunpack.c.l.bf16 %v1276_v21  ;;  %v1126_v36 = vunpack.c.l.bf16 %v1292_v22  ;;  %v1267_v37 = vld [vmem:[%s1631_s29 + $0x20] sm:$0xff]   ;;  %v1030_v39 = vunpack.c.l.bf16 %v1268_v25  ;;  %v1094_v40 = vunpack.c.l.bf16 %v1284_v26  ;;  %v1266_v49 = vld [vmem:[%s1631_s29 + $0x18] sm:$0xff]   ;;  %v1265_v0 = vld [vmem:[%s1631_s29 + $0x10] sm:$0xff]  }
  0x1c   : > { %1364 = vmatprep.subr.mxu1 %v1134_v6  ;;  %1330 = vmatpush3.msra.mxu0 %v1038_v11  ;;  %v1283_v38 = vld [vmem:[%s1631_s29 + $0xa0] sm:$0xff]   ;;  %v1059_v41 = vunpack.c.h.bf16 %v1275_v33  ;;  %v1123_v42 = vunpack.c.h.bf16 %v1291_v34  ;;  %v1027_v43 = vunpack.c.h.bf16 %v1267_v37  ;;  %v1058_v47 = vunpack.c.l.bf16 %v1275_v33  ;;  %v1282_v50 = vld [vmem:[%s1631_s29 + $0x98] sm:$0xff]   ;;  %v1281_v1 = vld [vmem:[%s1631_s29 + $0x90] sm:$0xff]  }
  0x1d   : > { %1365 = vmatpush3.msra.mxu1 %v1102_v13  ;;  %1331 = vmatprep.subr.mxu0 %v1067_v17  ;;  %v1091_v44 = vunpack.c.h.bf16 %v1283_v38  ;;  %v1122_v48 = vunpack.c.l.bf16 %v1291_v34  ;;  %v1026_v51 = vunpack.c.l.bf16 %v1267_v37  ;;  %v1090_v52 = vunpack.c.l.bf16 %v1283_v38  ;;  %v1272_v10 = vld [vmem:[%s1631_s29 + $0x48] sm:$0xff]   ;;  %v241_v12 = vld [vmem:[%s1626_s25] sm:$0xff] }
  0x1e   : > { %1366 = vmatprep.subr.mxu1 %v1131_v18  ;;  %1332 = vmatpush3.msra.mxu0 %v1035_v19  ;;  %v1055_v54 = vunpack.c.h.bf16 %v1274_v45  ;;  %v1119_v55 = vunpack.c.h.bf16 %v1290_v46  ;;  %v1023_v56 = vunpack.c.h.bf16 %v1266_v49  ;;  %v1087_v57 = vunpack.c.h.bf16 %v1282_v50  ;;  %v1288_v11 = vld [vmem:[%s1631_s29 + $0xc8] sm:$0xff]   ;;  %v1271_v25 = vld [vmem:[%s1631_s29 + $0x40] sm:$0xff]  }
  0x1f   : > { %1367 = vmatpush3.msra.mxu1 %v1099_v20  ;;  %1333 = vmatprep.subr.mxu0 %v1066_v23  ;;  %v503_v61 = vunpack.c.l.s4 %v1577_v60  ;;  %v1054_v62 = vunpack.c.l.bf16 %v1274_v45  ;;  %v1118_v63 = vunpack.c.l.bf16 %v1290_v46  ;;  %v1022_v2 = vunpack.c.l.bf16 %v1266_v49  ;;  %v1264_v15 = vld [vmem:[%s1631_s29 + $0x8] sm:$0xff]   ;;  %v1287_v26 = vld [vmem:[%s1631_s29 + $0xc0] sm:$0xff]  }
  0x20   : > { %1368 = vmatprep.subr.mxu1 %v1130_v24  ;;  %1334 = vmatpush3.msra.mxu0 %v1034_v27  ;;  %v1086_v3 = vunpack.c.l.bf16 %v1282_v50  ;;  %v506_v5 = vshrl.u32 %v505_v53, 7  ;;  %v1051_v6 = vunpack.c.h.bf16 %v1273_v58  ;;  %v1115_v7 = vunpack.c.h.bf16 %v1289_v59  ;;  %v1280_v16 = vld [vmem:[%s1631_s29 + $0x88] sm:$0xff]   ;;  %v1309_v53 = vld [vmem:[%s1631_s29 + $0x170] sm:$0xff]  }
  0x21   : > { %1369 = vmatpush3.msra.mxu1 %v1098_v28  ;;  %1335 = vmatprep.subr.mxu0 %v1063_v29  ;;  %v504_v4 = vunpack.c.0.s8 %v503_v61  ;;  %v1019_v8 = vunpack.c.h.bf16 %v1265_v0  ;;  %v1083_v9 = vunpack.c.h.bf16 %v1281_v1  ;;  %v1050_v13 = vunpack.c.l.bf16 %v1273_v58  ;;  %v1009_v29 = vld [vmem:[%s1631_s29] sm:$0xff]   ;;  %v1317_v58 = vld [vmem:[%s1631_s29 + $0x1b0] sm:$0xff]  }
  0x22   : > { %1370 = vmatprep.subr.mxu1 %v1127_v30  ;;  %1336 = vmatpush3.msra.mxu0 %v1031_v31  ;;  %v1114_v14 = vunpack.c.l.bf16 %v1289_v59  ;;  %v1018_v17 = vunpack.c.l.bf16 %v1265_v0  ;;  %v1082_v18 = vunpack.c.l.bf16 %v1281_v1  ;;  %v1047_v20 = vunpack.c.h.bf16 %v1272_v10  ;;  %v1279_v30 = vld [vmem:[%s1631_s29 + $0x80] sm:$0xff]   ;;  %v1308_v1 = vld [vmem:[%s1631_s29 + $0x168] sm:$0xff]  }
  0x23   : > { %1371 = vmatpush3.msra.mxu1 %v1095_v32  ;;  %1337 = vmatprep.subr.mxu0 %v1062_v35  ;;  %v1663_v19 = vsub.s32 %v504_v4, %v506_v5  ;;  %v1111_v21 = vunpack.c.h.bf16 %v1288_v11  ;;  %v501_v22 = vcombine.high %v241_v12, %v241_v12  ;;  %v1015_v23 = vunpack.c.h.bf16 %v1264_v15  ;;  %v1300_v5 = vld [vmem:[%s1631_s29 + $0x128] sm:$0xff]  }
  0x24   : > { %1372 = vmatprep.subr.mxu1 %v1126_v36  ;;  %1338 = vmatpush3.msra.mxu0 %v1030_v39  ;;  %v1079_v24 = vunpack.c.h.bf16 %v1280_v16  ;;  %v1046_v27 = vunpack.c.l.bf16 %v1272_v10  ;;  %v1110_v28 = vunpack.c.l.bf16 %v1288_v11  ;;  %v1014_v31 = vunpack.c.l.bf16 %v1264_v15 }
  0x25   : > { %1373 = vmatpush3.msra.mxu1 %v1094_v40  ;;  %1339 = vmatprep.subr.mxu0 %v1059_v41  ;;  %v1078_v32 = vunpack.c.l.bf16 %v1280_v16  ;;  %v508_v33 = vrot.slane %v241_v12, %v1663_v19  ;;  %v1043_v34 = vunpack.c.h.bf16 %v1271_v25  ;;  %v1107_v35 = vunpack.c.h.bf16 %v1287_v26 }
  0x26   : > { %1374 = vmatprep.subr.mxu1 %v1123_v42  ;;  %1340 = vmatpush3.msra.mxu0 %v1027_v43  ;;  %v515_v36 = vrot.slane %v501_v22, %v1663_v19  ;;  %v1011_v37 = vunpack.c.h.bf16 %v1009_v29  ;;  %v1075_v38 = vunpack.c.h.bf16 %v1279_v30  ;;  %v1042_v39 = vunpack.c.l.bf16 %v1271_v25  ;;  %v1310_v43 = vld [vmem:[%s1631_s29 + $0x178] sm:$0xff]  }
  0x27   : > { %1375 = vmatpush3.msra.mxu1 %v1091_v44  ;;  %1341 = vmatprep.subr.mxu0 %v1058_v47  ;;  %v1106_v40 = vunpack.c.l.bf16 %v1287_v26  ;;  %v1010_v41 = vunpack.c.l.bf16 %v1009_v29  ;;  %v516_v42 = vcombine.high %v508_v33, %v508_v33  ;;  %v1326_v44 = vld [vmem:[%s1631_s29 + $0x1f8] sm:$0xff]   ;;  %v1074_v45 = vunpack.c.l.bf16 %v1279_v30 }
  0x28   : > { %1376 = vmatprep.subr.mxu1 %v1122_v48  ;;  %1342 = vmatpush3.msra.mxu0 %v1026_v51  ;;  %v517_v46 = vcombine.high %v515_v36, %v515_v36  ;;  %v1302_v47 = vld [vmem:[%s1631_s29 + $0x138] sm:$0xff]   ;;  %v1199_v49 = vunpack.c.h.bf16 %v1310_v43  ;;  %v1263_v50 = vunpack.c.h.bf16 %v1326_v44  ;;  %v1195_v61 = vunpack.c.h.bf16 %v1309_v53 }
  0x29   : > { %1377 = vmatpush3.msra.mxu1 %v1090_v52  ;;  %1343 = vmatprep.subr.mxu0 %v1055_v54  ;;  %v1318_v48 = vld [vmem:[%s1631_s29 + $0x1b8] sm:$0xff]   ;;  %v1167_v51 = vunpack.c.h.bf16 %v1302_v47  ;;  %v1325_v54 = vld [vmem:[%s1631_s29 + $0x1f0] sm:$0xff]   ;;  %v1166_v59 = vunpack.c.l.bf16 %v1302_v47  ;;  %v1227_v0 = vunpack.c.h.bf16 %v1317_v58  ;;  %v1159_v11 = vunpack.c.h.bf16 %v1300_v5 }
  0x2a   : > { %1378 = vmatprep.subr.mxu1 %v1119_v55  ;;  %1344 = vmatpush3.msra.mxu0 %v1023_v56  ;;  %v1231_v52 = vunpack.c.h.bf16 %v1318_v48  ;;  %v1198_v55 = vunpack.c.l.bf16 %v1310_v43  ;;  %v1262_v56 = vunpack.c.l.bf16 %v1326_v44  ;;  %v1230_v60 = vunpack.c.l.bf16 %v1318_v48  ;;  %v1306_v26 = vld [vmem:[%s1631_s29 + $0x158] sm:$0xff]   ;;  %v1313_v43 = vld [vmem:[%s1631_s29 + $0x190] sm:$0xff]  }
  0x2b   : > { %1379 = vmatpush3.msra.mxu1 %v1087_v57  ;;  %1345 = vmatprep.subr.mxu0 %v1054_v62  ;;  %v1301_v57 = vld [vmem:[%s1631_s29 + $0x130] sm:$0xff]   ;;  %v1259_v62 = vunpack.c.h.bf16 %v1325_v54  ;;  %v1258_v4 = vunpack.c.l.bf16 %v1325_v54  ;;  %v1190_v15 = vunpack.c.l.bf16 %v1308_v1  ;;  %v1298_v30 = vld [vmem:[%s1631_s29 + $0x118] sm:$0xff]  }
  0x2c   : > { %1380 = vmatprep.subr.mxu1 %v1118_v63  ;;  %1346 = vmatpush3.msra.mxu0 %v1022_v2  ;;  %v1163_v63 = vunpack.c.h.bf16 %v1301_v57  ;;  %v1324_v2 = vld [vmem:[%s1631_s29 + $0x1e8] sm:$0xff]   ;;  %v1150_v44 = vunpack.c.l.bf16 %v1298_v30 }
  0x2d   : > { %1381 = vmatpush3.msra.mxu1 %v1086_v3  ;;  %1347 = vmatprep.subr.mxu0 %v1051_v6  ;;  %v1194_v3 = vunpack.c.l.bf16 %v1309_v53  ;;  %v1316_v6 = vld [vmem:[%s1631_s29 + $0x1a8] sm:$0xff]   ;;  %v1255_v10 = vunpack.c.h.bf16 %v1324_v2  ;;  %v1254_v16 = vunpack.c.l.bf16 %v1324_v2 }
  0x2e   : > { %1382 = vmatprep.subr.mxu1 %v1115_v7  ;;  %1348 = vmatpush3.msra.mxu0 %v1019_v8  ;;  %v1162_v7 = vunpack.c.l.bf16 %v1301_v57  ;;  %v1226_v8 = vunpack.c.l.bf16 %v1317_v58  ;;  %v1223_v12 = vunpack.c.h.bf16 %v1316_v6  ;;  %v1210_v58 = vunpack.c.l.bf16 %v1313_v43 }
  0x2f   : > { %1383 = vmatpush3.msra.mxu1 %v1083_v9  ;;  %1349 = vmatprep.subr.mxu0 %v1050_v13  ;;  %v1191_v9 = vunpack.c.h.bf16 %v1308_v1  ;;  %v1307_v13 = vld [vmem:[%s1631_s29 + $0x160] sm:$0xff]  }
  0x30   : > { %1384 = vmatprep.subr.mxu1 %v1114_v14  ;;  %1350 = vmatpush3.msra.mxu0 %v1018_v17  ;;  %v1323_v14 = vld [vmem:[%s1631_s29 + $0x1e0] sm:$0xff]   ;;  %v1187_v22 = vunpack.c.h.bf16 %v1307_v13 }
  0x31   : > { %1385 = vmatpush3.msra.mxu1 %v1082_v18  ;;  %1351 = vmatprep.subr.mxu0 %v1047_v20  ;;  %v1299_v17 = vld [vmem:[%s1631_s29 + $0x120] sm:$0xff]   ;;  %v1158_v20 = vunpack.c.l.bf16 %v1300_v5  ;;  %v1250_v29 = vunpack.c.l.bf16 %v1323_v14 }
  0x32   : > { %1386 = vmatprep.subr.mxu1 %v1111_v21  ;;  %1352 = vmatpush3.msra.mxu0 %v1015_v23  ;;  %v1315_v18 = vld [vmem:[%s1631_s29 + $0x1a0] sm:$0xff]   ;;  %v1222_v21 = vunpack.c.l.bf16 %v1316_v6  ;;  %v1251_v23 = vunpack.c.h.bf16 %v1323_v14 }
  0x33   : > { %1387 = vmatpush3.msra.mxu1 %v1079_v24  ;;  %1353 = vmatprep.subr.mxu0 %v1046_v27  ;;  %v1155_v24 = vunpack.c.h.bf16 %v1299_v17  ;;  %v1219_v25 = vunpack.c.h.bf16 %v1315_v18  ;;  %v1322_v27 = vld [vmem:[%s1631_s29 + $0x1d8] sm:$0xff]   ;;  %v1319_v1 = vld [vmem:[%s1631_s29 + $0x1c0] sm:$0xff]  }
  0x34   : > { %1388 = vmatprep.subr.mxu1 %v1110_v28  ;;  %1354 = vmatpush3.msra.mxu0 %v1014_v31  ;;  %v1186_v28 = vunpack.c.l.bf16 %v1307_v13  ;;  %v1314_v31 = vld [vmem:[%s1631_s29 + $0x198] sm:$0xff]   ;;  %v1311_v5 = vld [vmem:[%s1631_s29 + $0x180] sm:$0xff]  }
  0x35   : > { %1389 = vmatpush3.msra.mxu1 %v1078_v32  ;;  %1355 = vmatprep.subr.mxu0 %v1043_v34  ;;  %v1154_v32 = vunpack.c.l.bf16 %v1299_v17  ;;  %v1183_v34 = vunpack.c.h.bf16 %v1306_v26  ;;  %v1203_v13 = vunpack.c.h.bf16 %v1311_v5 }
  0x36   : > { %1390 = vmatprep.subr.mxu1 %v1107_v35  ;;  %1356 = vmatpush3.msra.mxu0 %v1011_v37  ;;  %v1247_v35 = vunpack.c.h.bf16 %v1322_v27  ;;  %v1215_v37 = vunpack.c.h.bf16 %v1314_v31 }
  0x37   : > { %1391 = vmatpush3.msra.mxu1 %v1075_v38  ;;  %1357 = vmatprep.subr.mxu0 %v1042_v39  ;;  %v1305_v38 = vld [vmem:[%s1631_s29 + $0x150] sm:$0xff]  }
  0x38   : > { %1392 = vmatprep.subr.mxu1 %v1106_v40  ;;  %1358 = vmatpush3.msra.mxu0 %v1010_v41  ;;  %v1321_v39 = vld [vmem:[%s1631_s29 + $0x1d0] sm:$0xff]   ;;  %v1182_v40 = vunpack.c.l.bf16 %v1306_v26  ;;  %v1246_v41 = vunpack.c.l.bf16 %v1322_v27  ;;  %v1178_v53 = vunpack.c.l.bf16 %v1305_v38 }
  0x39   : > { %607 = vmatprep.mubr.f32.mxu0 %v516_v42  ;;  %1393 = vmatpush3.msra.mxu1 %v1074_v45  ;;  %v1297_v42 = vld [vmem:[%s1631_s29 + $0x110] sm:$0xff]   ;;  %v1214_v45 = vunpack.c.l.bf16 %v1314_v31  ;;  %v1243_v47 = vunpack.c.h.bf16 %v1321_v39  ;;  %v1242_v54 = vunpack.c.l.bf16 %v1321_v39 }
  0x3a   : > { %677 = vmatprep.mubr.f32.mxu1 %v517_v46  ;;  %608 = vmatmul.mubr.f32.vlgmr.msra.gmra.mxu0 %v508_v33  ;;  %v1218_v33 = vunpack.c.l.bf16 %v1315_v18  ;;  %v1179_v46 = vunpack.c.h.bf16 %v1305_v38  ;;  %v1147_v48 = vunpack.c.h.bf16 %v1297_v42  ;;  %v1146_v57 = vunpack.c.l.bf16 %v1297_v42 }
  0x3b   : > { %678 = vmatmul.mubr.f32.vlgmr.msra.gmra.mxu1 %v515_v36  ;;  %1397 = vmatprep.subr.mxu0 %v1199_v49  ;;  %v1151_v36 = vunpack.c.h.bf16 %v1298_v30  ;;  %v1211_v49 = vunpack.c.h.bf16 %v1313_v43  ;;  %v1202_v18 = vunpack.c.l.bf16 %v1311_v5 }
  0x3c   : > { %1432 = vmatprep.subr.mxu1 %v1263_v50  ;;  %1398 = vmatpush3.msra.mxu0 %v1167_v51  ;;  %v1304_v50 = vld [vmem:[%s1631_s29 + $0x148] sm:$0xff]  }
  0x3d   : > { %1433 = vmatpush3.msra.mxu1 %v1231_v52  ;;  %1399 = vmatprep.subr.mxu0 %v1198_v55  ;;  %v1320_v51 = vld [vmem:[%s1631_s29 + $0x1c8] sm:$0xff]   ;;  %v1174_v2 = vunpack.c.l.bf16 %v1304_v50 }
  0x3e   : > { %1434 = vmatprep.subr.mxu1 %v1262_v56  ;;  %1400 = vmatpush3.msra.mxu0 %v1166_v59  ;;  %v242_v52 = vld [vmem:[%s1626_s25 + $0x8] sm:$0xff]  ;;  %v1175_v59 = vunpack.c.h.bf16 %v1304_v50 }
  0x3f   : > { %1435 = vmatpush3.msra.mxu1 %v1230_v60  ;;  %1401 = vmatprep.subr.mxu0 %v1195_v61  ;;  %v1296_v55 = vld [vmem:[%s1631_s29 + $0x108] sm:$0xff]   ;;  %v1239_v60 = vunpack.c.h.bf16 %v1320_v51  ;;  %v518_v61 = vcombine.high %v242_v52, %v242_v52 }
  0x40   : > { %1436 = vmatprep.subr.mxu1 %v1259_v62  ;;  %1402 = vmatpush3.msra.mxu0 %v1163_v63  ;;  %v1312_v56 = vld [vmem:[%s1631_s29 + $0x188] sm:$0xff]   ;;  %v1143_v62 = vunpack.c.h.bf16 %v1296_v55  ;;  %v1142_v6 = vunpack.c.l.bf16 %v1296_v55 }
  0x41   : > { %1437 = vmatpush3.msra.mxu1 %v1227_v0  ;;  %1403 = vmatprep.subr.mxu0 %v1194_v3  ;;  %v1207_v63 = vunpack.c.h.bf16 %v1312_v56  ;;  %v1303_v0 = vld [vmem:[%s1631_s29 + $0x140] sm:$0xff]   ;;  %v1238_v3 = vunpack.c.l.bf16 %v1320_v51 }
  0x42   : > { %1438 = vmatprep.subr.mxu1 %v1258_v4  ;;  %1404 = vmatpush3.msra.mxu0 %v1162_v7  ;;  %v1295_v4 = vld [vmem:[%s1631_s29 + $0x100] sm:$0xff]   ;;  %v1206_v7 = vunpack.c.l.bf16 %v1312_v56  ;;  %v1170_v14 = vunpack.c.l.bf16 %v1303_v0 }
  0x43   : > { %1439 = vmatpush3.msra.mxu1 %v1226_v8  ;;  %1405 = vmatprep.subr.mxu0 %v1191_v9  ;;  %v525_v8 = vrot.slane %v242_v52, %v1663_v19  ;;  %v1171_v9 = vunpack.c.h.bf16 %v1303_v0 }
  0x44   : > { %1440 = vmatprep.subr.mxu1 %v1255_v10  ;;  %1406 = vmatpush3.msra.mxu0 %v1159_v11  ;;  %v1235_v10 = vunpack.c.h.bf16 %v1319_v1  ;;  %v532_v11 = vrot.slane %v518_v61, %v1663_v19 }
  0x45   : > { %1441 = vmatpush3.msra.mxu1 %v1223_v12  ;;  %1407 = vmatprep.subr.mxu0 %v1190_v15  ;;  %v1139_v12 = vunpack.c.h.bf16 %v1295_v4  ;;  %v1234_v15 = vunpack.c.l.bf16 %v1319_v1  ;;  %v533_v17 = vcombine.high %v525_v8, %v525_v8 }
  0x46   : > { %1442 = vmatprep.subr.mxu1 %v1254_v16  ;;  %1408 = vmatpush3.msra.mxu0 %v1158_v20  ;;  %v1138_v16 = vunpack.c.l.bf16 %v1295_v4  ;;  %v534_v20 = vcombine.high %v532_v11, %v532_v11 }
  0x47   : > { %1443 = vmatpush3.msra.mxu1 %v1222_v21  ;;  %1409 = vmatprep.subr.mxu0 %v1187_v22 }
  0x48   : > { %1444 = vmatprep.subr.mxu1 %v1251_v23  ;;  %1410 = vmatpush3.msra.mxu0 %v1155_v24 }
  0x49   : > { %1445 = vmatpush3.msra.mxu1 %v1219_v25  ;;  %1411 = vmatprep.subr.mxu0 %v1186_v28 }
  0x4a   : > { %1446 = vmatprep.subr.mxu1 %v1250_v29  ;;  %1412 = vmatpush3.msra.mxu0 %v1154_v32 }
  0x4b   : > { %1447 = vmatpush3.msra.mxu1 %v1218_v33  ;;  %1413 = vmatprep.subr.mxu0 %v1183_v34  ;;  %v240_v34 = vld [vmem:[#allocation2] sm:$0x3] }
  0x4c   : > { %1448 = vmatprep.subr.mxu1 %v1247_v35  ;;  %1414 = vmatpush3.msra.mxu0 %v1151_v36 }
  0x4d   : > { %1449 = vmatpush3.msra.mxu1 %v1215_v37  ;;  %1415 = vmatprep.subr.mxu0 %v1182_v40 }
  0x4e   : > { %1450 = vmatprep.subr.mxu1 %v1246_v41  ;;  %1416 = vmatpush3.msra.mxu0 %v1150_v44 }
  0x4f   : > { %1451 = vmatpush3.msra.mxu1 %v1214_v45  ;;  %1417 = vmatprep.subr.mxu0 %v1179_v46 }
  0x50   : > { %1452 = vmatprep.subr.mxu1 %v1243_v47  ;;  %1418 = vmatpush3.msra.mxu0 %v1147_v48 }
  0x51   : > { %1453 = vmatpush3.msra.mxu1 %v1211_v49  ;;  %1419 = vmatprep.subr.mxu0 %v1178_v53 }
  0x52   : > { %1454 = vmatprep.subr.mxu1 %v1242_v54  ;;  %1420 = vmatpush3.msra.mxu0 %v1146_v57 }
  0x53   : > { %1455 = vmatpush3.msra.mxu1 %v1210_v58  ;;  %1421 = vmatprep.subr.mxu0 %v1175_v59 }
  0x54   : > { %1456 = vmatprep.subr.mxu1 %v1239_v60  ;;  %1422 = vmatpush3.msra.mxu0 %v1143_v62 }
  0x55   : > { %1457 = vmatpush3.msra.mxu1 %v1207_v63  ;;  %1423 = vmatprep.subr.mxu0 %v1174_v2 }
  0x56   : > { %1458 = vmatprep.subr.mxu1 %v1238_v3  ;;  %1424 = vmatpush3.msra.mxu0 %v1142_v6 }
  0x57   : > { %1459 = vmatpush3.msra.mxu1 %v1206_v7  ;;  %1425 = vmatprep.subr.mxu0 %v1171_v9 }
  0x58   : > { %1460 = vmatprep.subr.mxu1 %v1235_v10  ;;  %1426 = vmatpush3.msra.mxu0 %v1139_v12 }
  0x59   : > { %1461 = vmatpush3.msra.mxu1 %v1203_v13  ;;  %1427 = vmatprep.subr.mxu0 %v1170_v14 }
  0x5a   : > { %1462 = vmatprep.subr.mxu1 %v1234_v15  ;;  %1428 = vmatpush3.msra.mxu0 %v1138_v16 }
  0x5b   : > { %747 = vmatprep.mubr.f32.mxu0 %v533_v17  ;;  %1463 = vmatpush3.msra.mxu1 %v1202_v18 }
  0x5c   : > { %817 = vmatprep.mubr.f32.mxu1 %v534_v20  ;;  %748 = vmatmul.mubr.f32.vlgmr.msra.gmra.mxu0 %v525_v8 }
  0x5d   : > { %818 = vmatmul.mubr.f32.vlgmr.msra.gmra.mxu1 %v532_v11 }
  0xfa   : > { %v1359_v19 = vpop.f32.mrf.mxu0 }
  0xfb   : > { %v1394_v21 = vpop.f32.mrf.mxu1 }
  0xfc   : > { %v1360_v22 = vpop.f32.mrf.mxu0 }
  0xfd   : > { %v1395_v23 = vpop.f32.mrf.mxu1  ;;  %v1361_v24 = vadd.f32 %v1360_v22, %v1359_v19 }
  0xfe   : > { %v1396_v25 = vadd.f32 %v1395_v23, %v1394_v21 }
 0x100   : > { %v680_v30 = vadd.f32 %v1396_v25, %v1361_v24 }
 0x11c   : > { %v1429_v26 = vpop.f32.mrf.mxu0 }
 0x11d   : > { %v1464_v27 = vpop.f32.mrf.mxu1 }
 0x11e   : > { %v1430_v28 = vpop.f32.mrf.mxu0 }
 0x11f   : > { %v1465_v29 = vpop.f32.mrf.mxu1  ;;  %v1431_v31 = vadd.f32 %v1430_v28, %v1429_v26 }
 0x120   : > { %v1466_v33 = vadd.f32 %v1465_v29, %v1464_v27 }
 0x121   : > { %v750_v32 = vadd.f32 %v1431_v31, %v680_v30 }
 0x123   : > { %v820_v35 = vadd.f32 %v1466_v33, %v750_v32  ;;  %828 = sbr.rel (%p1001_p6) target bundleno = 525 (0x20d), region = 48 }
 0x125   : > { %v823_v36 = vadd.f32 %v820_v35, %v240_v34 }
 0x127   : > { %824 = vst [vmem:[#allocation2] sm:$0x3] %v823_v36 }
 0x128   : > { %v854_v37 = vld [vmem:[%s1779_s3 + $0x78] sm:$0xff]  ;;  %v1578_v38 = vmov 0.0   ;;  %v853_v39 = vld [vmem:[%s1779_s3 + $0x70] sm:$0xff]  ;;  %vm1579_vm0 = vmmov 0   ;;  %v852_v40 = vld [vmem:[%s1779_s3 + $0x68] sm:$0xff]  ;;  %vm932_vm1 = vcmask 9216  }
 0x129   : > { %1484 = vmatprep.subr.mxu0 %v1578_v38  ;;  %1516 = vmatprep.mubr.msk.f32.mxu0 %vm1579_vm0, %v1578_v38  ;;  %v851_v41 = vld [vmem:[%s1779_s3 + $0x60] sm:$0xff]  ;;  %v850_v42 = vld [vmem:[%s1779_s3 + $0x58] sm:$0xff]  ;;  %v849_v43 = vld [vmem:[%s1779_s3 + $0x50] sm:$0xff] }
 0x12a   : > { %1485 = vmatpush3.msra.mxu0 %v854_v37  ;;  %v848_v44 = vld [vmem:[%s1779_s3 + $0x48] sm:$0xff]  ;;  %v847_v45 = vld [vmem:[%s1779_s3 + $0x40] sm:$0xff]  ;;  %v846_v46 = vld [vmem:[%s1779_s3 + $0x38] sm:$0xff] }
 0x12b   : > { %1486 = vmatprep.subr.mxu0 %v1578_v38  ;;  %v845_v47 = vld [vmem:[%s1779_s3 + $0x30] sm:$0xff]  ;;  %v844_v48 = vld [vmem:[%s1779_s3 + $0x28] sm:$0xff]  ;;  %v843_v49 = vld [vmem:[%s1779_s3 + $0x20] sm:$0xff] }
 0x12c   : > { %1487 = vmatpush3.msra.mxu0 %v853_v39  ;;  %v1002_v51 = vld [vmem:[%s1778_s2] ss:$0 sm:$0xff]  ;;  %v842_v52 = vld [vmem:[%s1779_s3 + $0x18] sm:$0xff]  ;;  %v841_v53 = vld [vmem:[%s1779_s3 + $0x10] sm:$0xff] }
 0x12d   : > { %1488 = vmatprep.subr.mxu0 %v1578_v38  ;;  %v840_v55 = vld [vmem:[%s1779_s3 + $0x8] sm:$0xff]  ;;  %v839_v56 = vld [vmem:[%s1779_s3] sm:$0xff] }
 0x12e   : > { %1489 = vmatpush3.msra.mxu0 %v852_v40  ;;  %v829_v50 = vld [vmem:[#allocation2] sm:$0x3] }
 0x12f   : > { %1490 = vmatprep.subr.mxu0 %v1578_v38  ;;  %v837_v54 = vadd.f32 %v1002_v51, %v829_v50  ;;  %v1003_v58 = vld [vmem:[%s1780_s4] ss:$0 sm:$0xff] }
 0x130   : > { %1491 = vmatpush3.msra.mxu0 %v851_v41 }
 0x131   : > { %1492 = vmatprep.subr.mxu0 %v1578_v38  ;;  %v838_v57 = vmax.f32 %v837_v54, 0.0 }
 0x132   : > { %1493 = vmatpush3.msra.mxu0 %v850_v42 }
 0x133   : > { %1494 = vmatprep.subr.mxu0 %v1578_v38 }
 0x134   : > { %1495 = vmatpush3.msra.mxu0 %v849_v43 }
 0x135   : > { %1496 = vmatprep.subr.mxu0 %v1578_v38 }
 0x136   : > { %1497 = vmatpush3.msra.mxu0 %v848_v44 }
 0x137   : > { %1498 = vmatprep.subr.mxu0 %v1578_v38 }
 0x138   : > { %1499 = vmatpush3.msra.mxu0 %v847_v45 }
 0x139   : > { %1500 = vmatprep.subr.mxu0 %v1578_v38 }
 0x13a   : > { %1501 = vmatpush3.msra.mxu0 %v846_v46 }
 0x13b   : > { %1502 = vmatprep.subr.mxu0 %v1578_v38 }
 0x13c   : > { %1503 = vmatpush3.msra.mxu0 %v845_v47 }
 0x13d   : > { %1504 = vmatprep.subr.mxu0 %v1578_v38 }
 0x13e   : > { %1505 = vmatpush3.msra.mxu0 %v844_v48 }
 0x13f   : > { %1506 = vmatprep.subr.mxu0 %v1578_v38 }
 0x140   : > { %1507 = vmatpush3.msra.mxu0 %v843_v49 }
 0x141   : > { %1508 = vmatprep.subr.mxu0 %v1578_v38 }
 0x142   : > { %1509 = vmatpush3.msra.mxu0 %v842_v52 }
 0x143   : > { %1510 = vmatprep.subr.mxu0 %v1578_v38 }
 0x144   : > { %1511 = vmatpush3.msra.mxu0 %v841_v53 }
 0x145   : > { %1512 = vmatprep.subr.mxu0 %v1578_v38 }
 0x146   : > { %1513 = vmatpush3.msra.mxu0 %v840_v55 }
 0x147   : > { %1514 = vmatprep.subr.mxu0 %v1578_v38 }
 0x148   : > { %1515 = vmatpush3.msra.mxu0 %v839_v56 }
 0x149   : > { %1517 = vmatmul.mubr.f32.vlgmr.msra.gmra.mxu0 %v838_v57 }
 0x209   : > { %v928_v59 = vpop.f32.mrf.mxu0 }
 0x20a   : > { %v929_v60 = vadd.f32 %v1003_v58, %v928_v59 }
 0x20b   : > { %v1518_v61 = vpop.f32.mrf.mxu0 }
 0x20c   : > { %933 = vst.msk [vmem:[#allocation3] sm:$0x3] %vm932_vm1, %v929_v60 }
 0x20d PF: > { %p1523_p7 = scmp.eq.s32.totalorder %s1617_s19, 1  ;;  %s1580_s20 = smov [#allocation3]  }
 0x20e   : > { %s941_s21 = sshll.u32 %s1580_s20, 4  ;;  %s942_s21 = int_to_ptr.vmem [resolvable:$true] %s941_s21 }
 0x20f   : > { %s1540_s22 = scalar_lea.vmem %s942_s21, 32  ;;  %p1547_p11 = scmp.lt.s32.totalorder %s942_s21, %s942_s21 }
 0x210   : > { %p1541_p8 = scmp.ne.s32.totalorder %s942_s21, %s1540_s22  ;;  %p1548_p12 = scmp.lt.s32.totalorder %s1540_s22, %s1540_s22 }
 0x212   : > { %p1542_p9 = pnand %p1541_p8, %p1523_p7  ;;  %p1549_p13 = por %p1548_p12, %p1547_p11 }
 0x214   : > { %p1543_p10 = pneg %p1542_p9 }
 0x216   : > { %p1550_p0 = pnand %p1549_p13, %p1543_p10 }
 0x218   : > { %1553 = shalt.err (!%p1550_p0)
}
 0x219   : > { %1520 = dma.vmem_to_hbm [thread:$0]  (%p1523_p7), %s942_s21, 32, %s1781_s5, [#allocation4]  }
 0x21a   : > { %1569 = dma.done.wait (%p1523_p7), [#allocation4], 32  }
 0x21b   : > { %1571 = vsyncadd (%p1523_p7), [#allocation4], 4294967264 }
 0x21c PF: > { %s16_s18 = sadd.s32 1, %s1574_s18  }
 0x21d   : > { %p13_p1 = scmp.ge.s32.totalorder %s16_s18, 4  }
 0x21f   :  { %15 = sbr.rel (!%p13_p1) target bundleno = 1 (0x1), region = 78 }
 0x224   :  { %954 = vsyncpa [#allocation4], 1 }
 0x225   :  { %956 = vsyncpa [#allocation4 + $0x1], 1 }

// kernel: cnn_model_forward.4
= control target key start
LH: loop header
LB: loop body
LE: loop exit
PB: predicated region body
PF: predicated region fallthrough
CT: control target
= control target key end

     0   :  { %s2487_s12 = smov 0   ;;  %s3342_s0 = inlined_call_operand.vmem [shape: f32[4,10,18,16], index: 0, kind: input, shape index: {}]   ;;  %s3343_s1 = inlined_call_operand.vmem [shape: f32[3,48,32], index: 1, kind: input, shape index: {}]   ;;  %s3344_s2 = inlined_call_operand.vmem [shape: f32[1,32], index: 2, kind: input, shape index: {}]   ;;  %s3345_s3 = inlined_call_operand.vmem [shape: f32[4,4,256], index: 3, kind: output, shape index: {}]  }
   0x1 LB: > { %s2112_s13 = sadd.s32 4294967295, %s2459_s12   ;;  %p2116_p0 = scmp.ge.s32.totalorder %s2459_s12, 1  ;;  %s2459_s12 = sphi %s2487_s12, %s13_s12  }
   0x2   : > { %p137_p1 = scmp.lt.s32.totalorder %s2459_s12, 5 }
   0x4   : > { %p138_p2 = pnand %p2116_p0, %p137_p1 }
   0x6   : > { %141 = sbr.rel (%p138_p2) target bundleno = 639 (0x27f), region = 32 }
   0xb   : > { %p161_p3 = scmp.lt.s32.totalorder %s2112_s13, 3  ;;  %v2125_v0 = vld [vmem:[%s3343_s1 + $0x58] sm:$0xff]  ;;  %v2124_v1 = vld [vmem:[%s3343_s1 + $0x50] sm:$0xff]  ;;  %v2123_v2 = vld [vmem:[%s3343_s1 + $0x48] sm:$0xff]  ;;  %vm314_vm0 = vcmask 1045504   ;;  %vm225_vm1 = vcmask 1046528  }
   0xc   : > { %2426 = vmatprep.subr.mxu1 %v2125_v0  ;;  %2318 = vmatprep.subr.mxu0 %v2125_v0  ;;  %v2122_v3 = vld [vmem:[%s3343_s1 + $0x40] sm:$0xff]  ;;  %v2121_v4 = vld [vmem:[%s3343_s1 + $0x38] sm:$0xff]  ;;  %v2120_v18 = vld [vmem:[%s3343_s1 + $0x30] sm:$0xff]  ;;  %s2461_s30 = smov 32   ;;  %s2462_s4 = smov 16   ;;  %vm403_vm2 = vcmask 130048  }
   0xd   : > { %s3362_s13 = smov (!%p161_p3, %s2112_s13), 3  ;;  %2432 = vmatpush3.msra.mxu1 %v2125_v0  ;;  %2319 = vmatpush3.msra.mxu0 %v2125_v0  ;;  %vm420_vm3 = vcmask 261120   ;;  %vm479_vm4 = vcmask 392192   ;;  %vm1743_vm5 = vcmask 1041409   ;;  %vm1745_vm6 = vcmask 1043459   ;;  %s2465_s7 = smov 64  }
   0xe   : > { %2427 = vmatprep.subr.mxu1 %v2124_v1  ;;  %2320 = vmatprep.subr.mxu0 %v2124_v1  ;;  %s2438_s20 = smul.u32 240, %s3362_s13  ;;  %vm1747_vm7 = vcmask 1045509   ;;  %vm1749_vm8 = vcmask 1047559   ;;  %vm2045_vm9 = vcmask 523264   ;;  %vm2047_vm10 = vcmask 785408   ;;  %s2251_s8 = sshll.u32 %s3362_s13, 3 }
   0xf   : > { %2433 = vmatpush3.msra.mxu1 %v2124_v1  ;;  %2321 = vmatpush3.msra.mxu0 %v2124_v1  ;;  %s170_s11 = scalar_lea.vmem %s3345_s3, %s2251_s8 }
  0x10   : > { %2428 = vmatprep.subr.mxu1 %v2123_v2  ;;  %2322 = vmatprep.subr.mxu0 %v2123_v2  ;;  %s2513_s25 = scalar_lea.vmem %s3342_s0, %s2438_s20 }
  0x11   : > { %2434 = vmatpush3.msra.mxu1 %v2123_v2  ;;  %2323 = vmatpush3.msra.mxu0 %v2123_v2  ;;  %v2519_v5 = vld [vmem:[%s2513_s25 + $0x78] sm:$0xff]  ;;  %v2522_v6 = vld [vmem:[%s2513_s25 + $0x80] sm:$0xff]  ;;  %v188_v7 = vld [vmem:[%s2513_s25 + $0x88] sm:$0x3] }
  0x12   : > { %2429 = vmatprep.subr.mxu1 %v2122_v3  ;;  %2324 = vmatprep.subr.mxu0 %v2122_v3  ;;  %v340_v8 = vrot.slane %v2519_v5, 2  ;;  %v341_v9 = vrot.slane %v2522_v6, 2  ;;  %v251_v10 = vrot.slane %v2519_v5, 1  ;;  %v252_v11 = vrot.slane %v2522_v6, 1  ;;  %v2530_v12 = vld [vmem:[%s2513_s25 + $0x18] sm:$0xff]  ;;  %v2533_v13 = vld [vmem:[%s2513_s25 + $0x20] sm:$0xff] }
  0x13   : > { %2435 = vmatpush3.msra.mxu1 %v2122_v3  ;;  %2325 = vmatpush3.msra.mxu0 %v2122_v3  ;;  %v254_v14 = vrot.slane %v188_v7, 1  ;;  %v231_v15 = vrot.slane %v2530_v12, 1  ;;  %v232_v16 = vrot.slane %v2533_v13, 1  ;;  %v176_v17 = vld [vmem:[%s2513_s25 + $0x28] sm:$0x3]  ;;  %v343_v21 = vrot.slane %v188_v7, 2 }
  0x14   : > { %2430 = vmatprep.subr.mxu1 %v2121_v4  ;;  %2326 = vmatprep.subr.mxu0 %v2121_v4  ;;  %v342_v19 = vsel %vm314_vm0, %v340_v8, %v341_v9  ;;  %v253_v20 = vsel %vm225_vm1, %v251_v10, %v252_v11  ;;  %v234_v24 = vrot.slane %v176_v17, 1  ;;  %v2548_v25 = vld [vmem:[%s2513_s25 + $0x90] sm:$0xff]  ;;  %v2551_v26 = vld [vmem:[%s2513_s25 + $0x98] sm:$0xff]  ;;  %v320_v28 = vrot.slane %v2530_v12, 2  ;;  %v191_v33 = vld [vmem:[%s2513_s25 + $0xa0] sm:$0x3] }
  0x15   : > { %2436 = vmatpush3.msra.mxu1 %v2121_v4  ;;  %2327 = vmatpush3.msra.mxu0 %v2121_v4  ;;  %v255_v22 = vsel %vm225_vm1, %v252_v11, %v254_v14  ;;  %v233_v23 = vsel %vm225_vm1, %v231_v15, %v232_v16  ;;  %v344_v27 = vsel %vm314_vm0, %v341_v9, %v343_v21  ;;  %v321_v30 = vrot.slane %v2533_v13, 2  ;;  %v2567_v38 = vld [vmem:[%s2513_s25 + $0x30] sm:$0xff]  ;;  %v2570_v39 = vld [vmem:[%s2513_s25 + $0x38] sm:$0xff]  ;;  %v179_v46 = vld [vmem:[%s2513_s25 + $0x40] sm:$0x3] }
  0x16   : > { %375 = vrot.lane.b32.xlu1 %v342_v19, %s2461_s30  ;;  %286 = vrot.lane.b32.xlu0 %v253_v20, %s2462_s4  ;;  %v235_v29 = vsel %vm225_vm1, %v232_v16, %v234_v24  ;;  %v256_v31 = vrot.slane %v2548_v25, 1  ;;  %v257_v32 = vrot.slane %v2551_v26, 1  ;;  %v323_v36 = vrot.slane %v176_v17, 2  ;;  %v2582_v47 = vld [vmem:[%s2513_s25 + $0x8] sm:$0xff]  ;;  %v173_v48 = vld [vmem:[%s2513_s25 + $0x10] sm:$0x3] }
  0x17   : > { %2431 = vmatprep.subr.mxu1 %v2120_v18  ;;  %2328 = vmatprep.subr.mxu0 %v2120_v18  ;;  %v322_v34 = vsel %vm314_vm0, %v320_v28, %v321_v30  ;;  %v259_v37 = vrot.slane %v191_v33, 1  ;;  %v345_v40 = vrot.slane %v2548_v25, 2  ;;  %v346_v41 = vrot.slane %v2551_v26, 2  ;;  %v2589_v52 = vld [vmem:[%s2513_s25 + $0xe0] sm:$0xff]  ;;  %v200_v53 = vld [vmem:[%s2513_s25 + $0xe8] sm:$0x3] }
  0x18   : > { %2437 = vmatpush3.msra.mxu1 %v2120_v18  ;;  %2329 = vmatpush3.msra.mxu0 %v2120_v18  ;;  %v258_v35 = vsel %vm225_vm1, %v256_v31, %v257_v32  ;;  %v324_v42 = vsel %vm314_vm0, %v321_v30, %v323_v36  ;;  %v236_v44 = vrot.slane %v2567_v38, 1  ;;  %v237_v45 = vrot.slane %v2570_v39, 1  ;;  %v2594_v55 = vld [vmem:[%s2513_s25 + $0xa8] sm:$0xff]  ;;  %v2600_v60 = vld [vmem:[%s2513_s25 + $0xb0] sm:$0xff]  ;;  %v194_v14 = vld [vmem:[%s2513_s25 + $0xb8] sm:$0x3] }
  0x19   : > { %v260_v43 = vsel %vm225_vm1, %v257_v32, %v259_v37  ;;  %v347_v49 = vsel %vm314_vm0, %v345_v40, %v346_v41  ;;  %v348_v50 = vrot.slane %v191_v33, 2  ;;  %v239_v51 = vrot.slane %v179_v46, 1  ;;  %v2637_v20 = vld [vmem:[%s2513_s25 + $0x48] sm:$0xff]  ;;  %v2640_v21 = vld [vmem:[%s2513_s25 + $0x50] sm:$0xff]  ;;  %v182_v30 = vld [vmem:[%s2513_s25 + $0x58] sm:$0x3] }
  0x1a   : > { %288 = vrot.lane.b32.xlu0 %v255_v22, %s2462_s4  ;;  %270 = vrot.lane.b32.xlu1 %v233_v23, %s2462_s4  ;;  %v238_v54 = vsel %vm225_vm1, %v236_v44, %v237_v45  ;;  %v227_v56 = vrot.slane %v2582_v47, 1  ;;  %v229_v57 = vrot.slane %v173_v48, 1  ;;  %v316_v58 = vrot.slane %v2582_v47, 2  ;;  %v197_v44 = vld [vmem:[%s2513_s25 + $0xd0] sm:$0x3] }
  0x1b   : > { %v325_v59 = vrot.slane %v2567_v38, 2  ;;  %v318_v61 = vrot.slane %v173_v48, 2  ;;  %v326_v62 = vrot.slane %v2570_v39, 2  ;;  %v828_v0 = vrot.slane %v2589_v52, 1  ;;  %v2675_v48 = vld [vmem:[%s3343_s1 + $0x28] sm:$0xff] }
  0x1c   : > { %v2606_v63 = vsel %vm225_vm1, %v227_v56, %v229_v57  ;;  %v830_v1 = vrot.slane %v200_v53, 1  ;;  %v261_v2 = vrot.slane %v2594_v55, 1  ;;  %v839_v4 = vrot.slane %v2589_v52, 2  ;;  %2354 = vmatprep.subr.mxu1 %v2675_v48  ;;  %v2690_v57 = vld [vmem:[%s2513_s25 + $0x68] sm:$0xff] }
  0x1d   : > { %v2615_v3 = vsel %vm314_vm0, %v316_v58, %v318_v61  ;;  %v841_v7 = vrot.slane %v200_v53, 2  ;;  %v349_v8 = vsel %vm314_vm0, %v346_v41, %v348_v50  ;;  %v240_v9 = vsel %vm225_vm1, %v237_v45, %v239_v51 }
  0x1e   : > { %377 = vrot.lane.b32.xlu0 %v344_v27, %s2461_s30  ;;  %272 = vrot.lane.b32.xlu1 %v235_v29, %s2462_s4  ;;  %v262_v10 = vrot.slane %v2600_v60, 1  ;;  %v2624_v11 = vsel %vm225_vm1, %v828_v0, %v830_v1  ;;  %v327_v16 = vsel %vm314_vm0, %v325_v59, %v326_v62  ;;  %v328_v18 = vrot.slane %v179_v46, 2 }
  0x1f   : > { %v2630_v15 = vsel %vm314_vm0, %v839_v4, %v841_v7  ;;  %v264_v19 = vrot.slane %v194_v14, 1  ;;  %v350_v22 = vrot.slane %v2594_v55, 2  ;;  %v351_v23 = vrot.slane %v2600_v60, 2 }
  0x20   : > { %v263_v17 = vsel %vm225_vm1, %v261_v2, %v262_v10  ;;  %v329_v24 = vsel %vm314_vm0, %v326_v62, %v328_v18  ;;  %v241_v28 = vrot.slane %v2637_v20, 1  ;;  %v242_v29 = vrot.slane %v2640_v21, 1 }
  0x21   : > { %v265_v27 = vsel %vm225_vm1, %v262_v10, %v264_v19  ;;  %v352_v31 = vsel %vm314_vm0, %v350_v22, %v351_v23  ;;  %v353_v33 = vrot.slane %v194_v14, 2  ;;  %v331_v40 = vrot.slane %v2640_v21, 2 }
  0x22   : > { %359 = vrot.lane.b32.xlu0 %v322_v34, %s2461_s30  ;;  %290 = vrot.lane.b32.xlu1 %v258_v35, %s2462_s4  ;;  %v243_v32 = vsel %vm225_vm1, %v241_v28, %v242_v29  ;;  %v244_v34 = vrot.slane %v182_v30, 1  ;;  %v330_v35 = vrot.slane %v2637_v20, 2  ;;  %v333_v41 = vrot.slane %v182_v30, 2 }
  0x23   : > { %v354_v36 = vsel %vm314_vm0, %v351_v23, %v353_v33  ;;  %v449_v53 = vrot.slane %v197_v44, 1  ;;  %v247_v7 = vrot.slane %v2690_v57, 1  ;;  %v460_v14 = vrot.slane %v197_v44, 2  ;;  %v440_v44 = vld [vmem:[%s3343_s1 + $0x18] sm:$0xff] }
  0x24   : > { %v245_v37 = vsel %vm225_vm1, %v242_v29, %v244_v34  ;;  %v332_v50 = vsel %vm314_vm0, %v330_v35, %v331_v40  ;;  %v334_v51 = vsel %vm314_vm0, %v331_v40, %v333_v41  ;;  %v336_v23 = vrot.slane %v2690_v57, 2 }
  0x26   : > { %361 = vrot.lane.b32.xlu0 %v324_v42, %s2461_s30  ;;  %292 = vrot.lane.b32.xlu1 %v260_v43, %s2462_s4  ;;  %v2662_v42 = vld [vmem:[%s2513_s25 + $0xc0] sm:$0xff]  ;;  %v2665_v43 = vld [vmem:[%s2513_s25 + $0xc8] sm:$0xff] }
  0x27   : > { %v446_v45 = vrot.slane %v2662_v42, 1  ;;  %v447_v46 = vrot.slane %v2665_v43, 1  ;;  %v457_v61 = vrot.slane %v2662_v42, 2  ;;  %v458_v1 = vrot.slane %v2665_v43, 2 }
  0x29   : > { %v448_v59 = vsel %vm225_vm1, %v446_v45, %v447_v46  ;;  %v450_v62 = vsel %vm225_vm1, %v447_v46, %v449_v53  ;;  %v461_v19 = vsel %vm314_vm0, %v458_v1, %v460_v14 }
  0x2a   : > { %379 = vrot.lane.b32.xlu0 %v347_v49, %s2461_s30  ;;  %274 = vrot.lane.b32.xlu1 %v238_v54, %s2462_s4  ;;  %v2680_v49 = vld [vmem:[%s3343_s1 + $0x88] sm:$0xff]  ;;  %v2687_v54 = vld [vmem:[%s2513_s25 + $0x60] sm:$0xff] }
  0x2b   : > { %2390 = vmatprep.subr.mxu0 %v2680_v49  ;;  %v246_v2 = vrot.slane %v2687_v54, 1  ;;  %v335_v18 = vrot.slane %v2687_v54, 2 }
  0x2d   : > { %v248_v10 = vsel %vm225_vm1, %v246_v2, %v247_v7 }
  0x2e   : > { %381 = vrot.lane.b32.xlu0 %v349_v8, %s2461_s30  ;;  %276 = vrot.lane.b32.xlu1 %v240_v9, %s2462_s4  ;;  %v185_v8 = vld [vmem:[%s2513_s25 + $0x70] sm:$0x3]  ;;  %v459_v9 = vsel %vm314_vm0, %v457_v61, %v458_v1  ;;  %v437_v1 = vld [vmem:[%s3343_s1] sm:$0xff] }
  0x2f   : > { %v338_v29 = vrot.slane %v185_v8, 2 }
  0x31   : > { %v339_v30 = vsel %vm314_vm0, %v336_v23, %v338_v29 }
  0x32   : > { %363 = vrot.lane.b32.xlu0 %v327_v16, %s2461_s30  ;;  %294 = vrot.lane.b32.xlu1 %v263_v17, %s2462_s4  ;;  %v249_v16 = vrot.slane %v185_v8, 1  ;;  %v2706_v17 = vld [vmem:[%s2513_s25] sm:$0xff] }
  0x34   : > { %v250_v22 = vsel %vm225_vm1, %v247_v7, %v249_v16 }
  0x36   : > { %365 = vrot.lane.b32.xlu0 %v329_v24, %s2461_s30  ;;  %296 = vrot.lane.b32.xlu1 %v265_v27, %s2462_s4  ;;  %v226_v24 = vrot.slane %v2706_v17, 1  ;;  %v337_v27 = vsel %vm314_vm0, %v335_v18, %v336_v23 }
  0x38   : > { %v228_v28 = vsel %vm225_vm1, %v226_v24, %v227_v56 }
  0x3a   : > { %383 = vrot.lane.b32.xlu0 %v352_v31, %s2461_s30  ;;  %278 = vrot.lane.b32.xlu1 %v243_v32, %s2462_s4  ;;  %v315_v31 = vrot.slane %v2706_v17, 2  ;;  %v2726_v32 = vld [vmem:[%s2513_s25 + $0xd8] sm:$0xff] }
  0x3b   : > { %v827_v33 = vrot.slane %v2726_v32, 1  ;;  %v838_v35 = vrot.slane %v2726_v32, 2 }
  0x3c   : > { %v317_v56 = vsel %vm314_vm0, %v315_v31, %v316_v58 }
  0x3d   : > { %v829_v34 = vsel %vm225_vm1, %v827_v33, %v828_v0  ;;  %v840_v58 = vsel %vm314_vm0, %v838_v35, %v839_v4 }
  0x3e   : > { %385 = vrot.lane.b32.xlu0 %v354_v36, %s2461_s30  ;;  %280 = vrot.lane.b32.xlu1 %v245_v37, %s2462_s4 }
  0x42   : > { %367 = vrot.lane.b32.xlu0 %v332_v50, %s2461_s30  ;;  %369 = vrot.lane.b32.xlu1 %v334_v51, %s2461_s30  ;;  %v439_v51 = vld [vmem:[%s3343_s1 + $0x10] sm:$0xff] }
  0x46   : > { %451 = vrot.lane.b32.xlu0 %v448_v59, %s2462_s4  ;;  %453 = vrot.lane.b32.xlu1 %v450_v62, %s2462_s4  ;;  %v2162_v62 = vld [vmem:[%s3343_s1 + $0x80] sm:$0xff] }
  0x4a   : > { %462 = vrot.lane.b32.xlu0 %v459_v9, %s2461_s30  ;;  %282 = vrot.lane.b32.xlu1 %v248_v10, %s2462_s4 }
  0x4e   : > { %464 = vrot.lane.b32.xlu0 %v461_v19, %s2461_s30  ;;  %284 = vrot.lane.b32.xlu1 %v250_v22, %s2462_s4  ;;  %v2158_v19 = vld [vmem:[%s3343_s1 + $0x60] sm:$0xff] }
  0x52   : > { %371 = vrot.lane.b32.xlu0 %v337_v27, %s2461_s30  ;;  %266 = vrot.lane.b32.xlu1 %v228_v28, %s2462_s4 }
  0x56   : > { %373 = vrot.lane.b32.xlu0 %v339_v30, %s2461_s30  ;;  %268 = vrot.lane.b32.xlu1 %v2606_v63, %s2462_s4 }
  0x5a   : > { %355 = vrot.lane.b32.xlu0 %v317_v56, %s2461_s30  ;;  %357 = vrot.lane.b32.xlu1 %v2615_v3, %s2461_s30 }
  0x5e   : > { %832 = vrot.lane.b32.xlu0 %v829_v34, %s2462_s4  ;;  %834 = vrot.lane.b32.xlu1 %v2624_v11, %s2462_s4 }
  0x62   : > { %843 = vrot.lane.b32.xlu0 %v840_v58, %s2461_s30  ;;  %845 = vrot.lane.b32.xlu1 %v2630_v15, %s2461_s30 }
  0x88   : > { %v376_v63 = vpop.permute.xlu1 %375  ;;  %v287_v0 = vpop.permute.xlu0 %286 }
  0x89   : > { %v414_v3 = vsel %vm403_vm2, %v2519_v5, %v287_v0  ;;  %v441_v5 = vld [vmem:[%s3343_s1 + $0x20] sm:$0xff] }
  0x8a   : > { %v2754_v36 = vsel %vm420_vm3, %v414_v3, %v376_v63 }
  0x8b   : > { %2342 = vmatprep.mubr.msk.f32.mxu1 %vm479_vm4, %v2754_v36 }
  0x8c   : > { %v289_v4 = vpop.permute.xlu0 %288  ;;  %v271_v11 = vpop.permute.xlu1 %270 }
  0x8d   : > { %v415_v37 = vsel %vm403_vm2, %v2522_v6, %v289_v4  ;;  %v406_v6 = vsel %vm403_vm2, %v2530_v12, %v271_v11  ;;  %v438_v12 = vld [vmem:[%s3343_s1 + $0x8] sm:$0xff] }
  0x90   : > { %v378_v15 = vpop.permute.xlu0 %377  ;;  %v273_v40 = vpop.permute.xlu1 %272 }
  0x91   : > { %v2761_v41 = vsel %vm420_vm3, %v415_v37, %v378_v15 }
  0x92   : > { %2343 = vmatmul.mubr.msk.f32.vlgmr.msra.gmra.mxu1 %vm479_vm4, %v2761_v41 }
  0x93   : > { %2355 = vmatpush3.msra.mxu1 %v2675_v48  ;;  %v407_v48 = vsel %vm403_vm2, %v2533_v13, %v273_v40  ;;  %v2161_v13 = vld [vmem:[%s3343_s1 + $0x78] sm:$0xff] }
  0x94   : > { %v360_v45 = vpop.permute.xlu0 %359  ;;  %v291_v46 = vpop.permute.xlu1 %290  ;;  %2356 = vmatprep.subr.mxu1 %v441_v5 }
  0x95   : > { %v2775_v50 = vsel %vm420_vm3, %v406_v6, %v360_v45  ;;  %2357 = vmatpush3.msra.mxu1 %v441_v5  ;;  %v416_v2 = vsel %vm403_vm2, %v2548_v25, %v291_v46  ;;  %v2159_v25 = vld [vmem:[%s3343_s1 + $0x68] sm:$0xff] }
  0x96   : > { %2330 = vmatprep.mubr.msk.f32.mxu0 %vm479_vm4, %v2775_v50  ;;  %2358 = vmatprep.subr.mxu1 %v440_v44 }
  0x97   : > { %2359 = vmatpush3.msra.mxu1 %v440_v44 }
  0x98   : > { %v362_v53 = vpop.permute.xlu0 %361  ;;  %v293_v59 = vpop.permute.xlu1 %292  ;;  %2360 = vmatprep.subr.mxu1 %v439_v51 }
  0x99   : > { %v2788_v61 = vsel %vm420_vm3, %v407_v48, %v362_v53  ;;  %2361 = vmatpush3.msra.mxu1 %v439_v51  ;;  %v417_v10 = vsel %vm403_vm2, %v2551_v26, %v293_v59 }
  0x9a   : > { %2331 = vmatmul.mubr.msk.f32.vlgmr.msra.gmra.mxu0 %vm479_vm4, %v2788_v61  ;;  %2362 = vmatprep.subr.mxu1 %v438_v12 }
  0x9b   : > { %2391 = vmatpush3.msra.mxu0 %v2680_v49  ;;  %2363 = vmatpush3.msra.mxu1 %v438_v12  ;;  %v2160_v49 = vld [vmem:[%s3343_s1 + $0x70] sm:$0xff] }
  0x9c   : > { %v380_v7 = vpop.permute.xlu0 %379  ;;  %v275_v8 = vpop.permute.xlu1 %274  ;;  %2392 = vmatprep.subr.mxu0 %v2162_v62  ;;  %2364 = vmatprep.subr.mxu1 %v437_v1 }
  0x9d   : > { %v2805_v9 = vsel %vm420_vm3, %v416_v2, %v380_v7  ;;  %2393 = vmatpush3.msra.mxu0 %v2162_v62  ;;  %2365 = vmatpush3.msra.mxu1 %v437_v1  ;;  %v408_v22 = vsel %vm403_vm2, %v2567_v38, %v275_v8 }
  0x9e   : > { %2345 = vmatprep.mubr.msk.f32.mxu1 %vm479_vm4, %v2805_v9  ;;  %2394 = vmatprep.subr.mxu0 %v2161_v13 }
  0x9f   : > { %2395 = vmatpush3.msra.mxu0 %v2161_v13 }
  0xa0   : > { %v382_v14 = vpop.permute.xlu0 %381  ;;  %v277_v16 = vpop.permute.xlu1 %276  ;;  %2396 = vmatprep.subr.mxu0 %v2160_v49 }
  0xa1   : > { %v2818_v18 = vsel %vm420_vm3, %v417_v10, %v382_v14  ;;  %2397 = vmatpush3.msra.mxu0 %v2160_v49  ;;  %v409_v27 = vsel %vm403_vm2, %v2570_v39, %v277_v16 }
  0xa2   : > { %2346 = vmatmul.mubr.msk.f32.gmra.mxu1 %vm479_vm4, %v2818_v18  ;;  %2398 = vmatprep.subr.mxu0 %v2159_v25 }
  0xa3   : > { %2399 = vmatpush3.msra.mxu0 %v2159_v25 }
  0xa4   : > { %v364_v26 = vpop.permute.xlu0 %363  ;;  %v295_v23 = vpop.permute.xlu1 %294  ;;  %2400 = vmatprep.subr.mxu0 %v2158_v19 }
  0xa5   : > { %v2828_v24 = vsel %vm420_vm3, %v408_v22, %v364_v26  ;;  %2401 = vmatpush3.msra.mxu0 %v2158_v19  ;;  %v418_v38 = vsel %vm403_vm2, %v2594_v55, %v295_v23 }
  0xa6   : > { %2333 = vmatprep.mubr.msk.f32.mxu0 %vm479_vm4, %v2828_v24 }
  0xa8   : > { %v366_v28 = vpop.permute.xlu0 %365  ;;  %v297_v29 = vpop.permute.xlu1 %296 }
  0xa9   : > { %v426_v30 = vsel %vm420_vm3, %v409_v27, %v366_v28  ;;  %v419_v39 = vsel %vm403_vm2, %v2600_v60, %v297_v29  ;;  %v2463_v28 = vmov 1983009808  }
  0xaa   : > { %2334 = vmatmul.mubr.msk.f32.gmra.mxu0 %vm479_vm4, %v426_v30  ;;  %v1084_v29 = vunpack.c.l.s4 %v2463_v28 }
  0xac   : > { %v384_v31 = vpop.permute.xlu0 %383  ;;  %v279_v56 = vpop.permute.xlu1 %278 }
  0xad   : > { %v2839_v33 = vsel %vm420_vm3, %v418_v38, %v384_v31  ;;  %v410_v55 = vsel %vm403_vm2, %v2637_v20, %v279_v56 }
  0xae   : > { %2348 = vmatprep.mubr.msk.f32.mxu1 %vm479_vm4, %v2839_v33 }
  0xb0   : > { %v386_v34 = vpop.permute.xlu0 %385  ;;  %v281_v35 = vpop.permute.xlu1 %280 }
  0xb1   : > { %v2846_v58 = vsel %vm420_vm3, %v419_v39, %v386_v34  ;;  %v411_v63 = vsel %vm403_vm2, %v2640_v21, %v281_v35  ;;  %v1085_v39 = vunpack.c.0.s8 %v1084_v29 }
  0xb2   : > { %2349 = vmatmul.mubr.msk.f32.gmra.mxu1 %vm479_vm4, %v2846_v58 }
  0xb4   : > { %v368_v0 = vpop.permute.xlu0 %367  ;;  %v370_v3 = vpop.permute.xlu1 %369 }
  0xb5   : > { %v427_v4 = vsel %vm420_vm3, %v410_v55, %v368_v0  ;;  %v428_v60 = vsel %vm420_vm3, %v411_v63, %v370_v3 }
  0xb6   : > { %2336 = vmatprep.mubr.msk.f32.mxu0 %vm479_vm4, %v427_v4 }
  0xb7   : > { %2337 = vmatmul.mubr.msk.f32.gmra.mxu0 %vm479_vm4, %v428_v60 }
  0xb8   : > { %v452_v11 = vpop.permute.xlu0 %451  ;;  %v454_v37 = vpop.permute.xlu1 %453 }
  0xb9   : > { %v468_v15 = vsel %vm403_vm2, %v2662_v42, %v452_v11  ;;  %v469_v21 = vsel %vm403_vm2, %v2665_v43, %v454_v37 }
  0xbc   : > { %v463_v40 = vpop.permute.xlu0 %462  ;;  %v283_v20 = vpop.permute.xlu1 %282 }
  0xbd   : > { %v470_v5 = vsel %vm420_vm3, %v468_v15, %v463_v40  ;;  %v412_v46 = vsel %vm403_vm2, %v2687_v54, %v283_v20 }
  0xbe   : > { %2351 = vmatprep.mubr.msk.f32.mxu1 %vm479_vm4, %v470_v5 }
  0xc0   : > { %v465_v44 = vpop.permute.xlu0 %464  ;;  %v285_v6 = vpop.permute.xlu1 %284 }
  0xc1   : > { %v471_v45 = vsel %vm420_vm3, %v469_v21, %v465_v44  ;;  %v413_v48 = vsel %vm403_vm2, %v2690_v57, %v285_v6 }
  0xc2   : > { %2352 = vmatmul.mubr.msk.f32.gmra.mxu1 %vm479_vm4, %v471_v45 }
  0xc4   : > { %v372_v51 = vpop.permute.xlu0 %371  ;;  %v267_v42 = vpop.permute.xlu1 %266 }
  0xc5   : > { %v429_v12 = vsel %vm420_vm3, %v412_v46, %v372_v51  ;;  %v404_v54 = vsel %vm403_vm2, %v2706_v17, %v267_v42 }
  0xc6   : > { %2339 = vmatprep.mubr.msk.f32.mxu0 %vm479_vm4, %v429_v12 }
  0xc8   : > { %v374_v53 = vpop.permute.xlu0 %373  ;;  %v269_v43 = vpop.permute.xlu1 %268 }
  0xc9   : > { %v430_v59 = vsel %vm420_vm3, %v413_v48, %v374_v53  ;;  %v405_v62 = vsel %vm403_vm2, %v2582_v47, %v269_v43 }
  0xca   : > { %2340 = vmatmul.mubr.msk.f32.gmra.mxu0 %vm479_vm4, %v430_v59 }
  0xcb   : > { %2402 = vmatprep.mubr.msk.f32.mxu0 %vm479_vm4, %v2828_v24 }
  0xcc   : > { %v356_v1 = vpop.permute.xlu0 %355  ;;  %v358_v13 = vpop.permute.xlu1 %357 }
  0xcd   : > { %v421_v2 = vsel %vm420_vm3, %v404_v54, %v356_v1  ;;  %v422_v57 = vsel %vm420_vm3, %v405_v62, %v358_v13 }
  0xce   : > { %2366 = vmatprep.mubr.msk.f32.mxu1 %vm479_vm4, %v421_v2  ;;  %2403 = vmatmul.mubr.msk.f32.vlgmr.msra.gmra.mxu0 %vm479_vm4, %v426_v30 }
  0xcf   : > { %2367 = vmatmul.mubr.msk.f32.vlgmr.msra.gmra.mxu1 %vm479_vm4, %v422_v57  ;;  %2405 = vmatprep.mubr.msk.f32.mxu0 %vm479_vm4, %v427_v4 }
  0xd0   : > { %2369 = vmatprep.mubr.msk.f32.mxu1 %vm479_vm4, %v2775_v50  ;;  %v833_v47 = vpop.permute.xlu0 %832  ;;  %v835_v17 = vpop.permute.xlu1 %834 }
  0xd1   : > { %v849_v50 = vsel %vm403_vm2, %v2726_v32, %v833_v47  ;;  %v850_v7 = vsel %vm403_vm2, %v2589_v52, %v835_v17 }
  0xd2   : > { %2406 = vmatmul.mubr.msk.f32.gmra.mxu0 %vm479_vm4, %v428_v60 }
  0xd3   : > { %2370 = vmatmul.mubr.msk.f32.gmra.mxu1 %vm479_vm4, %v2788_v61  ;;  %2408 = vmatprep.mubr.msk.f32.mxu0 %vm479_vm4, %v429_v12 }
  0xd4   : > { %2372 = vmatprep.mubr.msk.f32.mxu1 %vm479_vm4, %v2828_v24  ;;  %v844_v61 = vpop.permute.xlu0 %843  ;;  %v846_v8 = vpop.permute.xlu1 %845 }
  0xd5   : > { %v852_v32 = vsel %vm420_vm3, %v850_v7, %v846_v8 }
  0xd6   : > { %2409 = vmatmul.mubr.msk.f32.gmra.mxu0 %vm479_vm4, %v430_v59 }
  0xd7   : > { %2373 = vmatmul.mubr.msk.f32.gmra.mxu1 %vm479_vm4, %v426_v30  ;;  %2411 = vmatprep.mubr.msk.f32.mxu0 %vm479_vm4, %v2754_v36  ;;  %v1086_v30 = vlaneseq }
  0xd8   : > { %2375 = vmatprep.mubr.msk.f32.mxu1 %vm479_vm4, %v427_v4 }
  0xd9   : > { %v1087_v34 = vshrl.u32 %v1086_v30, 7 }
  0xda   : > { %2412 = vmatmul.mubr.msk.f32.gmra.mxu0 %vm479_vm4, %v2761_v41 }
  0xdb   : > { %2376 = vmatmul.mubr.msk.f32.gmra.mxu1 %vm479_vm4, %v428_v60  ;;  %2414 = vmatprep.mubr.msk.f32.mxu0 %vm479_vm4, %v2805_v9  ;;  %v2464_v60 = vmov 1934713408   ;;  %v2962_v15 = vsub.s32 %v1085_v39, %v1087_v34 }
  0xdc   : > { %2378 = vmatprep.mubr.msk.f32.mxu1 %vm479_vm4, %v429_v12  ;;  %v1874_v11 = vunpack.c.l.s4 %v2464_v60 }
  0xde   : > { %2415 = vmatmul.mubr.msk.f32.gmra.mxu0 %vm479_vm4, %v2818_v18  ;;  %v1875_v42 = vunpack.c.0.s8 %v1874_v11 }
  0xdf   : > { %2379 = vmatmul.mubr.msk.f32.gmra.mxu1 %vm479_vm4, %v430_v59  ;;  %2417 = vmatprep.mubr.msk.f32.mxu0 %vm479_vm4, %v2839_v33 }
  0xe0   : > { %2381 = vmatprep.mubr.msk.f32.mxu1 %vm479_vm4, %v2754_v36  ;;  %v851_v36 = vsel %vm420_vm3, %v849_v50, %v844_v61  ;;  %v2970_v7 = vsub.s32 %v1875_v42, %v1087_v34 }
  0xe2   : > { %2418 = vmatmul.mubr.msk.f32.gmra.mxu0 %vm479_vm4, %v2846_v58 }
  0xe3   : > { %2420 = vmatprep.mubr.msk.f32.mxu0 %vm479_vm4, %v470_v5  ;;  %2382 = vmatmul.mubr.msk.f32.gmra.mxu1 %vm479_vm4, %v2761_v41 }
  0xe4   : > { %2384 = vmatprep.mubr.msk.f32.mxu1 %vm479_vm4, %v2805_v9 }
  0xe6   : > { %2421 = vmatmul.mubr.msk.f32.gmra.mxu0 %vm479_vm4, %v471_v45 }
  0xe7   : > { %2385 = vmatmul.mubr.msk.f32.gmra.mxu1 %vm479_vm4, %v2818_v18  ;;  %2423 = vmatprep.mubr.msk.f32.mxu0 %vm479_vm4, %v851_v36 }
  0xe8   : > { %2387 = vmatprep.mubr.msk.f32.mxu1 %vm479_vm4, %v2839_v33 }
  0xea   : > { %2424 = vmatmul.mubr.msk.f32.gmra.mxu0 %vm479_vm4, %v852_v32 }
  0xeb   : > { %2388 = vmatmul.mubr.msk.f32.gmra.mxu1 %vm479_vm4, %v2846_v58  ;;  %v2959_v58 = vld [vmem:[%s3344_s2] ss:$0 sm:$0xff] }
 0x152   : > { %v2934_v52 = vpop.f32.mrf.mxu1 }
 0x154   : > { %v2936_v9 = vpop.f32.mrf.mxu1 }
 0x15a   : > { %v2332_v41 = vpop.f32.mrf.mxu0 }
 0x15c   : > { %v594_v49 = vpop.f32.mrf.mxu0 }
 0x162   : > { %v2938_v25 = vpop.f32.mrf.mxu1 }
 0x164   : > { %v2940_v14 = vpop.f32.mrf.mxu1 }
 0x16a   : > { %v2335_v10 = vpop.f32.mrf.mxu0 }
 0x16c   : > { %v604_v16 = vpop.f32.mrf.mxu0 }
 0x172   : > { %v2942_v18 = vpop.f32.mrf.mxu1 }
 0x174   : > { %v2944_v22 = vpop.f32.mrf.mxu1 }
 0x177   : > { %v2338_v19 = vpop.f32.mrf.mxu0 }
 0x179   : > { %v2946_v26 = vpop.f32.mrf.mxu0 }
 0x182   : > { %v2948_v23 = vpop.f32.mrf.mxu1 }
 0x184   : > { %v2954_v38 = vpop.f32.mrf.mxu1 }
 0x18a   : > { %v2950_v24 = vpop.f32.mrf.mxu0 }
 0x18c   : > { %v2952_v27 = vpop.f32.mrf.mxu0 }
 0x18e   : > { %v2404_v31 = vpop.f32.mrf.mxu0 }
 0x18f   : > { %v2368_v56 = vpop.f32.mrf.mxu1 }
 0x190   : > { %v751_v33 = vadd.f32 %v2368_v56, %v2332_v41  ;;  %v932_v35 = vpop.f32.mrf.mxu0 }
 0x191   : > { %v745_v55 = vpop.f32.mrf.mxu1 }
 0x192   : > { %v1012_v63 = vadd.f32 %v2404_v31, %v751_v33  ;;  %v746_v0 = vadd.f32 %v745_v55, %v594_v49  ;;  %v2407_v3 = vpop.f32.mrf.mxu0 }
 0x193   : > { %v2371_v4 = vpop.f32.mrf.mxu1 }
 0x194   : > { %v1035_v37 = vadd.f32 %v2959_v58, %v1012_v63  ;;  %v1011_v40 = vadd.f32 %v932_v35, %v746_v0  ;;  %v761_v20 = vadd.f32 %v2371_v4, %v2335_v10  ;;  %v942_v5 = vpop.f32.mrf.mxu0 }
 0x195   : > { %v755_v21 = vpop.f32.mrf.mxu1 }
 0x196   : > { %v1051_v44 = vmax.f32 %v1035_v37, 0.0  ;;  %v1034_v6 = vadd.f32 %v2959_v58, %v1011_v40  ;;  %v1014_v45 = vadd.f32 %v2407_v3, %v761_v20  ;;  %v756_v46 = vadd.f32 %v755_v21, %v604_v16  ;;  %v2410_v54 = vpop.f32.mrf.mxu0 }
 0x197   : > { %v2374_v51 = vpop.f32.mrf.mxu1 }
 0x198   : > { %v1099_v12 = vcombine.high %v1051_v44, %v1051_v44  ;;  %v1106_v48 = vrot.slane %v1051_v44, %v2962_v15  ;;  %v1050_v53 = vmax.f32 %v1034_v6, 0.0  ;;  %v1037_v43 = vadd.f32 %v2959_v58, %v1014_v45  ;;  %v2973_v28 = vpop.f32.mrf.mxu0 }
 0x199   : > { %v1013_v59 = vadd.f32 %v942_v5, %v756_v46  ;;  %v771_v62 = vadd.f32 %v2374_v51, %v2338_v19  ;;  %v765_v1 = vpop.f32.mrf.mxu1 }
 0x19a   : > { %v1113_v13 = vrot.slane %v1099_v12, %v2962_v15  ;;  %v1114_v2 = vcombine.high %v1106_v48, %v1106_v48  ;;  %v2185_v57 = vrot.slane %v1106_v48, 9  ;;  %v1082_v47 = vcombine.high %v1050_v53, %v1050_v53  ;;  %v2413_v20 = vpop.f32.mrf.mxu0 }
 0x19b   : > { %v1089_v17 = vrot.slane %v1050_v53, %v2962_v15  ;;  %v1053_v50 = vmax.f32 %v1037_v43, 0.0  ;;  %v1036_v61 = vadd.f32 %v2959_v58, %v1013_v59  ;;  %v1016_v41 = vadd.f32 %v2410_v54, %v771_v62  ;;  %v2975_v29 = vpop.f32.mrf.mxu1 }
 0x19c   : > { %v1115_v36 = vcombine.high %v1113_v13, %v1113_v13  ;;  %v2186_v8 = vrot.slane %v1114_v2, 9  ;;  %v2187_v32 = vrot.slane %v1113_v13, 9  ;;  %v1096_v49 = vrot.slane %v1082_v47, %v2962_v15 }
 0x19d   : > { %v1097_v10 = vcombine.high %v1089_v17, %v1089_v17  ;;  %v2181_v16 = vrot.slane %v1089_v17, 9  ;;  %v1133_v19 = vcombine.high %v1053_v50, %v1053_v50  ;;  %v2977_v31 = vmax.f32 %v1106_v48, %v2185_v57  ;;  %v775_v5 = vpop.f32.mrf.mxu1  ;;  %v962_v57 = vpop.f32.mrf.mxu0 }
 0x19e   : > { %v2188_v30 = vrot.slane %v1115_v36, 9  ;;  %v1519_v56 = vmax.f32 %v1114_v2, %v2186_v8  ;;  %v1140_v33 = vrot.slane %v1053_v50, %v2962_v15  ;;  %v2980_v39 = vmax.f32 %v1113_v13, %v2187_v32 }
 0x19f   : > { %v1098_v34 = vcombine.high %v1096_v49, %v1096_v49  ;;  %v2182_v35 = vrot.slane %v1097_v10, 9  ;;  %v2183_v55 = vrot.slane %v1096_v49, 9  ;;  %v2982_v63 = vmax.f32 %v1089_v17, %v2181_v16  ;;  %v2380_v47 = vpop.f32.mrf.mxu1 }
 0x1a0   : > { %v1147_v0 = vrot.slane %v1133_v19, %v2962_v15  ;;  %v1148_v3 = vcombine.high %v1140_v33, %v1140_v33  ;;  %v2217_v4 = vrot.slane %v1140_v33, 9  ;;  %v1521_v60 = vmax.f32 %v1115_v36, %v2188_v30 }
 0x1a1   : > { %v2184_v11 = vrot.slane %v1098_v34, 9  ;;  %v1515_v37 = vmax.f32 %v1097_v10, %v2182_v35  ;;  %v1052_v40 = vmax.f32 %v1036_v61, 0.0  ;;  %v2987_v46 = vmax.f32 %v1096_v49, %v2183_v55 }
 0x1a2   : > { %v1149_v21 = vcombine.high %v1147_v0, %v1147_v0  ;;  %v2218_v44 = vrot.slane %v1148_v3, 9  ;;  %v2219_v6 = vrot.slane %v1147_v0, 9  ;;  %v2985_v45 = vmax.f32 %v1140_v33, %v2217_v4 }
 0x1a3   : > { %v1116_v51 = vcombine.high %v1052_v40, %v1052_v40  ;;  %v1123_v42 = vrot.slane %v1052_v40, %v2962_v15  ;;  %v1039_v12 = vadd.f32 %v2959_v58, %v1016_v41  ;;  %v1517_v48 = vmax.f32 %v1098_v34, %v2184_v11 }
 0x1a4   : > { %v2220_v53 = vrot.slane %v1149_v21, 9  ;;  %v1647_v43 = vmax.f32 %v1148_v3, %v2218_v44  ;;  %v2991_v59 = vmax.f32 %v1147_v0, %v2219_v6  ;;  %v766_v36 = vadd.f32 %v765_v1, %v2946_v26  ;;  %v785_v26 = vpop.f32.mrf.mxu1 }
 0x1a5   : > { %v1130_v54 = vrot.slane %v1116_v51, %v2962_v15  ;;  %v1131_v62 = vcombine.high %v1123_v42, %v1123_v42  ;;  %v2213_v13 = vrot.slane %v1123_v42, 9  ;;  %v1055_v2 = vmax.f32 %v1039_v12, 0.0 }
 0x1a6   : > { %v1649_v17 = vmax.f32 %v1149_v21, %v2220_v53  ;;  %v1679_v61 = vmax.f32 %v1519_v56, %v1647_v43  ;;  %v2416_v56 = vpop.f32.mrf.mxu0  ;;  %v1015_v21 = vadd.f32 %v2973_v28, %v766_v36 }
 0x1a7   : > { %v1132_v8 = vcombine.high %v1130_v54, %v1130_v54  ;;  %v2214_v32 = vrot.slane %v1131_v62, 9  ;;  %v2215_v41 = vrot.slane %v1130_v54, 9  ;;  %v2997_v49 = vmax.f32 %v1123_v42, %v2213_v13  ;;  %v2383_v13 = vpop.f32.mrf.mxu1 }
 0x1a8   : > { %v1681_v16 = vmax.f32 %v1521_v60, %v1649_v17  ;;  %v1167_v19 = vcombine.high %v1055_v2, %v1055_v2  ;;  %v1174_v30 = vrot.slane %v1055_v2, %v2962_v15  ;;  %v3002_v33 = vrot.slane %v1679_v61, 7 }
 0x1a9   : > { %v2216_v34 = vrot.slane %v1132_v8, 9  ;;  %v1643_v35 = vmax.f32 %v1131_v62, %v2214_v32  ;;  %v3004_v55 = vmax.f32 %v1130_v54, %v2215_v41  ;;  %v1038_v43 = vadd.f32 %v2959_v58, %v1015_v21  ;;  %v972_v62 = vpop.f32.mrf.mxu0 }
 0x1aa   : > { %v1181_v0 = vrot.slane %v1167_v19, %v2962_v15  ;;  %v1182_v3 = vcombine.high %v1174_v30, %v1174_v30  ;;  %v2193_v4 = vrot.slane %v1174_v30, 9  ;;  %v3009_v11 = vrot.slane %v1681_v16, 7 }
 0x1ab   : > { %v1645_v60 = vmax.f32 %v1132_v8, %v2216_v34  ;;  %v1675_v40 = vmax.f32 %v1515_v37, %v1643_v35  ;;  %v781_v54 = vadd.f32 %v2975_v29, %v2950_v24  ;;  %v776_v17 = vadd.f32 %v775_v5, %v2952_v27  ;;  %v2419_v27 = vpop.f32.mrf.mxu0  ;;  %v795_v5 = vpop.f32.mrf.mxu1 }
 0x1ac   : > { %v1183_v6 = vcombine.high %v1181_v0, %v1181_v0  ;;  %v2194_v51 = vrot.slane %v1182_v3, 9  ;;  %v2195_v42 = vrot.slane %v1181_v0, 9  ;;  %v3014_v53 = vmax.f32 %v1174_v30, %v2193_v4 }
 0x1ad   : > { %v1677_v12 = vmax.f32 %v1517_v48, %v1645_v60  ;;  %v3019_v2 = vrot.slane %v1675_v40, 7  ;;  %v1054_v36 = vmax.f32 %v1038_v43, 0.0  ;;  %v1018_v48 = vadd.f32 %v2413_v20, %v781_v54 }
 0x1ae   : > { %v2196_v37 = vrot.slane %v1183_v6, 9  ;;  %v3021_v28 = vmax.f32 %v1182_v3, %v2194_v51  ;;  %v3024_v61 = vmax.f32 %v1181_v0, %v2195_v42  ;;  %v791_v8 = vadd.f32 %v2380_v47, %v2934_v52 }
 0x1af   : > { %v3027_v32 = vrot.slane %v1677_v12, 7  ;;  %v1017_v41 = vadd.f32 %v962_v57, %v776_v17  ;;  %v786_v24 = vadd.f32 %v785_v26, %v2936_v9  ;;  %v801_v29 = vadd.f32 %v2383_v13, %v2938_v25 }
 0x1b0   : > { %v1150_v16 = vcombine.high %v1054_v36, %v1054_v36  ;;  %v1157_v19 = vrot.slane %v1054_v36, %v2962_v15  ;;  %v1041_v30 = vadd.f32 %v2959_v58, %v1018_v48  ;;  %v1020_v34 = vadd.f32 %v2416_v56, %v791_v8 }
 0x1b1   : > { %v3033_v35 = vmax.f32 %v1183_v6, %v2196_v37  ;;  %v1040_v20 = vadd.f32 %v2959_v58, %v1017_v41  ;;  %v1019_v52 = vadd.f32 %v972_v62, %v786_v24  ;;  %v1022_v47 = vadd.f32 %v2419_v27, %v801_v29 }
 0x1b2   : > { %v1164_v57 = vrot.slane %v1150_v16, %v2962_v15  ;;  %v1165_v0 = vcombine.high %v1157_v19, %v1157_v19  ;;  %v2189_v9 = vrot.slane %v1157_v19, 9  ;;  %v1057_v26 = vmax.f32 %v1041_v30, 0.0 }
 0x1b3   : > { %v1056_v25 = vmax.f32 %v1040_v20, 0.0  ;;  %v1043_v3 = vadd.f32 %v2959_v58, %v1020_v34  ;;  %v1042_v4 = vadd.f32 %v2959_v58, %v1019_v52  ;;  %v3040_v56 = vadd.f32 %v795_v5, %v2940_v14 }
 0x1b4   : > { %v1166_v60 = vcombine.high %v1164_v57, %v1164_v57  ;;  %v2190_v40 = vrot.slane %v1165_v0, 9  ;;  %v2191_v21 = vrot.slane %v1164_v57, 9  ;;  %v1045_v6 = vadd.f32 %v2959_v58, %v1022_v47 }
 0x1b5   : > { %v1201_v51 = vcombine.high %v1057_v26, %v1057_v26  ;;  %v1208_v42 = vrot.slane %v1057_v26, %v2962_v15  ;;  %v1184_v12 = vcombine.high %v1056_v25, %v1056_v25  ;;  %v1191_v43 = vrot.slane %v1056_v25, %v2962_v15 }
 0x1b6   : > { %v2192_v54 = vrot.slane %v1166_v60, 9  ;;  %v3045_v62 = vmax.f32 %v1157_v19, %v2189_v9  ;;  %v1523_v13 = vmax.f32 %v1165_v0, %v2190_v40  ;;  %v1059_v37 = vmax.f32 %v1043_v3, 0.0 }
 0x1b7   : > { %v1215_v17 = vrot.slane %v1201_v51, %v2962_v15  ;;  %v1216_v14 = vcombine.high %v1208_v42, %v1208_v42  ;;  %v2225_v36 = vrot.slane %v1208_v42, 9  ;;  %v1198_v48 = vrot.slane %v1184_v12, %v2962_v15 }
 0x1b8   : > { %v3049_v8 = vmax.f32 %v1164_v57, %v2191_v21  ;;  %v1199_v41 = vcombine.high %v1191_v43, %v1191_v43  ;;  %v2221_v24 = vrot.slane %v1191_v43, 9  ;;  %v1235_v29 = vcombine.high %v1059_v37, %v1059_v37 }
 0x1b9   : > { %v1217_v16 = vcombine.high %v1215_v17, %v1215_v17  ;;  %v2226_v30 = vrot.slane %v1216_v14, 9  ;;  %v2227_v34 = vrot.slane %v1215_v17, 9  ;;  %v3051_v27 = vmax.f32 %v1208_v42, %v2225_v36 }
 0x1ba   : > { %v1200_v19 = vcombine.high %v1198_v48, %v1198_v48  ;;  %v2222_v5 = vrot.slane %v1199_v41, 9  ;;  %v2223_v20 = vrot.slane %v1198_v48, 9  ;;  %v3053_v52 = vmax.f32 %v1191_v43, %v2221_v24 }
 0x1bb   : > { %v1525_v47 = vmax.f32 %v1166_v60, %v2192_v54  ;;  %v2228_v0 = vrot.slane %v1217_v16, 9  ;;  %v1655_v9 = vmax.f32 %v1216_v14, %v2226_v30  ;;  %v3055_v26 = vmax.f32 %v1215_v17, %v2227_v34 }
 0x1bc   : > { %v2224_v25 = vrot.slane %v1200_v19, 9  ;;  %v1651_v3 = vmax.f32 %v1199_v41, %v2222_v5  ;;  %v3059_v40 = vmax.f32 %v1198_v48, %v2223_v20  ;;  %v1242_v12 = vrot.slane %v1059_v37, %v2962_v15  ;;  %v2386_v5 = vpop.f32.mrf.mxu1 }
 0x1bd   : > { %v1657_v21 = vmax.f32 %v1217_v16, %v2228_v0  ;;  %v1687_v51 = vmax.f32 %v3021_v28, %v1655_v9  ;;  %v1249_v17 = vrot.slane %v1235_v29, %v2962_v15  ;;  %v1061_v0 = vmax.f32 %v1045_v6, 0.0  ;;  %v982_v9 = vpop.f32.mrf.mxu0 }
 0x1be   : > { %v1653_v43 = vmax.f32 %v1200_v19, %v2224_v25  ;;  %v1683_v54 = vmax.f32 %v1523_v13, %v1651_v3  ;;  %v1250_v48 = vcombine.high %v1242_v12, %v1242_v12  ;;  %v2201_v41 = vrot.slane %v1242_v12, 9 }
 0x1bf   : > { %v1689_v14 = vmax.f32 %v3033_v35, %v1657_v21  ;;  %v3071_v28 = vrot.slane %v1687_v51, 7  ;;  %v1251_v16 = vcombine.high %v1249_v17, %v1249_v17  ;;  %v2203_v30 = vrot.slane %v1249_v17, 9 }
 0x1c0   : > { %v1685_v24 = vmax.f32 %v1525_v47, %v1653_v43  ;;  %v3075_v34 = vrot.slane %v1683_v54, 7  ;;  %v2202_v19 = vrot.slane %v1250_v48, 9  ;;  %v1058_v13 = vmax.f32 %v1042_v4, 0.0 }
 0x1c1   : > { %v3073_v37 = vrot.slane %v1689_v14, 7  ;;  %v2204_v35 = vrot.slane %v1251_v16, 9  ;;  %v3079_v20 = vmax.f32 %v1242_v12, %v2201_v41  ;;  %v3081_v25 = vmax.f32 %v1249_v17, %v2203_v30 }
 0x1c2   : > { %v3077_v29 = vrot.slane %v1685_v24, 7  ;;  %v1218_v3 = vcombine.high %v1058_v13, %v1058_v13  ;;  %v1225_v47 = vrot.slane %v1058_v13, %v2962_v15  ;;  %v1021_v21 = vadd.f32 %v982_v9, %v3040_v56  ;;  %v2422_v13 = vpop.f32.mrf.mxu0  ;;  %v805_v9 = vpop.f32.mrf.mxu1 }
 0x1c3   : > { %v1535_v51 = vmax.f32 %v1250_v48, %v2202_v19  ;;  %v1269_v43 = vcombine.high %v1061_v0, %v1061_v0  ;;  %v1276_v54 = vrot.slane %v1061_v0, %v2962_v15  ;;  %v811_v4 = vadd.f32 %v2386_v5, %v2942_v18 }
 0x1c4   : > { %v1232_v14 = vrot.slane %v1218_v3, %v2962_v15  ;;  %v1233_v24 = vcombine.high %v1225_v47, %v1225_v47  ;;  %v2197_v12 = vrot.slane %v1225_v47, 9  ;;  %v1044_v6 = vadd.f32 %v2959_v58, %v1021_v21 }
 0x1c5   : > { %v1537_v41 = vmax.f32 %v1251_v16, %v2204_v35  ;;  %v1283_v17 = vrot.slane %v1269_v43, %v2962_v15  ;;  %v1284_v30 = vcombine.high %v1276_v54, %v1276_v54  ;;  %v2233_v36 = vrot.slane %v1276_v54, 9 }
 0x1c6   : > { %v1234_v44 = vcombine.high %v1232_v14, %v1232_v14  ;;  %v2198_v56 = vrot.slane %v1233_v24, 9  ;;  %v2199_v48 = vrot.slane %v1232_v14, 9  ;;  %v1024_v19 = vadd.f32 %v2422_v13, %v811_v4 }
 0x1c7   : > { %v1285_v0 = vcombine.high %v1283_v17, %v1283_v17  ;;  %v2234_v60 = vrot.slane %v1284_v30, 9  ;;  %v2235_v18 = vrot.slane %v1283_v17, 9  ;;  %v3090_v5 = vmax.f32 %v1276_v54, %v2233_v36  ;;  %v2389_v54 = vpop.f32.mrf.mxu1 }
 0x1c8   : > { %v2200_v3 = vrot.slane %v1234_v44, 9  ;;  %v3092_v10 = vmax.f32 %v1225_v47, %v2197_v12  ;;  %v1531_v21 = vmax.f32 %v1233_v24, %v2198_v56  ;;  %v1060_v16 = vmax.f32 %v1044_v6, 0.0 }
 0x1c9   : > { %v3094_v35 = vmax.f32 %v1232_v14, %v2199_v48  ;;  %v2236_v43 = vrot.slane %v1285_v0, 9  ;;  %v1663_v42 = vmax.f32 %v1284_v30, %v2234_v60  ;;  %v3096_v1 = vmax.f32 %v1283_v17, %v2235_v18  ;;  %v992_v30 = vpop.f32.mrf.mxu0 }
 0x1ca   : > { %v1252_v13 = vcombine.high %v1060_v16, %v1060_v16  ;;  %v1259_v57 = vrot.slane %v1060_v16, %v2962_v15  ;;  %v1047_v36 = vadd.f32 %v2959_v58, %v1024_v19  ;;  %v1533_v50 = vmax.f32 %v1234_v44, %v2200_v3 }
 0x1cb   : > { %v1665_v47 = vmax.f32 %v1285_v0, %v2236_v43  ;;  %v1695_v12 = vmax.f32 %v1535_v51, %v1663_v42  ;;  %v806_v24 = vadd.f32 %v805_v9, %v2944_v22  ;;  %v821_v19 = vadd.f32 %v2389_v54, %v2948_v23 }
 0x1cc   : > { %v1266_v14 = vrot.slane %v1252_v13, %v2962_v15  ;;  %v1267_v6 = vcombine.high %v1259_v57, %v1259_v57  ;;  %v2229_v60 = vrot.slane %v1259_v57, 9  ;;  %v1063_v17 = vmax.f32 %v1047_v36, 0.0 }
 0x1cd   : > { %v1697_v48 = vmax.f32 %v1537_v41, %v1665_v47  ;;  %v1023_v18 = vadd.f32 %v992_v30, %v806_v24  ;;  %v3109_v22 = vrot.slane %v1695_v12, 7  ;;  %v2425_v24 = vpop.f32.mrf.mxu0 }
 0x1ce   : > { %v1268_v16 = vcombine.high %v1266_v14, %v1266_v14  ;;  %v2230_v44 = vrot.slane %v1267_v6, 9  ;;  %v2231_v0 = vrot.slane %v1266_v14, 9  ;;  %v3107_v42 = vmax.f32 %v1259_v57, %v2229_v60 }
 0x1cf   : > { %v1303_v51 = vcombine.high %v1063_v17, %v1063_v17  ;;  %v1310_v9 = vrot.slane %v1063_v17, %v2962_v15  ;;  %v1046_v3 = vadd.f32 %v2959_v58, %v1023_v18  ;;  %v3113_v43 = vrot.slane %v1697_v48, 7 }
 0x1d0   : > { %v2232_v41 = vrot.slane %v1268_v16, 9  ;;  %v1659_v13 = vmax.f32 %v1267_v6, %v2230_v44  ;;  %v3115_v36 = vmax.f32 %v1266_v14, %v2231_v0  ;;  %v1026_v30 = vadd.f32 %v2425_v24, %v821_v19 }
 0x1d1   : > { %v1317_v23 = vrot.slane %v1303_v51, %v2962_v15  ;;  %v1318_v54 = vcombine.high %v1310_v9, %v1310_v9  ;;  %v2209_v57 = vrot.slane %v1310_v9, 9  ;;  %v1062_v47 = vmax.f32 %v1046_v3, 0.0  ;;  %v815_v3 = vpop.f32.mrf.mxu1 }
 0x1d2   : > { %v1661_v12 = vmax.f32 %v1268_v16, %v2232_v41  ;;  %v1691_v17 = vmax.f32 %v1531_v21, %v1659_v13  ;;  %v1049_v21 = vadd.f32 %v2959_v58, %v1026_v30 }
 0x1d3   : > { %v1319_v18 = vcombine.high %v1317_v23, %v1317_v23  ;;  %v2210_v56 = vrot.slane %v1318_v54, 9  ;;  %v2211_v6 = vrot.slane %v1317_v23, 9  ;;  %v3122_v44 = vmax.f32 %v1310_v9, %v2209_v57 }
 0x1d4   : > { %v1693_v14 = vmax.f32 %v1533_v50, %v1661_v12  ;;  %v1286_v0 = vcombine.high %v1062_v47, %v1062_v47  ;;  %v1293_v51 = vrot.slane %v1062_v47, %v2962_v15  ;;  %v3125_v16 = vrot.slane %v1691_v17, 7  ;;  %v1002_v17 = vpop.f32.mrf.mxu0 }
 0x1d5   : > { %v2212_v41 = vrot.slane %v1319_v18, 9  ;;  %v1543_v60 = vmax.f32 %v1318_v54, %v2210_v56  ;;  %v3128_v19 = vmax.f32 %v1317_v23, %v2211_v6  ;;  %v1065_v50 = vmax.f32 %v1049_v21, 0.0 }
 0x1d6   : > { %v1300_v13 = vrot.slane %v1286_v0, %v2962_v15  ;;  %v1301_v24 = vcombine.high %v1293_v51, %v1293_v51  ;;  %v2205_v48 = vrot.slane %v1293_v51, 9  ;;  %v3131_v4 = vrot.slane %v1693_v14, 7 }
 0x1d7   : > { %v816_v9 = vadd.f32 %v815_v3, %v2954_v38  ;;  %v3348_v57 = vmax.f32 %v2977_v31, %v2985_v45  ;;  %v1545_v56 = vmax.f32 %v1319_v18, %v2212_v41  ;;  %v1337_v30 = vcombine.high %v1065_v50, %v1065_v50 }
 0x1d8   : > { %3347 = vst [vmem:[#allocation2_spill] sm:$0xff] %v3131_v4  ;;  %v1302_v54 = vcombine.high %v1300_v13, %v1300_v13  ;;  %v2206_v12 = vrot.slane %v1301_v24, 9  ;;  %v2207_v23 = vrot.slane %v1300_v13, 9  ;;  %v1344_v6 = vrot.slane %v1065_v50, %v2962_v15 }
 0x1d9   : > { %v1761_v47 = vsel %vm1743_vm5, %v3002_v33, %v3348_v57  ;;  %v1025_v0 = vadd.f32 %v1002_v17, %v816_v9  ;;  %v3142_v38 = vmax.f32 %v1293_v51, %v2205_v48  ;;  %v1351_v45 = vrot.slane %v1337_v30, %v2962_v15 }
 0x1da   : > { %v1762_v14 = vsel %vm1745_vm6, %v3002_v33, %v1761_v47  ;;  %v2208_v21 = vrot.slane %v1302_v54, 9  ;;  %v3144_v3 = vmax.f32 %v1301_v24, %v2206_v12  ;;  %v1352_v18 = vcombine.high %v1344_v6, %v1344_v6 }
 0x1db   : > { %v1763_v31 = vsel %vm1747_vm7, %v3002_v33, %v1762_v14  ;;  %v2241_v41 = vrot.slane %v1344_v6, 9  ;;  %v1048_v57 = vadd.f32 %v2959_v58, %v1025_v0  ;;  %v3150_v4 = vmax.f32 %v1300_v13, %v2207_v23 }
 0x1dc   : > { %v3152_v50 = vmax.f32 %v1302_v54, %v2208_v21  ;;  %v3349_v9 = vmax.f32 %v3014_v53, %v3051_v27  ;;  %v3350_v51 = vmax.f32 %v3079_v20, %v3090_v5  ;;  %v1353_v47 = vcombine.high %v1351_v45, %v1351_v45 }
 0x1dd   : > { %v2242_v12 = vrot.slane %v1352_v18, 9  ;;  %v2243_v17 = vrot.slane %v1351_v45, 9  ;;  %v1670_v58 = vmax.f32 %v1344_v6, %v2241_v41  ;;  %v1064_v13 = vmax.f32 %v1048_v57, 0.0 }
 0x1de   : > { %v1789_v48 = vsel %vm1743_vm5, %v3071_v28, %v3349_v9  ;;  %v1817_v24 = vsel %vm1743_vm5, %v3109_v22, %v3350_v51  ;;  %v1764_v54 = vsel %vm1749_vm8, %v3002_v33, %v1763_v31  ;;  %v2244_v23 = vrot.slane %v1353_v47, 9 }
 0x1df   : > { %v1790_v53 = vsel %vm1745_vm6, %v3071_v28, %v1789_v48  ;;  %v1818_v27 = vsel %vm1745_vm6, %v3109_v22, %v1817_v24  ;;  %v1671_v30 = vmax.f32 %v1352_v18, %v2242_v12  ;;  %v3170_v20 = vmax.f32 %v1351_v45, %v2243_v17 }
 0x1e0   : > { %v3351_v5 = vmax.f32 %v2982_v63, %v2997_v49  ;;  %v1702_v0 = vmax.f32 %v3122_v44, %v1670_v58  ;;  %v1320_v14 = vcombine.high %v1064_v13, %v1064_v13  ;;  %v1327_v33 = vrot.slane %v1064_v13, %v2962_v15 }
 0x1e1   : > { %v1791_v21 = vsel %vm1747_vm7, %v3071_v28, %v1790_v53  ;;  %v1673_v31 = vmax.f32 %v1353_v47, %v2244_v23  ;;  %v1703_v41 = vmax.f32 %v1543_v60, %v1671_v30  ;;  %v1819_v18 = vsel %vm1747_vm7, %v3109_v22, %v1818_v27 }
 0x1e2   : > { %v1744_v6 = vsel %vm1743_vm5, %v3019_v2, %v3351_v5  ;;  %v1792_v45 = vsel %vm1749_vm8, %v3071_v28, %v1791_v21  ;;  %v1704_v63 = vmax.f32 %v3128_v19, %v3170_v20  ;;  %v1334_v49 = vrot.slane %v1320_v14, %v2962_v15 }
 0x1e3   : > { %v1335_v44 = vcombine.high %v1327_v33, %v1327_v33  ;;  %v2237_v57 = vrot.slane %v1327_v33, 9  ;;  %v1705_v9 = vmax.f32 %v1545_v56, %v1673_v31  ;;  %v1844_v48 = vrot.slane %v1703_v41, 7 }
 0x1e4   : > { %v1908_v51 = vcombine.low %v1764_v54, %v1792_v45  ;;  %v1746_v24 = vsel %vm1745_vm6, %v3019_v2, %v1744_v6  ;;  %v1336_v60 = vcombine.high %v1334_v49, %v1334_v49  ;;  %v2239_v12 = vrot.slane %v1334_v49, 9 }
 0x1e5   : > { %v2238_v47 = vrot.slane %v1335_v44, 9  ;;  %v1666_v28 = vmax.f32 %v1327_v33, %v2237_v57  ;;  %v1851_v17 = vrot.slane %v1705_v9, 7  ;;  %v1820_v58 = vsel %vm1749_vm8, %v3109_v22, %v1819_v18 }
 0x1e6   : > { %v1845_v19 = vsel %vm1743_vm5, %v1844_v48, %v1702_v0  ;;  %v1748_v13 = vsel %vm1747_vm7, %v3019_v2, %v1746_v24  ;;  %v2240_v53 = vrot.slane %v1336_v60, 9  ;;  %v3195_v27 = vmax.f32 %v1334_v49, %v2239_v12 }
 0x1e7   : > { %v1667_v56 = vmax.f32 %v1335_v44, %v2238_v47  ;;  %v3198_v54 = vrot.slane %v1908_v51, %v2970_v7  ;;  %v1698_v23 = vmax.f32 %v3142_v38, %v1666_v28  ;;  %v1846_v30 = vsel %vm1745_vm6, %v1844_v48, %v1845_v19 }
 0x1e8   : > { %v3352_v20 = vmax.f32 %v3045_v62, %v3053_v52  ;;  %v3353_v5 = vmax.f32 %v3092_v10, %v3107_v42  ;;  %v1669_v0 = vmax.f32 %v1336_v60, %v2240_v53  ;;  %v1847_v33 = vsel %vm1747_vm7, %v1844_v48, %v1846_v30 }
 0x1e9   : > { %v1699_v14 = vmax.f32 %v3144_v3, %v1667_v56  ;;  %v1750_v38 = vsel %vm1749_vm8, %v3019_v2, %v1748_v13  ;;  %v1848_v21 = vsel %vm1749_vm8, %v1844_v48, %v1847_v33  ;;  %v3354_v10 = vmax.f32 %v2980_v39, %v2991_v59 }
 0x1ea   : > { %v1775_v22 = vsel %vm1743_vm5, %v3075_v34, %v3352_v20  ;;  %v1803_v6 = vsel %vm1743_vm5, %v3125_v16, %v3353_v5  ;;  %v1701_v3 = vmax.f32 %v3152_v50, %v1669_v0  ;;  %v1917_v41 = vcombine.low %v1820_v58, %v1848_v21  ;;  %v3360_v21 = vld [vmem:[#allocation2_spill] sm:$0xff] }
 0x1eb   : > { %v1776_v62 = vsel %vm1745_vm6, %v3075_v34, %v1775_v22  ;;  %v1804_v52 = vsel %vm1745_vm6, %v3125_v16, %v1803_v6  ;;  %v1768_v42 = vsel %vm1743_vm5, %v3009_v11, %v3354_v10  ;;  %v1830_v31 = vrot.slane %v1699_v14, 7 }
 0x1ec   : > { %v1777_v2 = vsel %vm1747_vm7, %v3075_v34, %v1776_v62  ;;  %v1805_v18 = vsel %vm1747_vm7, %v3125_v16, %v1804_v52  ;;  %v1769_v49 = vsel %vm1745_vm6, %v3009_v11, %v1768_v42  ;;  %v3355_v39 = vmax.f32 %v3024_v61, %v3055_v26 }
 0x1ed   : > { %v1778_v45 = vsel %vm1749_vm8, %v3075_v34, %v1777_v2  ;;  %v1700_v50 = vmax.f32 %v3150_v4, %v3195_v27  ;;  %v1837_v44 = vrot.slane %v1701_v3, 7  ;;  %v3243_v57 = vrot.slane %v1917_v41, %v2970_v7 }
 0x1ee   : > { %v1796_v59 = vsel %vm1743_vm5, %v3073_v37, %v3355_v39  ;;  %v1831_v34 = vsel %vm1743_vm5, %v1830_v31, %v1698_v23  ;;  %v1806_v9 = vsel %vm1749_vm8, %v3125_v16, %v1805_v18  ;;  %v1770_v61 = vsel %vm1747_vm7, %v3009_v11, %v1769_v49 }
 0x1ef   : > { %v1832_v48 = vsel %vm1745_vm6, %v1830_v31, %v1831_v34  ;;  %v1797_v26 = vsel %vm1745_vm6, %v3073_v37, %v1796_v59  ;;  %v2247_v4 = vcombine.high %v3198_v54, %v3243_v57  ;;  %v1872_v24 = vcombine.low %v1750_v38, %v1778_v45 }
 0x1f0   : > { %v1833_v51 = vsel %vm1747_vm7, %v1830_v31, %v1832_v48  ;;  %v1798_v60 = vsel %vm1747_vm7, %v3073_v37, %v1797_v26  ;;  %v1771_v16 = vsel %vm1749_vm8, %v3009_v11, %v1770_v61  ;;  %v3356_v28 = vmax.f32 %v3081_v25, %v3096_v1 }
 0x1f1   : > { %v1834_v47 = vsel %vm1749_vm8, %v1830_v31, %v1833_v51  ;;  %v1799_v12 = vsel %vm1749_vm8, %v3073_v37, %v1798_v60  ;;  %v2014_v19 = vrot.slane %v2247_v4, %v2962_v15  ;;  %v1852_v56 = vsel %vm1743_vm5, %v1851_v17, %v1704_v63 }
 0x1f2   : > { %v1824_v58 = vsel %vm1743_vm5, %v3113_v43, %v3356_v28  ;;  %v1881_v13 = vcombine.low %v1806_v9, %v1834_v47  ;;  %v1853_v27 = vsel %vm1745_vm6, %v1851_v17, %v1852_v56  ;;  %v1926_v37 = vcombine.low %v1771_v16, %v1799_v12 }
 0x1f3   : > { %v1825_v53 = vsel %vm1745_vm6, %v3113_v43, %v1824_v58  ;;  %v3357_v1 = vmax.f32 %v2987_v46, %v3004_v55  ;;  %2015 = vrot.lane.b32.xlu1 %v2014_v19, %s2461_s30  ;;  %v1879_v23 = vrot.slane %v1872_v24, %v2970_v7  ;;  %v1854_v63 = vsel %vm1747_vm7, %v1851_v17, %v1853_v27 }
 0x1f4   : > { %v1826_v11 = vsel %vm1747_vm7, %v3113_v43, %v1825_v53  ;;  %v1888_v30 = vrot.slane %v1881_v13, %v2970_v7  ;;  %v1855_v5 = vsel %vm1749_vm8, %v1851_v17, %v1854_v63  ;;  %v1933_v46 = vrot.slane %v1926_v37, %v2970_v7 }
 0x1f5   : > { %v1754_v25 = vsel %vm1743_vm5, %v3027_v32, %v3357_v1  ;;  %v1827_v22 = vsel %vm1749_vm8, %v3113_v43, %v1826_v11  ;;  %v3358_v55 = vmax.f32 %v3049_v8, %v3059_v40  ;;  %v3359_v17 = vmax.f32 %v3094_v35, %v3115_v36 }
 0x1f6   : > { %v1755_v20 = vsel %vm1745_vm6, %v3027_v32, %v1754_v25  ;;  %v2245_v0 = vcombine.high %v1879_v23, %v1888_v30  ;;  %v1935_v14 = vcombine.low %v1827_v22, %v1855_v5  ;;  %v1838_v40 = vsel %vm1743_vm5, %v1837_v44, %v1700_v50 }
 0x1f7   : > { %v1782_v6 = vsel %vm1743_vm5, %v3077_v29, %v3358_v55  ;;  %v1756_v33 = vsel %vm1747_vm7, %v3027_v32, %v1755_v20  ;;  %v1810_v8 = vsel %vm1743_vm5, %v3360_v21, %v3359_v17  ;;  %v1996_v62 = vcombine.low %v3198_v54, %v3243_v57 }
 0x1f8   : > { %v1783_v38 = vsel %vm1745_vm6, %v3077_v29, %v1782_v6  ;;  %v1964_v52 = vrot.slane %v2245_v0, %v2962_v15  ;;  %v1942_v10 = vrot.slane %v1935_v14, %v2970_v7  ;;  %v1811_v3 = vsel %vm1745_vm6, %v3360_v21, %v1810_v8 }
 0x1f9   : > { %v1784_v43 = vsel %vm1747_vm7, %v3077_v29, %v1783_v38  ;;  %v1757_v35 = vsel %vm1749_vm8, %v3027_v32, %v1756_v33  ;;  %v1812_v36 = vsel %vm1747_vm7, %v3360_v21, %v1811_v3  ;;  %v1839_v31 = vsel %vm1745_vm6, %v1837_v44, %v1838_v40 }
 0x1fa   : > { %v1785_v42 = vsel %vm1749_vm8, %v3077_v29, %v1784_v43  ;;  %1965 = vrot.lane.b32.xlu0 %v1964_v52, %s2461_s30  ;;  %v2020_v54 = vcombine.low %v1933_v46, %v1942_v10  ;;  %v1840_v41 = vsel %vm1747_vm7, %v1837_v44, %v1839_v31  ;;  %v1813_v29 = vsel %vm1749_vm8, %v3360_v21, %v1812_v36  ;;  %s2466_s30 = smov 96  }
 0x1fb   : > { %v1890_v2 = vcombine.low %v1757_v35, %v1785_v42  ;;  %v1841_v45 = vsel %vm1749_vm8, %v1837_v44, %v1840_v41  ;;  %v1946_v18 = vcombine.low %v1879_v23, %v1888_v30  ;;  %v2248_v39 = vcombine.high %v1933_v46, %v1942_v10 }
 0x1fc   : > { %v2027_v49 = vrot.slane %v2020_v54, %v2962_v15  ;;  %v1899_v32 = vcombine.low %v1813_v29, %v1841_v45  ;;  %v2003_v24 = vrot.slane %v1996_v62, %v2962_v15 }
 0x1fd   : > { %v1897_v59 = vrot.slane %v1890_v2, %v2970_v7  ;;  %v2040_v34 = vrot.slane %v2248_v39, %v2962_v15 }
 0x1fe   : > { %2028 = vrot.lane.b32.xlu1 %v2027_v49, %s2465_s7  ;;  %v1906_v50 = vrot.slane %v1899_v32, %v2970_v7  ;;  %v1953_v7 = vrot.slane %v1946_v18, %v2962_v15 }
 0x200   : > { %v1970_v57 = vcombine.low %v1897_v59, %v1906_v50  ;;  %v2246_v44 = vcombine.high %v1897_v59, %v1906_v50 }
 0x202   : > { %v1977_v9 = vrot.slane %v1970_v57, %v2962_v15  ;;  %2041 = vrot.lane.b32.xlu1 %v2040_v34, %s2466_s30  ;;  %v1990_v48 = vrot.slane %v2246_v44, %v2962_v15 }
 0x204   : > { %1978 = vrot.lane.b32.xlu0 %v1977_v9, %s2465_s7 }
 0x208   : > { %1991 = vrot.lane.b32.xlu0 %v1990_v48, %s2466_s30 }
 0x265   : > { %v2016_v61 = vpop.permute.xlu1 %2015 }
 0x266   : > { %v2049_v47 = vsel %vm420_vm3, %v2003_v24, %v2016_v61 }
 0x26c   : > { %v1966_v26 = vpop.permute.xlu0 %1965 }
 0x26d   : > { %v2044_v16 = vsel %vm420_vm3, %v1953_v7, %v1966_v26 }
 0x270   : > { %v2029_v4 = vpop.permute.xlu1 %2028 }
 0x271   : > { %v2050_v12 = vsel %vm2045_vm9, %v2049_v47, %v2029_v4 }
 0x274   : > { %v2042_v60 = vpop.permute.xlu1 %2041 }
 0x275   : > { %v2051_v19 = vsel %vm2047_vm10, %v2050_v12, %v2042_v60 }
 0x276   : > { %v1979_v51 = vpop.permute.xlu0 %1978 }
 0x277   : > { %v2046_v28 = vsel %vm2045_vm9, %v2044_v16, %v1979_v51 }
 0x27a   : > { %v1992_v58 = vpop.permute.xlu0 %1991 }
 0x27b   : > { %v2048_v13 = vsel %vm2047_vm10, %v2046_v28, %v1992_v58 }
 0x27c   : > { %v2054_v53 = vcombine.low %v2048_v13, %v2051_v19 }
 0x27e   : > { %2056 = vst [vmem:[%s170_s11] sm:$0xff] %v2054_v53 }
 0x27f PF: > { %s13_s12 = sadd.s32 1, %s2459_s12  }
 0x280   : > { %p10_p4 = scmp.ge.s32.totalorder %s13_s12, 6  }
 0x282   :  { %12 = sbr.rel (!%p10_p4) target bundleno = 1 (0x1), region = 64 }

// kernel: cnn_model_forward.3
= control target key start
LH: loop header
LB: loop body
LE: loop exit
PB: predicated region body
PF: predicated region fallthrough
CT: control target
= control target key end

     0   :  { %s7842_s12 = smov 0   ;;  %s11127_s0 = inlined_call_operand.vmem [shape: f32[4,18,34,8], index: 0, kind: input, shape index: {}]   ;;  %s11128_s1 = inlined_call_operand.vmem [shape: f32[3,24,16], index: 1, kind: input, shape index: {}]   ;;  %s11129_s2 = inlined_call_operand.vmem [shape: f32[1,16], index: 2, kind: input, shape index: {}]   ;;  %s11130_s3 = inlined_call_operand.vmem [shape: f32[4,8,256], index: 3, kind: output, shape index: {}]  }
   0x1 LB: > { %s6788_s13 = sadd.s32 4294967295, %s7810_s12   ;;  %p6792_p0 = scmp.ge.s32.totalorder %s7810_s12, 1  ;;  %s7810_s12 = sphi %s7842_s12, %s13_s12  }
   0x2   : > { %p137_p1 = scmp.lt.s32.totalorder %s7810_s12, 5 }
   0x4   : > { %p138_p2 = pnand %p6792_p0, %p137_p1 }
   0x6   : > { %141 = sbr.rel (%p138_p2) target bundleno = 1148 (0x47c), region = 32 }
   0xb   : > { %p161_p3 = scmp.lt.s32.totalorder %s6788_s13, 3  ;;  %v6798_v0 = vld [vmem:[%s11128_s1 + $0x28] sm:$0xff]  ;;  %v6797_v1 = vld [vmem:[%s11128_s1 + $0x20] sm:$0xff]  ;;  %v6796_v2 = vld [vmem:[%s11128_s1 + $0x18] sm:$0xff]  ;;  %vm678_vm0 = vcmask 1045504   ;;  %vm341_vm1 = vcmask 1046528  }
   0xc   : > { %7777 = vmatprep.subr.mxu1 %v6798_v0  ;;  %7471 = vmatprep.subr.mxu0 %v6798_v0  ;;  %s7812_s24 = smov 16   ;;  %s7813_s25 = smov 8   ;;  %vm1015_vm2 = vcmask 64512   ;;  %vm1080_vm3 = vcmask 130048   ;;  %vm1207_vm4 = vcmask 195584   ;;  %vm5530_vm5 = vcmask 1041409  }
   0xd   : > { %s11608_s13 = smov (!%p161_p3, %s6788_s13), 3  ;;  %7780 = vmatpush3.msra.mxu1 %v6798_v0  ;;  %7472 = vmatpush3.msra.mxu0 %v6798_v0  ;;  %vm5532_vm6 = vcmask 1043459   ;;  %vm5534_vm7 = vcmask 1045509   ;;  %vm5536_vm8 = vcmask 1047559   ;;  %s7816_s19 = smov 64   ;;  %vm6712_vm9 = vcmask 261120  }
   0xe   : > { %s7783_s20 = smul.u32 720, %s11608_s13  ;;  %7778 = vmatprep.subr.mxu1 %v6797_v1  ;;  %7473 = vmatprep.subr.mxu0 %v6797_v1  ;;  %s7818_s21 = smov 96   ;;  %vm6714_vm10 = vcmask 392192   ;;  %vm6716_vm11 = vcmask 523264   ;;  %vm6718_vm12 = vcmask 654336   ;;  %vm6720_vm13 = vcmask 785408  }
   0xf   : > { %7781 = vmatpush3.msra.mxu1 %v6797_v1  ;;  %7474 = vmatpush3.msra.mxu0 %v6797_v1  ;;  %s7819_s22 = smov 32   ;;  %vm6722_vm14 = vcmask 916480  }
  0x10   : > { %s7865_s23 = scalar_lea.vmem %s11127_s0, %s7783_s20  ;;  %7779 = vmatprep.subr.mxu1 %v6796_v2  ;;  %7475 = vmatprep.subr.mxu0 %v6796_v2  ;;  %s7817_s20 = smov 80  }
  0x11   : > { %v7868_v3 = vld [vmem:[%s7865_s23 + $0x168] sm:$0xff]  ;;  %v7871_v4 = vld [vmem:[%s7865_s23 + $0x170] sm:$0xff]  ;;  %v7874_v5 = vld [vmem:[%s7865_s23 + $0x178] sm:$0xff]  ;;  %7782 = vmatpush3.msra.mxu1 %v6796_v2  ;;  %7476 = vmatpush3.msra.mxu0 %v6796_v2 }
  0x12   : > { %v760_v6 = vrot.slane %v7868_v3, 2  ;;  %v761_v7 = vrot.slane %v7871_v4, 2  ;;  %v423_v8 = vrot.slane %v7868_v3, 1  ;;  %v424_v9 = vrot.slane %v7871_v4, 1  ;;  %v7881_v10 = vld [vmem:[%s7865_s23 + $0x28] sm:$0xff]  ;;  %v7884_v11 = vld [vmem:[%s7865_s23 + $0x30] sm:$0xff] }
  0x13   : > { %v426_v12 = vrot.slane %v7874_v5, 1  ;;  %v351_v13 = vrot.slane %v7881_v10, 1  ;;  %v352_v14 = vrot.slane %v7884_v11, 1  ;;  %v7890_v15 = vld [vmem:[%s7865_s23 + $0x38] sm:$0xff]  ;;  %v763_v20 = vrot.slane %v7874_v5, 2  ;;  %v7901_v22 = vld [vmem:[%s7865_s23 + $0x180] sm:$0xff] }
  0x14   : > { %v762_v16 = vsel %vm678_vm0, %v760_v6, %v761_v7  ;;  %v425_v17 = vsel %vm341_vm1, %v423_v8, %v424_v9  ;;  %v354_v21 = vrot.slane %v7890_v15, 1  ;;  %v688_v23 = vrot.slane %v7881_v10, 2  ;;  %v220_v28 = vld [vmem:[%s7865_s23 + $0x188] sm:$0x3]  ;;  %v7917_v33 = vld [vmem:[%s7865_s23 + $0x40] sm:$0xff]  ;;  %v7931_v43 = vld [vmem:[%s7865_s23 + $0x190] sm:$0xff] }
  0x15   : > { %895 = vrot.lane.b32.xlu1 %v762_v16, %s7812_s24  ;;  %558 = vrot.lane.b32.xlu0 %v425_v17, %s7813_s25  ;;  %v427_v18 = vsel %vm341_vm1, %v424_v9, %v426_v12  ;;  %v353_v19 = vsel %vm341_vm1, %v351_v13, %v352_v14  ;;  %v764_v24 = vsel %vm678_vm0, %v761_v7, %v763_v20  ;;  %v689_v26 = vrot.slane %v7884_v11, 2  ;;  %v180_v38 = vld [vmem:[%s7865_s23 + $0x48] sm:$0x3]  ;;  %v7934_v44 = vld [vmem:[%s7865_s23 + $0x198] sm:$0xff] }
  0x16   : > { %v355_v25 = vsel %vm341_vm1, %v352_v14, %v354_v21  ;;  %v428_v27 = vrot.slane %v7901_v22, 1  ;;  %v691_v31 = vrot.slane %v7890_v15, 2  ;;  %v430_v32 = vrot.slane %v220_v28, 1  ;;  %v7944_v50 = vld [vmem:[%s7865_s23 + $0x1a0] sm:$0xff]  ;;  %v7952_v55 = vld [vmem:[%s7865_s23 + $0x50] sm:$0xff]  ;;  %v7955_v56 = vld [vmem:[%s7865_s23 + $0x58] sm:$0xff] }
  0x17   : > { %v690_v29 = vsel %vm678_vm0, %v688_v23, %v689_v26  ;;  %v765_v36 = vrot.slane %v7901_v22, 2  ;;  %v356_v37 = vrot.slane %v7917_v33, 1  ;;  %v767_v39 = vrot.slane %v220_v28, 2  ;;  %v7966_v63 = vld [vmem:[%s7865_s23 + $0x60] sm:$0xff]  ;;  %v7975_v7 = vld [vmem:[%s7865_s23 + $0x1a8] sm:$0xff] }
  0x18   : > { %v429_v30 = vsel %vm341_vm1, %v426_v12, %v428_v27  ;;  %v692_v34 = vsel %vm678_vm0, %v689_v26, %v691_v31  ;;  %v431_v35 = vsel %vm341_vm1, %v428_v27, %v430_v32  ;;  %v358_v42 = vrot.slane %v180_v38, 1  ;;  %v225_v16 = vld [vmem:[%s7865_s23 + $0x1b0] sm:$0x3]  ;;  %v8005_v32 = vld [vmem:[%s7865_s23 + $0x1b8] sm:$0xff] }
  0x19   : > { %560 = vrot.lane.b32.xlu0 %v427_v18, %s7813_s25  ;;  %494 = vrot.lane.b32.xlu1 %v353_v19, %s7813_s25  ;;  %v766_v40 = vsel %vm678_vm0, %v763_v20, %v765_v36  ;;  %v357_v41 = vsel %vm341_vm1, %v354_v21, %v356_v37  ;;  %v768_v45 = vsel %vm678_vm0, %v765_v36, %v767_v39  ;;  %v693_v47 = vrot.slane %v7917_v33, 2  ;;  %v7991_v21 = vld [vmem:[%s7865_s23 + $0x68] sm:$0xff]  ;;  %v185_v27 = vld [vmem:[%s7865_s23 + $0x70] sm:$0x3] }
  0x1a   : > { %v359_v46 = vsel %vm341_vm1, %v356_v37, %v358_v42  ;;  %v432_v48 = vrot.slane %v7931_v43, 1  ;;  %v433_v49 = vrot.slane %v7934_v44, 1  ;;  %v695_v53 = vrot.slane %v180_v38, 2 }
  0x1b   : > { %v694_v51 = vsel %vm678_vm0, %v691_v31, %v693_v47  ;;  %v435_v54 = vrot.slane %v7944_v50, 1  ;;  %v769_v57 = vrot.slane %v7931_v43, 2  ;;  %v770_v58 = vrot.slane %v7934_v44, 2 }
  0x1c   : > { %v434_v52 = vsel %vm341_vm1, %v432_v48, %v433_v49  ;;  %v696_v59 = vsel %vm678_vm0, %v693_v47, %v695_v53  ;;  %v360_v61 = vrot.slane %v7952_v55, 1  ;;  %v361_v62 = vrot.slane %v7955_v56, 1  ;;  %v8026_v47 = vld [vmem:[%s7865_s23 + $0x78] sm:$0xff]  ;;  %v8029_v48 = vld [vmem:[%s7865_s23 + $0x80] sm:$0xff] }
  0x1d   : > { %897 = vrot.lane.b32.xlu0 %v764_v24, %s7812_s24  ;;  %496 = vrot.lane.b32.xlu1 %v355_v25, %s7813_s25  ;;  %v436_v60 = vsel %vm341_vm1, %v433_v49, %v435_v54  ;;  %v771_v0 = vsel %vm678_vm0, %v769_v57, %v770_v58  ;;  %v772_v2 = vrot.slane %v7944_v50, 2  ;;  %v363_v6 = vrot.slane %v7966_v63, 1 }
  0x1e   : > { %v362_v1 = vsel %vm341_vm1, %v360_v61, %v361_v62  ;;  %v697_v8 = vrot.slane %v7952_v55, 2  ;;  %v698_v13 = vrot.slane %v7955_v56, 2  ;;  %v437_v14 = vrot.slane %v7975_v7, 1 }
  0x1f   : > { %v773_v9 = vsel %vm678_vm0, %v770_v58, %v772_v2  ;;  %v364_v12 = vsel %vm341_vm1, %v361_v62, %v363_v6  ;;  %v700_v19 = vrot.slane %v7966_v63, 2  ;;  %v439_v20 = vrot.slane %v225_v16, 1  ;;  %v8040_v58 = vld [vmem:[%s7865_s23 + $0x88] sm:$0xff] }
  0x20   : > { %v699_v17 = vsel %vm678_vm0, %v697_v8, %v698_v13  ;;  %v438_v18 = vsel %vm341_vm1, %v435_v54, %v437_v14  ;;  %v774_v25 = vrot.slane %v7975_v7, 2  ;;  %v365_v26 = vrot.slane %v7991_v21, 1 }
  0x21   : > { %831 = vrot.lane.b32.xlu0 %v690_v29, %s7812_s24  ;;  %562 = vrot.lane.b32.xlu1 %v429_v30, %s7813_s25  ;;  %v701_v23 = vsel %vm678_vm0, %v698_v13, %v700_v19  ;;  %v440_v24 = vsel %vm341_vm1, %v437_v14, %v439_v20  ;;  %v776_v30 = vrot.slane %v225_v16, 2  ;;  %v367_v31 = vrot.slane %v185_v27, 1 }
  0x22   : > { %v775_v28 = vsel %vm678_vm0, %v772_v2, %v774_v25  ;;  %v366_v29 = vsel %vm341_vm1, %v363_v6, %v365_v26  ;;  %v441_v38 = vrot.slane %v8005_v32, 1  ;;  %v778_v49 = vrot.slane %v8005_v32, 2 }
  0x23   : > { %v777_v36 = vsel %vm678_vm0, %v774_v25, %v776_v30  ;;  %v368_v37 = vsel %vm341_vm1, %v365_v26, %v367_v31  ;;  %v369_v54 = vrot.slane %v8026_v47, 1  ;;  %v370_v57 = vrot.slane %v8029_v48, 1  ;;  %v190_v25 = vld [vmem:[%s7865_s23 + $0x98] sm:$0x3]  ;;  %v8079_v30 = vld [vmem:[%s7865_s23 + $0x1e0] sm:$0xff]  ;;  %v8082_v31 = vld [vmem:[%s7865_s23 + $0x1e8] sm:$0xff] }
  0x24   : > { %v372_v62 = vrot.slane %v8040_v58, 1  ;;  %v707_v8 = vrot.slane %v8029_v48, 2  ;;  %v709_v16 = vrot.slane %v8040_v58, 2 }
  0x25   : > { %833 = vrot.lane.b32.xlu0 %v692_v34, %s7812_s24  ;;  %564 = vrot.lane.b32.xlu1 %v431_v35, %s7813_s25  ;;  %v8008_v34 = vld [vmem:[%s7865_s23 + $0x1c0] sm:$0xff]  ;;  %v702_v35 = vrot.slane %v7991_v21, 2 }
  0x26   : > { %v442_v39 = vrot.slane %v8008_v34, 1  ;;  %v373_v6 = vsel %vm341_vm1, %v370_v57, %v372_v62 }
  0x28   : > { %v443_v42 = vsel %vm341_vm1, %v441_v38, %v442_v39  ;;  %v450_v38 = vrot.slane %v8079_v30, 1 }
  0x29   : > { %899 = vrot.lane.b32.xlu0 %v766_v40, %s7812_s24  ;;  %498 = vrot.lane.b32.xlu1 %v357_v41, %s7813_s25  ;;  %v8018_v40 = vld [vmem:[%s7865_s23 + $0x1c8] sm:$0xff]  ;;  %v703_v41 = vsel %vm678_vm0, %v700_v19, %v702_v35  ;;  %v710_v19 = vsel %vm678_vm0, %v707_v8, %v709_v16 }
  0x2a   : > { %v781_v61 = vrot.slane %v8018_v40, 2 }
  0x2d   : > { %901 = vrot.lane.b32.xlu0 %v768_v45, %s7812_s24  ;;  %500 = vrot.lane.b32.xlu1 %v359_v46, %s7813_s25  ;;  %v704_v45 = vrot.slane %v185_v27, 2  ;;  %v444_v46 = vrot.slane %v8018_v40, 1 }
  0x2f   : > { %v445_v53 = vsel %vm341_vm1, %v442_v39, %v444_v46  ;;  %v451_v39 = vrot.slane %v8082_v31, 1 }
  0x31   : > { %835 = vrot.lane.b32.xlu0 %v694_v51, %s7812_s24  ;;  %566 = vrot.lane.b32.xlu1 %v434_v52, %s7813_s25  ;;  %v779_v51 = vrot.slane %v8008_v34, 2  ;;  %v705_v52 = vsel %vm678_vm0, %v702_v35, %v704_v45  ;;  %v452_v45 = vsel %vm341_vm1, %v450_v38, %v451_v39 }
  0x33   : > { %v782_v2 = vsel %vm678_vm0, %v779_v51, %v781_v61 }
  0x35   : > { %837 = vrot.lane.b32.xlu0 %v696_v59, %s7812_s24  ;;  %568 = vrot.lane.b32.xlu1 %v436_v60, %s7813_s25  ;;  %v780_v59 = vsel %vm678_vm0, %v778_v49, %v779_v51  ;;  %v371_v60 = vsel %vm341_vm1, %v369_v54, %v370_v57  ;;  %v8100_v51 = vld [vmem:[%s7865_s23 + $0xa0] sm:$0xff]  ;;  %v788_v54 = vrot.slane %v8082_v31, 2 }
  0x39   : > { %903 = vrot.lane.b32.xlu0 %v771_v0, %s7812_s24  ;;  %502 = vrot.lane.b32.xlu1 %v362_v1, %s7813_s25  ;;  %v8049_v0 = vld [vmem:[%s7865_s23 + $0x1d0] sm:$0xff]  ;;  %v706_v1 = vrot.slane %v8026_v47, 2 }
  0x3b   : > { %v708_v13 = vsel %vm678_vm0, %v706_v1, %v707_v8 }
  0x3d   : > { %905 = vrot.lane.b32.xlu0 %v773_v9, %s7812_s24  ;;  %504 = vrot.lane.b32.xlu1 %v364_v12, %s7813_s25  ;;  %v446_v9 = vrot.slane %v8049_v0, 1  ;;  %v230_v12 = vld [vmem:[%s7865_s23 + $0x1d8] sm:$0x3] }
  0x3f   : > { %v447_v14 = vsel %vm341_vm1, %v444_v46, %v446_v9  ;;  %v713_v46 = vrot.slane %v190_v25, 2 }
  0x41   : > { %839 = vrot.lane.b32.xlu0 %v699_v17, %s7812_s24  ;;  %570 = vrot.lane.b32.xlu1 %v438_v18, %s7813_s25  ;;  %v448_v17 = vrot.slane %v230_v12, 1  ;;  %v8065_v18 = vld [vmem:[%s7865_s23 + $0x90] sm:$0xff] }
  0x42   : > { %v711_v35 = vrot.slane %v8065_v18, 2 }
  0x43   : > { %v449_v20 = vsel %vm341_vm1, %v446_v9, %v448_v17  ;;  %v8123_v9 = vld [vmem:[%s7865_s23 + $0x1f8] sm:$0xff] }
  0x44   : > { %v714_v57 = vsel %vm678_vm0, %v711_v35, %v713_v46  ;;  %v455_v17 = vrot.slane %v8123_v9, 1 }
  0x45   : > { %841 = vrot.lane.b32.xlu0 %v701_v23, %s7812_s24  ;;  %572 = vrot.lane.b32.xlu1 %v440_v24, %s7813_s25  ;;  %v783_v23 = vrot.slane %v8049_v0, 2  ;;  %v374_v24 = vrot.slane %v8065_v18, 1 }
  0x47   : > { %v784_v26 = vsel %vm678_vm0, %v781_v61, %v783_v23  ;;  %v375_v27 = vsel %vm341_vm1, %v372_v62, %v374_v24  ;;  %v8114_v62 = vld [vmem:[%s7865_s23 + $0xb0] sm:$0xff] }
  0x48   : > { %v381_v8 = vrot.slane %v8114_v62, 1 }
  0x49   : > { %907 = vrot.lane.b32.xlu0 %v775_v28, %s7812_s24  ;;  %506 = vrot.lane.b32.xlu1 %v366_v29, %s7813_s25  ;;  %v785_v28 = vrot.slane %v230_v12, 2  ;;  %v376_v29 = vrot.slane %v190_v25, 1  ;;  %v715_v12 = vrot.slane %v8100_v51, 2 }
  0x4d   : > { %909 = vrot.lane.b32.xlu0 %v777_v36, %s7812_s24  ;;  %508 = vrot.lane.b32.xlu1 %v368_v37, %s7813_s25  ;;  %v786_v36 = vsel %vm678_vm0, %v783_v23, %v785_v28  ;;  %v377_v37 = vsel %vm341_vm1, %v374_v24, %v376_v29  ;;  %v718_v24 = vrot.slane %v8114_v62, 2  ;;  %v792_v29 = vrot.slane %v8123_v9, 2 }
  0x51   : > { %843 = vrot.lane.b32.xlu0 %v703_v41, %s7812_s24  ;;  %574 = vrot.lane.b32.xlu1 %v443_v42, %s7813_s25  ;;  %v8092_v41 = vld [vmem:[%s7865_s23 + $0x1f0] sm:$0xff]  ;;  %v712_v42 = vsel %vm678_vm0, %v709_v16, %v711_v35 }
  0x52   : > { %v453_v49 = vrot.slane %v8092_v41, 1 }
  0x54   : > { %v456_v23 = vsel %vm341_vm1, %v453_v49, %v455_v17 }
  0x55   : > { %845 = vrot.lane.b32.xlu0 %v705_v52, %s7812_s24  ;;  %576 = vrot.lane.b32.xlu1 %v445_v53, %s7813_s25  ;;  %v8103_v52 = vld [vmem:[%s7865_s23 + $0xa8] sm:$0xff]  ;;  %v787_v53 = vrot.slane %v8079_v30, 2 }
  0x56   : > { %v379_v61 = vrot.slane %v8103_v52, 1  ;;  %v716_v16 = vrot.slane %v8103_v52, 2 }
  0x57   : > { %v789_v1 = vsel %vm678_vm0, %v787_v53, %v788_v54  ;;  %v8155_v53 = vld [vmem:[%s7865_s23 + $0x208] sm:$0xff] }
  0x59   : > { %911 = vrot.lane.b32.xlu0 %v780_v59, %s7812_s24  ;;  %510 = vrot.lane.b32.xlu1 %v371_v60, %s7813_s25  ;;  %v454_v59 = vsel %vm341_vm1, %v451_v39, %v453_v49  ;;  %v378_v60 = vrot.slane %v8100_v51, 1 }
  0x5d   : > { %913 = vrot.lane.b32.xlu0 %v782_v2, %s7812_s24  ;;  %512 = vrot.lane.b32.xlu1 %v373_v6, %s7813_s25  ;;  %v380_v2 = vsel %vm341_vm1, %v378_v60, %v379_v61  ;;  %v790_v6 = vrot.slane %v8092_v41, 2 }
  0x61   : > { %847 = vrot.lane.b32.xlu0 %v708_v13, %s7812_s24  ;;  %578 = vrot.lane.b32.xlu1 %v447_v14, %s7813_s25  ;;  %v791_v13 = vsel %vm678_vm0, %v788_v54, %v790_v6  ;;  %v382_v14 = vsel %vm341_vm1, %v379_v61, %v381_v8  ;;  %v8158_v54 = vld [vmem:[%s7865_s23 + $0x210] sm:$0xff] }
  0x65   : > { %849 = vrot.lane.b32.xlu0 %v710_v19, %s7812_s24  ;;  %580 = vrot.lane.b32.xlu1 %v449_v20, %s7813_s25  ;;  %v235_v19 = vld [vmem:[%s7865_s23 + $0x200] sm:$0x3]  ;;  %v717_v20 = vsel %vm678_vm0, %v715_v12, %v716_v16 }
  0x66   : > { %v457_v25 = vrot.slane %v235_v19, 1  ;;  %v794_v39 = vrot.slane %v235_v19, 2 }
  0x68   : > { %v458_v28 = vsel %vm341_vm1, %v455_v17, %v457_v25  ;;  %v8186_v25 = vld [vmem:[%s7865_s23 + $0xc8] sm:$0xff] }
  0x69   : > { %915 = vrot.lane.b32.xlu0 %v784_v26, %s7812_s24  ;;  %514 = vrot.lane.b32.xlu1 %v375_v27, %s7813_s25  ;;  %v8139_v26 = vld [vmem:[%s7865_s23 + $0xb8] sm:$0xff]  ;;  %v719_v27 = vsel %vm678_vm0, %v716_v16, %v718_v24 }
  0x6a   : > { %v383_v35 = vrot.slane %v8139_v26, 1 }
  0x6c   : > { %v384_v38 = vsel %vm341_vm1, %v381_v8, %v383_v35  ;;  %v8173_v8 = vld [vmem:[%s7865_s23 + $0x218] sm:$0xff] }
  0x6d   : > { %917 = vrot.lane.b32.xlu0 %v786_v36, %s7812_s24  ;;  %516 = vrot.lane.b32.xlu1 %v377_v37, %s7813_s25  ;;  %v195_v36 = vld [vmem:[%s7865_s23 + $0xc0] sm:$0x3]  ;;  %v793_v37 = vsel %vm678_vm0, %v790_v6, %v792_v29  ;;  %v460_v6 = vrot.slane %v8158_v54, 1 }
  0x71   : > { %851 = vrot.lane.b32.xlu0 %v712_v42, %s7812_s24  ;;  %582 = vrot.lane.b32.xlu1 %v452_v45, %s7813_s25  ;;  %v385_v42 = vrot.slane %v195_v36, 1 }
  0x73   : > { %v386_v60 = vsel %vm341_vm1, %v383_v35, %v385_v42 }
  0x75   : > { %853 = vrot.lane.b32.xlu0 %v714_v57, %s7812_s24  ;;  %584 = vrot.lane.b32.xlu1 %v454_v59, %s7813_s25  ;;  %v795_v59 = vsel %vm678_vm0, %v792_v29, %v794_v39 }
  0x79   : > { %919 = vrot.lane.b32.xlu0 %v789_v1, %s7812_s24  ;;  %518 = vrot.lane.b32.xlu1 %v380_v2, %s7813_s25  ;;  %v459_v2 = vrot.slane %v8155_v53, 1 }
  0x7b   : > { %v461_v19 = vsel %vm341_vm1, %v459_v2, %v460_v6  ;;  %v8223_v2 = vld [vmem:[%s7865_s23 + $0x220] sm:$0xff] }
  0x7d   : > { %921 = vrot.lane.b32.xlu0 %v791_v13, %s7812_s24  ;;  %520 = vrot.lane.b32.xlu1 %v382_v14, %s7813_s25  ;;  %v722_v13 = vrot.slane %v195_v36, 2 }
  0x81   : > { %855 = vrot.lane.b32.xlu0 %v717_v20, %s7812_s24  ;;  %586 = vrot.lane.b32.xlu1 %v456_v23, %s7813_s25  ;;  %v462_v20 = vrot.slane %v8173_v8, 1 }
  0x85   : > { %857 = vrot.lane.b32.xlu0 %v719_v27, %s7812_s24  ;;  %588 = vrot.lane.b32.xlu1 %v458_v28, %s7813_s25  ;;  %v8189_v27 = vld [vmem:[%s7865_s23 + $0xd0] sm:$0xff]  ;;  %v797_v28 = vrot.slane %v8158_v54, 2 }
  0x86   : > { %v388_v39 = vrot.slane %v8189_v27, 1 }
  0x87   : > { %v896_v45 = vpop.permute.xlu1 %895  ;;  %v559_v46 = vpop.permute.xlu0 %558 }
  0x88   : > { %v1052_v49 = vsel %vm1015_vm2, %v7868_v3, %v559_v46  ;;  %v720_v3 = vrot.slane %v8139_v26, 2  ;;  %v799_v46 = vrot.slane %v8173_v8, 2 }
  0x89   : > { %923 = vrot.lane.b32.xlu0 %v793_v37, %s7812_s24  ;;  %522 = vrot.lane.b32.xlu1 %v384_v38, %s7813_s25  ;;  %v8163_v57 = vsel %vm1080_vm3, %v1052_v49, %v896_v45  ;;  %v463_v37 = vsel %vm341_vm1, %v460_v6, %v462_v20  ;;  %v387_v38 = vrot.slane %v8186_v25, 1  ;;  %v8207_v45 = vld [vmem:[%s7865_s23 + $0xd8] sm:$0xff]  ;;  %v724_v6 = vrot.slane %v8186_v25, 2 }
  0x8a   : > { %11279 = vst [vmem:[#allocation2_spill] sm:$0xff] %v8163_v57  ;;  %7525 = vmatprep.mubr.msk.f32.mxu1 %vm1207_vm4, %v8163_v57  ;;  %v721_v12 = vsel %vm678_vm0, %v718_v24, %v720_v3  ;;  %v796_v24 = vrot.slane %v8155_v53, 2  ;;  %v8519_v57 = vld [vmem:[%s7865_s23 + $0x130] sm:$0xff] }
  0x8b   : > { %v561_v61 = vpop.permute.xlu0 %560  ;;  %v495_v1 = vpop.permute.xlu1 %494 }
  0x8c   : > { %v1053_v14 = vsel %vm1015_vm2, %v7871_v4, %v561_v61  ;;  %v723_v4 = vsel %vm678_vm0, %v720_v3, %v722_v13  ;;  %v1020_v29 = vsel %vm1015_vm2, %v7881_v10, %v495_v1  ;;  %v798_v10 = vsel %vm678_vm0, %v796_v24, %v797_v28  ;;  %v240_v24 = vld [vmem:[%s7865_s23 + $0x228] sm:$0x3] }
  0x8d   : > { %925 = vrot.lane.b32.xlu0 %v795_v59, %s7812_s24  ;;  %524 = vrot.lane.b32.xlu1 %v386_v60, %s7813_s25  ;;  %v389_v3 = vsel %vm341_vm1, %v387_v38, %v388_v39  ;;  %v390_v61 = vrot.slane %v8207_v45, 1  ;;  %v466_v38 = vrot.slane %v240_v24, 1 }
  0x8f   : > { %v898_v16 = vpop.permute.xlu0 %897  ;;  %v497_v17 = vpop.permute.xlu1 %496 }
  0x90   : > { %v8183_v23 = vsel %vm1080_vm3, %v1053_v14, %v898_v16  ;;  %v1021_v49 = vsel %vm1015_vm2, %v7884_v11, %v497_v17  ;;  %v800_v11 = vsel %vm678_vm0, %v797_v28, %v799_v46  ;;  %v391_v17 = vsel %vm341_vm1, %v388_v39, %v390_v61 }
  0x91   : > { %11280 = vst [vmem:[#allocation3_spill] sm:$0xff] %v8183_v23  ;;  %7526 = vmatmul.mubr.msk.f32.vlgmr.msra.gmra.mxu1 %vm1207_vm4, %v8183_v23  ;;  %859 = vrot.lane.b32.xlu0 %v721_v12, %s7812_s24  ;;  %v725_v12 = vrot.slane %v8189_v27, 2  ;;  %v727_v28 = vrot.slane %v8207_v45, 2 }
  0x92   : > { %590 = vrot.lane.b32.xlu1 %v461_v19, %s7813_s25  ;;  %v464_v19 = vrot.slane %v8223_v2, 1 }
  0x93   : > { %v832_v35 = vpop.permute.xlu0 %831  ;;  %v563_v36 = vpop.permute.xlu1 %562 }
  0x94   : > { %v8204_v42 = vsel %vm1080_vm3, %v1020_v29, %v832_v35  ;;  %v1054_v13 = vsel %vm1015_vm2, %v7874_v5, %v563_v36  ;;  %v726_v5 = vsel %vm678_vm0, %v724_v6, %v725_v12 }
  0x95   : > { %861 = vrot.lane.b32.xlu0 %v723_v4, %s7812_s24  ;;  %7477 = vmatprep.mubr.msk.f32.mxu0 %vm1207_vm4, %v8204_v42 }
  0x96   : > { %592 = vrot.lane.b32.xlu1 %v463_v37, %s7813_s25  ;;  %v465_v37 = vsel %vm341_vm1, %v462_v20, %v464_v19 }
  0x97   : > { %v834_v59 = vpop.permute.xlu0 %833  ;;  %v565_v60 = vpop.permute.xlu1 %564 }
  0x98   : > { %v8220_v1 = vsel %vm1080_vm3, %v1021_v49, %v834_v59  ;;  %v1055_v29 = vsel %vm1015_vm2, %v7901_v22, %v565_v60  ;;  %v728_v22 = vsel %vm678_vm0, %v725_v12, %v727_v28  ;;  %v801_v49 = vrot.slane %v8223_v2, 2 }
  0x99   : > { %927 = vrot.lane.b32.xlu0 %v798_v10, %s7812_s24  ;;  %7478 = vmatmul.mubr.msk.f32.vlgmr.msra.gmra.mxu0 %vm1207_vm4, %v8220_v1  ;;  %v8253_v10 = vld [vmem:[%s7865_s23 + $0xe0] sm:$0xff]  ;;  %v803_v12 = vrot.slane %v240_v24, 2 }
  0x9a   : > { %526 = vrot.lane.b32.xlu1 %v389_v3, %s7813_s25  ;;  %v467_v3 = vsel %vm341_vm1, %v464_v19, %v466_v38 }
  0x9b   : > { %v900_v14 = vpop.permute.xlu0 %899  ;;  %v499_v16 = vpop.permute.xlu1 %498 }
  0x9c   : > { %v8237_v4 = vsel %vm1080_vm3, %v1054_v13, %v900_v14  ;;  %v1022_v20 = vsel %vm1015_vm2, %v7890_v15, %v499_v16  ;;  %v200_v13 = vld [vmem:[%s7865_s23 + $0xe8] sm:$0x3]  ;;  %v802_v15 = vsel %vm678_vm0, %v799_v46, %v801_v49  ;;  %v729_v46 = vrot.slane %v8253_v10, 2 }
  0x9d   : > { %11281 = vst [vmem:[#allocation4_spill] sm:$0xff] %v8237_v4  ;;  %929 = vrot.lane.b32.xlu0 %v800_v11, %s7812_s24  ;;  %7528 = vmatprep.mubr.msk.f32.mxu1 %vm1207_vm4, %v8237_v4  ;;  %v392_v11 = vrot.slane %v8253_v10, 1  ;;  %v8489_v4 = vld [vmem:[%s7865_s23 + $0x270] sm:$0xff] }
  0x9e   : > { %528 = vrot.lane.b32.xlu1 %v391_v17, %s7813_s25 }
  0x9f   : > { %v902_v35 = vpop.permute.xlu0 %901  ;;  %v501_v36 = vpop.permute.xlu1 %500  ;;  %v393_v19 = vsel %vm341_vm1, %v390_v61, %v392_v11 }
  0xa0   : > { %v8250_v39 = vsel %vm1080_vm3, %v1055_v29, %v902_v35  ;;  %v1023_v14 = vsel %vm1015_vm2, %v7917_v33, %v501_v36  ;;  %v8281_v35 = vld [vmem:[%s7865_s23 + $0x230] sm:$0xff]  ;;  %v804_v33 = vsel %vm678_vm0, %v801_v49, %v803_v12  ;;  %v731_v49 = vrot.slane %v200_v13, 2 }
  0xa1   : > { %11282 = vst [vmem:[#allocation5_spill] sm:$0xff] %v8250_v39  ;;  %863 = vrot.lane.b32.xlu0 %v726_v5, %s7812_s24  ;;  %7529 = vmatmul.mubr.msk.f32.gmra.mxu1 %vm1207_vm4, %v8250_v39  ;;  %v394_v5 = vrot.slane %v200_v13, 1 }
  0xa2   : > { %594 = vrot.lane.b32.xlu1 %v465_v37, %s7813_s25  ;;  %v8284_v37 = vld [vmem:[%s7865_s23 + $0x238] sm:$0xff] }
  0xa3   : > { %v836_v59 = vpop.permute.xlu0 %835  ;;  %v567_v60 = vpop.permute.xlu1 %566  ;;  %v395_v38 = vsel %vm341_vm1, %v392_v11, %v394_v5  ;;  %v8319_v5 = vld [vmem:[%s7865_s23 + $0xf8] sm:$0xff]  ;;  %v806_v13 = vrot.slane %v8284_v37, 2 }
  0xa4   : > { %v8266_v6 = vsel %vm1080_vm3, %v1022_v20, %v836_v59  ;;  %v1056_v61 = vsel %vm1015_vm2, %v7931_v43, %v567_v60  ;;  %v469_v20 = vrot.slane %v8284_v37, 1  ;;  %v730_v43 = vsel %vm678_vm0, %v727_v28, %v729_v46 }
  0xa5   : > { %865 = vrot.lane.b32.xlu0 %v728_v22, %s7812_s24  ;;  %7480 = vmatprep.mubr.msk.f32.mxu0 %vm1207_vm4, %v8266_v6  ;;  %v468_v22 = vrot.slane %v8281_v35, 1  ;;  %v805_v28 = vrot.slane %v8281_v35, 2 }
  0xa6   : > { %596 = vrot.lane.b32.xlu1 %v467_v3, %s7813_s25  ;;  %v8301_v3 = vld [vmem:[%s7865_s23 + $0x240] sm:$0xff] }
  0xa7   : > { %v838_v16 = vpop.permute.xlu0 %837  ;;  %v569_v17 = vpop.permute.xlu1 %568  ;;  %v470_v12 = vsel %vm341_vm1, %v468_v22, %v469_v20  ;;  %v397_v22 = vrot.slane %v8319_v5, 1 }
  0xa8   : > { %v8278_v29 = vsel %vm1080_vm3, %v1023_v14, %v838_v16  ;;  %v1057_v60 = vsel %vm1015_vm2, %v7934_v44, %v569_v17  ;;  %v471_v14 = vrot.slane %v8301_v3, 1  ;;  %v732_v44 = vsel %vm678_vm0, %v729_v46, %v731_v49  ;;  %v8337_v46 = vld [vmem:[%s7865_s23 + $0x100] sm:$0xff] }
  0xa9   : > { %11283 = vst [vmem:[#allocation6_spill] sm:$0xff] %v8278_v29  ;;  %931 = vrot.lane.b32.xlu0 %v802_v15, %s7812_s24  ;;  %7481 = vmatmul.mubr.msk.f32.gmra.mxu0 %vm1207_vm4, %v8278_v29 }
  0xaa   : > { %530 = vrot.lane.b32.xlu1 %v393_v19, %s7813_s25  ;;  %v8316_v19 = vld [vmem:[%s7865_s23 + $0xf0] sm:$0xff] }
  0xab   : > { %v904_v24 = vpop.permute.xlu0 %903  ;;  %v503_v36 = vpop.permute.xlu1 %502 }
  0xac   : > { %v8298_v59 = vsel %vm1080_vm3, %v1056_v61, %v904_v24  ;;  %v1024_v17 = vsel %vm1015_vm2, %v7952_v55, %v503_v36  ;;  %v472_v24 = vsel %vm341_vm1, %v469_v20, %v471_v14  ;;  %v807_v55 = vsel %vm678_vm0, %v805_v28, %v806_v13 }
  0xad   : > { %11284 = vst [vmem:[#allocation7_spill] sm:$0xff] %v8298_v59  ;;  %933 = vrot.lane.b32.xlu0 %v804_v33, %s7812_s24  ;;  %7531 = vmatprep.mubr.msk.f32.mxu1 %vm1207_vm4, %v8298_v59  ;;  %v808_v36 = vrot.slane %v8301_v3, 2  ;;  %v734_v28 = vrot.slane %v8319_v5, 2  ;;  %v8383_v59 = vld [vmem:[%s7865_s23 + $0x108] sm:$0xff] }
  0xae   : > { %532 = vrot.lane.b32.xlu1 %v395_v38, %s7813_s25  ;;  %v396_v38 = vrot.slane %v8316_v19, 1 }
  0xaf   : > { %v906_v11 = vpop.permute.xlu0 %905  ;;  %v505_v15 = vpop.permute.xlu1 %504 }
  0xb0   : > { %v8313_v16 = vsel %vm1080_vm3, %v1057_v60, %v906_v11  ;;  %v1025_v20 = vsel %vm1015_vm2, %v7955_v56, %v505_v15  ;;  %v398_v11 = vsel %vm341_vm1, %v396_v38, %v397_v22  ;;  %v809_v56 = vsel %vm678_vm0, %v806_v13, %v808_v36 }
  0xb1   : > { %11285 = vst [vmem:[#allocation8_spill] sm:$0xff] %v8313_v16  ;;  %867 = vrot.lane.b32.xlu0 %v730_v43, %s7812_s24  ;;  %7532 = vmatmul.mubr.msk.f32.gmra.mxu1 %vm1207_vm4, %v8313_v16  ;;  %v733_v15 = vrot.slane %v8316_v19, 2  ;;  %v736_v13 = vrot.slane %v8337_v46, 2 }
  0xb2   : > { %598 = vrot.lane.b32.xlu1 %v470_v12, %s7813_s25  ;;  %v399_v12 = vrot.slane %v8337_v46, 1 }
  0xb3   : > { %v840_v33 = vpop.permute.xlu0 %839  ;;  %v571_v61 = vpop.permute.xlu1 %570 }
  0xb4   : > { %v8334_v43 = vsel %vm1080_vm3, %v1024_v17, %v840_v33  ;;  %v8353_v17 = vld [vmem:[%s7865_s23 + $0x248] sm:$0xff]  ;;  %v1058_v33 = vsel %vm1015_vm2, %v7944_v50, %v571_v61  ;;  %v735_v50 = vsel %vm678_vm0, %v733_v15, %v734_v28 }
  0xb5   : > { %869 = vrot.lane.b32.xlu0 %v732_v44, %s7812_s24  ;;  %7483 = vmatprep.mubr.msk.f32.mxu0 %vm1207_vm4, %v8334_v43 }
  0xb6   : > { %600 = vrot.lane.b32.xlu1 %v472_v24, %s7813_s25 }
  0xb7   : > { %v842_v49 = vpop.permute.xlu0 %841  ;;  %v573_v60 = vpop.permute.xlu1 %572 }
  0xb8   : > { %v8350_v44 = vsel %vm1080_vm3, %v1025_v20, %v842_v49  ;;  %v400_v20 = vsel %vm341_vm1, %v397_v22, %v399_v12  ;;  %v1059_v61 = vsel %vm1015_vm2, %v7975_v7, %v573_v60  ;;  %v737_v7 = vsel %vm678_vm0, %v734_v28, %v736_v13 }
  0xb9   : > { %935 = vrot.lane.b32.xlu0 %v807_v55, %s7812_s24  ;;  %7484 = vmatmul.mubr.msk.f32.gmra.mxu0 %vm1207_vm4, %v8350_v44  ;;  %v473_v55 = vrot.slane %v8353_v17, 1  ;;  %v810_v60 = vrot.slane %v8353_v17, 2 }
  0xba   : > { %534 = vrot.lane.b32.xlu1 %v398_v11, %s7813_s25  ;;  %v245_v11 = vld [vmem:[%s7865_s23 + $0x250] sm:$0x3] }
  0xbb   : > { %v908_v24 = vpop.permute.xlu0 %907  ;;  %v507_v38 = vpop.permute.xlu1 %506  ;;  %v812_v28 = vrot.slane %v245_v11, 2 }
  0xbc   : > { %v8367_v49 = vsel %vm1080_vm3, %v1058_v33, %v908_v24  ;;  %v474_v33 = vsel %vm341_vm1, %v471_v14, %v473_v55  ;;  %v475_v24 = vrot.slane %v245_v11, 1  ;;  %v1026_v14 = vsel %vm1015_vm2, %v7966_v63, %v507_v38 }
  0xbd   : > { %11286 = vst [vmem:[#allocation9_spill] sm:$0xff] %v8367_v49  ;;  %937 = vrot.lane.b32.xlu0 %v809_v56, %s7812_s24  ;;  %7534 = vmatprep.mubr.msk.f32.mxu1 %vm1207_vm4, %v8367_v49  ;;  %v811_v63 = vsel %vm678_vm0, %v808_v36, %v810_v60  ;;  %v8414_v49 = vld [vmem:[%s7865_s23 + $0x260] sm:$0xff] }
  0xbe   : > { %536 = vrot.lane.b32.xlu1 %v400_v20, %s7813_s25 }
  0xbf   : > { %v910_v22 = vpop.permute.xlu0 %909  ;;  %v509_v16 = vpop.permute.xlu1 %508 }
  0xc0   : > { %v8380_v56 = vsel %vm1080_vm3, %v1059_v61, %v910_v22  ;;  %v476_v61 = vsel %vm341_vm1, %v473_v55, %v475_v24  ;;  %v1027_v38 = vsel %vm1015_vm2, %v7991_v21, %v509_v16  ;;  %v813_v21 = vsel %vm678_vm0, %v810_v60, %v812_v28 }
  0xc1   : > { %11287 = vst [vmem:[#allocation10_spill] sm:$0xff] %v8380_v56  ;;  %871 = vrot.lane.b32.xlu0 %v735_v50, %s7812_s24  ;;  %7535 = vmatmul.mubr.msk.f32.gmra.mxu1 %vm1207_vm4, %v8380_v56  ;;  %v401_v50 = vrot.slane %v8383_v59, 1  ;;  %v205_v56 = vld [vmem:[%s7865_s23 + $0x110] sm:$0x3]  ;;  %v738_v16 = vrot.slane %v8383_v59, 2 }
  0xc2   : > { %602 = vrot.lane.b32.xlu1 %v474_v33, %s7813_s25  ;;  %v740_v60 = vrot.slane %v205_v56, 2 }
  0xc3   : > { %v844_v15 = vpop.permute.xlu0 %843  ;;  %v575_v20 = vpop.permute.xlu1 %574  ;;  %v402_v24 = vsel %vm341_vm1, %v399_v12, %v401_v50 }
  0xc4   : > { %v8396_v22 = vsel %vm1080_vm3, %v1026_v14, %v844_v15  ;;  %v403_v14 = vrot.slane %v205_v56, 1  ;;  %v1060_v36 = vsel %vm1015_vm2, %v8005_v32, %v575_v20  ;;  %v739_v32 = vsel %vm678_vm0, %v736_v13, %v738_v16 }
  0xc5   : > { %873 = vrot.lane.b32.xlu0 %v737_v7, %s7812_s24  ;;  %7486 = vmatprep.mubr.msk.f32.mxu0 %vm1207_vm4, %v8396_v22  ;;  %v8411_v7 = vld [vmem:[%s7865_s23 + $0x258] sm:$0xff]  ;;  %v741_v13 = vsel %vm678_vm0, %v738_v16, %v740_v60  ;;  %v6929_v16 = vld [vmem:[%s11128_s1 + $0x40] sm:$0xff] }
  0xc6   : > { %604 = vrot.lane.b32.xlu1 %v476_v61, %s7813_s25  ;;  %v404_v61 = vsel %vm341_vm1, %v401_v50, %v403_v14  ;;  %v814_v56 = vrot.slane %v8411_v7, 2  ;;  %7675 = vmatprep.subr.mxu0 %v6929_v16 }
  0xc7   : > { %v846_v55 = vpop.permute.xlu0 %845  ;;  %v577_v33 = vpop.permute.xlu1 %576  ;;  %7676 = vmatpush3.msra.mxu0 %v6929_v16 }
  0xc8   : > { %v8408_v15 = vsel %vm1080_vm3, %v1027_v38, %v846_v55  ;;  %v477_v38 = vrot.slane %v8411_v7, 1  ;;  %v1061_v20 = vsel %vm1015_vm2, %v8008_v34, %v577_v33  ;;  %v1147_v34 = vld [vmem:[%s11128_s1 + $0x10] sm:$0xff]  ;;  %v815_v33 = vrot.slane %v8414_v49, 2 }
  0xc9   : > { %939 = vrot.lane.b32.xlu0 %v811_v63, %s7812_s24  ;;  %7487 = vmatmul.mubr.msk.f32.gmra.mxu0 %vm1207_vm4, %v8408_v15  ;;  %v478_v63 = vrot.slane %v8414_v49, 1 }
  0xca   : > { %538 = vrot.lane.b32.xlu1 %v402_v24, %s7813_s25  ;;  %v8431_v24 = vld [vmem:[%s7865_s23 + $0x268] sm:$0xff]  ;;  %7573 = vmatprep.subr.mxu1 %v1147_v34 }
  0xcb   : > { %v912_v12 = vpop.permute.xlu0 %911  ;;  %v511_v11 = vpop.permute.xlu1 %510  ;;  %v479_v14 = vsel %vm341_vm1, %v477_v38, %v478_v63  ;;  %7574 = vmatpush3.msra.mxu1 %v1147_v34 }
  0xcc   : > { %v8428_v55 = vsel %vm1080_vm3, %v1060_v36, %v912_v12  ;;  %v480_v36 = vrot.slane %v8431_v24, 1 }
  0xcd   : > { %11288 = vst [vmem:[#allocation11_spill] sm:$0xff] %v8428_v55  ;;  %941 = vrot.lane.b32.xlu0 %v813_v21, %s7812_s24  ;;  %7537 = vmatprep.mubr.msk.f32.mxu1 %vm1207_vm4, %v8428_v55  ;;  %v8446_v21 = vld [vmem:[%s7865_s23 + $0x118] sm:$0xff]  ;;  %v8449_v55 = vld [vmem:[%s7865_s23 + $0x120] sm:$0xff] }
  0xce   : > { %540 = vrot.lane.b32.xlu1 %v404_v61, %s7813_s25  ;;  %v1028_v61 = vsel %vm1015_vm2, %v8026_v47, %v511_v11  ;;  %v816_v47 = vsel %vm678_vm0, %v814_v56, %v815_v33  ;;  %v817_v11 = vrot.slane %v8431_v24, 2  ;;  %v743_v56 = vrot.slane %v8449_v55, 2 }
  0xcf   : > { %v914_v50 = vpop.permute.xlu0 %913  ;;  %v513_v28 = vpop.permute.xlu1 %512 }
  0xd0   : > { %v8443_v12 = vsel %vm1080_vm3, %v1061_v20, %v914_v50  ;;  %v481_v20 = vsel %vm341_vm1, %v478_v63, %v480_v36  ;;  %v405_v50 = vrot.slane %v8446_v21, 1  ;;  %v1029_v63 = vsel %vm1015_vm2, %v8029_v48, %v513_v28 }
  0xd1   : > { %11289 = vst [vmem:[#allocation12_spill] sm:$0xff] %v8443_v12  ;;  %875 = vrot.lane.b32.xlu0 %v739_v32, %s7812_s24  ;;  %7538 = vmatmul.mubr.msk.f32.gmra.mxu1 %vm1207_vm4, %v8443_v12  ;;  %v406_v12 = vrot.slane %v8449_v55, 1  ;;  %v818_v48 = vsel %vm678_vm0, %v815_v33, %v817_v11  ;;  %v742_v28 = vrot.slane %v8446_v21, 2 }
  0xd2   : > { %606 = vrot.lane.b32.xlu1 %v479_v14, %s7813_s25  ;;  %v8473_v14 = vld [vmem:[%s7865_s23 + $0x128] sm:$0xff] }
  0xd3   : > { %v848_v38 = vpop.permute.xlu0 %847  ;;  %v579_v32 = vpop.permute.xlu1 %578  ;;  %v745_v33 = vrot.slane %v8473_v14, 2 }
  0xd4   : > { %v8470_v60 = vsel %vm1080_vm3, %v1028_v61, %v848_v38  ;;  %v407_v38 = vsel %vm341_vm1, %v405_v50, %v406_v12 }
  0xd5   : > { %877 = vrot.lane.b32.xlu0 %v741_v13, %s7812_s24  ;;  %7489 = vmatprep.mubr.msk.f32.mxu0 %vm1207_vm4, %v8470_v60  ;;  %v408_v13 = vrot.slane %v8473_v14, 1 }
  0xd6   : > { %608 = vrot.lane.b32.xlu1 %v481_v20, %s7813_s25  ;;  %v1062_v20 = vsel %vm1015_vm2, %v8018_v40, %v579_v32  ;;  %v744_v40 = vsel %vm678_vm0, %v742_v28, %v743_v56 }
  0xd7   : > { %v850_v34 = vpop.permute.xlu0 %849  ;;  %v581_v61 = vpop.permute.xlu1 %580 }
  0xd8   : > { %v8486_v39 = vsel %vm1080_vm3, %v1029_v63, %v850_v34  ;;  %v409_v63 = vsel %vm341_vm1, %v406_v12, %v408_v13  ;;  %v1063_v12 = vsel %vm1015_vm2, %v8049_v0, %v581_v61  ;;  %v746_v0 = vsel %vm678_vm0, %v743_v56, %v745_v33 }
  0xd9   : > { %943 = vrot.lane.b32.xlu0 %v816_v47, %s7812_s24  ;;  %7490 = vmatmul.mubr.msk.f32.gmra.mxu0 %vm1207_vm4, %v8486_v39  ;;  %v482_v47 = vrot.slane %v8489_v4, 1  ;;  %v819_v61 = vrot.slane %v8489_v4, 2 }
  0xda   : > { %542 = vrot.lane.b32.xlu1 %v407_v38, %s7813_s25  ;;  %v250_v38 = vld [vmem:[%s7865_s23 + $0x278] sm:$0x3] }
  0xdb   : > { %v916_v50 = vpop.permute.xlu0 %915  ;;  %v515_v16 = vpop.permute.xlu1 %514  ;;  %v820_v56 = vsel %vm678_vm0, %v817_v11, %v819_v61  ;;  %v747_v11 = vrot.slane %v8519_v57, 2 }
  0xdc   : > { %v8503_v34 = vsel %vm1080_vm3, %v1062_v20, %v916_v50  ;;  %v483_v20 = vsel %vm341_vm1, %v480_v36, %v482_v47  ;;  %v484_v50 = vrot.slane %v250_v38, 1  ;;  %v1030_v36 = vsel %vm1015_vm2, %v8040_v58, %v515_v16  ;;  %v1146_v16 = vld [vmem:[%s11128_s1 + $0x8] sm:$0xff] }
  0xdd   : > { %11290 = vst [vmem:[#allocation13_spill] sm:$0xff] %v8503_v34  ;;  %945 = vrot.lane.b32.xlu0 %v818_v48, %s7812_s24  ;;  %7540 = vmatprep.mubr.msk.f32.mxu1 %vm1207_vm4, %v8503_v34  ;;  %v210_v34 = vld [vmem:[%s7865_s23 + $0x138] sm:$0x3]  ;;  %v821_v58 = vrot.slane %v250_v38, 2 }
  0xde   : > { %544 = vrot.lane.b32.xlu1 %v409_v63, %s7813_s25  ;;  %7575 = vmatprep.subr.mxu1 %v1146_v16 }
  0xdf   : > { %v918_v32 = vpop.permute.xlu0 %917  ;;  %v517_v23 = vpop.permute.xlu1 %516  ;;  %7576 = vmatpush3.msra.mxu1 %v1146_v16  ;;  %v749_v16 = vrot.slane %v210_v34, 2 }
  0xe0   : > { %v8516_v48 = vsel %vm1080_vm3, %v1063_v12, %v918_v32  ;;  %v485_v12 = vsel %vm341_vm1, %v482_v47, %v484_v50  ;;  %v410_v32 = vrot.slane %v8519_v57, 1  ;;  %v1031_v47 = vsel %vm1015_vm2, %v8065_v18, %v517_v23  ;;  %v6928_v18 = vld [vmem:[%s11128_s1 + $0x38] sm:$0xff] }
  0xe1   : > { %11291 = vst [vmem:[#allocation14_spill] sm:$0xff] %v8516_v48  ;;  %879 = vrot.lane.b32.xlu0 %v744_v40, %s7812_s24  ;;  %7541 = vmatmul.mubr.msk.f32.gmra.mxu1 %vm1207_vm4, %v8516_v48  ;;  %v822_v23 = vsel %vm678_vm0, %v819_v61, %v821_v58  ;;  %v8571_v58 = vld [vmem:[%s7865_s23 + $0x290] sm:$0xff] }
  0xe2   : > { %610 = vrot.lane.b32.xlu1 %v483_v20, %s7813_s25  ;;  %7677 = vmatprep.subr.mxu0 %v6928_v18 }
  0xe3   : > { %v852_v28 = vpop.permute.xlu0 %851  ;;  %v583_v63 = vpop.permute.xlu1 %582  ;;  %7678 = vmatpush3.msra.mxu0 %v6928_v18  ;;  %v750_v18 = vsel %vm678_vm0, %v747_v11, %v749_v16 }
  0xe4   : > { %v8532_v40 = vsel %vm1080_vm3, %v1030_v36, %v852_v28  ;;  %v411_v36 = vsel %vm341_vm1, %v408_v13, %v410_v32  ;;  %v1064_v13 = vsel %vm1015_vm2, %v8079_v30, %v583_v63  ;;  %v748_v30 = vsel %vm678_vm0, %v745_v33, %v747_v11  ;;  %v8591_v33 = vld [vmem:[%s7865_s23 + $0x148] sm:$0xff] }
  0xe5   : > { %881 = vrot.lane.b32.xlu0 %v746_v0, %s7812_s24  ;;  %7492 = vmatprep.mubr.msk.f32.mxu0 %vm1207_vm4, %v8532_v40  ;;  %v412_v0 = vrot.slane %v210_v34, 1 }
  0xe6   : > { %612 = vrot.lane.b32.xlu1 %v485_v12, %s7813_s25 }
  0xe7   : > { %v854_v20 = vpop.permute.xlu0 %853  ;;  %v585_v50 = vpop.permute.xlu1 %584 }
  0xe8   : > { %v8547_v28 = vsel %vm1080_vm3, %v1031_v47, %v854_v20  ;;  %v8562_v47 = vld [vmem:[%s7865_s23 + $0x280] sm:$0xff]  ;;  %v8565_v20 = vld [vmem:[%s7865_s23 + $0x288] sm:$0xff] }
  0xe9   : > { %947 = vrot.lane.b32.xlu0 %v820_v56, %s7812_s24  ;;  %7493 = vmatmul.mubr.msk.f32.gmra.mxu0 %vm1207_vm4, %v8547_v28  ;;  %v413_v56 = vsel %vm341_vm1, %v410_v32, %v412_v0  ;;  %v1153_v34 = vrot.slane %v8562_v47, 1  ;;  %v1154_v63 = vrot.slane %v8565_v20, 1  ;;  %v1065_v32 = vsel %vm1015_vm2, %v8082_v31, %v585_v50 }
  0xea   : > { %546 = vrot.lane.b32.xlu1 %v411_v36, %s7813_s25  ;;  %v1174_v50 = vrot.slane %v8562_v47, 2  ;;  %v1175_v11 = vrot.slane %v8565_v20, 2 }
  0xeb   : > { %v920_v38 = vpop.permute.xlu0 %919  ;;  %v519_v12 = vpop.permute.xlu1 %518  ;;  %v1155_v31 = vsel %vm341_vm1, %v1153_v34, %v1154_v63  ;;  %v8611_v34 = vld [vmem:[%s7865_s23 + $0x150] sm:$0xff] }
  0xec   : > { %v8568_v61 = vsel %vm1080_vm3, %v1064_v13, %v920_v38  ;;  %v8588_v38 = vld [vmem:[%s7865_s23 + $0x140] sm:$0xff] }
  0xed   : > { %11292 = vst [vmem:[#allocation15_spill] sm:$0xff] %v8568_v61  ;;  %949 = vrot.lane.b32.xlu0 %v822_v23, %s7812_s24  ;;  %7543 = vmatprep.mubr.msk.f32.mxu1 %vm1207_vm4, %v8568_v61  ;;  %v11155_v23 = vrot.slane %v8571_v58, 1 }
  0xee   : > { %548 = vrot.lane.b32.xlu1 %v413_v56, %s7813_s25  ;;  %v1032_v56 = vsel %vm1015_vm2, %v8100_v51, %v519_v12  ;;  %v1176_v51 = vsel %vm678_vm0, %v1174_v50, %v1175_v11  ;;  %v1177_v12 = vrot.slane %v8571_v58, 2  ;;  %v752_v50 = vrot.slane %v8591_v33, 2 }
  0xef   : > { %v922_v36 = vpop.permute.xlu0 %921  ;;  %v521_v0 = vpop.permute.xlu1 %520 }
  0xf0   : > { %v8585_v13 = vsel %vm1080_vm3, %v1065_v32, %v922_v36  ;;  %v414_v36 = vrot.slane %v8588_v38, 1 }
  0xf1   : > { %11293 = vst [vmem:[#allocation16_spill] sm:$0xff] %v8585_v13  ;;  %883 = vrot.lane.b32.xlu0 %v748_v30, %s7812_s24  ;;  %7544 = vmatmul.mubr.msk.f32.gmra.mxu1 %vm1207_vm4, %v8585_v13  ;;  %v1157_v30 = vsel %vm341_vm1, %v1154_v63, %v11155_v23  ;;  %v415_v13 = vrot.slane %v8591_v33, 1  ;;  %v1033_v63 = vsel %vm1015_vm2, %v8103_v52, %v521_v0  ;;  %v751_v0 = vrot.slane %v8588_v38, 2 }
  0xf2   : > { %885 = vrot.lane.b32.xlu1 %v750_v18, %s7812_s24  ;;  %v1178_v52 = vsel %vm678_vm0, %v1175_v11, %v1177_v12 }
  0xf3   : > { %v856_v16 = vpop.permute.xlu0 %855  ;;  %v587_v32 = vpop.permute.xlu1 %586  ;;  %v753_v11 = vsel %vm678_vm0, %v751_v0, %v752_v50  ;;  %v8665_v0 = vld [vmem:[%s7865_s23 + $0x158] sm:$0xff] }
  0xf4   : > { %v8608_v18 = vsel %vm1080_vm3, %v1032_v56, %v856_v16  ;;  %v416_v16 = vsel %vm341_vm1, %v414_v36, %v415_v13 }
  0xf5   : > { %1162 = vrot.lane.b32.xlu0 %v1155_v31, %s7813_s25  ;;  %7495 = vmatprep.mubr.msk.f32.mxu0 %vm1207_vm4, %v8608_v18  ;;  %v417_v31 = vrot.slane %v8611_v34, 1 }
  0xf6   : > { %1164 = vrot.lane.b32.xlu1 %v1157_v30, %s7813_s25  ;;  %v1066_v30 = vsel %vm1015_vm2, %v8092_v41, %v587_v32  ;;  %v1145_v41 = vld [vmem:[%s11128_s1] sm:$0xff] }
  0xf7   : > { %v858_v23 = vpop.permute.xlu0 %857  ;;  %v589_v56 = vpop.permute.xlu1 %588  ;;  %7577 = vmatprep.subr.mxu1 %v1145_v41 }
  0xf8   : > { %v8624_v61 = vsel %vm1080_vm3, %v1033_v63, %v858_v23  ;;  %v418_v23 = vsel %vm341_vm1, %v415_v13, %v417_v31  ;;  %v8638_v63 = vld [vmem:[%s7865_s23 + $0x298] sm:$0xff]  ;;  %v6927_v13 = vld [vmem:[%s11128_s1 + $0x30] sm:$0xff]  ;;  %7578 = vmatpush3.msra.mxu1 %v1145_v41 }
  0xf9   : > { %11294 = vst [vmem:[#allocation17_spill] sm:$0xff] %v8624_v61  ;;  %1183 = vrot.lane.b32.xlu0 %v1176_v51, %s7812_s24  ;;  %7496 = vmatmul.mubr.msk.f32.gmra.mxu0 %vm1207_vm4, %v8624_v61  ;;  %v11165_v51 = vrot.slane %v8611_v34, 2  ;;  %v1158_v32 = vrot.slane %v8638_v63, 1 }
  0xfa   : > { %550 = vrot.lane.b32.xlu1 %v416_v16, %s7813_s25  ;;  %v255_v16 = vld [vmem:[%s7865_s23 + $0x2a0] sm:$0x3]  ;;  %7679 = vmatprep.subr.mxu0 %v6927_v13 }
  0xfb   : > { %v924_v36 = vpop.permute.xlu0 %923  ;;  %v523_v48 = vpop.permute.xlu1 %522  ;;  %v1160_v61 = vrot.slane %v255_v16, 1  ;;  %7680 = vmatpush3.msra.mxu0 %v6927_v13  ;;  %v419_v13 = vrot.slane %v8665_v0, 1 }
  0xfc   : > { %v8641_v29 = vsel %vm1080_vm3, %v1066_v30, %v924_v36  ;;  %v1034_v41 = vsel %vm1015_vm2, %v8114_v62, %v523_v48  ;;  %v1181_v48 = vrot.slane %v255_v16, 2 }
  0xfd   : > { %11295 = vst [vmem:[#allocation18_spill] sm:$0xff] %v8641_v29  ;;  %1185 = vrot.lane.b32.xlu0 %v1178_v52, %s7812_s24  ;;  %7546 = vmatprep.mubr.msk.f32.mxu1 %vm1207_vm4, %v8641_v29  ;;  %v1067_v52 = vsel %vm1015_vm2, %v8123_v9, %v589_v56  ;;  %v755_v29 = vsel %vm678_vm0, %v752_v50, %v11165_v51  ;;  %v11297_v9 = vrot.slane %v8571_v58, 1  ;;  %v1179_v50 = vrot.slane %v8638_v63, 2  ;;  %v215_v51 = vld [vmem:[%s7865_s23 + $0x160] sm:$0x3] }
  0xfe   : > { %552 = vrot.lane.b32.xlu1 %v418_v23, %s7813_s25 }
  0xff   : > { %v926_v30 = vpop.permute.xlu0 %925  ;;  %v525_v36 = vpop.permute.xlu1 %524  ;;  %v1159_v56 = vsel %vm341_vm1, %v11297_v9, %v1158_v32  ;;  %v1180_v62 = vsel %vm678_vm0, %v1177_v12, %v1179_v50  ;;  %v420_v9 = vsel %vm341_vm1, %v417_v31, %v419_v13  ;;  %v756_v12 = vrot.slane %v8665_v0, 2 }
 0x100   : > { %v8662_v23 = vsel %vm1080_vm3, %v1067_v52, %v926_v30  ;;  %v1161_v30 = vsel %vm341_vm1, %v1158_v32, %v1160_v61  ;;  %v1035_v61 = vsel %vm1015_vm2, %v8139_v26, %v525_v36  ;;  %v1182_v26 = vsel %vm678_vm0, %v1179_v50, %v1181_v48 }
 0x101   : > { %11296 = vst [vmem:[#allocation19_spill] sm:$0xff] %v8662_v23  ;;  %887 = vrot.lane.b32.xlu0 %v753_v11, %s7812_s24  ;;  %7547 = vmatmul.mubr.msk.f32.gmra.mxu1 %vm1207_vm4, %v8662_v23  ;;  %v8695_v23 = vld [vmem:[%s7865_s23] sm:$0xff] }
 0x102   : > { %889 = vrot.lane.b32.xlu1 %v755_v29, %s7812_s24 }
 0x103   : > { %v860_v52 = vpop.permute.xlu0 %859 }
 0x104   : > { %v8680_v11 = vsel %vm1080_vm3, %v1034_v41, %v860_v52  ;;  %v591_v29 = vpop.permute.xlu1 %590  ;;  %v421_v41 = vrot.slane %v215_v51, 1 }
 0x105   : > { %11298 = vst [vmem:[#allocation20_spill] sm:$0xff] %v8680_v11  ;;  %1166 = vrot.lane.b32.xlu0 %v1159_v56, %s7813_s25  ;;  %7498 = vmatprep.mubr.msk.f32.mxu0 %vm1207_vm4, %v8680_v11  ;;  %v8698_v11 = vld [vmem:[%s7865_s23 + $0x8] sm:$0xff]  ;;  %v1068_v31 = vsel %vm1015_vm2, %v8155_v53, %v591_v29  ;;  %v11301_v53 = vrot.slane %v8611_v34, 2 }
 0x106   : > { %1168 = vrot.lane.b32.xlu1 %v1161_v30, %s7813_s25  ;;  %v422_v36 = vsel %vm341_vm1, %v419_v13, %v421_v41  ;;  %v342_v30 = vrot.slane %v8695_v23, 1  ;;  %v758_v13 = vrot.slane %v215_v51, 2  ;;  %v679_v51 = vrot.slane %v8695_v23, 2 }
 0x107   : > { %v862_v32 = vpop.permute.xlu0 %861  ;;  %v757_v50 = vsel %vm678_vm0, %v11301_v53, %v756_v12 }
 0x108   : > { %v8692_v52 = vsel %vm1080_vm3, %v1035_v61, %v862_v32  ;;  %v593_v56 = vpop.permute.xlu1 %592  ;;  %v343_v61 = vrot.slane %v8698_v11, 1 }
 0x109   : > { %11299 = vst [vmem:[#allocation21_spill] sm:$0xff] %v8692_v52  ;;  %1187 = vrot.lane.b32.xlu0 %v1180_v62, %s7812_s24  ;;  %7499 = vmatmul.mubr.msk.f32.gmra.mxu0 %vm1207_vm4, %v8692_v52  ;;  %v8715_v52 = vld [vmem:[%s7865_s23 + $0x10] sm:$0xff]  ;;  %v1069_v29 = vsel %vm1015_vm2, %v8158_v54, %v593_v56  ;;  %v759_v54 = vsel %vm678_vm0, %v756_v12, %v758_v13  ;;  %v680_v56 = vrot.slane %v8698_v11, 2 }
 0x10a   : > { %554 = vrot.lane.b32.xlu1 %v420_v9, %s7813_s25  ;;  %v344_v9 = vsel %vm341_vm1, %v342_v30, %v343_v61  ;;  %v345_v41 = vrot.slane %v8715_v52, 1  ;;  %v682_v53 = vrot.slane %v8715_v52, 2 }
 0x10b   : > { %v928_v16 = vpop.permute.xlu0 %927 }
 0x10c   : > { %v8712_v62 = vsel %vm1080_vm3, %v1068_v31, %v928_v16  ;;  %v527_v32 = vpop.permute.xlu1 %526  ;;  %v346_v30 = vsel %vm341_vm1, %v343_v61, %v345_v41  ;;  %v683_v13 = vsel %vm678_vm0, %v680_v56, %v682_v53 }
 0x10d   : > { %11300 = vst [vmem:[#allocation22_spill] sm:$0xff] %v8712_v62  ;;  %1189 = vrot.lane.b32.xlu0 %v1182_v26, %s7812_s24  ;;  %7549 = vmatprep.mubr.msk.f32.mxu1 %vm1207_vm4, %v8712_v62  ;;  %v1036_v16 = vsel %vm1015_vm2, %v8186_v25, %v527_v32  ;;  %v681_v25 = vsel %vm678_vm0, %v679_v51, %v680_v56 }
 0x10e   : > { %556 = vrot.lane.b32.xlu1 %v422_v36, %s7813_s25 }
 0x10f   : > { %v930_v48 = vpop.permute.xlu0 %929 }
 0x110   : > { %v8729_v26 = vsel %vm1080_vm3, %v1069_v29, %v930_v48  ;;  %v529_v31 = vpop.permute.xlu1 %528 }
 0x111   : > { %11302 = vst [vmem:[#allocation23_spill] sm:$0xff] %v8729_v26  ;;  %891 = vrot.lane.b32.xlu0 %v757_v50, %s7812_s24  ;;  %7550 = vmatmul.mubr.msk.f32.gmra.mxu1 %vm1207_vm4, %v8729_v26  ;;  %v8743_v50 = vld [vmem:[%s7865_s23 + $0x18] sm:$0xff]  ;;  %v1037_v61 = vsel %vm1015_vm2, %v8189_v27, %v529_v31  ;;  %v8774_v26 = vld [vmem:[%s7865_s23 + $0x2b0] sm:$0xff] }
 0x112   : > { %486 = vrot.lane.b32.xlu1 %v344_v9, %s7813_s25  ;;  %v175_v9 = vld [vmem:[%s7865_s23 + $0x20] sm:$0x3]  ;;  %v347_v12 = vrot.slane %v8743_v50, 1  ;;  %v684_v27 = vrot.slane %v8743_v50, 2  ;;  %11303 = vst [vmem:[#allocation24_spill] sm:$0xff] %v8774_v26 }
 0x113   : > { %v864_v36 = vpop.permute.xlu0 %863 }
 0x114   : > { %v8746_v29 = vsel %vm1080_vm3, %v1036_v16, %v864_v36  ;;  %v595_v48 = vpop.permute.xlu1 %594  ;;  %v349_v16 = vrot.slane %v175_v9, 1  ;;  %v348_v51 = vsel %vm341_vm1, %v345_v41, %v347_v12 }
 0x115   : > { %893 = vrot.lane.b32.xlu0 %v759_v54, %s7812_s24  ;;  %7501 = vmatprep.mubr.msk.f32.mxu0 %vm1207_vm4, %v8746_v29  ;;  %v1070_v31 = vsel %vm1015_vm2, %v8173_v8, %v595_v48  ;;  %v685_v8 = vsel %vm678_vm0, %v682_v53, %v684_v27  ;;  %v2188_v48 = vrot.slane %v8774_v26, 1 }
 0x116   : > { %488 = vrot.lane.b32.xlu1 %v346_v30, %s7813_s25  ;;  %v350_v30 = vsel %vm341_vm1, %v347_v12, %v349_v16 }
 0x117   : > { %v866_v32 = vpop.permute.xlu0 %865 }
 0x118   : > { %v8759_v54 = vsel %vm1080_vm3, %v1037_v61, %v866_v32  ;;  %v597_v36 = vpop.permute.xlu1 %596  ;;  %v686_v61 = vrot.slane %v175_v9, 2  ;;  %v8771_v32 = vld [vmem:[%s7865_s23 + $0x2a8] sm:$0xff] }
 0x119   : > { %7502 = vmatmul.mubr.msk.f32.gmra.mxu0 %vm1207_vm4, %v8759_v54  ;;  %823 = vrot.lane.b32.xlu0 %v681_v25, %s7812_s24  ;;  %v2187_v41 = vrot.slane %v8771_v32, 1  ;;  %v1071_v9 = vsel %vm1015_vm2, %v8223_v2, %v597_v36  ;;  %v2208_v53 = vrot.slane %v8771_v32, 2  ;;  %v2209_v36 = vrot.slane %v8774_v26, 2 }
 0x11a   : > { %825 = vrot.lane.b32.xlu1 %v683_v13, %s7812_s24  ;;  %v8780_v13 = vld [vmem:[%s7865_s23 + $0x2b8] sm:$0xff]  ;;  %v687_v16 = vsel %vm678_vm0, %v684_v27, %v686_v61 }
 0x11b   : > { %v932_v56 = vpop.permute.xlu0 %931  ;;  %11304 = vst [vmem:[#allocation25_spill] sm:$0xff] %v8780_v13  ;;  %v2189_v2 = vsel %vm341_vm1, %v2187_v41, %v2188_v48 }
 0x11c   : > { %v8777_v62 = vsel %vm1080_vm3, %v1070_v31, %v932_v56  ;;  %v531_v25 = vpop.permute.xlu1 %530  ;;  %v2190_v31 = vrot.slane %v8780_v13, 1 }
 0x11d   : > { %7552 = vmatprep.mubr.msk.f32.mxu1 %vm1207_vm4, %v8777_v62  ;;  %490 = vrot.lane.b32.xlu0 %v348_v51, %s7813_s25  ;;  %v1038_v27 = vsel %vm1015_vm2, %v8207_v45, %v531_v25  ;;  %v2210_v45 = vsel %vm678_vm0, %v2208_v53, %v2209_v36 }
 0x11e   : > { %492 = vrot.lane.b32.xlu1 %v350_v30, %s7813_s25  ;;  %v2191_v61 = vsel %vm341_vm1, %v2188_v48, %v2190_v31 }
 0x11f   : > { %v934_v12 = vpop.permute.xlu0 %933 }
 0x120   : > { %v8794_v51 = vsel %vm1080_vm3, %v1071_v9, %v934_v12  ;;  %v533_v56 = vpop.permute.xlu1 %532  ;;  %v2211_v9 = vrot.slane %v8780_v13, 2  ;;  %v8808_v12 = vld [vmem:[%s7865_s23 + $0x2c0] sm:$0xff] }
 0x121   : > { %11305 = vst [vmem:[#allocation26_spill] sm:$0xff] %v8794_v51  ;;  %7553 = vmatmul.mubr.msk.f32.gmra.mxu1 %vm1207_vm4, %v8794_v51  ;;  %827 = vrot.lane.b32.xlu0 %v685_v8, %s7812_s24  ;;  %v260_v51 = vld [vmem:[%s7865_s23 + $0x2c8] sm:$0x3]  ;;  %v2192_v25 = vrot.slane %v8808_v12, 1  ;;  %v1039_v41 = vsel %vm1015_vm2, %v8253_v10, %v533_v56  ;;  %v2213_v53 = vrot.slane %v8808_v12, 2  ;;  %s7820_s23 = smov 48  }
 0x122   : > { %829 = vrot.lane.b32.xlu1 %v687_v16, %s7812_s24 }
 0x123   : > { %v868_v30 = vpop.permute.xlu0 %867 }
 0x124   : > { %v8811_v8 = vsel %vm1080_vm3, %v1038_v27, %v868_v30  ;;  %v599_v16 = vpop.permute.xlu1 %598  ;;  %v2212_v27 = vsel %vm678_vm0, %v2209_v36, %v2211_v9  ;;  %v2194_v30 = vrot.slane %v260_v51, 1 }
 0x125   : > { %7504 = vmatprep.mubr.msk.f32.mxu0 %vm1207_vm4, %v8811_v8  ;;  %2196 = vrot.lane.b32.xlu0 %v2189_v2, %s7813_s25  ;;  %v2193_v2 = vsel %vm341_vm1, %v2190_v31, %v2192_v25  ;;  %v1072_v10 = vsel %vm1015_vm2, %v8281_v35, %v599_v16  ;;  %v2214_v31 = vsel %vm678_vm0, %v2211_v9, %v2213_v53 }
 0x126   : > { %2198 = vrot.lane.b32.xlu1 %v2191_v61, %s7813_s25  ;;  %v2195_v36 = vsel %vm341_vm1, %v2192_v25, %v2194_v30  ;;  %v2215_v61 = vrot.slane %v260_v51, 2 }
 0x127   : > { %v870_v48 = vpop.permute.xlu0 %869 }
 0x128   : > { %v8824_v13 = vsel %vm1080_vm3, %v1039_v41, %v870_v48  ;;  %v601_v26 = vpop.permute.xlu1 %600 }
 0x129   : > { %7505 = vmatmul.mubr.msk.f32.gmra.mxu0 %vm1207_vm4, %v8824_v13  ;;  %2217 = vrot.lane.b32.xlu0 %v2210_v45, %s7812_s24  ;;  %v1073_v35 = vsel %vm1015_vm2, %v8284_v37, %v601_v26  ;;  %v2216_v45 = vsel %vm678_vm0, %v2213_v53, %v2215_v61 }
 0x12a   : > { %2219 = vrot.lane.b32.xlu1 %v2212_v27, %s7812_s24 }
 0x12b   : > { %v936_v56 = vpop.permute.xlu0 %935 }
 0x12c   : > { %v8836_v41 = vsel %vm1080_vm3, %v1072_v10, %v936_v56  ;;  %v535_v48 = vpop.permute.xlu1 %534 }
 0x12d   : > { %7555 = vmatprep.mubr.msk.f32.mxu1 %vm1207_vm4, %v8836_v41  ;;  %2200 = vrot.lane.b32.xlu0 %v2193_v2, %s7813_s25  ;;  %v1040_v9 = vsel %vm1015_vm2, %v8316_v19, %v535_v48 }
 0x12e   : > { %2202 = vrot.lane.b32.xlu1 %v2195_v36, %s7813_s25  ;;  %s7269_s25 = sshll.u32 %s11608_s13, 4 }
 0x12f   : > { %v938_v16 = vpop.permute.xlu0 %937  ;;  %s170_s28 = scalar_lea.vmem %s11130_s3, %s7269_s25 }
 0x130   : > { %v8847_v51 = vsel %vm1080_vm3, %v1073_v35, %v938_v16  ;;  %v537_v25 = vpop.permute.xlu1 %536 }
 0x131   : > { %7556 = vmatmul.mubr.msk.f32.gmra.mxu1 %vm1207_vm4, %v8847_v51  ;;  %2221 = vrot.lane.b32.xlu0 %v2214_v31, %s7812_s24  ;;  %v1041_v30 = vsel %vm1015_vm2, %v8319_v5, %v537_v25 }
 0x132   : > { %2223 = vrot.lane.b32.xlu1 %v2216_v45, %s7812_s24 }
 0x133   : > { %v872_v27 = vpop.permute.xlu0 %871 }
 0x134   : > { %v8856_v37 = vsel %vm1080_vm3, %v1040_v9, %v872_v27  ;;  %v603_v26 = vpop.permute.xlu1 %602 }
 0x135   : > { %7507 = vmatprep.mubr.msk.f32.mxu0 %vm1207_vm4, %v8856_v37  ;;  %v1074_v19 = vsel %vm1015_vm2, %v8301_v3, %v603_v26 }
 0x137   : > { %v874_v2 = vpop.permute.xlu0 %873 }
 0x138   : > { %v8863_v53 = vsel %vm1080_vm3, %v1041_v30, %v874_v2  ;;  %v605_v10 = vpop.permute.xlu1 %604 }
 0x139   : > { %7508 = vmatmul.mubr.msk.f32.gmra.mxu0 %vm1207_vm4, %v8863_v53  ;;  %v1075_v5 = vsel %vm1015_vm2, %v8353_v17, %v605_v10 }
 0x13b   : > { %v940_v56 = vpop.permute.xlu0 %939 }
 0x13c   : > { %v8870_v36 = vsel %vm1080_vm3, %v1074_v19, %v940_v56  ;;  %v539_v61 = vpop.permute.xlu1 %538 }
 0x13d   : > { %7558 = vmatprep.mubr.msk.f32.mxu1 %vm1207_vm4, %v8870_v36  ;;  %v1042_v3 = vsel %vm1015_vm2, %v8337_v46, %v539_v61 }
 0x13f   : > { %v942_v48 = vpop.permute.xlu0 %941 }
 0x140   : > { %v8877_v31 = vsel %vm1080_vm3, %v1075_v5, %v942_v48  ;;  %v541_v35 = vpop.permute.xlu1 %540 }
 0x141   : > { %7559 = vmatmul.mubr.msk.f32.gmra.mxu1 %vm1207_vm4, %v8877_v31  ;;  %v1043_v17 = vsel %vm1015_vm2, %v8383_v59, %v541_v35 }
 0x143   : > { %v876_v16 = vpop.permute.xlu0 %875 }
 0x144   : > { %v8884_v45 = vsel %vm1080_vm3, %v1042_v3, %v876_v16  ;;  %v607_v25 = vpop.permute.xlu1 %606 }
 0x145   : > { %7510 = vmatprep.mubr.msk.f32.mxu0 %vm1207_vm4, %v8884_v45  ;;  %v1076_v46 = vsel %vm1015_vm2, %v8411_v7, %v607_v25 }
 0x147   : > { %v878_v9 = vpop.permute.xlu0 %877 }
 0x148   : > { %v8891_v27 = vsel %vm1080_vm3, %v1043_v17, %v878_v9  ;;  %v609_v26 = vpop.permute.xlu1 %608 }
 0x149   : > { %7511 = vmatmul.mubr.msk.f32.gmra.mxu0 %vm1207_vm4, %v8891_v27  ;;  %v1077_v59 = vsel %vm1015_vm2, %v8414_v49, %v609_v26 }
 0x14b   : > { %v944_v30 = vpop.permute.xlu0 %943 }
 0x14c   : > { %v8898_v2 = vsel %vm1080_vm3, %v1076_v46, %v944_v30  ;;  %v543_v10 = vpop.permute.xlu1 %542 }
 0x14d   : > { %7561 = vmatprep.mubr.msk.f32.mxu1 %vm1207_vm4, %v8898_v2  ;;  %v1044_v7 = vsel %vm1015_vm2, %v8446_v21, %v543_v10 }
 0x14f   : > { %v946_v19 = vpop.permute.xlu0 %945 }
 0x150   : > { %v8905_v56 = vsel %vm1080_vm3, %v1077_v59, %v946_v19  ;;  %v545_v61 = vpop.permute.xlu1 %544 }
 0x151   : > { %7562 = vmatmul.mubr.msk.f32.gmra.mxu1 %vm1207_vm4, %v8905_v56  ;;  %v1045_v49 = vsel %vm1015_vm2, %v8449_v55, %v545_v61 }
 0x153   : > { %v880_v5 = vpop.permute.xlu0 %879 }
 0x154   : > { %v8912_v48 = vsel %vm1080_vm3, %v1044_v7, %v880_v5  ;;  %v611_v35 = vpop.permute.xlu1 %610 }
 0x155   : > { %7513 = vmatprep.mubr.msk.f32.mxu0 %vm1207_vm4, %v8912_v48  ;;  %v1078_v21 = vsel %vm1015_vm2, %v8431_v24, %v611_v35 }
 0x157   : > { %v882_v3 = vpop.permute.xlu0 %881 }
 0x158   : > { %v8919_v16 = vsel %vm1080_vm3, %v1045_v49, %v882_v3  ;;  %v613_v25 = vpop.permute.xlu1 %612 }
 0x159   : > { %7514 = vmatmul.mubr.msk.f32.gmra.mxu0 %vm1207_vm4, %v8919_v16  ;;  %v1079_v55 = vsel %vm1015_vm2, %v8489_v4, %v613_v25 }
 0x15b   : > { %v948_v17 = vpop.permute.xlu0 %947 }
 0x15c   : > { %v8926_v9 = vsel %vm1080_vm3, %v1078_v21, %v948_v17  ;;  %v547_v26 = vpop.permute.xlu1 %546 }
 0x15d   : > { %7564 = vmatprep.mubr.msk.f32.mxu1 %vm1207_vm4, %v8926_v9  ;;  %v1046_v24 = vsel %vm1015_vm2, %v8473_v14, %v547_v26 }
 0x15f   : > { %v950_v46 = vpop.permute.xlu0 %949 }
 0x160   : > { %v8933_v30 = vsel %vm1080_vm3, %v1079_v55, %v950_v46  ;;  %v549_v10 = vpop.permute.xlu1 %548 }
 0x161   : > { %7565 = vmatmul.mubr.msk.f32.gmra.mxu1 %vm1207_vm4, %v8933_v30  ;;  %v1047_v19 = vsel %vm1015_vm2, %v8519_v57, %v549_v10 }
 0x163   : > { %v884_v59 = vpop.permute.xlu0 %883 }
 0x164   : > { %v8942_v61 = vsel %vm1080_vm3, %v1046_v24, %v884_v59  ;;  %v886_v7 = vpop.permute.xlu1 %885 }
 0x165   : > { %v8945_v4 = vsel %vm1080_vm3, %v1047_v19, %v886_v7  ;;  %7516 = vmatprep.mubr.msk.f32.mxu0 %vm1207_vm4, %v8942_v61 }
 0x166   : > { %7517 = vmatmul.mubr.msk.f32.gmra.mxu0 %vm1207_vm4, %v8945_v4 }
 0x167   : > { %v1163_v5 = vpop.permute.xlu0 %1162 }
 0x168   : > { %v1165_v35 = vpop.permute.xlu1 %1164  ;;  %v1195_v14 = vsel %vm1015_vm2, %v8562_v47, %v1163_v5 }
 0x169   : > { %v1196_v25 = vsel %vm1015_vm2, %v8565_v20, %v1165_v35 }
 0x16b   : > { %v1184_v49 = vpop.permute.xlu0 %1183 }
 0x16c   : > { %v8954_v57 = vsel %vm1080_vm3, %v1195_v14, %v1184_v49  ;;  %v551_v3 = vpop.permute.xlu1 %550 }
 0x16d   : > { %7567 = vmatprep.mubr.msk.f32.mxu1 %vm1207_vm4, %v8954_v57  ;;  %v1048_v47 = vsel %vm1015_vm2, %v8588_v38, %v551_v3 }
 0x16f   : > { %v1186_v21 = vpop.permute.xlu0 %1185 }
 0x170   : > { %v8961_v17 = vsel %vm1080_vm3, %v1196_v25, %v1186_v21  ;;  %v553_v26 = vpop.permute.xlu1 %552 }
 0x171   : > { %7568 = vmatmul.mubr.msk.f32.gmra.mxu1 %vm1207_vm4, %v8961_v17  ;;  %v1049_v46 = vsel %vm1015_vm2, %v8591_v33, %v553_v26 }
 0x173   : > { %v888_v55 = vpop.permute.xlu0 %887 }
 0x174   : > { %v8970_v10 = vsel %vm1080_vm3, %v1048_v47, %v888_v55  ;;  %v890_v24 = vpop.permute.xlu1 %889 }
 0x175   : > { %v8973_v20 = vsel %vm1080_vm3, %v1049_v46, %v890_v24  ;;  %7519 = vmatprep.mubr.msk.f32.mxu0 %vm1207_vm4, %v8970_v10 }
 0x176   : > { %7520 = vmatmul.mubr.msk.f32.gmra.mxu0 %vm1207_vm4, %v8973_v20 }
 0x177   : > { %v1167_v59 = vpop.permute.xlu0 %1166 }
 0x178   : > { %v1169_v19 = vpop.permute.xlu1 %1168  ;;  %v1197_v38 = vsel %vm1015_vm2, %v8571_v58, %v1167_v59 }
 0x179   : > { %v1198_v35 = vsel %vm1015_vm2, %v8638_v63, %v1169_v19 }
 0x17b   : > { %v1188_v7 = vpop.permute.xlu0 %1187 }
 0x17c   : > { %v8982_v33 = vsel %vm1080_vm3, %v1197_v38, %v1188_v7  ;;  %v555_v5 = vpop.permute.xlu1 %554 }
 0x17d   : > { %7570 = vmatprep.mubr.msk.f32.mxu1 %vm1207_vm4, %v8982_v33  ;;  %v1050_v58 = vsel %vm1015_vm2, %v8611_v34, %v555_v5 }
 0x17f   : > { %v1190_v14 = vpop.permute.xlu0 %1189 }
 0x180   : > { %v8989_v49 = vsel %vm1080_vm3, %v1198_v35, %v1190_v14  ;;  %v557_v3 = vpop.permute.xlu1 %556 }
 0x181   : > { %7571 = vmatmul.mubr.msk.f32.gmra.mxu1 %vm1207_vm4, %v8989_v49  ;;  %v1051_v63 = vsel %vm1015_vm2, %v8665_v0, %v557_v3 }
 0x183   : > { %v892_v25 = vpop.permute.xlu0 %891 }
 0x184   : > { %v8996_v21 = vsel %vm1080_vm3, %v1050_v58, %v892_v25  ;;  %v487_v26 = vpop.permute.xlu1 %486  ;;  %v11308_v25 = vld [vmem:[#allocation20_spill] sm:$0xff] }
 0x185   : > { %7522 = vmatprep.mubr.msk.f32.mxu0 %vm1207_vm4, %v8996_v21  ;;  %v1016_v34 = vsel %vm1015_vm2, %v8695_v23, %v487_v26 }
 0x187   : > { %v894_v47 = vpop.permute.xlu0 %893 }
 0x188   : > { %v9003_v55 = vsel %vm1080_vm3, %v1051_v63, %v894_v47  ;;  %v489_v46 = vpop.permute.xlu1 %488 }
 0x189   : > { %7523 = vmatmul.mubr.msk.f32.gmra.mxu0 %vm1207_vm4, %v9003_v55  ;;  %v1017_v59 = vsel %vm1015_vm2, %v8698_v11, %v489_v46 }
 0x18a   : > { %7681 = vmatprep.mubr.msk.f32.mxu0 %vm1207_vm4, %v8334_v43 }
 0x18b   : > { %v824_v24 = vpop.permute.xlu0 %823 }
 0x18c   : > { %v1081_v0 = vsel %vm1080_vm3, %v1016_v34, %v824_v24  ;;  %v826_v19 = vpop.permute.xlu1 %825 }
 0x18d   : > { %v1082_v38 = vsel %vm1080_vm3, %v1017_v59, %v826_v19  ;;  %7579 = vmatprep.mubr.msk.f32.mxu1 %vm1207_vm4, %v1081_v0  ;;  %7682 = vmatmul.mubr.msk.f32.vlgmr.msra.gmra.mxu0 %vm1207_vm4, %v8350_v44 }
 0x18e   : > { %7684 = vmatprep.mubr.msk.f32.mxu0 %vm1207_vm4, %v8396_v22  ;;  %7580 = vmatmul.mubr.msk.f32.vlgmr.msra.gmra.mxu1 %vm1207_vm4, %v1082_v38 }
 0x18f   : > { %v491_v23 = vpop.permute.xlu0 %490 }
 0x190   : > { %v493_v7 = vpop.permute.xlu1 %492  ;;  %v1018_v11 = vsel %vm1015_vm2, %v8715_v52, %v491_v23  ;;  %v11306_v52 = vld [vmem:[#allocation17_spill] sm:$0xff]  ;;  %v11335_v23 = vld [vmem:[#allocation24_spill] sm:$0xff] }
 0x191   : > { %7685 = vmatmul.mubr.msk.f32.gmra.mxu0 %vm1207_vm4, %v8408_v15  ;;  %v1019_v35 = vsel %vm1015_vm2, %v8743_v50, %v493_v7  ;;  %v11307_v50 = vld [vmem:[#allocation6_spill] sm:$0xff]  ;;  %v11337_v7 = vld [vmem:[#allocation25_spill] sm:$0xff] }
 0x192   : > { %7687 = vmatprep.mubr.msk.f32.mxu0 %vm1207_vm4, %v8470_v60 }
 0x193   : > { %v828_v5 = vpop.permute.xlu0 %827 }
 0x194   : > { %v1083_v14 = vsel %vm1080_vm3, %v1018_v11, %v828_v5  ;;  %v830_v3 = vpop.permute.xlu1 %829 }
 0x195   : > { %v1084_v58 = vsel %vm1080_vm3, %v1019_v35, %v830_v3  ;;  %7582 = vmatprep.mubr.msk.f32.mxu1 %vm1207_vm4, %v1083_v14  ;;  %7688 = vmatmul.mubr.msk.f32.gmra.mxu0 %vm1207_vm4, %v8486_v39 }
 0x196   : > { %7690 = vmatprep.mubr.msk.f32.mxu0 %vm1207_vm4, %v8532_v40  ;;  %7583 = vmatmul.mubr.msk.f32.gmra.mxu1 %vm1207_vm4, %v1084_v58 }
 0x197   : > { %7585 = vmatprep.mubr.msk.f32.mxu1 %vm1207_vm4, %v8204_v42  ;;  %v11309_v42 = vld [vmem:[#allocation21_spill] sm:$0xff] }
 0x199   : > { %7691 = vmatmul.mubr.msk.f32.gmra.mxu0 %vm1207_vm4, %v8547_v28 }
 0x19a   : > { %7586 = vmatmul.mubr.msk.f32.gmra.mxu1 %vm1207_vm4, %v8220_v1  ;;  %7693 = vmatprep.mubr.msk.f32.mxu0 %vm1207_vm4, %v8608_v18  ;;  %v11310_v1 = vld [vmem:[#allocation2_spill] sm:$0xff] }
 0x19b   : > { %7588 = vmatprep.mubr.msk.f32.mxu1 %vm1207_vm4, %v8266_v6  ;;  %v11312_v6 = vld [vmem:[#allocation4_spill] sm:$0xff] }
 0x19d   : > { %7694 = vmatmul.mubr.msk.f32.gmra.mxu0 %vm1207_vm4, %v11306_v52 }
 0x19e   : > { %7589 = vmatmul.mubr.msk.f32.gmra.mxu1 %vm1207_vm4, %v11307_v50  ;;  %7696 = vmatprep.mubr.msk.f32.mxu0 %vm1207_vm4, %v11308_v25 }
 0x19f   : > { %7591 = vmatprep.mubr.msk.f32.mxu1 %vm1207_vm4, %v8334_v43  ;;  %v11313_v43 = vld [vmem:[#allocation5_spill] sm:$0xff] }
 0x1a1   : > { %7697 = vmatmul.mubr.msk.f32.gmra.mxu0 %vm1207_vm4, %v11309_v42 }
 0x1a2   : > { %7592 = vmatmul.mubr.msk.f32.gmra.mxu1 %vm1207_vm4, %v8350_v44  ;;  %7699 = vmatprep.mubr.msk.f32.mxu0 %vm1207_vm4, %v8746_v29  ;;  %v11314_v44 = vld [vmem:[#allocation7_spill] sm:$0xff] }
 0x1a3   : > { %7594 = vmatprep.mubr.msk.f32.mxu1 %vm1207_vm4, %v8396_v22  ;;  %v11315_v22 = vld [vmem:[#allocation8_spill] sm:$0xff] }
 0x1a5   : > { %7700 = vmatmul.mubr.msk.f32.gmra.mxu0 %vm1207_vm4, %v8759_v54 }
 0x1a6   : > { %7595 = vmatmul.mubr.msk.f32.gmra.mxu1 %vm1207_vm4, %v8408_v15  ;;  %7702 = vmatprep.mubr.msk.f32.mxu0 %vm1207_vm4, %v8811_v8  ;;  %v11316_v15 = vld [vmem:[#allocation9_spill] sm:$0xff] }
 0x1a7   : > { %7597 = vmatprep.mubr.msk.f32.mxu1 %vm1207_vm4, %v8470_v60  ;;  %v11317_v60 = vld [vmem:[#allocation10_spill] sm:$0xff] }
 0x1a9   : > { %7703 = vmatmul.mubr.msk.f32.gmra.mxu0 %vm1207_vm4, %v8824_v13 }
 0x1aa   : > { %7598 = vmatmul.mubr.msk.f32.gmra.mxu1 %vm1207_vm4, %v8486_v39  ;;  %7705 = vmatprep.mubr.msk.f32.mxu0 %vm1207_vm4, %v8856_v37  ;;  %v11311_v39 = vld [vmem:[#allocation3_spill] sm:$0xff] }
 0x1ab   : > { %7600 = vmatprep.mubr.msk.f32.mxu1 %vm1207_vm4, %v8532_v40  ;;  %v11318_v40 = vld [vmem:[#allocation11_spill] sm:$0xff] }
 0x1ad   : > { %7706 = vmatmul.mubr.msk.f32.gmra.mxu0 %vm1207_vm4, %v8863_v53 }
 0x1ae   : > { %7601 = vmatmul.mubr.msk.f32.gmra.mxu1 %vm1207_vm4, %v8547_v28  ;;  %7708 = vmatprep.mubr.msk.f32.mxu0 %vm1207_vm4, %v8884_v45  ;;  %v11319_v28 = vld [vmem:[#allocation12_spill] sm:$0xff] }
 0x1af   : > { %7603 = vmatprep.mubr.msk.f32.mxu1 %vm1207_vm4, %v8608_v18  ;;  %v11320_v18 = vld [vmem:[#allocation13_spill] sm:$0xff] }
 0x1b1   : > { %7709 = vmatmul.mubr.msk.f32.gmra.mxu0 %vm1207_vm4, %v8891_v27 }
 0x1b2   : > { %7604 = vmatmul.mubr.msk.f32.gmra.mxu1 %vm1207_vm4, %v11306_v52  ;;  %7711 = vmatprep.mubr.msk.f32.mxu0 %vm1207_vm4, %v8912_v48 }
 0x1b3   : > { %7606 = vmatprep.mubr.msk.f32.mxu1 %vm1207_vm4, %v11308_v25 }
 0x1b5   : > { %7712 = vmatmul.mubr.msk.f32.gmra.mxu0 %vm1207_vm4, %v8919_v16 }
 0x1b6   : > { %7607 = vmatmul.mubr.msk.f32.gmra.mxu1 %vm1207_vm4, %v11309_v42  ;;  %7714 = vmatprep.mubr.msk.f32.mxu0 %vm1207_vm4, %v8942_v61 }
 0x1b7   : > { %7609 = vmatprep.mubr.msk.f32.mxu1 %vm1207_vm4, %v8746_v29  ;;  %v11321_v29 = vld [vmem:[#allocation14_spill] sm:$0xff] }
 0x1b9   : > { %7715 = vmatmul.mubr.msk.f32.gmra.mxu0 %vm1207_vm4, %v8945_v4 }
 0x1ba   : > { %7610 = vmatmul.mubr.msk.f32.gmra.mxu1 %vm1207_vm4, %v8759_v54  ;;  %7717 = vmatprep.mubr.msk.f32.mxu0 %vm1207_vm4, %v8970_v10  ;;  %v11322_v54 = vld [vmem:[#allocation15_spill] sm:$0xff] }
 0x1bb   : > { %7612 = vmatprep.mubr.msk.f32.mxu1 %vm1207_vm4, %v8811_v8  ;;  %v11324_v8 = vld [vmem:[#allocation18_spill] sm:$0xff] }
 0x1bd   : > { %7718 = vmatmul.mubr.msk.f32.gmra.mxu0 %vm1207_vm4, %v8973_v20 }
 0x1be   : > { %7613 = vmatmul.mubr.msk.f32.gmra.mxu1 %vm1207_vm4, %v8824_v13  ;;  %7720 = vmatprep.mubr.msk.f32.mxu0 %vm1207_vm4, %v8996_v21  ;;  %v11323_v13 = vld [vmem:[#allocation16_spill] sm:$0xff] }
 0x1bf   : > { %7615 = vmatprep.mubr.msk.f32.mxu1 %vm1207_vm4, %v8856_v37  ;;  %v11325_v37 = vld [vmem:[#allocation19_spill] sm:$0xff] }
 0x1c1   : > { %7721 = vmatmul.mubr.msk.f32.gmra.mxu0 %vm1207_vm4, %v9003_v55 }
 0x1c2   : > { %7616 = vmatmul.mubr.msk.f32.gmra.mxu1 %vm1207_vm4, %v8863_v53  ;;  %7723 = vmatprep.mubr.msk.f32.mxu0 %vm1207_vm4, %v11310_v1  ;;  %v11326_v53 = vld [vmem:[#allocation22_spill] sm:$0xff] }
 0x1c3   : > { %7618 = vmatprep.mubr.msk.f32.mxu1 %vm1207_vm4, %v8884_v45  ;;  %v11327_v45 = vld [vmem:[#allocation23_spill] sm:$0xff] }
 0x1c5   : > { %7724 = vmatmul.mubr.msk.f32.gmra.mxu0 %vm1207_vm4, %v11311_v39 }
 0x1c6   : > { %7619 = vmatmul.mubr.msk.f32.gmra.mxu1 %vm1207_vm4, %v8891_v27  ;;  %7726 = vmatprep.mubr.msk.f32.mxu0 %vm1207_vm4, %v11312_v6  ;;  %v11328_v27 = vld [vmem:[#allocation26_spill] sm:$0xff] }
 0x1c7   : > { %7621 = vmatprep.mubr.msk.f32.mxu1 %vm1207_vm4, %v8912_v48  ;;  %v9209_v48 = vpop.f32.mrf.mxu1 }
 0x1c8   : > { %11329 = vst [vmem:[#allocation17_spill] sm:$0xff] %v9209_v48 }
 0x1c9   : > { %7727 = vmatmul.mubr.msk.f32.gmra.mxu0 %vm1207_vm4, %v11313_v43 }
 0x1ca   : > { %7622 = vmatmul.mubr.msk.f32.gmra.mxu1 %vm1207_vm4, %v8919_v16  ;;  %7729 = vmatprep.mubr.msk.f32.mxu0 %vm1207_vm4, %v11314_v44  ;;  %v2197_v16 = vpop.permute.xlu0 %2196 }
 0x1cb   : > { %7624 = vmatprep.mubr.msk.f32.mxu1 %vm1207_vm4, %v8942_v61  ;;  %v9215_v61 = vpop.f32.mrf.mxu0  ;;  %v2229_v0 = vsel %vm1015_vm2, %v8771_v32, %v2197_v16 }
 0x1cd   : > { %7730 = vmatmul.mubr.msk.f32.gmra.mxu0 %vm1207_vm4, %v11315_v22 }
 0x1ce   : > { %7625 = vmatmul.mubr.msk.f32.gmra.mxu1 %vm1207_vm4, %v8945_v4  ;;  %7732 = vmatprep.mubr.msk.f32.mxu0 %vm1207_vm4, %v11316_v15  ;;  %v2199_v4 = vpop.permute.xlu1 %2198  ;;  %v2218_v26 = vpop.permute.xlu0 %2217 }
 0x1cf   : > { %7627 = vmatprep.mubr.msk.f32.mxu1 %vm1207_vm4, %v8970_v10  ;;  %v9221_v10 = vpop.f32.mrf.mxu1  ;;  %v2233_v32 = vsel %vm1080_vm3, %v2229_v0, %v2218_v26 }
 0x1d0   : > { %11330 = vst [vmem:[#allocation6_spill] sm:$0xff] %v9221_v10 }
 0x1d1   : > { %7733 = vmatmul.mubr.msk.f32.gmra.mxu0 %vm1207_vm4, %v11317_v60 }
 0x1d2   : > { %7628 = vmatmul.mubr.msk.f32.gmra.mxu1 %vm1207_vm4, %v8973_v20  ;;  %7735 = vmatprep.mubr.msk.f32.mxu0 %vm1207_vm4, %v11318_v40  ;;  %v9227_v20 = vpop.f32.mrf.mxu0  ;;  %v2220_v47 = vpop.permute.xlu1 %2219 }
 0x1d3   : > { %7630 = vmatprep.mubr.msk.f32.mxu1 %vm1207_vm4, %v8996_v21  ;;  %v9231_v21 = vpop.f32.mrf.mxu1  ;;  %v2201_v24 = vpop.permute.xlu0 %2200 }
 0x1d4   : > { %11331 = vst [vmem:[#allocation20_spill] sm:$0xff] %v9231_v21  ;;  %v9233_v63 = vpop.f32.mrf.mxu0  ;;  %v2231_v11 = vsel %vm1015_vm2, %v11337_v7, %v2201_v24 }
 0x1d5   : > { %7736 = vmatmul.mubr.msk.f32.gmra.mxu0 %vm1207_vm4, %v11319_v28 }
 0x1d6   : > { %7631 = vmatmul.mubr.msk.f32.gmra.mxu1 %vm1207_vm4, %v9003_v55  ;;  %7738 = vmatprep.mubr.msk.f32.mxu0 %vm1207_vm4, %v11320_v18  ;;  %v9243_v55 = vpop.f32.mrf.mxu1  ;;  %v9245_v46 = vpop.f32.mrf.mxu0 }
 0x1d7   : > { %7633 = vmatprep.mubr.msk.f32.mxu1 %vm1207_vm4, %v11310_v1  ;;  %11332 = vst [vmem:[#allocation21_spill] sm:$0xff] %v9243_v55  ;;  %v2203_v19 = vpop.permute.xlu1 %2202  ;;  %v2222_v5 = vpop.permute.xlu0 %2221 }
 0x1d8   : > { %v9249_v34 = vpop.f32.mrf.mxu1  ;;  %v9255_v59 = vpop.f32.mrf.mxu0  ;;  %v2235_v14 = vsel %vm1080_vm3, %v2231_v11, %v2222_v5 }
 0x1d9   : > { %7739 = vmatmul.mubr.msk.f32.gmra.mxu0 %vm1207_vm4, %v11321_v29  ;;  %11333 = vst [vmem:[#allocation2_spill] sm:$0xff] %v9249_v34 }
 0x1da   : > { %7634 = vmatmul.mubr.msk.f32.gmra.mxu1 %vm1207_vm4, %v11311_v39  ;;  %7741 = vmatprep.mubr.msk.f32.mxu0 %vm1207_vm4, %v11322_v54  ;;  %v9263_v38 = vpop.f32.mrf.mxu1 }
 0x1db   : > { %7636 = vmatprep.mubr.msk.f32.mxu1 %vm1207_vm4, %v11312_v6  ;;  %11334 = vst [vmem:[#allocation3_spill] sm:$0xff] %v9263_v38  ;;  %v2224_v3 = vpop.permute.xlu1 %2223 }
 0x1dd   : > { %7742 = vmatmul.mubr.msk.f32.gmra.mxu0 %vm1207_vm4, %v11323_v13 }
 0x1de   : > { %7637 = vmatmul.mubr.msk.f32.gmra.mxu1 %vm1207_vm4, %v11313_v43  ;;  %7744 = vmatprep.mubr.msk.f32.mxu0 %vm1207_vm4, %v11324_v8 }
 0x1df   : > { %7639 = vmatprep.mubr.msk.f32.mxu1 %vm1207_vm4, %v11314_v44 }
 0x1e1   : > { %7745 = vmatmul.mubr.msk.f32.gmra.mxu0 %vm1207_vm4, %v11325_v37 }
 0x1e2   : > { %7640 = vmatmul.mubr.msk.f32.gmra.mxu1 %vm1207_vm4, %v11315_v22  ;;  %7747 = vmatprep.mubr.msk.f32.mxu0 %vm1207_vm4, %v11326_v53 }
 0x1e3   : > { %7642 = vmatprep.mubr.msk.f32.mxu1 %vm1207_vm4, %v11316_v15 }
 0x1e5   : > { %7748 = vmatmul.mubr.msk.f32.gmra.mxu0 %vm1207_vm4, %v11327_v45 }
 0x1e6   : > { %7643 = vmatmul.mubr.msk.f32.gmra.mxu1 %vm1207_vm4, %v11317_v60  ;;  %7750 = vmatprep.mubr.msk.f32.mxu0 %vm1207_vm4, %v8777_v62 }
 0x1e7   : > { %7645 = vmatprep.mubr.msk.f32.mxu1 %vm1207_vm4, %v11318_v40 }
 0x1e9   : > { %7751 = vmatmul.mubr.msk.f32.gmra.mxu0 %vm1207_vm4, %v11328_v27 }
 0x1ea   : > { %7646 = vmatmul.mubr.msk.f32.gmra.mxu1 %vm1207_vm4, %v11319_v28  ;;  %7753 = vmatprep.mubr.msk.f32.mxu0 %vm1207_vm4, %v8836_v41 }
 0x1eb   : > { %7648 = vmatprep.mubr.msk.f32.mxu1 %vm1207_vm4, %v11320_v18 }
 0x1ed   : > { %7754 = vmatmul.mubr.msk.f32.gmra.mxu0 %vm1207_vm4, %v8847_v51 }
 0x1ee   : > { %7649 = vmatmul.mubr.msk.f32.gmra.mxu1 %vm1207_vm4, %v11321_v29  ;;  %7756 = vmatprep.mubr.msk.f32.mxu0 %vm1207_vm4, %v8870_v36 }
 0x1ef   : > { %7651 = vmatprep.mubr.msk.f32.mxu1 %vm1207_vm4, %v11322_v54 }
 0x1f1   : > { %7757 = vmatmul.mubr.msk.f32.gmra.mxu0 %vm1207_vm4, %v8877_v31 }
 0x1f2   : > { %7652 = vmatmul.mubr.msk.f32.gmra.mxu1 %vm1207_vm4, %v11323_v13  ;;  %7759 = vmatprep.mubr.msk.f32.mxu0 %vm1207_vm4, %v8898_v2 }
 0x1f3   : > { %7654 = vmatprep.mubr.msk.f32.mxu1 %vm1207_vm4, %v11324_v8 }
 0x1f5   : > { %7760 = vmatmul.mubr.msk.f32.gmra.mxu0 %vm1207_vm4, %v8905_v56 }
 0x1f6   : > { %7655 = vmatmul.mubr.msk.f32.gmra.mxu1 %vm1207_vm4, %v11325_v37  ;;  %7762 = vmatprep.mubr.msk.f32.mxu0 %vm1207_vm4, %v8926_v9 }
 0x1f7   : > { %7657 = vmatprep.mubr.msk.f32.mxu1 %vm1207_vm4, %v11326_v53 }
 0x1f9   : > { %7763 = vmatmul.mubr.msk.f32.gmra.mxu0 %vm1207_vm4, %v8933_v30 }
 0x1fa   : > { %7658 = vmatmul.mubr.msk.f32.gmra.mxu1 %vm1207_vm4, %v11327_v45  ;;  %7765 = vmatprep.mubr.msk.f32.mxu0 %vm1207_vm4, %v8954_v57  ;;  %v9269_v57 = vpop.f32.mrf.mxu0 }
 0x1fb   : > { %7660 = vmatprep.mubr.msk.f32.mxu1 %vm1207_vm4, %v8777_v62  ;;  %v2230_v62 = vsel %vm1015_vm2, %v11335_v23, %v2199_v4 }
 0x1fc   : > { %v9280_v35 = vpop.f32.mrf.mxu0 }
 0x1fd   : > { %7766 = vmatmul.mubr.msk.f32.gmra.mxu0 %vm1207_vm4, %v8961_v17  ;;  %v9276_v17 = vpop.f32.mrf.mxu1 }
 0x1fe   : > { %7661 = vmatmul.mubr.msk.f32.gmra.mxu1 %vm1207_vm4, %v11328_v27  ;;  %7768 = vmatprep.mubr.msk.f32.mxu0 %vm1207_vm4, %v8982_v33  ;;  %11336 = vst [vmem:[#allocation4_spill] sm:$0xff] %v9276_v17  ;;  %v2234_v33 = vsel %vm1080_vm3, %v2230_v62, %v2220_v47  ;;  %v9295_v52 = vpop.f32.mrf.mxu0 }
 0x1ff   : > { %7663 = vmatprep.mubr.msk.f32.mxu1 %vm1207_vm4, %v8836_v41  ;;  %v2232_v41 = vsel %vm1015_vm2, %v8808_v12, %v2203_v19  ;;  %v9293_v58 = vpop.f32.mrf.mxu1 }
 0x200   : > { %11338 = vst [vmem:[#allocation5_spill] sm:$0xff] %v9293_v58 }
 0x201   : > { %7769 = vmatmul.mubr.msk.f32.gmra.mxu0 %vm1207_vm4, %v8989_v49  ;;  %v9298_v49 = vpop.f32.mrf.mxu1 }
 0x202   : > { %7664 = vmatmul.mubr.msk.f32.gmra.mxu1 %vm1207_vm4, %v8847_v51  ;;  %7771 = vmatprep.mubr.msk.f32.mxu0 %vm1207_vm4, %v2233_v32  ;;  %11339 = vst [vmem:[#allocation7_spill] sm:$0xff] %v9298_v49  ;;  %v2236_v51 = vsel %vm1080_vm3, %v2232_v41, %v2224_v3 }
 0x203   : > { %7666 = vmatprep.mubr.msk.f32.mxu1 %vm1207_vm4, %v8870_v36  ;;  %v9304_v36 = vpop.f32.mrf.mxu0  ;;  %v9309_v12 = vpop.f32.mrf.mxu1 }
 0x204   : > { %11340 = vst [vmem:[#allocation8_spill] sm:$0xff] %v9309_v12 }
 0x205   : > { %7772 = vmatmul.mubr.msk.f32.gmra.mxu0 %vm1207_vm4, %v2234_v33  ;;  %v9313_v50 = vpop.f32.mrf.mxu0 }
 0x206   : > { %7667 = vmatmul.mubr.msk.f32.gmra.mxu1 %vm1207_vm4, %v8877_v31  ;;  %7774 = vmatprep.mubr.msk.f32.mxu0 %vm1207_vm4, %v2235_v14  ;;  %v9317_v31 = vpop.f32.mrf.mxu1 }
 0x207   : > { %7669 = vmatprep.mubr.msk.f32.mxu1 %vm1207_vm4, %v8898_v2  ;;  %11341 = vst [vmem:[#allocation9_spill] sm:$0xff] %v9317_v31  ;;  %v9319_v25 = vpop.f32.mrf.mxu0 }
 0x208   : > { %v9323_v2 = vpop.f32.mrf.mxu1 }
 0x209   : > { %7775 = vmatmul.mubr.msk.f32.gmra.mxu0 %vm1207_vm4, %v2236_v51  ;;  %11342 = vst [vmem:[#allocation10_spill] sm:$0xff] %v9323_v2  ;;  %v9325_v42 = vpop.f32.mrf.mxu0  ;;  %v7814_v51 = vmov 1983009808  }
 0x20a   : > { %7670 = vmatmul.mubr.msk.f32.gmra.mxu1 %vm1207_vm4, %v8905_v56  ;;  %v9327_v1 = vpop.f32.mrf.mxu1 }
 0x20b   : > { %7672 = vmatprep.mubr.msk.f32.mxu1 %vm1207_vm4, %v8926_v9  ;;  %11343 = vst [vmem:[#allocation11_spill] sm:$0xff] %v9327_v1  ;;  %v9329_v39 = vpop.f32.mrf.mxu0 }
 0x20c   : > { %v9331_v56 = vpop.f32.mrf.mxu1 }
 0x20d   : > { %11344 = vst [vmem:[#allocation12_spill] sm:$0xff] %v9331_v56  ;;  %v9333_v6 = vpop.f32.mrf.mxu0 }
 0x20e   : > { %7673 = vmatmul.mubr.msk.f32.gmra.mxu1 %vm1207_vm4, %v8933_v30  ;;  %v9335_v9 = vpop.f32.mrf.mxu1 }
 0x20f   : > { %11345 = vst [vmem:[#allocation13_spill] sm:$0xff] %v9335_v9  ;;  %v9337_v43 = vpop.f32.mrf.mxu0 }
 0x210   : > { %v9339_v44 = vpop.f32.mrf.mxu1 }
 0x211   : > { %11346 = vst [vmem:[#allocation14_spill] sm:$0xff] %v9339_v44  ;;  %v9341_v22 = vpop.f32.mrf.mxu0 }
 0x212   : > { %v9343_v30 = vpop.f32.mrf.mxu1 }
 0x213   : > { %11347 = vst [vmem:[#allocation15_spill] sm:$0xff] %v9343_v30  ;;  %v9345_v15 = vpop.f32.mrf.mxu0 }
 0x214   : > { %v9347_v60 = vpop.f32.mrf.mxu1 }
 0x215   : > { %11348 = vst [vmem:[#allocation16_spill] sm:$0xff] %v9347_v60  ;;  %v9349_v40 = vpop.f32.mrf.mxu0 }
 0x216   : > { %v9351_v28 = vpop.f32.mrf.mxu1 }
 0x217   : > { %11349 = vst [vmem:[#allocation18_spill] sm:$0xff] %v9351_v28  ;;  %v9353_v18 = vpop.f32.mrf.mxu0 }
 0x218   : > { %v9355_v29 = vpop.f32.mrf.mxu1 }
 0x219   : > { %11350 = vst [vmem:[#allocation19_spill] sm:$0xff] %v9355_v29  ;;  %v9357_v54 = vpop.f32.mrf.mxu0 }
 0x21a   : > { %v9359_v13 = vpop.f32.mrf.mxu1 }
 0x21b   : > { %11351 = vst [vmem:[#allocation22_spill] sm:$0xff] %v9359_v13  ;;  %v9361_v8 = vpop.f32.mrf.mxu0 }
 0x21c   : > { %v9363_v37 = vpop.f32.mrf.mxu1 }
 0x21d   : > { %11352 = vst [vmem:[#allocation23_spill] sm:$0xff] %v9363_v37  ;;  %v9365_v53 = vpop.f32.mrf.mxu0 }
 0x21e   : > { %v9367_v45 = vpop.f32.mrf.mxu1 }
 0x21f   : > { %11353 = vst [vmem:[#allocation26_spill] sm:$0xff] %v9367_v45  ;;  %v9369_v27 = vpop.f32.mrf.mxu0 }
 0x220   : > { %v9371_v16 = vpop.f32.mrf.mxu1 }
 0x221   : > { %11354 = vst [vmem:[#allocation24_spill] sm:$0xff] %v9371_v16  ;;  %v9373_v4 = vpop.f32.mrf.mxu0 }
 0x222   : > { %11355 = vst [vmem:[#allocation25_spill] sm:$0xff] %v9373_v4  ;;  %v9375_v26 = vpop.f32.mrf.mxu1 }
 0x223   : > { %11356 = vst [vmem:[#allocation27_spill] sm:$0xff] %v9375_v26  ;;  %v9377_v47 = vpop.f32.mrf.mxu0 }
 0x224   : > { %11357 = vst [vmem:[#allocation28_spill] sm:$0xff] %v9377_v47  ;;  %v9379_v24 = vpop.f32.mrf.mxu1 }
 0x225   : > { %11358 = vst [vmem:[#allocation29_spill] sm:$0xff] %v9379_v24  ;;  %v9381_v0 = vpop.f32.mrf.mxu0  ;;  %v2905_v24 = vlaneseq }
 0x226   : > { %11359 = vst [vmem:[#allocation30_spill] sm:$0xff] %v9381_v0  ;;  %v9383_v19 = vpop.f32.mrf.mxu1 }
 0x227   : > { %11360 = vst [vmem:[#allocation31_spill] sm:$0xff] %v9383_v19  ;;  %v9385_v23 = vpop.f32.mrf.mxu0  ;;  %v2903_v19 = vunpack.c.l.s4 %v7814_v51  ;;  %v9408_v37 = vshrl.u32 %v2905_v24, 7 }
 0x228   : > { %11361 = vst [vmem:[#allocation32_spill] sm:$0xff] %v9385_v23  ;;  %v9387_v62 = vpop.f32.mrf.mxu1 }
 0x229   : > { %11362 = vst [vmem:[#allocation33_spill] sm:$0xff] %v9387_v62  ;;  %v9389_v32 = vpop.f32.mrf.mxu0  ;;  %v2904_v45 = vunpack.c.0.s8 %v2903_v19  ;;  %11372 = vst [vmem:[#allocation43_spill] sm:$0xff] %v9408_v37 }
 0x22a   : > { %11363 = vst [vmem:[#allocation34_spill] sm:$0xff] %v9389_v32 }
 0x231   : > { %v9391_v7 = vpop.f32.mrf.mxu1 }
 0x232   : > { %11364 = vst [vmem:[#allocation35_spill] sm:$0xff] %v9391_v7 }
 0x233   : > { %v9395_v5 = vpop.f32.mrf.mxu1 }
 0x234   : > { %11366 = vst [vmem:[#allocation37_spill] sm:$0xff] %v9395_v5 }
 0x236   : > { %v9393_v11 = vpop.f32.mrf.mxu0 }
 0x237   : > { %11365 = vst [vmem:[#allocation36_spill] sm:$0xff] %v9393_v11 }
 0x238   : > { %v9397_v33 = vpop.f32.mrf.mxu0 }
 0x239   : > { %11367 = vst [vmem:[#allocation38_spill] sm:$0xff] %v9397_v33 }
 0x241   : > { %v9399_v41 = vpop.f32.mrf.mxu1 }
 0x242   : > { %11368 = vst [vmem:[#allocation39_spill] sm:$0xff] %v9399_v41  ;;  %v9413_v41 = vld [vmem:[%s11129_s2] ss:$0 sm:$0xff] }
 0x243   : > { %v9405_v62 = vpop.f32.mrf.mxu1 }
 0x244   : > { %11371 = vst [vmem:[#allocation42_spill] sm:$0xff] %v9405_v62  ;;  %v9418_v62 = vsub.s32 %v2904_v45, %v9408_v37 }
 0x249   : > { %v9401_v14 = vpop.f32.mrf.mxu0 }
 0x24a   : > { %11369 = vst [vmem:[#allocation40_spill] sm:$0xff] %v9401_v14 }
 0x24b   : > { %v9403_v3 = vpop.f32.mrf.mxu0 }
 0x24c   : > { %11370 = vst [vmem:[#allocation41_spill] sm:$0xff] %v9403_v3 }
 0x24d   : > { %v7683_v26 = vpop.f32.mrf.mxu0 }
 0x24e   : > { %v7581_v16 = vpop.f32.mrf.mxu1 }
 0x24f   : > { %v1869_v7 = vadd.f32 %v7581_v16, %v9215_v61  ;;  %v2319_v5 = vpop.f32.mrf.mxu0 }
 0x250   : > { %v1863_v13 = vpop.f32.mrf.mxu1 }
 0x251   : > { %v2639_v29 = vadd.f32 %v7683_v26, %v1869_v7  ;;  %v1864_v51 = vadd.f32 %v1863_v13, %v9227_v20  ;;  %v7686_v61 = vpop.f32.mrf.mxu0 }
 0x253   : > { %v2710_v28 = vadd.f32 %v9413_v41, %v2639_v29  ;;  %v2638_v60 = vadd.f32 %v2319_v5, %v1864_v51  ;;  %v2329_v56 = vpop.f32.mrf.mxu0 }
 0x255   : > { %v2774_v16 = vmax.f32 %v2710_v28, 0.0  ;;  %v2709_v24 = vadd.f32 %v9413_v41, %v2638_v60 }
 0x256   : > { %v7584_v19 = vpop.f32.mrf.mxu1 }
 0x257   : > { %v2918_v30 = vcombine.high %v2774_v16, %v2774_v16  ;;  %v2925_v44 = vrot.slane %v2774_v16, %v9418_v62  ;;  %v2773_v9 = vmax.f32 %v2709_v24, 0.0  ;;  %v1879_v26 = vadd.f32 %v7584_v19, %v9233_v63  ;;  %v7689_v24 = vpop.f32.mrf.mxu0 }
 0x258   : > { %v1873_v7 = vpop.f32.mrf.mxu1 }
 0x259   : > { %v2932_v20 = vrot.slane %v2918_v30, %v9418_v62  ;;  %v2933_v29 = vcombine.high %v2925_v44, %v2925_v44  ;;  %v6999_v13 = vrot.slane %v2925_v44, 9  ;;  %v2901_v45 = vcombine.high %v2773_v9, %v2773_v9  ;;  %v2339_v38 = vpop.f32.mrf.mxu0 }
 0x25a   : > { %v2908_v5 = vrot.slane %v2773_v9, %v9418_v62  ;;  %v2641_v51 = vadd.f32 %v7686_v61, %v1879_v26  ;;  %v1874_v28 = vadd.f32 %v1873_v7, %v9245_v46  ;;  %v7587_v60 = vpop.f32.mrf.mxu1 }
 0x25b   : > { %v2934_v37 = vcombine.high %v2932_v20, %v2932_v20  ;;  %v7000_v1 = vrot.slane %v2933_v29, 9  ;;  %v7001_v2 = vrot.slane %v2932_v20, 9  ;;  %v9426_v16 = vmax.f32 %v2925_v44, %v6999_v13 }
 0x25c   : > { %v2915_v63 = vrot.slane %v2901_v45, %v9418_v62  ;;  %v2916_v19 = vcombine.high %v2908_v5, %v2908_v5  ;;  %v6995_v31 = vrot.slane %v2908_v5, 9  ;;  %v2712_v30 = vadd.f32 %v9413_v41, %v2641_v51  ;;  %v1883_v12 = vpop.f32.mrf.mxu1 }
 0x25d   : > { %v7002_v49 = vrot.slane %v2934_v37, 9  ;;  %v9430_v58 = vmax.f32 %v2933_v29, %v7000_v1  ;;  %v9432_v9 = vmax.f32 %v2932_v20, %v7001_v2  ;;  %v2640_v46 = vadd.f32 %v2329_v56, %v1874_v28 }
 0x25e   : > { %v2917_v61 = vcombine.high %v2915_v63, %v2915_v63  ;;  %v6996_v26 = vrot.slane %v2916_v19, 9  ;;  %v6997_v7 = vrot.slane %v2915_v63, 9  ;;  %v9434_v17 = vmax.f32 %v2908_v5, %v6995_v31  ;;  %v7590_v44 = vpop.f32.mrf.mxu1 }
 0x25f   : > { %v9436_v13 = vmax.f32 %v2934_v37, %v7002_v49  ;;  %v2776_v45 = vmax.f32 %v2712_v30, 0.0  ;;  %v2711_v34 = vadd.f32 %v9413_v41, %v2640_v46  ;;  %v1889_v51 = vadd.f32 %v7587_v60, %v9255_v59 }
 0x260   : > { %v6998_v55 = vrot.slane %v2917_v61, 9  ;;  %v9440_v1 = vmax.f32 %v2916_v19, %v6996_v26  ;;  %v9442_v2 = vmax.f32 %v2915_v63, %v6997_v7  ;;  %v1884_v56 = vadd.f32 %v1883_v12, %v9269_v57  ;;  %v1893_v20 = vpop.f32.mrf.mxu1  ;;  %v7692_v57 = vpop.f32.mrf.mxu0 }
 0x261   : > { %v2952_v29 = vcombine.high %v2776_v45, %v2776_v45  ;;  %v2959_v31 = vrot.slane %v2776_v45, %v9418_v62  ;;  %v2775_v5 = vmax.f32 %v2711_v34, 0.0  ;;  %v2643_v49 = vadd.f32 %v7689_v24, %v1889_v51 }
 0x262   : > { %v9446_v37 = vmax.f32 %v2917_v61, %v6998_v55  ;;  %v2642_v28 = vadd.f32 %v2339_v38, %v1884_v56  ;;  %v1899_v30 = vadd.f32 %v7590_v44, %v9280_v35  ;;  %v9450_v59 = vadd.f32 %v1893_v20, %v9295_v52  ;;  %v7593_v47 = vpop.f32.mrf.mxu1 }
 0x263   : > { %v2966_v60 = vrot.slane %v2952_v29, %v9418_v62  ;;  %v2967_v63 = vcombine.high %v2959_v31, %v2959_v31  ;;  %v7007_v19 = vrot.slane %v2959_v31, 9  ;;  %v2935_v46 = vcombine.high %v2775_v5, %v2775_v5 }
 0x264   : > { %v2942_v12 = vrot.slane %v2775_v5, %v9418_v62  ;;  %v2714_v26 = vadd.f32 %v9413_v41, %v2643_v49  ;;  %v2713_v34 = vadd.f32 %v9413_v41, %v2642_v28  ;;  %v2645_v55 = vadd.f32 %v7692_v57, %v1899_v30 }
 0x265   : > { %v2968_v24 = vcombine.high %v2966_v60, %v2966_v60  ;;  %v7008_v38 = vrot.slane %v2967_v63, 9  ;;  %v7009_v61 = vrot.slane %v2966_v60, 9  ;;  %v9456_v35 = vmax.f32 %v2959_v31, %v7007_v19 }
 0x266   : > { %v2949_v52 = vrot.slane %v2935_v46, %v9418_v62  ;;  %v2950_v7 = vcombine.high %v2942_v12, %v2942_v12  ;;  %v7003_v44 = vrot.slane %v2942_v12, 9  ;;  %v2778_v45 = vmax.f32 %v2714_v26, 0.0 }
 0x267   : > { %v7010_v51 = vrot.slane %v2968_v24, 9  ;;  %v9459_v56 = vmax.f32 %v2967_v63, %v7008_v38  ;;  %v9461_v20 = vmax.f32 %v2966_v60, %v7009_v61  ;;  %v2777_v29 = vmax.f32 %v2713_v34, 0.0 }
 0x268   : > { %v2951_v5 = vcombine.high %v2949_v52, %v2949_v52  ;;  %v7004_v49 = vrot.slane %v2950_v7, 9  ;;  %v7005_v28 = vrot.slane %v2949_v52, 9  ;;  %v9463_v30 = vmax.f32 %v2942_v12, %v7003_v44 }
 0x269   : > { %v9465_v57 = vmax.f32 %v2968_v24, %v7010_v51  ;;  %v2986_v31 = vcombine.high %v2778_v45, %v2778_v45  ;;  %v2993_v19 = vrot.slane %v2778_v45, %v9418_v62  ;;  %v2969_v46 = vcombine.high %v2777_v29, %v2777_v29 }
 0x26a   : > { %v7006_v21 = vrot.slane %v2951_v5, 9  ;;  %v9468_v10 = vmax.f32 %v2950_v7, %v7004_v49  ;;  %v9470_v26 = vmax.f32 %v2949_v52, %v7005_v28  ;;  %v2976_v60 = vrot.slane %v2777_v29, %v9418_v62 }
 0x26b   : > { %v3000_v63 = vrot.slane %v2986_v31, %v9418_v62  ;;  %v3001_v34 = vcombine.high %v2993_v19, %v2993_v19  ;;  %v7127_v38 = vrot.slane %v2993_v19, 9  ;;  %v2983_v12 = vrot.slane %v2969_v46, %v9418_v62 }
 0x26c   : > { %v9475_v24 = vmax.f32 %v2951_v5, %v7006_v21  ;;  %v2984_v61 = vcombine.high %v2976_v60, %v2976_v60  ;;  %v7123_v44 = vrot.slane %v2976_v60, 9  ;;  %v2716_v45 = vadd.f32 %v9413_v41, %v2645_v55 }
 0x26d   : > { %v3002_v7 = vcombine.high %v3000_v63, %v3000_v63  ;;  %v7128_v51 = vrot.slane %v3001_v34, 9  ;;  %v7129_v52 = vrot.slane %v3000_v63, 9  ;;  %v5145_v49 = vmax.f32 %v2993_v19, %v7127_v38  ;;  %v2349_v19 = vpop.f32.mrf.mxu0 }
 0x26e   : > { %v2985_v28 = vcombine.high %v2983_v12, %v2983_v12  ;;  %v7124_v48 = vrot.slane %v2984_v61, 9  ;;  %v7125_v29 = vrot.slane %v2983_v12, 9  ;;  %v5141_v3 = vmax.f32 %v2976_v60, %v7123_v44 }
 0x26f   : > { %v7130_v31 = vrot.slane %v3002_v7, 9  ;;  %v5146_v14 = vmax.f32 %v3001_v34, %v7128_v51  ;;  %v5147_v33 = vmax.f32 %v3000_v63, %v7129_v52  ;;  %v5273_v11 = vmax.f32 %v9426_v16, %v5145_v49 }
 0x270   : > { %v7126_v46 = vrot.slane %v2985_v28, 9  ;;  %v5142_v21 = vmax.f32 %v2984_v61, %v7124_v48  ;;  %v5143_v5 = vmax.f32 %v2983_v12, %v7125_v29  ;;  %v5269_v32 = vmax.f32 %v9434_v17, %v5141_v3  ;;  %v7695_v12 = vpop.f32.mrf.mxu0 }
 0x271   : > { %v5148_v23 = vmax.f32 %v3002_v7, %v7130_v31  ;;  %v5274_v55 = vmax.f32 %v9430_v58, %v5146_v14  ;;  %v5275_v0 = vmax.f32 %v9432_v9, %v5147_v33  ;;  %v2780_v38 = vmax.f32 %v2716_v45, 0.0 }
 0x272   : > { %v5144_v4 = vmax.f32 %v2985_v28, %v7126_v46  ;;  %v5270_v60 = vmax.f32 %v9440_v1, %v5142_v21  ;;  %v5271_v63 = vmax.f32 %v9442_v2, %v5143_v5  ;;  %v2644_v16 = vadd.f32 %v2349_v19, %v9450_v59  ;;  %v2359_v21 = vpop.f32.mrf.mxu0 }
 0x273   : > { %v5276_v48 = vmax.f32 %v9436_v13, %v5148_v23  ;;  %v9486_v34 = vrot.slane %v5274_v55, 7  ;;  %v3020_v17 = vcombine.high %v2780_v38, %v2780_v38  ;;  %v3027_v3 = vrot.slane %v2780_v38, %v9418_v62 }
 0x274   : > { %v5272_v58 = vmax.f32 %v9446_v37, %v5144_v4  ;;  %v9490_v33 = vrot.slane %v5270_v60, 7  ;;  %v2715_v14 = vadd.f32 %v9413_v41, %v2644_v16  ;;  %v1909_v9 = vadd.f32 %v7593_v47, %v9304_v36  ;;  %v1903_v36 = vpop.f32.mrf.mxu1 }
 0x275   : > { %v5548_v1 = vsel %vm5530_vm5, %v9486_v34, %v5273_v11  ;;  %v9496_v2 = vrot.slane %v5276_v48, 7  ;;  %v3034_v23 = vrot.slane %v3020_v17, %v9418_v62  ;;  %v3035_v13 = vcombine.high %v3027_v3, %v3027_v3 }
 0x276   : > { %11373 = vst [vmem:[#allocation44_spill] sm:$0xff] %v9490_v33  ;;  %v9501_v59 = vsel %vm5532_vm6, %v9486_v34, %v5548_v1  ;;  %v5531_v4 = vsel %vm5530_vm5, %v9490_v33, %v5269_v32  ;;  %v9505_v37 = vrot.slane %v5272_v58, 7  ;;  %v7135_v61 = vrot.slane %v3027_v3, 9  ;;  %v7596_v19 = vpop.f32.mrf.mxu1 }
 0x277   : > { %11374 = vst [vmem:[#allocation45_spill] sm:$0xff] %v9496_v2  ;;  %v9509_v47 = vsel %vm5530_vm5, %v9496_v2, %v5275_v0  ;;  %v9513_v11 = vsel %vm5532_vm6, %v9490_v33, %v5531_v4  ;;  %v3036_v44 = vcombine.high %v3034_v23, %v3034_v23  ;;  %v7136_v45 = vrot.slane %v3035_v13, 9  ;;  %v7698_v4 = vpop.f32.mrf.mxu0 }
 0x278   : > { %11375 = vst [vmem:[#allocation46_spill] sm:$0xff] %v9505_v37  ;;  %11376 = vst [vmem:[#allocation47_spill] sm:$0xff] %v9509_v47  ;;  %v9517_v7 = vsel %vm5530_vm5, %v9505_v37, %v5271_v63  ;;  %v7137_v32 = vrot.slane %v3034_v23, 9  ;;  %v5153_v51 = vmax.f32 %v3027_v3, %v7135_v61  ;;  %v2779_v52 = vmax.f32 %v2715_v14, 0.0 }
 0x279   : > { %11377 = vst [vmem:[#allocation48_spill] sm:$0xff] %v9513_v11  ;;  %11378 = vst [vmem:[#allocation49_spill] sm:$0xff] %v9517_v7  ;;  %v7138_v49 = vrot.slane %v3036_v44, 9  ;;  %v5154_v28 = vmax.f32 %v3035_v13, %v7136_v45  ;;  %v2647_v29 = vadd.f32 %v7695_v12, %v1909_v9  ;;  %v1904_v31 = vadd.f32 %v1903_v36, %v9313_v50  ;;  %v1913_v12 = vpop.f32.mrf.mxu1 }
 0x27a   : > { %v5155_v0 = vmax.f32 %v3034_v23, %v7137_v32  ;;  %v5281_v46 = vmax.f32 %v9456_v35, %v5153_v51  ;;  %v3003_v5 = vcombine.high %v2779_v52, %v2779_v52  ;;  %v3010_v55 = vrot.slane %v2779_v52, %v9418_v62 }
 0x27b   : > { %v5156_v38 = vmax.f32 %v3036_v44, %v7138_v49  ;;  %v5282_v60 = vmax.f32 %v9459_v56, %v5154_v28  ;;  %v2718_v63 = vadd.f32 %v9413_v41, %v2647_v29  ;;  %v2646_v16 = vadd.f32 %v2359_v21, %v1904_v31 }
 0x27c   : > { %v5283_v48 = vmax.f32 %v9461_v20, %v5155_v0  ;;  %v3017_v17 = vrot.slane %v3003_v5, %v9418_v62  ;;  %v3018_v3 = vcombine.high %v3010_v55, %v3010_v55  ;;  %v7131_v50 = vrot.slane %v3010_v55, 9  ;;  %v2369_v5 = vpop.f32.mrf.mxu0 }
 0x27d   : > { %v5284_v58 = vmax.f32 %v9465_v57, %v5156_v38  ;;  %v9527_v35 = vrot.slane %v5282_v60, 7  ;;  %v2782_v14 = vmax.f32 %v2718_v63, 0.0  ;;  %v2717_v9 = vadd.f32 %v9413_v41, %v2646_v16 }
 0x27e   : > { %v3019_v1 = vcombine.high %v3017_v17, %v3017_v17  ;;  %v7132_v23 = vrot.slane %v3018_v3, 9  ;;  %v7133_v13 = vrot.slane %v3017_v17, 9  ;;  %v5149_v56 = vmax.f32 %v3010_v55, %v7131_v50  ;;  %v7599_v55 = vpop.f32.mrf.mxu1 }
 0x27f   : > { %11379 = vst [vmem:[#allocation50_spill] sm:$0xff] %v9527_v35  ;;  %v5576_v20 = vsel %vm5530_vm5, %v9527_v35, %v5281_v46  ;;  %v9532_v61 = vrot.slane %v5284_v58, 7  ;;  %v3054_v36 = vcombine.high %v2782_v14, %v2782_v14  ;;  %v3061_v44 = vrot.slane %v2782_v14, %v9418_v62 }
 0x280   : > { %v9537_v57 = vsel %vm5532_vm6, %v9527_v35, %v5576_v20  ;;  %v7134_v45 = vrot.slane %v3019_v1, 9  ;;  %v5150_v32 = vmax.f32 %v3018_v3, %v7132_v23  ;;  %v5151_v51 = vmax.f32 %v3017_v17, %v7133_v13  ;;  %v1923_v13 = vpop.f32.mrf.mxu1 }
 0x281   : > { %11380 = vst [vmem:[#allocation51_spill] sm:$0xff] %v9532_v61  ;;  %v9541_v52 = vsel %vm5530_vm5, %v9532_v61, %v5283_v48  ;;  %v5277_v49 = vmax.f32 %v9463_v30, %v5149_v56  ;;  %v3068_v28 = vrot.slane %v3054_v36, %v9418_v62  ;;  %v3069_v29 = vcombine.high %v3061_v44, %v3061_v44 }
 0x282   : > { %11381 = vst [vmem:[#allocation52_spill] sm:$0xff] %v9541_v52  ;;  %v5152_v31 = vmax.f32 %v3019_v1, %v7134_v45  ;;  %v5278_v0 = vmax.f32 %v9468_v10, %v5150_v32  ;;  %v5279_v46 = vmax.f32 %v9470_v26, %v5151_v51  ;;  %v7015_v21 = vrot.slane %v3061_v44, 9 }
 0x283   : > { %v3070_v38 = vcombine.high %v3068_v28, %v3068_v28  ;;  %v7016_v60 = vrot.slane %v3069_v29, 9  ;;  %v7017_v63 = vrot.slane %v3068_v28, 9  ;;  %v2781_v16 = vmax.f32 %v2717_v9, 0.0 }
 0x284   : > { %v5280_v48 = vmax.f32 %v9475_v24, %v5152_v31  ;;  %v9548_v17 = vrot.slane %v5278_v0, 7  ;;  %v9550_v30 = vmax.f32 %v3061_v44, %v7015_v21  ;;  %v1919_v3 = vadd.f32 %v7596_v19, %v9319_v25  ;;  %v7701_v24 = vpop.f32.mrf.mxu0 }
 0x285   : > { %v7018_v50 = vrot.slane %v3070_v38, 9  ;;  %v9553_v58 = vmax.f32 %v3069_v29, %v7016_v60  ;;  %v9555_v10 = vmax.f32 %v3068_v28, %v7017_v63  ;;  %v3037_v26 = vcombine.high %v2781_v16, %v2781_v16 }
 0x286   : > { %11382 = vst [vmem:[#allocation53_spill] sm:$0xff] %v9548_v17  ;;  %v5562_v14 = vsel %vm5530_vm5, %v9548_v17, %v5277_v49  ;;  %v9559_v1 = vrot.slane %v5280_v48, 7  ;;  %v3044_v9 = vrot.slane %v2781_v16, %v9418_v62  ;;  %v2649_v23 = vadd.f32 %v7698_v4, %v1919_v3  ;;  %v2379_v21 = vpop.f32.mrf.mxu0 }
 0x287   : > { %v9564_v56 = vsel %vm5532_vm6, %v9548_v17, %v5562_v14  ;;  %v9566_v25 = vmax.f32 %v3070_v38, %v7018_v50  ;;  %v3051_v19 = vrot.slane %v3037_v26, %v9418_v62  ;;  %v1914_v20 = vadd.f32 %v1913_v12, %v9325_v42  ;;  %v7602_v12 = vpop.f32.mrf.mxu1 }
 0x288   : > { %11383 = vst [vmem:[#allocation54_spill] sm:$0xff] %v9559_v1  ;;  %11384 = vst [vmem:[#allocation55_spill] sm:$0xff] %v9564_v56  ;;  %v9572_v36 = vsel %vm5530_vm5, %v9559_v1, %v5279_v46  ;;  %v3052_v44 = vcombine.high %v3044_v9, %v3044_v9  ;;  %v7011_v45 = vrot.slane %v3044_v9, 9  ;;  %v2720_v32 = vadd.f32 %v9413_v41, %v2649_v23  ;;  %v7704_v23 = vpop.f32.mrf.mxu0 }
 0x289   : > { %11385 = vst [vmem:[#allocation56_spill] sm:$0xff] %v9572_v36  ;;  %v3053_v4 = vcombine.high %v3051_v19, %v3051_v19  ;;  %v7013_v51 = vrot.slane %v3051_v19, 9  ;;  %v2648_v49 = vadd.f32 %v2369_v5, %v1914_v20  ;;  %v1929_v28 = vadd.f32 %v7599_v55, %v9329_v39 }
 0x28a   : > { %v7012_v29 = vrot.slane %v3052_v44, 9  ;;  %v9576_v31 = vmax.f32 %v3044_v9, %v7011_v45  ;;  %v2784_v0 = vmax.f32 %v2720_v32, 0.0  ;;  %v1924_v42 = vadd.f32 %v1923_v13, %v9333_v6 }
 0x28b   : > { %v7014_v38 = vrot.slane %v3053_v4, 9  ;;  %v9579_v46 = vmax.f32 %v3051_v19, %v7013_v51  ;;  %v2719_v60 = vadd.f32 %v9413_v41, %v2648_v49  ;;  %v2651_v63 = vadd.f32 %v7701_v24, %v1929_v28 }
 0x28c   : > { %v9582_v16 = vmax.f32 %v3052_v44, %v7012_v29  ;;  %v3088_v48 = vcombine.high %v2784_v0, %v2784_v0  ;;  %v3095_v5 = vrot.slane %v2784_v0, %v9418_v62  ;;  %v2650_v39 = vadd.f32 %v2379_v21, %v1924_v42 }
 0x28d   : > { %v9585_v55 = vmax.f32 %v3053_v4, %v7014_v38  ;;  %v2783_v3 = vmax.f32 %v2719_v60, 0.0  ;;  %v2722_v50 = vadd.f32 %v9413_v41, %v2651_v63  ;;  %v1939_v6 = vadd.f32 %v7602_v12, %v9337_v43 }
 0x28e   : > { %v3102_v26 = vrot.slane %v3088_v48, %v9418_v62  ;;  %v3103_v14 = vcombine.high %v3095_v5, %v3095_v5  ;;  %v7023_v9 = vrot.slane %v3095_v5, 9  ;;  %v2721_v24 = vadd.f32 %v9413_v41, %v2650_v39 }
 0x28f   : > { %v3071_v13 = vcombine.high %v2783_v3, %v2783_v3  ;;  %v3078_v19 = vrot.slane %v2783_v3, %v9418_v62  ;;  %v2786_v20 = vmax.f32 %v2722_v50, 0.0  ;;  %v2653_v44 = vadd.f32 %v7704_v23, %v1939_v6  ;;  %v1933_v6 = vpop.f32.mrf.mxu1 }
 0x290   : > { %v3104_v45 = vcombine.high %v3102_v26, %v3102_v26  ;;  %v7024_v32 = vrot.slane %v3103_v14, 9  ;;  %v7025_v4 = vrot.slane %v3102_v26, 9  ;;  %v9592_v51 = vmax.f32 %v3095_v5, %v7023_v9 }
 0x291   : > { %v3085_v49 = vrot.slane %v3071_v13, %v9418_v62  ;;  %v3086_v43 = vcombine.high %v3078_v19, %v3078_v19  ;;  %v7019_v28 = vrot.slane %v3078_v19, 9  ;;  %v3122_v29 = vcombine.high %v2786_v20, %v2786_v20 }
 0x292   : > { %v7026_v0 = vrot.slane %v3104_v45, 9  ;;  %v9595_v21 = vmax.f32 %v3103_v14, %v7024_v32  ;;  %v9597_v42 = vmax.f32 %v3102_v26, %v7025_v4  ;;  %v3129_v12 = vrot.slane %v2786_v20, %v9418_v62 }
 0x293   : > { %v3087_v38 = vcombine.high %v3085_v49, %v3085_v49  ;;  %v7020_v60 = vrot.slane %v3086_v43, 9  ;;  %v7021_v63 = vrot.slane %v3085_v49, 9  ;;  %v9600_v48 = vmax.f32 %v3078_v19, %v7019_v28 }
 0x294   : > { %v9602_v39 = vmax.f32 %v3104_v45, %v7026_v0  ;;  %v3136_v5 = vrot.slane %v3122_v29, %v9418_v62  ;;  %v3137_v3 = vcombine.high %v3129_v12, %v3129_v12  ;;  %v7143_v50 = vrot.slane %v3129_v12, 9 }
 0x295   : > { %v7022_v9 = vrot.slane %v3087_v38, 9  ;;  %v9605_v23 = vmax.f32 %v3086_v43, %v7020_v60  ;;  %v9607_v14 = vmax.f32 %v3085_v49, %v7021_v63  ;;  %v2785_v26 = vmax.f32 %v2721_v24, 0.0  ;;  %v7605_v60 = vpop.f32.mrf.mxu1 }
 0x296   : > { %v3138_v13 = vcombine.high %v3136_v5, %v3136_v5  ;;  %v7144_v20 = vrot.slane %v3137_v3, 9  ;;  %v7145_v32 = vrot.slane %v3136_v5, 9  ;;  %v5161_v4 = vmax.f32 %v3129_v12, %v7143_v50 }
 0x297   : > { %v9609_v1 = vmax.f32 %v3087_v38, %v7022_v9  ;;  %v3105_v19 = vcombine.high %v2785_v26, %v2785_v26  ;;  %v3112_v45 = vrot.slane %v2785_v26, %v9418_v62  ;;  %v2724_v28 = vadd.f32 %v9413_v41, %v2653_v44  ;;  %v2389_v9 = vpop.f32.mrf.mxu0 }
 0x298   : > { %v7146_v29 = vrot.slane %v3138_v13, 9  ;;  %v5162_v0 = vmax.f32 %v3137_v3, %v7144_v20  ;;  %v5163_v36 = vmax.f32 %v3136_v5, %v7145_v32  ;;  %v5289_v43 = vmax.f32 %v9550_v30, %v5161_v4 }
 0x299   : > { %v3119_v49 = vrot.slane %v3105_v19, %v9418_v62  ;;  %v3120_v24 = vcombine.high %v3112_v45, %v3112_v45  ;;  %v7139_v63 = vrot.slane %v3112_v45, 9  ;;  %v2788_v61 = vmax.f32 %v2724_v28, 0.0  ;;  %v1943_v19 = vpop.f32.mrf.mxu1 }
 0x29a   : > { %v5164_v52 = vmax.f32 %v3138_v13, %v7146_v29  ;;  %v5290_v12 = vmax.f32 %v9553_v58, %v5162_v0  ;;  %v5291_v38 = vmax.f32 %v9555_v10, %v5163_v36  ;;  %v1934_v50 = vadd.f32 %v1933_v6, %v9341_v22  ;;  %v7707_v0 = vpop.f32.mrf.mxu0 }
 0x29b   : > { %v3121_v44 = vcombine.high %v3119_v49, %v3119_v49  ;;  %v7140_v26 = vrot.slane %v3120_v24, 9  ;;  %v7141_v3 = vrot.slane %v3119_v49, 9  ;;  %v5157_v5 = vmax.f32 %v3112_v45, %v7139_v63  ;;  %v7608_v63 = vpop.f32.mrf.mxu1 }
 0x29c   : > { %v5292_v30 = vmax.f32 %v9566_v25, %v5164_v52  ;;  %v9619_v20 = vrot.slane %v5290_v12, 7  ;;  %v3156_v32 = vcombine.high %v2788_v61, %v2788_v61  ;;  %v3163_v4 = vrot.slane %v2788_v61, %v9418_v62 }
 0x29d   : > { %v7142_v13 = vrot.slane %v3121_v44, 9  ;;  %v5158_v28 = vmax.f32 %v3120_v24, %v7140_v26  ;;  %v5159_v58 = vmax.f32 %v3119_v49, %v7141_v3  ;;  %v5285_v10 = vmax.f32 %v9576_v31, %v5157_v5 }
 0x29e   : > { %v5604_v22 = vsel %vm5530_vm5, %v9619_v20, %v5289_v43  ;;  %v9625_v36 = vrot.slane %v5292_v30, 7  ;;  %v3170_v6 = vrot.slane %v3156_v32, %v9418_v62  ;;  %v3171_v45 = vcombine.high %v3163_v4, %v3163_v4 }
 0x29f   : > { %v9630_v52 = vsel %vm5532_vm6, %v9619_v20, %v5604_v22  ;;  %v5160_v25 = vmax.f32 %v3121_v44, %v7142_v13  ;;  %v5286_v61 = vmax.f32 %v9582_v16, %v5158_v28  ;;  %v5287_v29 = vmax.f32 %v9579_v46, %v5159_v58  ;;  %v2399_v28 = vpop.f32.mrf.mxu0 }
 0x2a0   : > { %11386 = vst [vmem:[#allocation57_spill] sm:$0xff] %v9625_v36  ;;  %v9636_v31 = vsel %vm5530_vm5, %v9625_v36, %v5291_v38  ;;  %v3172_v43 = vcombine.high %v3170_v6, %v3170_v6  ;;  %v7151_v49 = vrot.slane %v3163_v4, 9  ;;  %v7152_v24 = vrot.slane %v3171_v45, 9 }
 0x2a1   : > { %11387 = vst [vmem:[#allocation58_spill] sm:$0xff] %v9636_v31  ;;  %v5288_v12 = vmax.f32 %v9585_v55, %v5160_v25  ;;  %v9639_v26 = vrot.slane %v5286_v61, 7  ;;  %v7153_v3 = vrot.slane %v3170_v6, 9  ;;  %v2652_v5 = vadd.f32 %v2389_v9, %v1934_v50 }
 0x2a2   : > { %v7154_v44 = vrot.slane %v3172_v43, 9  ;;  %v5169_v30 = vmax.f32 %v3163_v4, %v7151_v49  ;;  %v5170_v16 = vmax.f32 %v3171_v45, %v7152_v24  ;;  %v1949_v46 = vadd.f32 %v7605_v60, %v9345_v15  ;;  %v1953_v4 = vpop.f32.mrf.mxu1  ;;  %v7710_v49 = vpop.f32.mrf.mxu0 }
 0x2a3   : > { %11388 = vst [vmem:[#allocation59_spill] sm:$0xff] %v9639_v26  ;;  %v5590_v32 = vsel %vm5530_vm5, %v9639_v26, %v5285_v10  ;;  %v9644_v38 = vrot.slane %v5288_v12, 7  ;;  %v5171_v13 = vmax.f32 %v3170_v6, %v7153_v3  ;;  %v2723_v58 = vadd.f32 %v9413_v41, %v2652_v5 }
 0x2a4   : > { %v9649_v55 = vsel %vm5532_vm6, %v9639_v26, %v5590_v32  ;;  %v5172_v22 = vmax.f32 %v3172_v43, %v7154_v44  ;;  %v5297_v50 = vmax.f32 %v9592_v51, %v5169_v30  ;;  %v5298_v9 = vmax.f32 %v9595_v21, %v5170_v16 }
 0x2a5   : > { %11389 = vst [vmem:[#allocation60_spill] sm:$0xff] %v9644_v38  ;;  %11390 = vst [vmem:[#allocation61_spill] sm:$0xff] %v9649_v55  ;;  %v9655_v15 = vsel %vm5530_vm5, %v9644_v38, %v5287_v29  ;;  %v5299_v60 = vmax.f32 %v9597_v42, %v5171_v13  ;;  %v2787_v10 = vmax.f32 %v2723_v58, 0.0  ;;  %v2655_v6 = vadd.f32 %v7707_v0, %v1949_v46  ;;  %v2409_v58 = vpop.f32.mrf.mxu0 }
 0x2a6   : > { %11391 = vst [vmem:[#allocation62_spill] sm:$0xff] %v9655_v15  ;;  %v5300_v45 = vmax.f32 %v9602_v39, %v5172_v22  ;;  %v9659_v25 = vrot.slane %v5298_v9, 7  ;;  %v1944_v61 = vadd.f32 %v1943_v19, %v9349_v40  ;;  %v1959_v43 = vadd.f32 %v7608_v63, %v9353_v18  ;;  %v7611_v9 = vpop.f32.mrf.mxu1 }
 0x2a7   : > { %v3139_v51 = vcombine.high %v2787_v10, %v2787_v10  ;;  %v3146_v21 = vrot.slane %v2787_v10, %v9418_v62  ;;  %v2726_v24 = vadd.f32 %v9413_v41, %v2655_v6  ;;  %v9666_v29 = vadd.f32 %v1953_v4, %v9357_v54 }
 0x2a8   : > { %11392 = vst [vmem:[#allocation63_spill] sm:$0xff] %v9659_v25  ;;  %v5632_v42 = vsel %vm5530_vm5, %v9659_v25, %v5297_v50  ;;  %v9670_v0 = vrot.slane %v5300_v45, 7  ;;  %v2654_v39 = vadd.f32 %v2399_v28, %v1944_v61  ;;  %v2657_v12 = vadd.f32 %v7710_v49, %v1959_v43 }
 0x2a9   : > { %v9674_v40 = vsel %vm5532_vm6, %v9659_v25, %v5632_v42  ;;  %v3153_v18 = vrot.slane %v3139_v51, %v9418_v62  ;;  %v3154_v19 = vcombine.high %v3146_v21, %v3146_v21  ;;  %v7147_v63 = vrot.slane %v3146_v21, 9 }
 0x2aa   : > { %11393 = vst [vmem:[#allocation64_spill] sm:$0xff] %v9670_v0  ;;  %11394 = vst [vmem:[#allocation65_spill] sm:$0xff] %v9674_v40  ;;  %v9679_v3 = vsel %vm5530_vm5, %v9670_v0, %v5299_v60  ;;  %v2790_v54 = vmax.f32 %v2726_v24, 0.0  ;;  %v2725_v5 = vadd.f32 %v9413_v41, %v2654_v39  ;;  %v2728_v44 = vadd.f32 %v9413_v41, %v2657_v12 }
 0x2ab   : > { %11395 = vst [vmem:[#allocation66_spill] sm:$0xff] %v9679_v3  ;;  %v3155_v30 = vcombine.high %v3153_v18, %v3153_v18  ;;  %v7148_v16 = vrot.slane %v3154_v19, 9  ;;  %v7149_v46 = vrot.slane %v3153_v18, 9  ;;  %v5165_v32 = vmax.f32 %v3146_v21, %v7147_v63 }
 0x2ac   : > { %v3190_v13 = vcombine.high %v2790_v54, %v2790_v54  ;;  %v3197_v28 = vrot.slane %v2790_v54, %v9418_v62  ;;  %v2789_v22 = vmax.f32 %v2725_v5, 0.0  ;;  %v2792_v50 = vmax.f32 %v2728_v44, 0.0 }
 0x2ad   : > { %v7150_v4 = vrot.slane %v3155_v30, 9  ;;  %v5166_v10 = vmax.f32 %v3154_v19, %v7148_v16  ;;  %v5167_v60 = vmax.f32 %v3153_v18, %v7149_v46  ;;  %v5293_v6 = vmax.f32 %v9600_v48, %v5165_v32  ;;  %v7713_v18 = vpop.f32.mrf.mxu0  ;;  %v1963_v19 = vpop.f32.mrf.mxu1 }
 0x2ae   : > { %v3204_v45 = vrot.slane %v3190_v13, %v9418_v62  ;;  %v3205_v61 = vcombine.high %v3197_v28, %v3197_v28  ;;  %v7031_v43 = vrot.slane %v3197_v28, 9  ;;  %v3173_v51 = vcombine.high %v2789_v22, %v2789_v22 }
 0x2af   : > { %v5168_v49 = vmax.f32 %v3155_v30, %v7150_v4  ;;  %v5294_v21 = vmax.f32 %v9605_v23, %v5166_v10  ;;  %v5295_v24 = vmax.f32 %v9607_v14, %v5167_v60  ;;  %v3180_v42 = vrot.slane %v2789_v22, %v9418_v62 }
 0x2b0   : > { %v3206_v39 = vcombine.high %v3204_v45, %v3204_v45  ;;  %v7032_v12 = vrot.slane %v3205_v61, 9  ;;  %v7033_v63 = vrot.slane %v3204_v45, 9  ;;  %v9689_v54 = vmax.f32 %v3197_v28, %v7031_v43 }
 0x2b1   : > { %v5296_v48 = vmax.f32 %v9609_v1, %v5168_v49  ;;  %v9692_v5 = vrot.slane %v5294_v21, 7  ;;  %v3187_v44 = vrot.slane %v3173_v51, %v9418_v62  ;;  %v3188_v30 = vcombine.high %v3180_v42, %v3180_v42 }
 0x2b2   : > { %v7034_v16 = vrot.slane %v3206_v39, 9  ;;  %v9695_v23 = vmax.f32 %v3205_v61, %v7032_v12  ;;  %v9697_v14 = vmax.f32 %v3204_v45, %v7033_v63  ;;  %v7027_v46 = vrot.slane %v3180_v42, 9  ;;  %v2419_v61 = vpop.f32.mrf.mxu0  ;;  %v7614_v45 = vpop.f32.mrf.mxu1 }
 0x2b3   : > { %11396 = vst [vmem:[#allocation67_spill] sm:$0xff] %v9692_v5  ;;  %v5618_v32 = vsel %vm5530_vm5, %v9692_v5, %v5293_v6  ;;  %v9701_v13 = vrot.slane %v5296_v48, 7  ;;  %v3189_v28 = vcombine.high %v3187_v44, %v3187_v44  ;;  %v7028_v22 = vrot.slane %v3188_v30, 9 }
 0x2b4   : > { %v9705_v1 = vsel %vm5532_vm6, %v9692_v5, %v5618_v32  ;;  %v9707_v4 = vmax.f32 %v3206_v39, %v7034_v16  ;;  %v7029_v10 = vrot.slane %v3187_v44, 9  ;;  %v9709_v60 = vmax.f32 %v3180_v42, %v7027_v46 }
 0x2b5   : > { %11397 = vst [vmem:[#allocation68_spill] sm:$0xff] %v9701_v13  ;;  %11398 = vst [vmem:[#allocation69_spill] sm:$0xff] %v9705_v1  ;;  %v9713_v43 = vsel %vm5530_vm5, %v9701_v13, %v5295_v24  ;;  %v7030_v6 = vrot.slane %v3189_v28, 9  ;;  %v9715_v51 = vmax.f32 %v3188_v30, %v7028_v22  ;;  %v3224_v49 = vcombine.high %v2792_v50, %v2792_v50 }
 0x2b6   : > { %11399 = vst [vmem:[#allocation70_spill] sm:$0xff] %v9713_v43  ;;  %v9717_v21 = vmax.f32 %v3187_v44, %v7029_v10  ;;  %v3231_v12 = vrot.slane %v2792_v50, %v9418_v62  ;;  %v2656_v39 = vadd.f32 %v2409_v58, %v9666_v29  ;;  %v1969_v63 = vadd.f32 %v7611_v9, %v9361_v8  ;;  %v7716_v44 = vpop.f32.mrf.mxu0 }
 0x2b7   : > { %v9722_v42 = vmax.f32 %v3189_v28, %v7030_v6  ;;  %v3238_v48 = vrot.slane %v3224_v49, %v9418_v62  ;;  %v1964_v16 = vadd.f32 %v1963_v19, %v9365_v53  ;;  %v1979_v24 = vadd.f32 %v7614_v45, %v9369_v27  ;;  %v1973_v6 = vpop.f32.mrf.mxu1 }
 0x2b8   : > { %v3239_v46 = vcombine.high %v3231_v12, %v3231_v12  ;;  %v7039_v30 = vrot.slane %v3231_v12, 9  ;;  %v2727_v32 = vadd.f32 %v9413_v41, %v2656_v39  ;;  %v2659_v22 = vadd.f32 %v7713_v18, %v1969_v63 }
 0x2b9   : > { %v3240_v10 = vcombine.high %v3238_v48, %v3238_v48  ;;  %v7041_v50 = vrot.slane %v3238_v48, 9  ;;  %v2658_v13 = vadd.f32 %v2419_v61, %v1964_v16  ;;  %v2661_v29 = vadd.f32 %v7716_v44, %v1979_v24  ;;  %v11400_v24 = vld [vmem:[#allocation25_spill] sm:$0xff] }
 0x2ba   : > { %v7040_v58 = vrot.slane %v3239_v46, 9  ;;  %v9728_v8 = vmax.f32 %v3231_v12, %v7039_v30  ;;  %v2791_v9 = vmax.f32 %v2727_v32, 0.0  ;;  %v2730_v28 = vadd.f32 %v9413_v41, %v2659_v22 }
 0x2bb   : > { %v7042_v53 = vrot.slane %v3240_v10, 9  ;;  %v9731_v19 = vmax.f32 %v3238_v48, %v7041_v50  ;;  %v2729_v27 = vadd.f32 %v9413_v41, %v2658_v13  ;;  %v2732_v45 = vadd.f32 %v9413_v41, %v2661_v29  ;;  %v9746_v29 = vpop.f32.mrf.mxu1 }
 0x2bc   : > { %v9735_v49 = vmax.f32 %v3239_v46, %v7040_v58  ;;  %v3207_v18 = vcombine.high %v2791_v9, %v2791_v9  ;;  %v3214_v61 = vrot.slane %v2791_v9, %v9418_v62  ;;  %v2794_v39 = vmax.f32 %v2730_v28, 0.0 }
 0x2bd   : > { %v9738_v63 = vmax.f32 %v3240_v10, %v7042_v53  ;;  %v2793_v12 = vmax.f32 %v2729_v27, 0.0  ;;  %v2796_v16 = vmax.f32 %v2732_v45, 0.0  ;;  %v9741_v30 = vadd.f32 %v1973_v6, %v11400_v24  ;;  %v1983_v37 = vpop.f32.mrf.mxu1 }
 0x2be   : > { %v3221_v48 = vrot.slane %v3207_v18, %v9418_v62  ;;  %v3222_v32 = vcombine.high %v3214_v61, %v3214_v61  ;;  %v7035_v44 = vrot.slane %v3214_v61, 9  ;;  %v3258_v13 = vcombine.high %v2794_v39, %v2794_v39 }
 0x2bf   : > { %v3265_v41 = vrot.slane %v2794_v39, %v9418_v62  ;;  %v3241_v46 = vcombine.high %v2793_v12, %v2793_v12  ;;  %v3248_v22 = vrot.slane %v2793_v12, %v9418_v62  ;;  %v3292_v50 = vcombine.high %v2796_v16, %v2796_v16  ;;  %v2429_v12 = vpop.f32.mrf.mxu0 }
 0x2c0   : > { %v3223_v10 = vcombine.high %v3221_v48, %v3221_v48  ;;  %v7036_v58 = vrot.slane %v3222_v32, 9  ;;  %v7037_v9 = vrot.slane %v3221_v48, 9  ;;  %v9748_v28 = vmax.f32 %v3214_v61, %v7035_v44 }
 0x2c1   : > { %v3272_v6 = vrot.slane %v3258_v13, %v9418_v62  ;;  %v3273_v53 = vcombine.high %v3265_v41, %v3265_v41  ;;  %v7159_v27 = vrot.slane %v3265_v41, 9  ;;  %v3255_v45 = vrot.slane %v3241_v46, %v9418_v62  ;;  %v7719_v56 = vpop.f32.mrf.mxu0 }
 0x2c2   : > { %v7038_v18 = vrot.slane %v3223_v10, 9  ;;  %v9752_v24 = vmax.f32 %v3222_v32, %v7036_v58  ;;  %v9754_v39 = vmax.f32 %v3221_v48, %v7037_v9  ;;  %v3256_v43 = vcombine.high %v3248_v22, %v3248_v22 }
 0x2c3   : > { %v3274_v0 = vcombine.high %v3272_v6, %v3272_v6  ;;  %v7160_v3 = vrot.slane %v3273_v53, 9  ;;  %v7161_v38 = vrot.slane %v3272_v6, 9  ;;  %v5177_v15 = vmax.f32 %v3265_v41, %v7159_v27  ;;  %v7620_v27 = vpop.f32.mrf.mxu1 }
 0x2c4   : > { %v9756_v61 = vmax.f32 %v3223_v10, %v7038_v18  ;;  %v3257_v44 = vcombine.high %v3255_v45, %v3255_v45  ;;  %v7155_v13 = vrot.slane %v3248_v22, 9  ;;  %v7156_v7 = vrot.slane %v3256_v43, 9 }
 0x2c5   : > { %v7162_v5 = vrot.slane %v3274_v0, 9  ;;  %v5178_v1 = vmax.f32 %v3273_v53, %v7160_v3  ;;  %v5179_v46 = vmax.f32 %v3272_v6, %v7161_v38  ;;  %v5305_v32 = vmax.f32 %v9689_v54, %v5177_v15 }
 0x2c6   : > { %v7157_v58 = vrot.slane %v3255_v45, 9  ;;  %v7158_v48 = vrot.slane %v3257_v44, 9  ;;  %v5173_v9 = vmax.f32 %v3248_v22, %v7155_v13  ;;  %v5174_v17 = vmax.f32 %v3256_v43, %v7156_v7  ;;  %v2439_v43 = vpop.f32.mrf.mxu0 }
 0x2c7   : > { %v5180_v36 = vmax.f32 %v3274_v0, %v7162_v5  ;;  %v5306_v31 = vmax.f32 %v9695_v23, %v5178_v1  ;;  %v5307_v41 = vmax.f32 %v9697_v14, %v5179_v46  ;;  %v3299_v10 = vrot.slane %v2796_v16, %v9418_v62 }
 0x2c8   : > { %v5175_v18 = vmax.f32 %v3255_v45, %v7157_v58  ;;  %v5176_v2 = vmax.f32 %v3257_v44, %v7158_v48  ;;  %v5301_v3 = vmax.f32 %v9709_v60, %v5173_v9  ;;  %v5302_v38 = vmax.f32 %v9715_v51, %v5174_v17  ;;  %v7722_v46 = vpop.f32.mrf.mxu0  ;;  %v11407_v48 = vld [vmem:[#allocation28_spill] sm:$0xff] }
 0x2c9   : > { %v5308_v15 = vmax.f32 %v9707_v4, %v5180_v36  ;;  %v9765_v54 = vrot.slane %v5306_v31, 7  ;;  %v3306_v7 = vrot.slane %v3292_v50, %v9418_v62  ;;  %v3307_v0 = vcombine.high %v3299_v10, %v3299_v10  ;;  %v1993_v31 = vpop.f32.mrf.mxu1 }
 0x2ca   : > { %v5303_v5 = vmax.f32 %v9717_v21, %v5175_v18  ;;  %v5304_v23 = vmax.f32 %v9722_v42, %v5176_v2  ;;  %v9770_v14 = vrot.slane %v5302_v38, 7  ;;  %v7167_v1 = vrot.slane %v3299_v10, 9 }
 0x2cb   : > { %v5660_v60 = vsel %vm5530_vm5, %v9765_v54, %v5305_v32  ;;  %v9774_v16 = vrot.slane %v5308_v15, 7  ;;  %v3308_v17 = vcombine.high %v3306_v7, %v3306_v7  ;;  %v7168_v36 = vrot.slane %v3307_v0, 9  ;;  %v9806_v15 = vld [vmem:[%s11129_s2] ss:$0 sm:$0xff] }
 0x2cc   : > { %11401 = vst [vmem:[#allocation25_spill] sm:$0xff] %v9770_v14  ;;  %v9778_v4 = vsel %vm5532_vm6, %v9765_v54, %v5660_v60  ;;  %v5646_v51 = vsel %vm5530_vm5, %v9770_v14, %v5301_v3  ;;  %v9782_v2 = vrot.slane %v5304_v23, 7  ;;  %v7169_v21 = vrot.slane %v3306_v7, 9  ;;  %v7623_v3 = vpop.f32.mrf.mxu1  ;;  %v11412_v60 = vld [vmem:[#allocation36_spill] sm:$0xff] }
 0x2cd   : > { %11402 = vst [vmem:[#allocation71_spill] sm:$0xff] %v9774_v16  ;;  %v9786_v42 = vsel %vm5530_vm5, %v9774_v16, %v5307_v41  ;;  %v9790_v22 = vsel %vm5532_vm6, %v9770_v14, %v5646_v51  ;;  %v7170_v50 = vrot.slane %v3308_v17, 9  ;;  %v5185_v6 = vmax.f32 %v3299_v10, %v7167_v1  ;;  %v11408_v41 = vld [vmem:[#allocation30_spill] sm:$0xff]  ;;  %v2449_v1 = vpop.f32.mrf.mxu0 }
 0x2ce   : > { %11403 = vst [vmem:[#allocation72_spill] sm:$0xff] %v9782_v2  ;;  %11404 = vst [vmem:[#allocation73_spill] sm:$0xff] %v9786_v42  ;;  %v9794_v53 = vsel %vm5530_vm5, %v9782_v2, %v5303_v5  ;;  %v5186_v45 = vmax.f32 %v3307_v0, %v7168_v36  ;;  %v5187_v44 = vmax.f32 %v3306_v7, %v7169_v21  ;;  %v11410_v5 = vld [vmem:[#allocation34_spill] sm:$0xff] }
 0x2cf   : > { %11405 = vst [vmem:[#allocation74_spill] sm:$0xff] %v9790_v22  ;;  %11406 = vst [vmem:[#allocation75_spill] sm:$0xff] %v9794_v53  ;;  %v2660_v13 = vadd.f32 %v2429_v12, %v9741_v30  ;;  %v5188_v32 = vmax.f32 %v3308_v17, %v7170_v50  ;;  %v5313_v58 = vmax.f32 %v9728_v8, %v5185_v6  ;;  %v11409_v12 = vld [vmem:[#allocation32_spill] sm:$0xff] }
 0x2d0   : > { %v1989_v9 = vadd.f32 %v9746_v29, %v11407_v48  ;;  %v1984_v18 = vadd.f32 %v1983_v37, %v11408_v41  ;;  %v5314_v10 = vmax.f32 %v9735_v49, %v5186_v45  ;;  %v5315_v38 = vmax.f32 %v9731_v19, %v5187_v44 }
 0x2d1   : > { %v2731_v30 = vadd.f32 %v9806_v15, %v2660_v13  ;;  %v1999_v7 = vadd.f32 %v7620_v27, %v11409_v12  ;;  %v5316_v8 = vmax.f32 %v9738_v63, %v5188_v32  ;;  %v1994_v37 = vadd.f32 %v1993_v31, %v11410_v5 }
 0x2d2   : > { %v2663_v0 = vadd.f32 %v7719_v56, %v1989_v9  ;;  %v2662_v29 = vadd.f32 %v2439_v43, %v1984_v18  ;;  %v9812_v23 = vrot.slane %v5314_v10, 7  ;;  %v9815_v17 = vadd.f32 %v7623_v3, %v11412_v60 }
 0x2d3   : > { %v2795_v49 = vmax.f32 %v2731_v30, 0.0  ;;  %v2665_v19 = vadd.f32 %v7722_v46, %v1999_v7  ;;  %v9817_v36 = vrot.slane %v5316_v8, 7  ;;  %v9821_v21 = vadd.f32 %v2449_v1, %v1994_v37 }
 0x2d4   : > { %11411 = vst [vmem:[#allocation28_spill] sm:$0xff] %v9812_v23  ;;  %v2734_v51 = vadd.f32 %v9806_v15, %v2663_v0  ;;  %v2733_v27 = vadd.f32 %v9806_v15, %v2662_v29  ;;  %v5688_v56 = vsel %vm5530_vm5, %v9812_v23, %v5313_v58 }
 0x2d5   : > { %11413 = vst [vmem:[#allocation30_spill] sm:$0xff] %v9817_v36  ;;  %v3275_v63 = vcombine.high %v2795_v49, %v2795_v49  ;;  %v3282_v43 = vrot.slane %v2795_v49, %v9418_v62  ;;  %v2736_v31 = vadd.f32 %v9806_v15, %v2665_v19  ;;  %v9829_v50 = vsel %vm5532_vm6, %v9812_v23, %v5688_v56 }
 0x2d6   : > { %11414 = vst [vmem:[#allocation32_spill] sm:$0xff] %v9829_v50  ;;  %v9833_v6 = vsel %vm5530_vm5, %v9817_v36, %v5315_v38  ;;  %v2798_v45 = vmax.f32 %v2734_v51, 0.0  ;;  %v2797_v44 = vmax.f32 %v2733_v27, 0.0 }
 0x2d7   : > { %11415 = vst [vmem:[#allocation34_spill] sm:$0xff] %v9833_v6  ;;  %v3289_v13 = vrot.slane %v3275_v63, %v9418_v62  ;;  %v3290_v46 = vcombine.high %v3282_v43, %v3282_v43  ;;  %v7163_v32 = vrot.slane %v3282_v43, 9  ;;  %v2800_v58 = vmax.f32 %v2736_v31, 0.0  ;;  %v7725_v31 = vpop.f32.mrf.mxu0 }
 0x2d8   : > { %v3326_v48 = vcombine.high %v2798_v45, %v2798_v45  ;;  %v3333_v9 = vrot.slane %v2798_v45, %v9418_v62  ;;  %v3309_v41 = vcombine.high %v2797_v44, %v2797_v44  ;;  %v3316_v18 = vrot.slane %v2797_v44, %v9418_v62  ;;  %v2003_v45 = vpop.f32.mrf.mxu1 }
 0x2d9   : > { %v3291_v3 = vcombine.high %v3289_v13, %v3289_v13  ;;  %v7164_v10 = vrot.slane %v3290_v46, 9  ;;  %v7165_v30 = vrot.slane %v3289_v13, 9  ;;  %v5181_v12 = vmax.f32 %v3282_v43, %v7163_v32 }
 0x2da   : > { %v3340_v38 = vrot.slane %v3326_v48, %v9418_v62  ;;  %v3341_v7 = vcombine.high %v3333_v9, %v3333_v9  ;;  %v7047_v8 = vrot.slane %v3333_v9, 9  ;;  %v3323_v0 = vrot.slane %v3309_v41, %v9418_v62 }
 0x2db   : > { %v7166_v29 = vrot.slane %v3291_v3, 9  ;;  %v5182_v5 = vmax.f32 %v3290_v46, %v7164_v10  ;;  %v5183_v37 = vmax.f32 %v3289_v13, %v7165_v30  ;;  %v5309_v49 = vmax.f32 %v9748_v28, %v5181_v12 }
 0x2dc   : > { %v3342_v1 = vcombine.high %v3340_v38, %v3340_v38  ;;  %v7048_v19 = vrot.slane %v3341_v7, 9  ;;  %v7049_v60 = vrot.slane %v3340_v38, 9  ;;  %v9841_v51 = vmax.f32 %v3333_v9, %v7047_v8  ;;  %v2459_v8 = vpop.f32.mrf.mxu0 }
 0x2dd   : > { %v5184_v27 = vmax.f32 %v3291_v3, %v7166_v29  ;;  %v5310_v56 = vmax.f32 %v9752_v24, %v5182_v5  ;;  %v5311_v63 = vmax.f32 %v9754_v39, %v5183_v37  ;;  %v3324_v43 = vcombine.high %v3316_v18, %v3316_v18 }
 0x2de   : > { %v7050_v44 = vrot.slane %v3342_v1, 9  ;;  %v9845_v32 = vmax.f32 %v3341_v7, %v7048_v19  ;;  %v9847_v46 = vmax.f32 %v3340_v38, %v7049_v60  ;;  %v3325_v13 = vcombine.high %v3323_v0, %v3323_v0 }
 0x2df   : > { %v5312_v28 = vmax.f32 %v9756_v61, %v5184_v27  ;;  %v9850_v48 = vrot.slane %v5310_v56, 7  ;;  %v7043_v9 = vrot.slane %v3316_v18, 9  ;;  %v7044_v41 = vrot.slane %v3324_v43, 9  ;;  %v7626_v61 = vpop.f32.mrf.mxu1 }
 0x2e0   : > { %v9852_v3 = vmax.f32 %v3342_v1, %v7050_v44  ;;  %v7045_v24 = vrot.slane %v3323_v0, 9  ;;  %v7046_v10 = vrot.slane %v3325_v13, 9  ;;  %v3360_v39 = vcombine.high %v2800_v58, %v2800_v58  ;;  %v11421_v44 = vld [vmem:[#allocation40_spill] sm:$0xff] }
 0x2e1   : > { %11416 = vst [vmem:[#allocation36_spill] sm:$0xff] %v9850_v48  ;;  %v5674_v30 = vsel %vm5530_vm5, %v9850_v48, %v5309_v49  ;;  %v9856_v12 = vrot.slane %v5312_v28, 7  ;;  %v9858_v7 = vmax.f32 %v3316_v18, %v7043_v9  ;;  %v9860_v38 = vmax.f32 %v3324_v43, %v7044_v41  ;;  %v11420_v43 = vld [vmem:[#allocation38_spill] sm:$0xff]  ;;  %v7728_v41 = vpop.f32.mrf.mxu0 }
 0x2e2   : > { %v9864_v29 = vsel %vm5532_vm6, %v9850_v48, %v5674_v30  ;;  %v9866_v5 = vmax.f32 %v3323_v0, %v7045_v24  ;;  %v9868_v37 = vmax.f32 %v3325_v13, %v7046_v10  ;;  %v3367_v1 = vrot.slane %v2800_v58, %v9418_v62 }
 0x2e3   : > { %11417 = vst [vmem:[#allocation76_spill] sm:$0xff] %v9856_v12  ;;  %11418 = vst [vmem:[#allocation77_spill] sm:$0xff] %v9864_v29  ;;  %v9873_v49 = vsel %vm5530_vm5, %v9856_v12, %v5311_v63  ;;  %v3374_v18 = vrot.slane %v3360_v39, %v9418_v62  ;;  %v2735_v19 = vadd.f32 %v9806_v15, %v9821_v21 }
 0x2e4   : > { %11419 = vst [vmem:[#allocation78_spill] sm:$0xff] %v9873_v49  ;;  %v2667_v60 = vadd.f32 %v7725_v31, %v9815_v17  ;;  %v3375_v27 = vcombine.high %v3367_v1, %v3367_v1  ;;  %v7055_v56 = vrot.slane %v3367_v1, 9  ;;  %v2004_v0 = vadd.f32 %v2003_v45, %v11420_v43  ;;  %v2013_v45 = vpop.f32.mrf.mxu1 }
 0x2e5   : > { %v2019_v13 = vadd.f32 %v7626_v61, %v11421_v44  ;;  %v3376_v28 = vcombine.high %v3374_v18, %v3374_v18  ;;  %v7057_v9 = vrot.slane %v3374_v18, 9  ;;  %v2799_v58 = vmax.f32 %v2735_v19, 0.0 }
 0x2e6   : > { %v2738_v63 = vadd.f32 %v9806_v15, %v2667_v60  ;;  %v7056_v24 = vrot.slane %v3375_v27, 9  ;;  %v9882_v10 = vmax.f32 %v3367_v1, %v7055_v56  ;;  %v2666_v39 = vadd.f32 %v2459_v8, %v2004_v0 }
 0x2e7   : > { %v2669_v30 = vadd.f32 %v7728_v41, %v2019_v13  ;;  %v7058_v21 = vrot.slane %v3376_v28, 9  ;;  %v9884_v12 = vmax.f32 %v3374_v18, %v7057_v9  ;;  %v3343_v17 = vcombine.high %v2799_v58, %v2799_v58 }
 0x2e8   : > { %v3350_v31 = vrot.slane %v2799_v58, %v9418_v62  ;;  %v9887_v43 = vmax.f32 %v3375_v27, %v7056_v24  ;;  %v2802_v61 = vmax.f32 %v2738_v63, 0.0  ;;  %v2737_v19 = vadd.f32 %v9806_v15, %v2666_v39  ;;  %v9897_v63 = vpop.f32.mrf.mxu1 }
 0x2e9   : > { %v2740_v44 = vadd.f32 %v9806_v15, %v2669_v30  ;;  %v9891_v60 = vmax.f32 %v3376_v28, %v7058_v21  ;;  %v3357_v1 = vrot.slane %v3343_v17, %v9418_v62 }
 0x2ea   : > { %v3358_v8 = vcombine.high %v3350_v31, %v3350_v31  ;;  %v7051_v56 = vrot.slane %v3350_v31, 9  ;;  %v3394_v0 = vcombine.high %v2802_v61, %v2802_v61  ;;  %v3401_v18 = vrot.slane %v2802_v61, %v9418_v62  ;;  %v2023_v29 = vpop.f32.mrf.mxu1 }
 0x2eb   : > { %v2801_v13 = vmax.f32 %v2737_v19, 0.0  ;;  %v2804_v9 = vmax.f32 %v2740_v44, 0.0  ;;  %v3359_v58 = vcombine.high %v3357_v1, %v3357_v1  ;;  %v7053_v27 = vrot.slane %v3357_v1, 9 }
 0x2ec   : > { %v7052_v41 = vrot.slane %v3358_v8, 9  ;;  %v9895_v24 = vmax.f32 %v3350_v31, %v7051_v56  ;;  %v3408_v39 = vrot.slane %v3394_v0, %v9418_v62  ;;  %v3409_v28 = vcombine.high %v3401_v18, %v3401_v18  ;;  %v2469_v56 = vpop.f32.mrf.mxu0 }
 0x2ed   : > { %v7175_v30 = vrot.slane %v3401_v18, 9  ;;  %v3377_v21 = vcombine.high %v2801_v13, %v2801_v13  ;;  %v7054_v17 = vrot.slane %v3359_v58, 9  ;;  %v9902_v36 = vmax.f32 %v3357_v1, %v7053_v27 }
 0x2ee   : > { %v9900_v49 = vmax.f32 %v3358_v8, %v7052_v41  ;;  %v3384_v61 = vrot.slane %v2801_v13, %v9418_v62  ;;  %v3410_v19 = vcombine.high %v3408_v39, %v3408_v39  ;;  %v7176_v44 = vrot.slane %v3409_v28, 9  ;;  %v7731_v55 = vpop.f32.mrf.mxu0 }
 0x2ef   : > { %v7177_v6 = vrot.slane %v3408_v39, 9  ;;  %v5193_v2 = vmax.f32 %v3401_v18, %v7175_v30  ;;  %v9905_v31 = vmax.f32 %v3359_v58, %v7054_v17  ;;  %v3391_v53 = vrot.slane %v3377_v21, %v9418_v62 }
 0x2f0   : > { %v3392_v0 = vcombine.high %v3384_v61, %v3384_v61  ;;  %v7171_v48 = vrot.slane %v3384_v61, 9  ;;  %v7178_v16 = vrot.slane %v3410_v19, 9  ;;  %v5194_v42 = vmax.f32 %v3409_v28, %v7176_v44  ;;  %v7632_v28 = vpop.f32.mrf.mxu1 }
 0x2f1   : > { %v5195_v8 = vmax.f32 %v3408_v39, %v7177_v6  ;;  %v5321_v1 = vmax.f32 %v9841_v51, %v5193_v2  ;;  %v3393_v41 = vcombine.high %v3391_v53, %v3391_v53  ;;  %v7173_v13 = vrot.slane %v3391_v53, 9 }
 0x2f2   : > { %v7172_v27 = vrot.slane %v3392_v0, 9  ;;  %v5189_v47 = vmax.f32 %v3384_v61, %v7171_v48  ;;  %v5196_v14 = vmax.f32 %v3410_v19, %v7178_v16  ;;  %v5322_v18 = vmax.f32 %v9845_v32, %v5194_v42  ;;  %v2479_v19 = vpop.f32.mrf.mxu0 }
 0x2f3   : > { %v5323_v58 = vmax.f32 %v9847_v46, %v5195_v8  ;;  %v3428_v30 = vcombine.high %v2804_v9, %v2804_v9  ;;  %v7174_v17 = vrot.slane %v3393_v41, 9  ;;  %v5191_v22 = vmax.f32 %v3391_v53, %v7173_v13  ;;  %v11422_v46 = vld [vmem:[#allocation41_spill] sm:$0xff] }
 0x2f4   : > { %v5190_v21 = vmax.f32 %v3392_v0, %v7172_v27  ;;  %v5317_v26 = vmax.f32 %v9858_v7, %v5189_v47  ;;  %v5324_v6 = vmax.f32 %v9852_v3, %v5196_v14  ;;  %v9913_v2 = vrot.slane %v5322_v18, 7 }
 0x2f5   : > { %v3435_v51 = vrot.slane %v2804_v9, %v9418_v62  ;;  %v3442_v16 = vrot.slane %v3428_v30, %v9418_v62  ;;  %v5192_v48 = vmax.f32 %v3393_v41, %v7174_v17  ;;  %v5319_v32 = vmax.f32 %v9866_v5, %v5191_v22  ;;  %v2033_v22 = vpop.f32.mrf.mxu1 }
 0x2f6   : > { %v5318_v42 = vmax.f32 %v9860_v38, %v5190_v21  ;;  %v2014_v39 = vadd.f32 %v2013_v45, %v11422_v46  ;;  %v5716_v47 = vsel %vm5530_vm5, %v9913_v2, %v5321_v1  ;;  %v9922_v53 = vrot.slane %v5324_v6, 7  ;;  %v11429_v6 = vld [vmem:[#allocation17_spill] sm:$0xff]  ;;  %v11430_v46 = vld [vmem:[#allocation6_spill] sm:$0xff] }
 0x2f7   : > { %v3443_v7 = vcombine.high %v3435_v51, %v3435_v51  ;;  %v3444_v14 = vcombine.high %v3442_v16, %v3442_v16  ;;  %v9926_v3 = vsel %vm5532_vm6, %v9913_v2, %v5716_v47  ;;  %v5320_v9 = vmax.f32 %v9868_v37, %v5192_v48 }
 0x2f8   : > { %11423 = vst [vmem:[#allocation38_spill] sm:$0xff] %v9922_v53  ;;  %v9929_v61 = vrot.slane %v5318_v42, 7  ;;  %v7183_v38 = vrot.slane %v3435_v51, 9  ;;  %v9933_v5 = vsel %vm5530_vm5, %v9922_v53, %v5323_v58  ;;  %v7185_v44 = vrot.slane %v3442_v16, 9 }
 0x2f9   : > { %11425 = vst [vmem:[#allocation41_spill] sm:$0xff] %v9933_v5  ;;  %v7184_v45 = vrot.slane %v3443_v7, 9  ;;  %v7186_v0 = vrot.slane %v3444_v14, 9  ;;  %v9937_v1 = vrot.slane %v5320_v9, 7  ;;  %v2668_v27 = vadd.f32 %v2469_v56, %v2014_v39  ;;  %v7635_v56 = vpop.f32.mrf.mxu1 }
 0x2fa   : > { %11424 = vst [vmem:[#allocation40_spill] sm:$0xff] %v9929_v61  ;;  %v5702_v8 = vsel %vm5530_vm5, %v9929_v61, %v5317_v26  ;;  %v5201_v41 = vmax.f32 %v3435_v51, %v7183_v38  ;;  %v5203_v18 = vmax.f32 %v3442_v16, %v7185_v44  ;;  %v7734_v26 = vpop.f32.mrf.mxu0  ;;  %v2029_v51 = vadd.f32 %v9897_v63, %v11429_v6  ;;  %v11435_v44 = vld [vmem:[#allocation2_spill] sm:$0xff] }
 0x2fb   : > { %11426 = vst [vmem:[#allocation79_spill] sm:$0xff] %v9937_v1  ;;  %v9941_v37 = vsel %vm5532_vm6, %v9929_v61, %v5702_v8  ;;  %v5202_v13 = vmax.f32 %v3443_v7, %v7184_v45  ;;  %v5204_v30 = vmax.f32 %v3444_v14, %v7186_v0  ;;  %v9945_v58 = vsel %vm5530_vm5, %v9937_v1, %v5319_v32  ;;  %v11431_v7 = vld [vmem:[#allocation20_spill] sm:$0xff] }
 0x2fc   : > { %11427 = vst [vmem:[#allocation80_spill] sm:$0xff] %v9941_v37  ;;  %11428 = vst [vmem:[#allocation81_spill] sm:$0xff] %v9945_v58  ;;  %v5329_v17 = vmax.f32 %v9882_v10, %v5201_v41  ;;  %v2739_v21 = vadd.f32 %v9806_v15, %v2668_v27  ;;  %v5331_v42 = vmax.f32 %v9884_v12, %v5203_v18  ;;  %v11432_v10 = vld [vmem:[#allocation21_spill] sm:$0xff]  ;;  %v2043_v41 = vpop.f32.mrf.mxu1 }
 0x2fd   : > { %v5330_v48 = vmax.f32 %v9887_v43, %v5202_v13  ;;  %v5332_v16 = vmax.f32 %v9891_v60, %v5204_v30  ;;  %v2024_v39 = vadd.f32 %v2023_v29, %v11430_v46  ;;  %v2671_v32 = vadd.f32 %v7731_v55, %v2029_v51  ;;  %v2489_v29 = vpop.f32.mrf.mxu0 }
 0x2fe   : > { %v2803_v47 = vmax.f32 %v2739_v21, 0.0  ;;  %v2039_v14 = vadd.f32 %v7632_v28, %v11431_v7  ;;  %v2034_v9 = vadd.f32 %v2033_v22, %v11432_v10  ;;  %v9962_v0 = vadd.f32 %v7635_v56, %v11435_v44 }
 0x2ff   : > { %v9957_v38 = vrot.slane %v5330_v48, 7  ;;  %v9959_v45 = vrot.slane %v5332_v16, 7  ;;  %v2670_v63 = vadd.f32 %v2479_v19, %v2024_v39  ;;  %v2742_v60 = vadd.f32 %v9806_v15, %v2671_v32  ;;  %v7638_v32 = vpop.f32.mrf.mxu1 }
 0x300   : > { %v3411_v43 = vcombine.high %v2803_v47, %v2803_v47  ;;  %v3418_v12 = vrot.slane %v2803_v47, %v9418_v62  ;;  %v2673_v8 = vadd.f32 %v7734_v26, %v2039_v14  ;;  %v2672_v19 = vadd.f32 %v2489_v29, %v2034_v9 }
 0x301   : > { %11433 = vst [vmem:[#allocation17_spill] sm:$0xff] %v9957_v38  ;;  %11434 = vst [vmem:[#allocation6_spill] sm:$0xff] %v9959_v45  ;;  %v5744_v55 = vsel %vm5530_vm5, %v9957_v38, %v5329_v17  ;;  %v9970_v28 = vsel %vm5530_vm5, %v9959_v45, %v5331_v42  ;;  %v2741_v22 = vadd.f32 %v9806_v15, %v2670_v63  ;;  %v2806_v21 = vmax.f32 %v2742_v60, 0.0 }
 0x302   : > { %11436 = vst [vmem:[#allocation20_spill] sm:$0xff] %v9970_v28  ;;  %v9975_v27 = vsel %vm5532_vm6, %v9957_v38, %v5744_v55  ;;  %v3425_v13 = vrot.slane %v3411_v43, %v9418_v62  ;;  %v3426_v18 = vcombine.high %v3418_v12, %v3418_v12  ;;  %v7179_v30 = vrot.slane %v3418_v12, 9  ;;  %v11445_v28 = vld [vmem:[#allocation7_spill] sm:$0xff] }
 0x303   : > { %11437 = vst [vmem:[#allocation21_spill] sm:$0xff] %v9975_v27  ;;  %v2805_v26 = vmax.f32 %v2741_v22, 0.0  ;;  %v2744_v17 = vadd.f32 %v9806_v15, %v2673_v8  ;;  %v2743_v6 = vadd.f32 %v9806_v15, %v2672_v19  ;;  %v3462_v16 = vcombine.high %v2806_v21, %v2806_v21 }
 0x304   : > { %v3427_v51 = vcombine.high %v3425_v13, %v3425_v13  ;;  %v7180_v56 = vrot.slane %v3426_v18, 9  ;;  %v7181_v48 = vrot.slane %v3425_v13, 9  ;;  %v5197_v42 = vmax.f32 %v3418_v12, %v7179_v30 }
 0x305   : > { %v3469_v46 = vrot.slane %v2806_v21, %v9418_v62  ;;  %v3445_v39 = vcombine.high %v2805_v26, %v2805_v26  ;;  %v3452_v47 = vrot.slane %v2805_v26, %v9418_v62  ;;  %v3476_v63 = vrot.slane %v3462_v16, %v9418_v62 }
 0x306   : > { %v7182_v7 = vrot.slane %v3427_v51, 9  ;;  %v5198_v14 = vmax.f32 %v3426_v18, %v7180_v56  ;;  %v5199_v10 = vmax.f32 %v3425_v13, %v7181_v48  ;;  %v5325_v9 = vmax.f32 %v9895_v24, %v5197_v42  ;;  %v7737_v13 = vpop.f32.mrf.mxu0  ;;  %v2053_v18 = vpop.f32.mrf.mxu1 }
 0x307   : > { %v3477_v44 = vcombine.high %v3469_v46, %v3469_v46  ;;  %v7063_v43 = vrot.slane %v3469_v46, 9  ;;  %v3459_v60 = vrot.slane %v3445_v39, %v9418_v62  ;;  %v3460_v55 = vcombine.high %v3452_v47, %v3452_v47 }
 0x308   : > { %v5200_v29 = vmax.f32 %v3427_v51, %v7182_v7  ;;  %v5326_v12 = vmax.f32 %v9900_v49, %v5198_v14  ;;  %v5327_v8 = vmax.f32 %v9902_v36, %v5199_v10  ;;  %v3478_v22 = vcombine.high %v3476_v63, %v3476_v63 }
 0x309   : > { %v7064_v19 = vrot.slane %v3477_v44, 9  ;;  %v7065_v30 = vrot.slane %v3476_v63, 9  ;;  %v9987_v21 = vmax.f32 %v3469_v46, %v7063_v43  ;;  %v3461_v56 = vcombine.high %v3459_v60, %v3459_v60  ;;  %v7641_v43 = vpop.f32.mrf.mxu1 }
 0x30a   : > { %v5328_v24 = vmax.f32 %v9905_v31, %v5200_v29  ;;  %v9990_v26 = vrot.slane %v5326_v12, 7  ;;  %v7059_v48 = vrot.slane %v3452_v47, 9  ;;  %v7066_v42 = vrot.slane %v3478_v22, 9 }
 0x30b   : > { %v9992_v51 = vmax.f32 %v3477_v44, %v7064_v19  ;;  %v9994_v49 = vmax.f32 %v3476_v63, %v7065_v30  ;;  %v7060_v36 = vrot.slane %v3460_v55, 9  ;;  %v7061_v46 = vrot.slane %v3459_v60, 9  ;;  %v2499_v63 = vpop.f32.mrf.mxu0 }
 0x30c   : > { %11438 = vst [vmem:[#allocation2_spill] sm:$0xff] %v9990_v26  ;;  %v5730_v16 = vsel %vm5530_vm5, %v9990_v26, %v5325_v9  ;;  %v9998_v39 = vrot.slane %v5328_v24, 7  ;;  %v7062_v7 = vrot.slane %v3461_v56, 9  ;;  %v10004_v14 = vmax.f32 %v3478_v22, %v7066_v42  ;;  %v11442_v22 = vld [vmem:[#allocation3_spill] sm:$0xff] }
 0x30d   : > { %v10002_v31 = vsel %vm5532_vm6, %v9990_v26, %v5730_v16  ;;  %v10006_v10 = vmax.f32 %v3452_v47, %v7059_v48  ;;  %v10008_v44 = vmax.f32 %v3460_v55, %v7060_v36  ;;  %v10014_v9 = vmax.f32 %v3459_v60, %v7061_v46  ;;  %v11443_v47 = vld [vmem:[#allocation4_spill] sm:$0xff]  ;;  %v11444_v16 = vld [vmem:[#allocation5_spill] sm:$0xff] }
 0x30e   : > { %11439 = vst [vmem:[#allocation82_spill] sm:$0xff] %v9998_v39  ;;  %11440 = vst [vmem:[#allocation83_spill] sm:$0xff] %v10002_v31  ;;  %v10012_v29 = vsel %vm5530_vm5, %v9998_v39, %v5327_v8  ;;  %v10016_v12 = vmax.f32 %v3461_v56, %v7062_v7  ;;  %v2808_v19 = vmax.f32 %v2744_v17, 0.0  ;;  %v2807_v30 = vmax.f32 %v2743_v6, 0.0  ;;  %v7740_v56 = vpop.f32.mrf.mxu0 }
 0x30f   : > { %11441 = vst [vmem:[#allocation84_spill] sm:$0xff] %v10012_v29  ;;  %v2675_v24 = vadd.f32 %v7737_v13, %v9962_v0  ;;  %v2044_v42 = vadd.f32 %v2043_v41, %v11442_v22  ;;  %v2059_v48 = vadd.f32 %v7638_v32, %v11443_v47  ;;  %v2054_v45 = vadd.f32 %v2053_v18, %v11444_v16 }
 0x310   : > { %v3496_v55 = vcombine.high %v2808_v19, %v2808_v19  ;;  %v3503_v36 = vrot.slane %v2808_v19, %v9418_v62  ;;  %v2069_v8 = vadd.f32 %v7641_v43, %v11445_v28  ;;  %v3479_v39 = vcombine.high %v2807_v30, %v2807_v30 }
 0x311   : > { %v3486_v60 = vrot.slane %v2807_v30, %v9418_v62  ;;  %v2746_v17 = vadd.f32 %v9806_v15, %v2675_v24  ;;  %v2674_v6 = vadd.f32 %v2499_v63, %v2044_v42  ;;  %v2677_v46 = vadd.f32 %v7740_v56, %v2059_v48 }
 0x312   : > { %v3510_v0 = vrot.slane %v3496_v55, %v9418_v62  ;;  %v3511_v13 = vcombine.high %v3503_v36, %v3503_v36  ;;  %v7071_v41 = vrot.slane %v3503_v36, 9  ;;  %v3493_v32 = vrot.slane %v3479_v39, %v9418_v62  ;;  %v2509_v39 = vpop.f32.mrf.mxu0 }
 0x313   : > { %v3494_v7 = vcombine.high %v3486_v60, %v3486_v60  ;;  %v7067_v19 = vrot.slane %v3486_v60, 9  ;;  %v2810_v22 = vmax.f32 %v2746_v17, 0.0 }
 0x314   : > { %v3512_v18 = vcombine.high %v3510_v0, %v3510_v0  ;;  %v7072_v47 = vrot.slane %v3511_v13, 9  ;;  %v7073_v28 = vrot.slane %v3510_v0, 9  ;;  %v10028_v43 = vmax.f32 %v3503_v36, %v7071_v41 }
 0x315   : > { %v3495_v30 = vcombine.high %v3493_v32, %v3493_v32  ;;  %v7068_v16 = vrot.slane %v3494_v7, 9  ;;  %v7069_v29 = vrot.slane %v3493_v32, 9  ;;  %v10030_v24 = vmax.f32 %v3486_v60, %v7067_v19 }
 0x316   : > { %v7074_v63 = vrot.slane %v3512_v18, 9  ;;  %v10032_v42 = vmax.f32 %v3511_v13, %v7072_v47  ;;  %v10034_v55 = vmax.f32 %v3510_v0, %v7073_v28  ;;  %v3530_v48 = vcombine.high %v2810_v22, %v2810_v22 }
 0x317   : > { %v7070_v56 = vrot.slane %v3495_v30, 9  ;;  %v10036_v1 = vmax.f32 %v3494_v7, %v7068_v16  ;;  %v10038_v17 = vmax.f32 %v3493_v32, %v7069_v29  ;;  %v3537_v36 = vrot.slane %v2810_v22, %v9418_v62  ;;  %v7743_v29 = vpop.f32.mrf.mxu0 }
 0x318   : > { %v10041_v41 = vmax.f32 %v3512_v18, %v7074_v63  ;;  %v3544_v58 = vrot.slane %v3530_v48, %v9418_v62  ;;  %v2745_v60 = vadd.f32 %v9806_v15, %v2674_v6  ;;  %v2748_v13 = vadd.f32 %v9806_v15, %v2677_v46 }
 0x319   : > { %v10046_v19 = vmax.f32 %v3495_v30, %v7070_v56  ;;  %v3545_v0 = vcombine.high %v3537_v36, %v3537_v36  ;;  %v7191_v47 = vrot.slane %v3537_v36, 9  ;;  %v2676_v28 = vadd.f32 %v2509_v39, %v2054_v45 }
 0x31a   : > { %v3546_v26 = vcombine.high %v3544_v58, %v3544_v58  ;;  %v7193_v7 = vrot.slane %v3544_v58, 9  ;;  %v2809_v16 = vmax.f32 %v2745_v60, 0.0  ;;  %v2812_v32 = vmax.f32 %v2748_v13, 0.0 }
 0x31b   : > { %v7192_v31 = vrot.slane %v3545_v0, 9  ;;  %v5209_v22 = vmax.f32 %v3537_v36, %v7191_v47  ;;  %v2747_v18 = vadd.f32 %v9806_v15, %v2676_v28  ;;  %v2679_v63 = vadd.f32 %v7743_v29, %v2069_v8 }
 0x31c   : > { %v7194_v48 = vrot.slane %v3546_v26, 9  ;;  %v5211_v53 = vmax.f32 %v3544_v58, %v7193_v7  ;;  %v3513_v6 = vcombine.high %v2809_v16, %v2809_v16  ;;  %v3520_v46 = vrot.slane %v2809_v16, %v9418_v62 }
 0x31d   : > { %v5210_v30 = vmax.f32 %v3545_v0, %v7192_v31  ;;  %v5337_v56 = vmax.f32 %v9987_v21, %v5209_v22  ;;  %v3564_v5 = vcombine.high %v2812_v32, %v2812_v32  ;;  %v3571_v45 = vrot.slane %v2812_v32, %v9418_v62 }
 0x31e   : > { %v5212_v39 = vmax.f32 %v3546_v26, %v7194_v48  ;;  %v5339_v60 = vmax.f32 %v9994_v49, %v5211_v53  ;;  %v3527_v13 = vrot.slane %v3513_v6, %v9418_v62  ;;  %v3528_v36 = vcombine.high %v3520_v46, %v3520_v46  ;;  %v2063_v53 = vpop.f32.mrf.mxu1 }
 0x31f   : > { %v5338_v47 = vmax.f32 %v9992_v51, %v5210_v30  ;;  %v7187_v8 = vrot.slane %v3520_v46, 9  ;;  %v3578_v58 = vrot.slane %v3564_v5, %v9418_v62  ;;  %v3579_v28 = vcombine.high %v3571_v45, %v3571_v45 }
 0x320   : > { %v5340_v7 = vmax.f32 %v10004_v14, %v5212_v39  ;;  %v3529_v31 = vcombine.high %v3527_v13, %v3527_v13  ;;  %v7188_v0 = vrot.slane %v3528_v36, 9  ;;  %v7189_v21 = vrot.slane %v3527_v13, 9 }
 0x321   : > { %v10057_v16 = vrot.slane %v5338_v47, 7  ;;  %v5205_v29 = vmax.f32 %v3520_v46, %v7187_v8  ;;  %v3580_v26 = vcombine.high %v3578_v58, %v3578_v58  ;;  %v7199_v32 = vrot.slane %v3571_v45, 9 }
 0x322   : > { %v10059_v49 = vrot.slane %v5340_v7, 7  ;;  %v7190_v22 = vrot.slane %v3529_v31, 9  ;;  %v5206_v48 = vmax.f32 %v3528_v36, %v7188_v0  ;;  %v5207_v51 = vmax.f32 %v3527_v13, %v7189_v21  ;;  %v7644_v0 = vpop.f32.mrf.mxu1 }
 0x323   : > { %v5772_v5 = vsel %vm5530_vm5, %v10057_v16, %v5337_v56  ;;  %v5333_v6 = vmax.f32 %v10006_v10, %v5205_v29  ;;  %v7200_v14 = vrot.slane %v3579_v28, 9  ;;  %v7201_v30 = vrot.slane %v3578_v58, 9 }
 0x324   : > { %11446 = vst [vmem:[#allocation3_spill] sm:$0xff] %v10059_v49  ;;  %v10066_v39 = vsel %vm5532_vm6, %v10057_v16, %v5772_v5  ;;  %v10070_v46 = vsel %vm5530_vm5, %v10059_v49, %v5339_v60  ;;  %v5208_v47 = vmax.f32 %v3529_v31, %v7190_v22  ;;  %v5334_v8 = vmax.f32 %v10008_v44, %v5206_v48  ;;  %v11453_v22 = vld [vmem:[#allocation8_spill] sm:$0xff] }
 0x325   : > { %11447 = vst [vmem:[#allocation4_spill] sm:$0xff] %v10070_v46  ;;  %v5335_v13 = vmax.f32 %v10014_v9, %v5207_v51  ;;  %v7202_v36 = vrot.slane %v3580_v26, 9  ;;  %v5217_v7 = vmax.f32 %v3571_v45, %v7199_v32  ;;  %v5218_v56 = vmax.f32 %v3579_v28, %v7200_v14 }
 0x326   : > { %v5336_v10 = vmax.f32 %v10016_v12, %v5208_v47  ;;  %v10075_v21 = vrot.slane %v5334_v8, 7  ;;  %v5219_v29 = vmax.f32 %v3578_v58, %v7201_v30  ;;  %v2811_v5 = vmax.f32 %v2747_v18, 0.0 }
 0x327   : > { %v5220_v61 = vmax.f32 %v3580_v26, %v7202_v36  ;;  %v5345_v37 = vmax.f32 %v10028_v43, %v5217_v7  ;;  %v5346_v60 = vmax.f32 %v10032_v42, %v5218_v56  ;;  %v2750_v31 = vadd.f32 %v9806_v15, %v2679_v63  ;;  %v2519_v43 = vpop.f32.mrf.mxu0  ;;  %v2073_v63 = vpop.f32.mrf.mxu1 }
 0x328   : > { %11448 = vst [vmem:[#allocation5_spill] sm:$0xff] %v10075_v21  ;;  %v5758_v44 = vsel %vm5530_vm5, %v10075_v21, %v5333_v6  ;;  %v10082_v9 = vrot.slane %v5336_v10, 7  ;;  %v5347_v45 = vmax.f32 %v10034_v55, %v5219_v29  ;;  %v3547_v28 = vcombine.high %v2811_v5, %v2811_v5 }
 0x329   : > { %v10087_v12 = vsel %vm5532_vm6, %v10075_v21, %v5758_v44  ;;  %v5348_v18 = vmax.f32 %v10041_v41, %v5220_v61  ;;  %v10090_v58 = vrot.slane %v5346_v60, 7  ;;  %v3554_v42 = vrot.slane %v2811_v5, %v9418_v62  ;;  %v7746_v7 = vpop.f32.mrf.mxu0  ;;  %v7647_v56 = vpop.f32.mrf.mxu1 }
 0x32a   : > { %11449 = vst [vmem:[#allocation7_spill] sm:$0xff] %v10082_v9  ;;  %11450 = vst [vmem:[#allocation85_spill] sm:$0xff] %v10087_v12  ;;  %v10095_v26 = vsel %vm5530_vm5, %v10082_v9, %v5335_v13  ;;  %v3561_v32 = vrot.slane %v3547_v28, %v9418_v62  ;;  %v2814_v55 = vmax.f32 %v2750_v31, 0.0  ;;  %v2064_v48 = vadd.f32 %v2063_v53, %v11453_v22 }
 0x32b   : > { %11451 = vst [vmem:[#allocation86_spill] sm:$0xff] %v10090_v58  ;;  %11452 = vst [vmem:[#allocation87_spill] sm:$0xff] %v10095_v26  ;;  %v5800_v51 = vsel %vm5530_vm5, %v10090_v58, %v5345_v37  ;;  %v10101_v6 = vrot.slane %v5348_v18, 7  ;;  %v3562_v61 = vcombine.high %v3554_v42, %v3554_v42  ;;  %v7195_v41 = vrot.slane %v3554_v42, 9 }
 0x32c   : > { %v10105_v14 = vsel %vm5532_vm6, %v10090_v58, %v5800_v51  ;;  %v3563_v30 = vcombine.high %v3561_v32, %v3561_v32  ;;  %v7197_v47 = vrot.slane %v3561_v32, 9  ;;  %v3598_v8 = vcombine.high %v2814_v55, %v2814_v55 }
 0x32d   : > { %11454 = vst [vmem:[#allocation8_spill] sm:$0xff] %v10101_v6  ;;  %11455 = vst [vmem:[#allocation88_spill] sm:$0xff] %v10105_v14  ;;  %v10109_v13 = vsel %vm5530_vm5, %v10101_v6, %v5347_v45  ;;  %v7196_v36 = vrot.slane %v3562_v61, 9  ;;  %v5213_v53 = vmax.f32 %v3554_v42, %v7195_v41  ;;  %v3605_v37 = vrot.slane %v2814_v55, %v9418_v62 }
 0x32e   : > { %11456 = vst [vmem:[#allocation89_spill] sm:$0xff] %v10109_v13  ;;  %v7198_v10 = vrot.slane %v3563_v30, 9  ;;  %v5215_v29 = vmax.f32 %v3561_v32, %v7197_v47  ;;  %v3612_v5 = vrot.slane %v3598_v8, %v9418_v62  ;;  %v2678_v60 = vadd.f32 %v2519_v43, %v2064_v48  ;;  %v2529_v13 = vpop.f32.mrf.mxu0  ;;  %v2083_v47 = vpop.f32.mrf.mxu1 }
 0x32f   : > { %v5214_v31 = vmax.f32 %v3562_v61, %v7196_v36  ;;  %v5341_v44 = vmax.f32 %v10030_v24, %v5213_v53  ;;  %v3613_v28 = vcombine.high %v3605_v37, %v3605_v37  ;;  %v7079_v18 = vrot.slane %v3605_v37, 9  ;;  %v11457_v61 = vld [vmem:[#allocation9_spill] sm:$0xff] }
 0x330   : > { %v5216_v22 = vmax.f32 %v3563_v30, %v7198_v10  ;;  %v5343_v45 = vmax.f32 %v10038_v17, %v5215_v29  ;;  %v3614_v51 = vcombine.high %v3612_v5, %v3612_v5  ;;  %v7081_v6 = vrot.slane %v3612_v5, 9 }
 0x331   : > { %v5342_v42 = vmax.f32 %v10036_v1, %v5214_v31  ;;  %v7080_v41 = vrot.slane %v3613_v28, 9  ;;  %v10116_v55 = vmax.f32 %v3605_v37, %v7079_v18  ;;  %v2749_v32 = vadd.f32 %v9806_v15, %v2678_v60  ;;  %v11459_v1 = vld [vmem:[#allocation10_spill] sm:$0xff]  ;;  %v11461_v60 = vld [vmem:[#allocation11_spill] sm:$0xff] }
 0x332   : > { %v5344_v43 = vmax.f32 %v10046_v19, %v5216_v22  ;;  %v7082_v48 = vrot.slane %v3614_v51, 9  ;;  %v10120_v24 = vmax.f32 %v3612_v5, %v7081_v6  ;;  %v2079_v30 = vadd.f32 %v7644_v0, %v11457_v61  ;;  %v7749_v5 = vpop.f32.mrf.mxu0  ;;  %v11465_v61 = vld [vmem:[#allocation13_spill] sm:$0xff] }
 0x333   : > { %v10123_v8 = vrot.slane %v5342_v42, 7  ;;  %v10125_v17 = vmax.f32 %v3613_v28, %v7080_v41  ;;  %v2813_v36 = vmax.f32 %v2749_v32, 0.0  ;;  %v2074_v53 = vadd.f32 %v2073_v63, %v11459_v1  ;;  %v7650_v28 = vpop.f32.mrf.mxu1 }
 0x334   : > { %v10128_v37 = vrot.slane %v5344_v43, 7  ;;  %v10130_v10 = vmax.f32 %v3614_v51, %v7082_v48  ;;  %v2681_v29 = vadd.f32 %v7746_v7, %v2079_v30  ;;  %v2089_v31 = vadd.f32 %v7647_v56, %v11461_v60  ;;  %v11464_v43 = vld [vmem:[#allocation12_spill] sm:$0xff] }
 0x335   : > { %11458 = vst [vmem:[#allocation9_spill] sm:$0xff] %v10123_v8  ;;  %v5786_v19 = vsel %vm5530_vm5, %v10123_v8, %v5341_v44  ;;  %v3581_v6 = vcombine.high %v2813_v36, %v2813_v36  ;;  %v3588_v0 = vrot.slane %v2813_v36, %v9418_v62  ;;  %v2680_v18 = vadd.f32 %v2529_v13, %v2074_v53 }
 0x336   : > { %11460 = vst [vmem:[#allocation10_spill] sm:$0xff] %v10128_v37  ;;  %v10138_v22 = vsel %vm5532_vm6, %v10123_v8, %v5786_v19  ;;  %v10142_v63 = vsel %vm5530_vm5, %v10128_v37, %v5343_v45  ;;  %v2752_v7 = vadd.f32 %v9806_v15, %v2681_v29  ;;  %v2683_v56 = vadd.f32 %v7749_v5, %v2089_v31  ;;  %v2539_v31 = vpop.f32.mrf.mxu0 }
 0x337   : > { %11462 = vst [vmem:[#allocation11_spill] sm:$0xff] %v10138_v22  ;;  %11463 = vst [vmem:[#allocation90_spill] sm:$0xff] %v10142_v63  ;;  %v3595_v51 = vrot.slane %v3581_v6, %v9418_v62  ;;  %v3596_v44 = vcombine.high %v3588_v0, %v3588_v0  ;;  %v7075_v42 = vrot.slane %v3588_v0, 9  ;;  %v2751_v41 = vadd.f32 %v9806_v15, %v2680_v18 }
 0x338   : > { %v2816_v32 = vmax.f32 %v2752_v7, 0.0  ;;  %v2754_v13 = vadd.f32 %v9806_v15, %v2683_v56  ;;  %v2084_v48 = vadd.f32 %v2083_v47, %v11464_v43  ;;  %v2099_v30 = vadd.f32 %v7650_v28, %v11465_v61  ;;  %v2093_v47 = vpop.f32.mrf.mxu1 }
 0x339   : > { %v3597_v36 = vcombine.high %v3595_v51, %v3595_v51  ;;  %v7076_v1 = vrot.slane %v3596_v44, 9  ;;  %v7077_v45 = vrot.slane %v3595_v51, 9  ;;  %v10150_v53 = vmax.f32 %v3588_v0, %v7075_v42 }
 0x33a   : > { %v3632_v29 = vcombine.high %v2816_v32, %v2816_v32  ;;  %v3639_v60 = vrot.slane %v2816_v32, %v9418_v62  ;;  %v2815_v19 = vmax.f32 %v2751_v41, 0.0  ;;  %v2818_v6 = vmax.f32 %v2754_v13, 0.0  ;;  %v7653_v9 = vpop.f32.mrf.mxu1 }
 0x33b   : > { %v7078_v5 = vrot.slane %v3597_v36, 9  ;;  %v10153_v18 = vmax.f32 %v3596_v44, %v7076_v1  ;;  %v10155_v7 = vmax.f32 %v3595_v51, %v7077_v45  ;;  %v2682_v56 = vadd.f32 %v2539_v31, %v2084_v48 }
 0x33c   : > { %v3646_v28 = vrot.slane %v3632_v29, %v9418_v62  ;;  %v3647_v43 = vcombine.high %v3639_v60, %v3639_v60  ;;  %v7087_v61 = vrot.slane %v3639_v60, 9  ;;  %v3615_v37 = vcombine.high %v2815_v19, %v2815_v19  ;;  %v7752_v29 = vpop.f32.mrf.mxu0 }
 0x33d   : > { %v10158_v0 = vmax.f32 %v3597_v36, %v7078_v5  ;;  %v3622_v42 = vrot.slane %v2815_v19, %v9418_v62  ;;  %v3666_v32 = vcombine.high %v2818_v6, %v2818_v6  ;;  %v3673_v41 = vrot.slane %v2818_v6, %v9418_v62 }
 0x33e   : > { %v3648_v13 = vcombine.high %v3646_v28, %v3646_v28  ;;  %v7088_v63 = vrot.slane %v3647_v43, 9  ;;  %v7089_v44 = vrot.slane %v3646_v28, 9  ;;  %v10162_v1 = vmax.f32 %v3639_v60, %v7087_v61 }
 0x33f   : > { %v3629_v51 = vrot.slane %v3615_v37, %v9418_v62  ;;  %v3630_v48 = vcombine.high %v3622_v42, %v3622_v42  ;;  %v7083_v45 = vrot.slane %v3622_v42, 9  ;;  %v3680_v31 = vrot.slane %v3666_v32, %v9418_v62 }
 0x340   : > { %v7090_v36 = vrot.slane %v3648_v13, 9  ;;  %v10166_v5 = vmax.f32 %v3647_v43, %v7088_v63  ;;  %v10168_v19 = vmax.f32 %v3646_v28, %v7089_v44  ;;  %v3681_v26 = vcombine.high %v3673_v41, %v3673_v41  ;;  %v2549_v43 = vpop.f32.mrf.mxu0  ;;  %v2103_v28 = vpop.f32.mrf.mxu1 }
 0x341   : > { %v3631_v6 = vcombine.high %v3629_v51, %v3629_v51  ;;  %v7084_v8 = vrot.slane %v3630_v48, 9  ;;  %v7085_v22 = vrot.slane %v3629_v51, 9  ;;  %v10170_v49 = vmax.f32 %v3622_v42, %v7083_v45 }
 0x342   : > { %v10172_v60 = vmax.f32 %v3648_v13, %v7090_v36  ;;  %v3682_v37 = vcombine.high %v3680_v31, %v3680_v31  ;;  %v7207_v61 = vrot.slane %v3673_v41, 9  ;;  %v7208_v46 = vrot.slane %v3681_v26, 9  ;;  %v11466_v36 = vld [vmem:[#allocation14_spill] sm:$0xff]  ;;  %v7755_v27 = vpop.f32.mrf.mxu0 }
 0x343   : > { %v7086_v21 = vrot.slane %v3631_v6, 9  ;;  %v10174_v12 = vmax.f32 %v3630_v48, %v7084_v8  ;;  %v10176_v32 = vmax.f32 %v3629_v51, %v7085_v22  ;;  %v7209_v63 = vrot.slane %v3680_v31, 9 }
 0x344   : > { %v7210_v44 = vrot.slane %v3682_v37, 9  ;;  %v5225_v33 = vmax.f32 %v3673_v41, %v7207_v61  ;;  %v5226_v11 = vmax.f32 %v3681_v26, %v7208_v46  ;;  %v2753_v58 = vadd.f32 %v9806_v15, %v2682_v56  ;;  %v11467_v26 = vld [vmem:[#allocation15_spill] sm:$0xff]  ;;  %v10214_v61 = vpop.f32.mrf.mxu0 }
 0x345   : > { %v10179_v42 = vmax.f32 %v3631_v6, %v7086_v21  ;;  %v5227_v13 = vmax.f32 %v3680_v31, %v7209_v63  ;;  %v2685_v45 = vadd.f32 %v7752_v29, %v2099_v30  ;;  %v2094_v14 = vadd.f32 %v2093_v47, %v11466_v36  ;;  %v10187_v21 = vpop.f32.mrf.mxu1 }
 0x346   : > { %v5228_v38 = vmax.f32 %v3682_v37, %v7210_v44  ;;  %v5353_v8 = vmax.f32 %v10116_v55, %v5225_v33  ;;  %v5354_v22 = vmax.f32 %v10125_v17, %v5226_v11  ;;  %v2817_v51 = vmax.f32 %v2753_v58, 0.0  ;;  %v10196_v11 = vld [vmem:[%s11129_s2] ss:$0 sm:$0xff] }
 0x347   : > { %v5355_v48 = vmax.f32 %v10120_v24, %v5227_v13  ;;  %v2756_v41 = vadd.f32 %v9806_v15, %v2685_v45  ;;  %v2684_v46 = vadd.f32 %v2549_v43, %v2094_v14  ;;  %v2109_v56 = vadd.f32 %v7653_v9, %v11467_v26  ;;  %v11468_v9 = vld [vmem:[#allocation16_spill] sm:$0xff]  ;;  %v10216_v63 = vpop.f32.mrf.mxu1 }
 0x348   : > { %v5356_v30 = vmax.f32 %v10130_v10, %v5228_v38  ;;  %v10190_v29 = vrot.slane %v5354_v22, 7  ;;  %v3649_v47 = vcombine.high %v2817_v51, %v2817_v51  ;;  %v3656_v33 = vrot.slane %v2817_v51, %v9418_v62 }
 0x349   : > { %v2820_v55 = vmax.f32 %v2756_v41, 0.0  ;;  %v2755_v15 = vadd.f32 %v10196_v11, %v2684_v46  ;;  %v10199_v58 = vadd.f32 %v7755_v27, %v2109_v56  ;;  %v10202_v14 = vadd.f32 %v2103_v28, %v11468_v9  ;;  %v7758_v9 = vpop.f32.mrf.mxu0 }
 0x34a   : > { %v5828_v38 = vsel %vm5530_vm5, %v10190_v29, %v5353_v8  ;;  %v10206_v24 = vrot.slane %v5356_v30, 7  ;;  %v3663_v17 = vrot.slane %v3649_v47, %v9418_v62  ;;  %v3664_v10 = vcombine.high %v3656_v33, %v3656_v33 }
 0x34b   : > { %v10211_v31 = vsel %vm5532_vm6, %v10190_v29, %v5828_v38  ;;  %v7203_v6 = vrot.slane %v3656_v33, 9  ;;  %v3700_v37 = vcombine.high %v2820_v55, %v2820_v55  ;;  %v3707_v27 = vrot.slane %v2820_v55, %v9418_v62 }
 0x34c   : > { %11469 = vst [vmem:[#allocation12_spill] sm:$0xff] %v10206_v24  ;;  %v10220_v43 = vsel %vm5530_vm5, %v10206_v24, %v5355_v48  ;;  %v3665_v28 = vcombine.high %v3663_v17, %v3663_v17  ;;  %v7204_v44 = vrot.slane %v3664_v10, 9  ;;  %v7205_v13 = vrot.slane %v3663_v17, 9  ;;  %v7659_v48 = vpop.f32.mrf.mxu1 }
 0x34d   : > { %11470 = vst [vmem:[#allocation13_spill] sm:$0xff] %v10220_v43  ;;  %v5221_v45 = vmax.f32 %v3656_v33, %v7203_v6  ;;  %v3714_v36 = vrot.slane %v3700_v37, %v9418_v62  ;;  %v3715_v8 = vcombine.high %v3707_v27, %v3707_v27  ;;  %v7215_v22 = vrot.slane %v3707_v27, 9 }
 0x34e   : > { %v7206_v51 = vrot.slane %v3665_v28, 9  ;;  %v5222_v41 = vmax.f32 %v3664_v10, %v7204_v44  ;;  %v5223_v46 = vmax.f32 %v3663_v17, %v7205_v13  ;;  %v2819_v26 = vmax.f32 %v2755_v15, 0.0  ;;  %v10234_v13 = vpop.f32.mrf.mxu1 }
 0x34f   : > { %v5349_v56 = vmax.f32 %v10150_v53, %v5221_v45  ;;  %v3716_v30 = vcombine.high %v3714_v36, %v3714_v36  ;;  %v7216_v47 = vrot.slane %v3715_v8, 9  ;;  %v7217_v55 = vrot.slane %v3714_v36, 9 }
 0x350   : > { %v5224_v38 = vmax.f32 %v3665_v28, %v7206_v51  ;;  %v5350_v24 = vmax.f32 %v10153_v18, %v5222_v41  ;;  %v5351_v33 = vmax.f32 %v10155_v7, %v5223_v46  ;;  %v5233_v6 = vmax.f32 %v3707_v27, %v7215_v22  ;;  %v2569_v27 = vpop.f32.mrf.mxu0 }
 0x351   : > { %v7218_v37 = vrot.slane %v3716_v30, 9  ;;  %v5234_v43 = vmax.f32 %v3715_v8, %v7216_v47  ;;  %v5235_v23 = vmax.f32 %v3714_v36, %v7217_v55  ;;  %v3683_v50 = vcombine.high %v2819_v26, %v2819_v26 }
 0x352   : > { %v5352_v17 = vmax.f32 %v10158_v0, %v5224_v38  ;;  %v10227_v15 = vrot.slane %v5350_v24, 7  ;;  %v5361_v53 = vmax.f32 %v10162_v1, %v5233_v6  ;;  %v3690_v10 = vrot.slane %v2819_v26, %v9418_v62 }
 0x353   : > { %v5236_v44 = vmax.f32 %v3716_v30, %v7218_v37  ;;  %v5362_v28 = vmax.f32 %v10166_v5, %v5234_v43  ;;  %v5363_v18 = vmax.f32 %v10168_v19, %v5235_v23  ;;  %v3697_v7 = vrot.slane %v3683_v50, %v9418_v62 }
 0x354   : > { %11471 = vst [vmem:[#allocation14_spill] sm:$0xff] %v10227_v15  ;;  %v5814_v45 = vsel %vm5530_vm5, %v10227_v15, %v5349_v56  ;;  %v10238_v0 = vrot.slane %v5352_v17, 7  ;;  %v3698_v24 = vcombine.high %v3690_v10, %v3690_v10  ;;  %v7211_v36 = vrot.slane %v3690_v10, 9  ;;  %v10259_v56 = vpop.f32.mrf.mxu1 }
 0x355   : > { %v10242_v1 = vsel %vm5532_vm6, %v10227_v15, %v5814_v45  ;;  %v5364_v5 = vmax.f32 %v10172_v60, %v5236_v44  ;;  %v10245_v43 = vrot.slane %v5362_v28, 7  ;;  %v3699_v23 = vcombine.high %v3697_v7, %v3697_v7  ;;  %v10257_v60 = vpop.f32.mrf.mxu0  ;;  %v11480_v28 = vld [vmem:[#allocation19_spill] sm:$0xff] }
 0x356   : > { %11472 = vst [vmem:[#allocation15_spill] sm:$0xff] %v10238_v0  ;;  %11473 = vst [vmem:[#allocation16_spill] sm:$0xff] %v10242_v1  ;;  %v10249_v50 = vsel %vm5530_vm5, %v10238_v0, %v5351_v33  ;;  %v7212_v19 = vrot.slane %v3698_v24, 9  ;;  %v7213_v8 = vrot.slane %v3697_v7, 9  ;;  %v5229_v22 = vmax.f32 %v3690_v10, %v7211_v36  ;;  %v11479_v10 = vld [vmem:[#allocation18_spill] sm:$0xff] }
 0x357   : > { %11474 = vst [vmem:[#allocation91_spill] sm:$0xff] %v10245_v43  ;;  %11475 = vst [vmem:[#allocation92_spill] sm:$0xff] %v10249_v50  ;;  %v5856_v51 = vsel %vm5530_vm5, %v10245_v43, %v5361_v53  ;;  %v10253_v41 = vrot.slane %v5364_v5, 7  ;;  %v7214_v46 = vrot.slane %v3699_v23, 9  ;;  %v2758_v26 = vadd.f32 %v10196_v11, %v10199_v58  ;;  %v10281_v36 = vpop.f32.mrf.mxu0  ;;  %v11482_v5 = vld [vmem:[#allocation22_spill] sm:$0xff] }
 0x358   : > { %v10263_v30 = vsel %vm5532_vm6, %v10245_v43, %v5856_v51  ;;  %v5230_v47 = vmax.f32 %v3698_v24, %v7212_v19  ;;  %v5231_v55 = vmax.f32 %v3697_v7, %v7213_v8  ;;  %v5357_v38 = vmax.f32 %v10170_v49, %v5229_v22  ;;  %v11487_v1 = vld [vmem:[#allocation26_spill] sm:$0xff] }
 0x359   : > { %11476 = vst [vmem:[#allocation93_spill] sm:$0xff] %v10253_v41  ;;  %11477 = vst [vmem:[#allocation94_spill] sm:$0xff] %v10263_v30  ;;  %v10268_v33 = vsel %vm5530_vm5, %v10253_v41, %v5363_v18  ;;  %v5232_v6 = vmax.f32 %v3699_v23, %v7214_v46  ;;  %v2822_v37 = vmax.f32 %v2758_v26, 0.0  ;;  %v2686_v58 = vadd.f32 %v10214_v61, %v10202_v14  ;;  %v10283_v14 = vpop.f32.mrf.mxu1 }
 0x35a   : > { %11478 = vst [vmem:[#allocation95_spill] sm:$0xff] %v10268_v33  ;;  %v5358_v17 = vmax.f32 %v10174_v12, %v5230_v47  ;;  %v5359_v53 = vmax.f32 %v10176_v32, %v5231_v55  ;;  %v2119_v44 = vadd.f32 %v10187_v21, %v11479_v10  ;;  %v2114_v7 = vadd.f32 %v10216_v63, %v11480_v28  ;;  %v7764_v47 = vpop.f32.mrf.mxu0 }
 0x35b   : > { %v5360_v49 = vmax.f32 %v10179_v42, %v5232_v6  ;;  %v3734_v45 = vcombine.high %v2822_v37, %v2822_v37  ;;  %v3741_v18 = vrot.slane %v2822_v37, %v9418_v62  ;;  %v2757_v24 = vadd.f32 %v10196_v11, %v2686_v58  ;;  %v7665_v55 = vpop.f32.mrf.mxu1 }
 0x35c   : > { %v10285_v12 = vrot.slane %v5358_v17, 7  ;;  %v2689_v32 = vadd.f32 %v7758_v9, %v2119_v44  ;;  %v2688_v61 = vadd.f32 %v2569_v27, %v2114_v7  ;;  %v2129_v21 = vadd.f32 %v7659_v48, %v11482_v5  ;;  %v2589_v5 = vpop.f32.mrf.mxu0 }
 0x35d   : > { %v10288_v23 = vrot.slane %v5360_v49, 7  ;;  %v3748_v63 = vrot.slane %v3734_v45, %v9418_v62  ;;  %v3749_v42 = vcombine.high %v3741_v18, %v3741_v18  ;;  %v7095_v19 = vrot.slane %v3741_v18, 9 }
 0x35e   : > { %11481 = vst [vmem:[#allocation18_spill] sm:$0xff] %v10285_v12  ;;  %v5842_v8 = vsel %vm5530_vm5, %v10285_v12, %v5357_v38  ;;  %v2821_v22 = vmax.f32 %v2757_v24, 0.0  ;;  %v2760_v51 = vadd.f32 %v10196_v11, %v2689_v32  ;;  %v2759_v46 = vadd.f32 %v10196_v11, %v2688_v61 }
 0x35f   : > { %11483 = vst [vmem:[#allocation19_spill] sm:$0xff] %v10288_v23  ;;  %v10297_v9 = vsel %vm5532_vm6, %v10285_v12, %v5842_v8  ;;  %v10301_v48 = vsel %vm5530_vm5, %v10288_v23, %v5359_v53  ;;  %v3750_v27 = vcombine.high %v3748_v63, %v3748_v63  ;;  %v7096_v26 = vrot.slane %v3749_v42, 9 }
 0x360   : > { %11484 = vst [vmem:[#allocation22_spill] sm:$0xff] %v10297_v9  ;;  %11485 = vst [vmem:[#allocation96_spill] sm:$0xff] %v10301_v48  ;;  %v7097_v6 = vrot.slane %v3748_v63, 9  ;;  %v10303_v37 = vmax.f32 %v3741_v18, %v7095_v19  ;;  %v3717_v38 = vcombine.high %v2821_v22, %v2821_v22  ;;  %v3724_v58 = vrot.slane %v2821_v22, %v9418_v62  ;;  %v2143_v19 = vpop.f32.mrf.mxu1 }
 0x361   : > { %v7098_v17 = vrot.slane %v3750_v27, 9  ;;  %v10306_v10 = vmax.f32 %v3749_v42, %v7096_v26  ;;  %v2824_v44 = vmax.f32 %v2760_v51, 0.0  ;;  %v2823_v28 = vmax.f32 %v2759_v46, 0.0 }
 0x362   : > { %v10308_v7 = vmax.f32 %v3748_v63, %v7097_v6  ;;  %v3731_v53 = vrot.slane %v3717_v38, %v9418_v62  ;;  %v3732_v49 = vcombine.high %v3724_v58, %v3724_v58  ;;  %v7091_v45 = vrot.slane %v3724_v58, 9 }
 0x363   : > { %v10311_v24 = vmax.f32 %v3750_v27, %v7098_v17  ;;  %v3768_v32 = vcombine.high %v2824_v44, %v2824_v44  ;;  %v3775_v18 = vrot.slane %v2824_v44, %v9418_v62  ;;  %v3751_v61 = vcombine.high %v2823_v28, %v2823_v28 }
 0x364   : > { %v3733_v8 = vcombine.high %v3731_v53, %v3731_v53  ;;  %v7092_v22 = vrot.slane %v3732_v49, 9  ;;  %v7093_v42 = vrot.slane %v3731_v53, 9  ;;  %v10314_v26 = vmax.f32 %v3724_v58, %v7091_v45  ;;  %v7767_v58 = vpop.f32.mrf.mxu0  ;;  %v7668_v45 = vpop.f32.mrf.mxu1 }
 0x365   : > { %v3782_v63 = vrot.slane %v3768_v32, %v9418_v62  ;;  %v3783_v51 = vcombine.high %v3775_v18, %v3775_v18  ;;  %v7103_v46 = vrot.slane %v3775_v18, 9  ;;  %v3758_v6 = vrot.slane %v2823_v28, %v9418_v62 }
 0x366   : > { %v7094_v38 = vrot.slane %v3733_v8, 9  ;;  %v10318_v27 = vmax.f32 %v3732_v49, %v7092_v22  ;;  %v10320_v17 = vmax.f32 %v3731_v53, %v7093_v42  ;;  %v3765_v44 = vrot.slane %v3751_v61, %v9418_v62 }
 0x367   : > { %v3784_v23 = vcombine.high %v3782_v63, %v3782_v63  ;;  %v7104_v48 = vrot.slane %v3783_v51, 9  ;;  %v7105_v41 = vrot.slane %v3782_v63, 9  ;;  %v10323_v33 = vmax.f32 %v3775_v18, %v7103_v46 }
 0x368   : > { %v10325_v0 = vmax.f32 %v3733_v8, %v7094_v38  ;;  %v3766_v32 = vcombine.high %v3758_v6, %v3758_v6  ;;  %v3767_v50 = vcombine.high %v3765_v44, %v3765_v44  ;;  %v7099_v12 = vrot.slane %v3758_v6, 9  ;;  %v11486_v8 = vld [vmem:[#allocation23_spill] sm:$0xff] }
 0x369   : > { %v7106_v28 = vrot.slane %v3784_v23, 9  ;;  %v10327_v9 = vmax.f32 %v3783_v51, %v7104_v48  ;;  %v10329_v49 = vmax.f32 %v3782_v63, %v7105_v41  ;;  %v7101_v53 = vrot.slane %v3765_v44, 9  ;;  %v2599_v51 = vpop.f32.mrf.mxu0  ;;  %v2153_v41 = vpop.f32.mrf.mxu1 }
 0x36a   : > { %v7100_v22 = vrot.slane %v3766_v32, 9  ;;  %v7102_v61 = vrot.slane %v3767_v50, 9  ;;  %v10331_v42 = vmax.f32 %v3758_v6, %v7099_v12  ;;  %v2691_v18 = vadd.f32 %v10257_v60, %v2129_v21  ;;  %v11488_v6 = vld [vmem:[#allocation24_spill] sm:$0xff] }
 0x36b   : > { %v10334_v46 = vmax.f32 %v3784_v23, %v7106_v28  ;;  %v10336_v15 = vmax.f32 %v3765_v44, %v7101_v53  ;;  %v2124_v38 = vadd.f32 %v10234_v13, %v11486_v8  ;;  %v2139_v48 = vadd.f32 %v10259_v56, %v11487_v1  ;;  %v11489_v44 = vld [vmem:[#allocation27_spill] sm:$0xff]  ;;  %v11490_v13 = vld [vmem:[#allocation29_spill] sm:$0xff] }
 0x36c   : > { %v10342_v63 = vmax.f32 %v3766_v32, %v7100_v22  ;;  %v10344_v43 = vmax.f32 %v3767_v50, %v7102_v61  ;;  %v2762_v12 = vadd.f32 %v10196_v11, %v2691_v18  ;;  %v2134_v60 = vadd.f32 %v10283_v14, %v11488_v6  ;;  %v11491_v56 = vld [vmem:[#allocation31_spill] sm:$0xff]  ;;  %v11492_v32 = vld [vmem:[#allocation33_spill] sm:$0xff]  ;;  %v7770_v18 = vpop.f32.mrf.mxu0 }
 0x36d   : > { %v2690_v21 = vadd.f32 %v10281_v36, %v2124_v38  ;;  %v2693_v23 = vadd.f32 %v7764_v47, %v2139_v48  ;;  %v2149_v28 = vadd.f32 %v7665_v55, %v11489_v44  ;;  %v2144_v53 = vadd.f32 %v2143_v19, %v11490_v13 }
 0x36e   : > { %v2826_v8 = vmax.f32 %v2762_v12, 0.0  ;;  %v2692_v1 = vadd.f32 %v2589_v5, %v2134_v60  ;;  %v2159_v30 = vadd.f32 %v7668_v45, %v11491_v56  ;;  %v10354_v22 = vadd.f32 %v2153_v41, %v11492_v32 }
 0x36f   : > { %v2761_v50 = vadd.f32 %v10196_v11, %v2690_v21  ;;  %v2764_v61 = vadd.f32 %v10196_v11, %v2693_v23  ;;  %v2695_v14 = vadd.f32 %v7767_v58, %v2149_v28  ;;  %v2694_v6 = vadd.f32 %v2599_v51, %v2144_v53 }
 0x370   : > { %v3802_v36 = vcombine.high %v2826_v8, %v2826_v8  ;;  %v3809_v47 = vrot.slane %v2826_v8, %v9418_v62  ;;  %v2763_v55 = vadd.f32 %v10196_v11, %v2692_v1  ;;  %v10360_v19 = vadd.f32 %v7770_v18, %v2159_v30 }
 0x371   : > { %v2825_v5 = vmax.f32 %v2761_v50, 0.0  ;;  %v2828_v38 = vmax.f32 %v2764_v61, 0.0  ;;  %v10363_v45 = vadd.f32 %v10196_v11, %v2695_v14  ;;  %v10366_v48 = vadd.f32 %v10196_v11, %v2694_v6 }
 0x372   : > { %v3816_v41 = vrot.slane %v3802_v36, %v9418_v62  ;;  %v3817_v12 = vcombine.high %v3809_v47, %v3809_v47  ;;  %v7223_v58 = vrot.slane %v3809_v47, 9  ;;  %v2827_v51 = vmax.f32 %v2763_v55, 0.0 }
 0x373   : > { %v3785_v60 = vcombine.high %v2825_v5, %v2825_v5  ;;  %v3792_v21 = vrot.slane %v2825_v5, %v9418_v62  ;;  %v3836_v23 = vcombine.high %v2828_v38, %v2828_v38  ;;  %v3843_v30 = vrot.slane %v2828_v38, %v9418_v62 }
 0x374   : > { %v3818_v44 = vcombine.high %v3816_v41, %v3816_v41  ;;  %v7224_v28 = vrot.slane %v3817_v12, 9  ;;  %v7225_v13 = vrot.slane %v3816_v41, 9  ;;  %v5241_v53 = vmax.f32 %v3809_v47, %v7223_v58 }
 0x375   : > { %v3799_v8 = vrot.slane %v3785_v60, %v9418_v62  ;;  %v3800_v1 = vcombine.high %v3792_v21, %v3792_v21  ;;  %v7219_v56 = vrot.slane %v3792_v21, 9  ;;  %v3850_v32 = vrot.slane %v3836_v23, %v9418_v62 }
 0x376   : > { %v7226_v50 = vrot.slane %v3818_v44, 9  ;;  %v5242_v61 = vmax.f32 %v3817_v12, %v7224_v28  ;;  %v5243_v18 = vmax.f32 %v3816_v41, %v7225_v13  ;;  %v5369_v14 = vmax.f32 %v10303_v37, %v5241_v53 }
 0x377   : > { %v3801_v6 = vcombine.high %v3799_v8, %v3799_v8  ;;  %v7220_v36 = vrot.slane %v3800_v1, 9  ;;  %v7221_v55 = vrot.slane %v3799_v8, 9  ;;  %v5237_v5 = vmax.f32 %v3792_v21, %v7219_v56 }
 0x378   : > { %v5244_v38 = vmax.f32 %v3818_v44, %v7226_v50  ;;  %v5370_v25 = vmax.f32 %v10306_v10, %v5242_v61  ;;  %v5371_v47 = vmax.f32 %v10308_v7, %v5243_v18  ;;  %v3851_v58 = vcombine.high %v3843_v30, %v3843_v30 }
 0x379   : > { %v7222_v60 = vrot.slane %v3801_v6, 9  ;;  %v5238_v40 = vmax.f32 %v3800_v1, %v7220_v36  ;;  %v5239_v35 = vmax.f32 %v3799_v8, %v7221_v55  ;;  %v5365_v23 = vmax.f32 %v10314_v26, %v5237_v5 }
 0x37a   : > { %v5372_v12 = vmax.f32 %v10311_v24, %v5244_v38  ;;  %v10378_v41 = vrot.slane %v5370_v25, 7  ;;  %v3852_v37 = vcombine.high %v3850_v32, %v3850_v32  ;;  %v7231_v28 = vrot.slane %v3843_v30, 9 }
 0x37b   : > { %v5240_v13 = vmax.f32 %v3801_v6, %v7222_v60  ;;  %v5366_v21 = vmax.f32 %v10318_v27, %v5238_v40  ;;  %v5367_v44 = vmax.f32 %v10320_v17, %v5239_v35  ;;  %v7232_v10 = vrot.slane %v3851_v58, 9 }
 0x37c   : > { %v5884_v7 = vsel %vm5530_vm5, %v10378_v41, %v5369_v14  ;;  %v10384_v53 = vrot.slane %v5372_v12, 7  ;;  %v7233_v8 = vrot.slane %v3850_v32, 9  ;;  %v7234_v1 = vrot.slane %v3852_v37, 9 }
 0x37d   : > { %v10388_v24 = vsel %vm5532_vm6, %v10378_v41, %v5884_v7  ;;  %v5368_v25 = vmax.f32 %v10325_v0, %v5240_v13  ;;  %v10391_v26 = vrot.slane %v5366_v21, 7  ;;  %v5249_v56 = vmax.f32 %v3843_v30, %v7231_v28  ;;  %v7671_v21 = vpop.f32.mrf.mxu1 }
 0x37e   : > { %11493 = vst [vmem:[#allocation23_spill] sm:$0xff] %v10384_v53  ;;  %v10395_v35 = vsel %vm5530_vm5, %v10384_v53, %v5371_v47  ;;  %v5250_v40 = vmax.f32 %v3851_v58, %v7232_v10  ;;  %v5251_v27 = vmax.f32 %v3850_v32, %v7233_v8  ;;  %v5252_v17 = vmax.f32 %v3852_v37, %v7234_v1 }
 0x37f   : > { %11494 = vst [vmem:[#allocation26_spill] sm:$0xff] %v10391_v26  ;;  %11495 = vst [vmem:[#allocation24_spill] sm:$0xff] %v10395_v35  ;;  %v5870_v50 = vsel %vm5530_vm5, %v10391_v26, %v5365_v23  ;;  %v10399_v61 = vrot.slane %v5368_v25, 7  ;;  %v5377_v18 = vmax.f32 %v10323_v33, %v5249_v56  ;;  %v3819_v14 = vcombine.high %v2827_v51, %v2827_v51 }
 0x380   : > { %v10404_v0 = vsel %vm5532_vm6, %v10391_v26, %v5870_v50  ;;  %v5378_v30 = vmax.f32 %v10327_v9, %v5250_v40  ;;  %v5379_v6 = vmax.f32 %v10329_v49, %v5251_v27  ;;  %v5380_v36 = vmax.f32 %v10334_v46, %v5252_v17  ;;  %v2609_v40 = vpop.f32.mrf.mxu0 }
 0x381   : > { %11496 = vst [vmem:[#allocation27_spill] sm:$0xff] %v10399_v61  ;;  %11497 = vst [vmem:[#allocation29_spill] sm:$0xff] %v10404_v0  ;;  %v10411_v32 = vsel %vm5530_vm5, %v10399_v61, %v5367_v44  ;;  %v3826_v55 = vrot.slane %v2827_v51, %v9418_v62  ;;  %v3833_v5 = vrot.slane %v3819_v14, %v9418_v62  ;;  %v2830_v33 = vmax.f32 %v10363_v45, 0.0 }
 0x382   : > { %11498 = vst [vmem:[#allocation31_spill] sm:$0xff] %v10411_v32  ;;  %v10416_v38 = vrot.slane %v5378_v30, 7  ;;  %v10418_v47 = vrot.slane %v5380_v36, 7  ;;  %v2829_v9 = vmax.f32 %v10366_v48, 0.0  ;;  %v2768_v49 = vadd.f32 %v10196_v11, %v10360_v19 }
 0x383   : > { %v3834_v46 = vcombine.high %v3826_v55, %v3826_v55  ;;  %v3835_v58 = vcombine.high %v3833_v5, %v3833_v5  ;;  %v7227_v60 = vrot.slane %v3826_v55, 9  ;;  %v7229_v23 = vrot.slane %v3833_v5, 9 }
 0x384   : > { %11499 = vst [vmem:[#allocation33_spill] sm:$0xff] %v10416_v38  ;;  %11500 = vst [vmem:[#allocation97_spill] sm:$0xff] %v10418_v47  ;;  %v5912_v51 = vsel %vm5530_vm5, %v10416_v38, %v5377_v18  ;;  %v10427_v12 = vsel %vm5530_vm5, %v10418_v47, %v5379_v6  ;;  %v3870_v45 = vcombine.high %v2830_v33, %v2830_v33 }
 0x385   : > { %11501 = vst [vmem:[#allocation98_spill] sm:$0xff] %v10427_v12  ;;  %v3877_v37 = vrot.slane %v2830_v33, %v9418_v62  ;;  %v10432_v48 = vsel %vm5532_vm6, %v10416_v38, %v5912_v51  ;;  %v7228_v28 = vrot.slane %v3834_v46, 9  ;;  %v7230_v19 = vrot.slane %v3835_v58, 9  ;;  %v7773_v51 = vpop.f32.mrf.mxu0 }
 0x386   : > { %v5245_v13 = vmax.f32 %v3826_v55, %v7227_v60  ;;  %v5247_v44 = vmax.f32 %v3833_v5, %v7229_v23  ;;  %v3884_v10 = vrot.slane %v3870_v45, %v9418_v62  ;;  %v3853_v27 = vcombine.high %v2829_v9, %v2829_v9  ;;  %v2163_v5 = vpop.f32.mrf.mxu1 }
 0x387   : > { %v3885_v7 = vcombine.high %v3877_v37, %v3877_v37  ;;  %v7111_v8 = vrot.slane %v3877_v37, 9  ;;  %v5246_v1 = vmax.f32 %v3834_v46, %v7228_v28  ;;  %v5248_v25 = vmax.f32 %v3835_v58, %v7230_v19 }
 0x388   : > { %v5373_v56 = vmax.f32 %v10331_v42, %v5245_v13  ;;  %v5375_v17 = vmax.f32 %v10336_v15, %v5247_v44  ;;  %v3886_v50 = vcombine.high %v3884_v10, %v3884_v10  ;;  %v7113_v14 = vrot.slane %v3884_v10, 9 }
 0x389   : > { %v7112_v18 = vrot.slane %v3885_v7, 9  ;;  %v5374_v30 = vmax.f32 %v10342_v63, %v5246_v1  ;;  %v5376_v6 = vmax.f32 %v10344_v43, %v5248_v25  ;;  %v10439_v36 = vmax.f32 %v3877_v37, %v7111_v8 }
 0x38a   : > { %v3860_v55 = vrot.slane %v2829_v9, %v9418_v62  ;;  %v7114_v33 = vrot.slane %v3886_v50, 9  ;;  %v10444_v42 = vmax.f32 %v3884_v10, %v7113_v14  ;;  %v3867_v58 = vrot.slane %v3853_v27, %v9418_v62  ;;  %v7674_v10 = vpop.f32.mrf.mxu1  ;;  %v2619_v27 = vpop.f32.mrf.mxu0 }
 0x38b   : > { %v10442_v46 = vmax.f32 %v3885_v7, %v7112_v18  ;;  %v10447_v15 = vrot.slane %v5374_v30, 7  ;;  %v10449_v60 = vrot.slane %v5376_v6, 7  ;;  %v2832_v9 = vmax.f32 %v2768_v49, 0.0  ;;  %v11507_v6 = vld [vmem:[#allocation37_spill] sm:$0xff] }
 0x38c   : > { %v3868_v23 = vcombine.high %v3860_v55, %v3860_v55  ;;  %v7107_v63 = vrot.slane %v3860_v55, 9  ;;  %v10451_v43 = vmax.f32 %v3886_v50, %v7114_v33  ;;  %v3869_v45 = vcombine.high %v3867_v58, %v3867_v58  ;;  %v11506_v50 = vld [vmem:[#allocation35_spill] sm:$0xff] }
 0x38d   : > { %11502 = vst [vmem:[#allocation99_spill] sm:$0xff] %v10447_v15  ;;  %11503 = vst [vmem:[#allocation100_spill] sm:$0xff] %v10449_v60  ;;  %v7109_v37 = vrot.slane %v3867_v58, 9  ;;  %v5898_v28 = vsel %vm5530_vm5, %v10447_v15, %v5373_v56  ;;  %v10457_v19 = vsel %vm5530_vm5, %v10449_v60, %v5375_v17  ;;  %v3904_v25 = vcombine.high %v2832_v9, %v2832_v9  ;;  %v11508_v33 = vld [vmem:[#allocation39_spill] sm:$0xff] }
 0x38e   : > { %11504 = vst [vmem:[#allocation101_spill] sm:$0xff] %v10457_v19  ;;  %v7108_v13 = vrot.slane %v3868_v23, 9  ;;  %v10459_v44 = vmax.f32 %v3860_v55, %v7107_v63  ;;  %v10463_v7 = vsel %vm5532_vm6, %v10447_v15, %v5898_v28  ;;  %v7110_v8 = vrot.slane %v3869_v45, 9 }
 0x38f   : > { %11505 = vst [vmem:[#allocation102_spill] sm:$0xff] %v10463_v7  ;;  %v10465_v1 = vmax.f32 %v3867_v58, %v7109_v37  ;;  %v3911_v56 = vrot.slane %v2832_v9, %v9418_v62  ;;  %v2696_v17 = vadd.f32 %v2609_v40, %v10354_v22  ;;  %v2169_v18 = vadd.f32 %v7671_v21, %v11506_v50 }
 0x390   : > { %v10467_v49 = vmax.f32 %v3868_v23, %v7108_v13  ;;  %v10472_v14 = vmax.f32 %v3869_v45, %v7110_v8  ;;  %v3918_v30 = vrot.slane %v3904_v25, %v9418_v62  ;;  %v2164_v55 = vadd.f32 %v2163_v5, %v11507_v6  ;;  %v7776_v13 = vpop.f32.mrf.mxu0  ;;  %v2173_v25 = vpop.f32.mrf.mxu1 }
 0x391   : > { %v2179_v63 = vadd.f32 %v7674_v10, %v11508_v33  ;;  %v3919_v58 = vcombine.high %v3911_v56, %v3911_v56  ;;  %v7119_v37 = vrot.slane %v3911_v56, 9  ;;  %v2767_v23 = vadd.f32 %v10196_v11, %v2696_v17 }
 0x392   : > { %v2699_v28 = vadd.f32 %v7773_v51, %v2169_v18  ;;  %v3920_v9 = vcombine.high %v3918_v30, %v3918_v30  ;;  %v7121_v60 = vrot.slane %v3918_v30, 9  ;;  %v2698_v19 = vadd.f32 %v2619_v27, %v2164_v55 }
 0x393   : > { %v2701_v22 = vadd.f32 %v7776_v13, %v2179_v63  ;;  %v7120_v40 = vrot.slane %v3919_v58, 9  ;;  %v10478_v21 = vmax.f32 %v3911_v56, %v7119_v37  ;;  %v2831_v45 = vmax.f32 %v2767_v23, 0.0  ;;  %v11509_v63 = vld [vmem:[#allocation42_spill] sm:$0xff] }
 0x394   : > { %v2770_v8 = vadd.f32 %v10196_v11, %v2699_v28  ;;  %v7122_v5 = vrot.slane %v3920_v9, 9  ;;  %v10481_v50 = vmax.f32 %v3918_v30, %v7121_v60  ;;  %v2769_v10 = vadd.f32 %v10196_v11, %v2698_v19 }
 0x395   : > { %v2772_v17 = vadd.f32 %v10196_v11, %v2701_v22  ;;  %v10485_v51 = vmax.f32 %v3919_v58, %v7120_v40  ;;  %v3887_v18 = vcombine.high %v2831_v45, %v2831_v45  ;;  %v3894_v27 = vrot.slane %v2831_v45, %v9418_v62 }
 0x396   : > { %v2834_v6 = vmax.f32 %v2770_v8, 0.0  ;;  %v10488_v55 = vmax.f32 %v3920_v9, %v7122_v5  ;;  %v2833_v56 = vmax.f32 %v2769_v10, 0.0  ;;  %v10491_v37 = vadd.f32 %v2173_v25, %v11509_v63 }
 0x397   : > { %v2836_v33 = vmax.f32 %v2772_v17, 0.0  ;;  %v3901_v60 = vrot.slane %v3887_v18, %v9418_v62  ;;  %v3902_v30 = vcombine.high %v3894_v27, %v3894_v27  ;;  %v7115_v23 = vrot.slane %v3894_v27, 9 }
 0x398   : > { %v3938_v19 = vcombine.high %v2834_v6, %v2834_v6  ;;  %v3945_v28 = vrot.slane %v2834_v6, %v9418_v62  ;;  %v3921_v58 = vcombine.high %v2833_v56, %v2833_v56  ;;  %v3928_v13 = vrot.slane %v2833_v56, %v9418_v62 }
 0x399   : > { %v3972_v22 = vcombine.high %v2836_v33, %v2836_v33  ;;  %v3903_v40 = vcombine.high %v3901_v60, %v3901_v60  ;;  %v7116_v45 = vrot.slane %v3902_v30, 9  ;;  %v7117_v9 = vrot.slane %v3901_v60, 9 }
 0x39a   : > { %v10496_v8 = vmax.f32 %v3894_v27, %v7115_v23  ;;  %v3952_v5 = vrot.slane %v3938_v19, %v9418_v62  ;;  %v3953_v25 = vcombine.high %v3945_v28, %v3945_v28  ;;  %v7239_v10 = vrot.slane %v3945_v28, 9 }
 0x39b   : > { %v3935_v17 = vrot.slane %v3921_v58, %v9418_v62  ;;  %v7118_v18 = vrot.slane %v3903_v40, 9  ;;  %v10500_v63 = vmax.f32 %v3902_v30, %v7116_v45  ;;  %v10502_v47 = vmax.f32 %v3901_v60, %v7117_v9 }
 0x39c   : > { %v3936_v6 = vcombine.high %v3928_v13, %v3928_v13  ;;  %v3954_v12 = vcombine.high %v3952_v5, %v3952_v5  ;;  %v7240_v56 = vrot.slane %v3953_v25, 9  ;;  %v7241_v61 = vrot.slane %v3952_v5, 9 }
 0x39d   : > { %v5257_v32 = vmax.f32 %v3945_v28, %v7239_v10  ;;  %v10504_v15 = vmax.f32 %v3903_v40, %v7118_v18  ;;  %v3937_v27 = vcombine.high %v3935_v17, %v3935_v17  ;;  %v7235_v23 = vrot.slane %v3928_v13, 9 }
 0x39e   : > { %v7236_v7 = vrot.slane %v3936_v6, 9  ;;  %v7242_v19 = vrot.slane %v3954_v12, 9  ;;  %v5258_v53 = vmax.f32 %v3953_v25, %v7240_v56  ;;  %v5259_v35 = vmax.f32 %v3952_v5, %v7241_v61 }
 0x39f   : > { %v5385_v58 = vmax.f32 %v10439_v36, %v5257_v32  ;;  %v7237_v26 = vrot.slane %v3935_v17, 9  ;;  %v7238_v30 = vrot.slane %v3937_v27, 9  ;;  %v5253_v45 = vmax.f32 %v3928_v13, %v7235_v23 }
 0x3a0   : > { %v5254_v60 = vmax.f32 %v3936_v6, %v7236_v7  ;;  %v5260_v9 = vmax.f32 %v3954_v12, %v7242_v19  ;;  %v5386_v0 = vmax.f32 %v10442_v46, %v5258_v53  ;;  %v5387_v38 = vmax.f32 %v10444_v42, %v5259_v35 }
 0x3a1   : > { %v3979_v28 = vrot.slane %v2836_v33, %v9418_v62  ;;  %v5255_v40 = vmax.f32 %v3935_v17, %v7237_v26  ;;  %v5256_v10 = vmax.f32 %v3937_v27, %v7238_v30  ;;  %v5381_v18 = vmax.f32 %v10459_v44, %v5253_v45 }
 0x3a2   : > { %v5382_v25 = vmax.f32 %v10467_v49, %v5254_v60  ;;  %v5388_v61 = vmax.f32 %v10451_v43, %v5260_v9  ;;  %v10513_v32 = vrot.slane %v5386_v0, 7  ;;  %v3986_v36 = vrot.slane %v3972_v22, %v9418_v62  ;;  %v2629_v22 = vpop.f32.mrf.mxu0 }
 0x3a3   : > { %v3987_v7 = vcombine.high %v3979_v28, %v3979_v28  ;;  %v5383_v12 = vmax.f32 %v10465_v1, %v5255_v40  ;;  %v5384_v53 = vmax.f32 %v10472_v14, %v5256_v10  ;;  %v7247_v46 = vrot.slane %v3979_v28, 9 }
 0x3a4   : > { %v10518_v35 = vrot.slane %v5382_v25, 7  ;;  %v5940_v26 = vsel %vm5530_vm5, %v10513_v32, %v5385_v58  ;;  %v10522_v42 = vrot.slane %v5388_v61, 7  ;;  %v3988_v44 = vcombine.high %v3986_v36, %v3986_v36 }
 0x3a5   : > { %v7248_v49 = vrot.slane %v3987_v7, 9  ;;  %v5941_v0 = vsel %vm5532_vm6, %v10513_v32, %v5940_v26  ;;  %v10528_v33 = vrot.slane %v5384_v53, 7  ;;  %v7249_v1 = vrot.slane %v3986_v36, 9 }
 0x3a6   : > { %v5926_v43 = vsel %vm5530_vm5, %v10518_v35, %v5381_v18  ;;  %v10532_v14 = vsel %vm5530_vm5, %v10522_v42, %v5387_v38  ;;  %v7250_v5 = vrot.slane %v3988_v44, 9  ;;  %v5265_v17 = vmax.f32 %v3979_v28, %v7247_v46 }
 0x3a7   : > { %v10536_v13 = vsel %vm5532_vm6, %v10518_v35, %v5926_v43  ;;  %v10540_v6 = vsel %vm5530_vm5, %v10528_v33, %v5383_v12  ;;  %v5266_v56 = vmax.f32 %v3987_v7, %v7248_v49  ;;  %v5267_v27 = vmax.f32 %v3986_v36, %v7249_v1 }
 0x3a8   : > { %v2700_v23 = vadd.f32 %v2629_v22, %v10491_v37  ;;  %v5268_v19 = vmax.f32 %v3988_v44, %v7250_v5  ;;  %v5393_v58 = vmax.f32 %v10478_v21, %v5265_v17  ;;  %v5550_v60 = vsel %vm5534_vm7, %v9486_v34, %v9501_v59 }
 0x3a9   : > { %v5394_v38 = vmax.f32 %v10485_v51, %v5266_v56  ;;  %v5395_v30 = vmax.f32 %v10481_v50, %v5267_v27  ;;  %v5551_v37 = vsel %vm5536_vm8, %v9486_v34, %v5550_v60  ;;  %v5606_v21 = vsel %vm5534_vm7, %v9619_v20, %v9630_v52 }
 0x3aa   : > { %v2771_v45 = vadd.f32 %v10196_v11, %v2700_v23  ;;  %v5396_v9 = vmax.f32 %v10488_v55, %v5268_v19  ;;  %v5662_v51 = vsel %vm5534_vm7, %v9765_v54, %v9778_v4  ;;  %v5607_v28 = vsel %vm5536_vm8, %v9619_v20, %v5606_v21  ;;  %v11511_v19 = vld [vmem:[#allocation65_spill] sm:$0xff]  ;;  %v11514_v21 = vld [vmem:[#allocation32_spill] sm:$0xff] }
 0x3ab   : > { %v10559_v50 = vrot.slane %v5394_v38, 7  ;;  %v5663_v59 = vsel %vm5536_vm8, %v9765_v54, %v5662_v51  ;;  %v5718_v34 = vsel %vm5534_vm7, %v9913_v2, %v9926_v3  ;;  %v5774_v52 = vsel %vm5534_vm7, %v10057_v16, %v10066_v39 }
 0x3ac   : > { %v2835_v11 = vmax.f32 %v2771_v45, 0.0  ;;  %v10565_v55 = vrot.slane %v5396_v9, 7  ;;  %v5830_v4 = vsel %vm5534_vm7, %v10190_v29, %v10211_v31  ;;  %v5719_v10 = vsel %vm5536_vm8, %v9913_v2, %v5718_v34  ;;  %v11513_v9 = vld [vmem:[#allocation43_spill] sm:$0xff] }
 0x3ad   : > { %v5968_v20 = vsel %vm5530_vm5, %v10559_v50, %v5393_v58  ;;  %v5775_v31 = vsel %vm5536_vm8, %v10057_v16, %v5774_v52  ;;  %v5831_v18 = vsel %vm5536_vm8, %v10190_v29, %v5830_v4  ;;  %v5886_v2 = vsel %vm5534_vm7, %v10378_v41, %v10388_v24  ;;  %v11512_v58 = vld [vmem:[#allocation63_spill] sm:$0xff] }
 0x3ae   : > { %v3955_v40 = vcombine.high %v2835_v11, %v2835_v11  ;;  %v3962_v54 = vrot.slane %v2835_v11, %v9418_v62  ;;  %v10583_v3 = vsel %vm5532_vm6, %v10559_v50, %v5968_v20  ;;  %v10587_v39 = vsel %vm5530_vm5, %v10565_v55, %v5395_v30  ;;  %v11516_v11 = vld [vmem:[#allocation21_spill] sm:$0xff] }
 0x3af   : > { %v5887_v7 = vsel %vm5536_vm8, %v10378_v41, %v5886_v2  ;;  %v5942_v12 = vsel %vm5534_vm7, %v10513_v32, %v5941_v0  ;;  %v6115_v53 = vcombine.low %v5551_v37, %v5607_v28  ;;  %v7815_v49 = vmov 1934713408   ;;  %v11510_v0 = vld [vmem:[#allocation50_spill] sm:$0xff]  ;;  %v11517_v28 = vld [vmem:[#allocation17_spill] sm:$0xff] }
 0x3b0   : > { %v3969_v25 = vrot.slane %v3955_v40, %v9418_v62  ;;  %v3970_v61 = vcombine.high %v3962_v54, %v3962_v54  ;;  %v7243_v36 = vrot.slane %v3962_v54, 9  ;;  %v5943_v29 = vsel %vm5536_vm8, %v10513_v32, %v5942_v12 }
 0x3b1   : > { %v6045_v43 = vunpack.c.l.s4 %v7815_v49  ;;  %v6124_v1 = vcombine.low %v5663_v59, %v5719_v10  ;;  %v6133_v22 = vcombine.low %v5775_v31, %v5831_v18  ;;  %v6142_v27 = vcombine.low %v5887_v7, %v5943_v29  ;;  %v11518_v31 = vld [vmem:[#allocation88_spill] sm:$0xff]  ;;  %v11519_v18 = vld [vmem:[#allocation86_spill] sm:$0xff] }
 0x3b2   : > { %v3971_v46 = vcombine.high %v3969_v25, %v3969_v25  ;;  %v7244_v16 = vrot.slane %v3970_v61, 9  ;;  %v7245_v26 = vrot.slane %v3969_v25, 9  ;;  %v5261_v44 = vmax.f32 %v3962_v54, %v7243_v36  ;;  %v11521_v36 = vld [vmem:[#allocation91_spill] sm:$0xff] }
 0x3b3   : > { %v6046_v56 = vunpack.c.0.s8 %v6045_v43  ;;  %v5578_v23 = vsel %vm5534_vm7, %v11510_v0, %v9537_v57  ;;  %v5634_v38 = vsel %vm5534_vm7, %v11512_v58, %v11511_v19  ;;  %v11515_v57 = vld [vmem:[#allocation28_spill] sm:$0xff]  ;;  %v5746_v59 = vsel %vm5534_vm7, %v11517_v28, %v11516_v11  ;;  %v11527_v11 = vld [vmem:[#allocation74_spill] sm:$0xff] }
 0x3b4   : > { %v7246_v5 = vrot.slane %v3971_v46, 9  ;;  %v5262_v24 = vmax.f32 %v3970_v61, %v7244_v16  ;;  %v5263_v17 = vmax.f32 %v3969_v25, %v7245_v26  ;;  %v5389_v41 = vmax.f32 %v10496_v8, %v5261_v44  ;;  %v11520_v61 = vld [vmem:[#allocation94_spill] sm:$0xff] }
 0x3b5   : > { %v5579_v60 = vsel %vm5536_vm8, %v11510_v0, %v5578_v23  ;;  %v10615_v8 = vsub.s32 %v6046_v56, %v11513_v9  ;;  %v5635_v37 = vsel %vm5536_vm8, %v11512_v58, %v5634_v38  ;;  %v5690_v51 = vsel %vm5534_vm7, %v11515_v57, %v11514_v21  ;;  %v11525_v9 = vld [vmem:[#allocation61_spill] sm:$0xff] }
 0x3b6   : > { %v5264_v32 = vmax.f32 %v3971_v46, %v7246_v5  ;;  %v5390_v30 = vmax.f32 %v10500_v63, %v5262_v24  ;;  %v5391_v45 = vmax.f32 %v10502_v47, %v5263_v17  ;;  %v5691_v34 = vsel %vm5536_vm8, %v11515_v57, %v5690_v51 }
 0x3b7   : > { %v5747_v52 = vsel %vm5536_vm8, %v11517_v28, %v5746_v59  ;;  %v6122_v4 = vrot.slane %v6115_v53, %v10615_v8  ;;  %v6131_v20 = vrot.slane %v6124_v1, %v10615_v8  ;;  %v6140_v40 = vrot.slane %v6133_v22, %v10615_v8  ;;  %v11522_v22 = vld [vmem:[#allocation33_spill] sm:$0xff] }
 0x3b8   : > { %v5392_v63 = vmax.f32 %v10504_v15, %v5264_v32  ;;  %v10626_v47 = vrot.slane %v5390_v30, 7  ;;  %v6149_v54 = vrot.slane %v6142_v27, %v10615_v8  ;;  %v5802_v25 = vsel %vm5534_vm7, %v11519_v18, %v11518_v31  ;;  %v11523_v32 = vld [vmem:[#allocation48_spill] sm:$0xff]  ;;  %v11528_v28 = vld [vmem:[#allocation25_spill] sm:$0xff] }
 0x3b9   : > { %v5858_v2 = vsel %vm5534_vm7, %v11521_v36, %v11520_v61  ;;  %v6429_v12 = vcombine.low %v6122_v4, %v6131_v20  ;;  %v7255_v46 = vcombine.high %v6122_v4, %v6131_v20  ;;  %v5803_v44 = vsel %vm5536_vm8, %v11519_v18, %v5802_v25  ;;  %v11524_v30 = vld [vmem:[#allocation44_spill] sm:$0xff] }
 0x3ba   : > { %v5954_v10 = vsel %vm5530_vm5, %v10626_v47, %v5389_v41  ;;  %v10638_v15 = vrot.slane %v5392_v63, 7  ;;  %v6430_v53 = vcombine.low %v6140_v40, %v6149_v54  ;;  %v7256_v26 = vcombine.high %v6140_v40, %v6149_v54  ;;  %v11529_v63 = vld [vmem:[#allocation80_spill] sm:$0xff]  ;;  %v11531_v54 = vld [vmem:[#allocation85_spill] sm:$0xff] }
 0x3bb   : > { %v10648_v7 = vsel %vm5532_vm6, %v10626_v47, %v5954_v10  ;;  %v5859_v29 = vsel %vm5536_vm8, %v11521_v36, %v5858_v2  ;;  %v6437_v49 = vrot.slane %v6429_v12, %v9418_v62  ;;  %v6461_v1 = vrot.slane %v7255_v46, %v9418_v62  ;;  %v11532_v10 = vld [vmem:[#allocation5_spill] sm:$0xff]  ;;  %v11533_v61 = vld [vmem:[#allocation16_spill] sm:$0xff]  ;;  %v11534_v36 = vld [vmem:[#allocation14_spill] sm:$0xff] }
 0x3bc   : > { %v10652_v16 = vsel %vm5530_vm5, %v10638_v15, %v5391_v45  ;;  %v6444_v43 = vrot.slane %v6430_v53, %v9418_v62  ;;  %v5914_v5 = vsel %vm5534_vm7, %v11522_v22, %v10432_v48  ;;  %v6468_v24 = vrot.slane %v7256_v26, %v9418_v62  ;;  %v11535_v12 = vld [vmem:[#allocation29_spill] sm:$0xff]  ;;  %v11536_v53 = vld [vmem:[#allocation26_spill] sm:$0xff] }
 0x3bd   : > { %v5915_v17 = vsel %vm5536_vm8, %v11522_v22, %v5914_v5  ;;  %v5970_v41 = vsel %vm5534_vm7, %v10559_v50, %v10583_v3  ;;  %v6259_v56 = vcombine.low %v5579_v60, %v5635_v37  ;;  %v6268_v23 = vcombine.low %v5691_v34, %v5747_v52  ;;  %v11526_v37 = vld [vmem:[#allocation59_spill] sm:$0xff]  ;;  %v11530_v34 = vld [vmem:[#allocation40_spill] sm:$0xff] }
 0x3be   : > { %v6445_v27 = vcombine.low %v6437_v49, %v6444_v43  ;;  %v5971_v0 = vsel %vm5536_vm8, %v10559_v50, %v5970_v41  ;;  %v6277_v19 = vcombine.low %v5803_v44, %v5859_v29  ;;  %v6469_v58 = vcombine.low %v6461_v1, %v6468_v24 }
 0x3bf   : > { %v6266_v38 = vrot.slane %v6259_v56, %v10615_v8  ;;  %v6286_v48 = vcombine.low %v5915_v17, %v5971_v0  ;;  %v5535_v45 = vsel %vm5534_vm7, %v11524_v30, %v11523_v32  ;;  %v6275_v3 = vrot.slane %v6268_v23, %v10615_v8 }
 0x3c0   : > { %6446 = vrot.lane.b32.xlu0 %v6445_v27, %s7816_s19  ;;  %v6284_v60 = vrot.slane %v6277_v19, %v10615_v8  ;;  %v5537_v50 = vsel %vm5536_vm8, %v11524_v30, %v5535_v45  ;;  %v5592_v21 = vsel %vm5534_vm7, %v11526_v37, %v11525_v9  ;;  %v5648_v59 = vsel %vm5534_vm7, %v11528_v28, %v11527_v11  ;;  %v11537_v19 = vld [vmem:[#allocation47_spill] sm:$0xff]  ;;  %v11541_v9 = vld [vmem:[#allocation73_spill] sm:$0xff] }
 0x3c1   : > { %v6293_v57 = vrot.slane %v6286_v48, %v10615_v8  ;;  %v5593_v51 = vsel %vm5536_vm8, %v11526_v37, %v5592_v21  ;;  %v5704_v52 = vsel %vm5534_vm7, %v11530_v34, %v11529_v63  ;;  %v6619_v4 = vcombine.low %v6266_v38, %v6275_v3  ;;  %v11542_v37 = vld [vmem:[#allocation71_spill] sm:$0xff] }
 0x3c2   : > { %v5649_v20 = vsel %vm5536_vm8, %v11528_v28, %v5648_v59  ;;  %v5705_v40 = vsel %vm5536_vm8, %v11530_v34, %v5704_v52  ;;  %v5760_v31 = vsel %vm5534_vm7, %v11532_v10, %v11531_v54  ;;  %v5816_v2 = vsel %vm5534_vm7, %v11534_v36, %v11533_v61  ;;  %v11543_v52 = vld [vmem:[#allocation41_spill] sm:$0xff] }
 0x3c3   : > { %v6620_v18 = vcombine.low %v6284_v60, %v6293_v57  ;;  %v5761_v25 = vsel %vm5536_vm8, %v11532_v10, %v5760_v31  ;;  %v5872_v46 = vsel %vm5534_vm7, %v11536_v53, %v11535_v12  ;;  %v6627_v26 = vrot.slane %v6619_v4, %v9418_v62  ;;  %v11544_v4 = vld [vmem:[#allocation38_spill] sm:$0xff]  ;;  %v11545_v31 = vld [vmem:[#allocation4_spill] sm:$0xff] }
 0x3c4   : > { %6470 = vrot.lane.b32.xlu0 %v6469_v58, %s7817_s20  ;;  %v5817_v44 = vsel %vm5536_vm8, %v11534_v36, %v5816_v2  ;;  %v5873_v29 = vsel %vm5536_vm8, %v11536_v53, %v5872_v46  ;;  %v5928_v49 = vsel %vm5534_vm7, %v10518_v35, %v10536_v13  ;;  %v6043_v22 = vcombine.low %v5537_v50, %v5593_v51  ;;  %v11538_v13 = vld [vmem:[#allocation45_spill] sm:$0xff]  ;;  %v11548_v12 = vld [vmem:[#allocation12_spill] sm:$0xff] }
 0x3c5   : > { %v6634_v43 = vrot.slane %v6620_v18, %v9418_v62  ;;  %v5929_v1 = vsel %vm5536_vm8, %v10518_v35, %v5928_v49  ;;  %v6052_v5 = vcombine.low %v5649_v20, %v5705_v40  ;;  %v6061_v24 = vcombine.low %v5761_v25, %v5817_v44  ;;  %v11546_v18 = vld [vmem:[#allocation3_spill] sm:$0xff]  ;;  %v11547_v2 = vld [vmem:[#allocation13_spill] sm:$0xff]  ;;  %v11549_v46 = vld [vmem:[#allocation24_spill] sm:$0xff] }
 0x3c6   : > { %v6070_v17 = vcombine.low %v5873_v29, %v5929_v1  ;;  %v7263_v41 = vcombine.high %v6266_v38, %v6275_v3  ;;  %v7264_v56 = vcombine.high %v6284_v60, %v6293_v57  ;;  %v10721_v0 = vrot.slane %v6043_v22, %v10615_v8  ;;  %v11539_v3 = vld [vmem:[#allocation58_spill] sm:$0xff]  ;;  %v11540_v60 = vld [vmem:[#allocation57_spill] sm:$0xff] }
 0x3c7   : > { %v6635_v27 = vcombine.low %v6627_v26, %v6634_v43  ;;  %v10724_v23 = vrot.slane %v6052_v5, %v10615_v8  ;;  %v5556_v58 = vsel %vm5532_vm6, %v11538_v13, %v11537_v19  ;;  %v10730_v48 = vrot.slane %v6061_v24, %v10615_v8  ;;  %v11550_v26 = vld [vmem:[#allocation23_spill] sm:$0xff] }
 0x3c8   : > { %v10733_v35 = vrot.slane %v6070_v17, %v10615_v8  ;;  %v6651_v38 = vrot.slane %v7263_v41, %v9418_v62  ;;  %v6658_v32 = vrot.slane %v7264_v56, %v9418_v62  ;;  %v5557_v45 = vsel %vm5534_vm7, %v11538_v13, %v5556_v58  ;;  %v11551_v19 = vld [vmem:[#allocation55_spill] sm:$0xff] }
 0x3c9   : > { %6636 = vrot.lane.b32.xlu1 %v6635_v27, %s7816_s19  ;;  %v7251_v30 = vcombine.high %v10721_v0, %v10724_v23  ;;  %v5612_v50 = vsel %vm5532_vm6, %v11540_v60, %v11539_v3  ;;  %v5668_v21 = vsel %vm5532_vm6, %v11542_v37, %v11541_v9  ;;  %v5558_v11 = vsel %vm5536_vm8, %v11538_v13, %v5557_v45  ;;  %v11552_v13 = vld [vmem:[#allocation53_spill] sm:$0xff]  ;;  %v11554_v45 = vld [vmem:[#allocation67_spill] sm:$0xff] }
 0x3ca   : > { %v7252_v57 = vcombine.high %v10730_v48, %v10733_v35  ;;  %v6659_v51 = vcombine.low %v6651_v38, %v6658_v32  ;;  %v5613_v28 = vsel %vm5534_vm7, %v11540_v60, %v5612_v50  ;;  %v5669_v34 = vsel %vm5534_vm7, %v11542_v37, %v5668_v21  ;;  %v11556_v21 = vld [vmem:[#allocation36_spill] sm:$0xff] }
 0x3cb   : > { %v6365_v59 = vrot.slane %v7251_v30, %v9418_v62  ;;  %v5614_v63 = vsel %vm5536_vm8, %v11540_v60, %v5613_v28  ;;  %v5724_v20 = vsel %vm5532_vm6, %v11544_v4, %v11543_v52  ;;  %v5670_v54 = vsel %vm5536_vm8, %v11542_v37, %v5669_v34  ;;  %v11553_v30 = vld [vmem:[#allocation69_spill] sm:$0xff]  ;;  %v11561_v52 = vld [vmem:[#allocation22_spill] sm:$0xff] }
 0x3cc   : > { %v6372_v40 = vrot.slane %v7252_v57, %v9418_v62  ;;  %v5725_v10 = vsel %vm5534_vm7, %v11544_v4, %v5724_v20  ;;  %v5780_v25 = vsel %vm5532_vm6, %v11546_v18, %v11545_v31  ;;  %v5836_v53 = vsel %vm5532_vm6, %v11548_v12, %v11547_v2  ;;  %v11555_v37 = vld [vmem:[#allocation77_spill] sm:$0xff] }
 0x3cd   : > { %6660 = vrot.lane.b32.xlu1 %v6659_v51, %s7817_s20  ;;  %v5726_v61 = vsel %vm5536_vm8, %v11544_v4, %v5725_v10  ;;  %v5781_v36 = vsel %vm5534_vm7, %v11546_v18, %v5780_v25  ;;  %v5892_v44 = vsel %vm5532_vm6, %v11550_v26, %v11549_v46  ;;  %v5837_v43 = vsel %vm5534_vm7, %v11548_v12, %v5836_v53  ;;  %v11557_v51 = vld [vmem:[#allocation83_spill] sm:$0xff]  ;;  %v11562_v4 = vld [vmem:[#allocation18_spill] sm:$0xff] }
 0x3ce   : > { %v6373_v29 = vcombine.low %v6365_v59, %v6372_v40  ;;  %v5782_v49 = vsel %vm5536_vm8, %v11546_v18, %v5781_v36  ;;  %v5893_v1 = vsel %vm5534_vm7, %v11550_v26, %v5892_v44  ;;  %v5838_v22 = vsel %vm5536_vm8, %v11548_v12, %v5837_v43  ;;  %v11559_v59 = vld [vmem:[#allocation11_spill] sm:$0xff] }
 0x3cf   : > { %v5894_v5 = vsel %vm5536_vm8, %v11550_v26, %v5893_v1  ;;  %v5948_v24 = vsel %vm5532_vm6, %v10522_v42, %v10532_v14  ;;  %v6151_v17 = vcombine.low %v5558_v11, %v5614_v63  ;;  %v6160_v56 = vcombine.low %v5670_v54, %v5726_v61  ;;  %v11558_v11 = vld [vmem:[#allocation2_spill] sm:$0xff]  ;;  %v11560_v63 = vld [vmem:[#allocation9_spill] sm:$0xff]  ;;  %v11564_v36 = vld [vmem:[#allocation99_spill] sm:$0xff] }
 0x3d0   : > { %6374 = vrot.lane.b32.xlu0 %v6373_v29, %s7812_s24  ;;  %v5949_v41 = vsel %vm5534_vm7, %v10522_v42, %v5948_v24  ;;  %v6169_v27 = vcombine.low %v5782_v49, %v5838_v22  ;;  %v5564_v58 = vsel %vm5534_vm7, %v11552_v13, %v11551_v19  ;;  %v5620_v3 = vsel %vm5534_vm7, %v11554_v45, %v11553_v30  ;;  %v11563_v61 = vld [vmem:[#allocation102_spill] sm:$0xff]  ;;  %v11570_v19 = vld [vmem:[#allocation72_spill] sm:$0xff] }
 0x3d1   : > { %v5950_v38 = vsel %vm5536_vm8, %v10522_v42, %v5949_v41  ;;  %v10803_v32 = vrot.slane %v6151_v17, %v10615_v8  ;;  %v5565_v14 = vsel %vm5536_vm8, %v11552_v13, %v5564_v58  ;;  %v10811_v60 = vrot.slane %v6160_v56, %v10615_v8  ;;  %v11566_v24 = vld [vmem:[#allocation46_spill] sm:$0xff]  ;;  %v11568_v41 = vld [vmem:[#allocation60_spill] sm:$0xff] }
 0x3d2   : > { %v10814_v50 = vrot.slane %v6169_v27, %v10615_v8  ;;  %v6178_v9 = vcombine.low %v5894_v5, %v5950_v38  ;;  %v5621_v42 = vsel %vm5536_vm8, %v11554_v45, %v5620_v3  ;;  %v5676_v57 = vsel %vm5534_vm7, %v11556_v21, %v11555_v37  ;;  %v11565_v5 = vld [vmem:[#allocation49_spill] sm:$0xff]  ;;  %v11567_v17 = vld [vmem:[#allocation62_spill] sm:$0xff]  ;;  %v11569_v27 = vld [vmem:[#allocation75_spill] sm:$0xff] }
 0x3d3   : > { %v5732_v28 = vsel %vm5534_vm7, %v11558_v11, %v11557_v51  ;;  %v5788_v34 = vsel %vm5534_vm7, %v11560_v63, %v11559_v59  ;;  %v5844_v20 = vsel %vm5534_vm7, %v11562_v4, %v11561_v52  ;;  %v6477_v54 = vcombine.low %v10803_v32, %v10811_v60 }
 0x3d4   : > { %v10831_v40 = vrot.slane %v6178_v9, %v10615_v8  ;;  %v5677_v10 = vsel %vm5536_vm8, %v11556_v21, %v5676_v57  ;;  %v5733_v31 = vsel %vm5536_vm8, %v11558_v11, %v5732_v28  ;;  %v5789_v18 = vsel %vm5536_vm8, %v11560_v63, %v5788_v34  ;;  %v11571_v11 = vld [vmem:[#allocation81_spill] sm:$0xff]  ;;  %v11572_v28 = vld [vmem:[#allocation79_spill] sm:$0xff] }
 0x3d5   : > { %v5845_v25 = vsel %vm5536_vm8, %v11562_v4, %v5844_v20  ;;  %v5900_v2 = vsel %vm5534_vm7, %v11564_v36, %v11563_v61  ;;  %v5956_v12 = vsel %vm5534_vm7, %v10626_v47, %v10648_v7  ;;  %v6485_v46 = vrot.slane %v6477_v54, %v9418_v62  ;;  %v11573_v63 = vld [vmem:[#allocation87_spill] sm:$0xff]  ;;  %v11575_v4 = vld [vmem:[#allocation92_spill] sm:$0xff] }
 0x3d6   : > { %v6478_v53 = vcombine.low %v10814_v50, %v10831_v40  ;;  %v5901_v26 = vsel %vm5536_vm8, %v11564_v36, %v5900_v2  ;;  %v5957_v44 = vsel %vm5536_vm8, %v10626_v47, %v5956_v12  ;;  %v6187_v29 = vcombine.low %v5565_v14, %v5621_v42  ;;  %v11574_v34 = vld [vmem:[#allocation7_spill] sm:$0xff] }
 0x3d7   : > { %v6196_v49 = vcombine.low %v5677_v10, %v5733_v31  ;;  %v6205_v43 = vcombine.low %v5789_v18, %v5845_v25  ;;  %v6214_v1 = vcombine.low %v5901_v26, %v5957_v44  ;;  %v5542_v7 = vsel %vm5532_vm6, %v11566_v24, %v11565_v5  ;;  %v11576_v20 = vld [vmem:[#allocation15_spill] sm:$0xff] }
 0x3d8   : > { %v6492_v22 = vrot.slane %v6478_v53, %v9418_v62  ;;  %v5598_v56 = vsel %vm5532_vm6, %v11568_v41, %v11567_v17  ;;  %v5654_v13 = vsel %vm5532_vm6, %v11570_v19, %v11569_v27  ;;  %v10867_v47 = vrot.slane %v6187_v29, %v10615_v8  ;;  %v11577_v12 = vld [vmem:[#allocation31_spill] sm:$0xff]  ;;  %v11579_v17 = vld [vmem:[#allocation52_spill] sm:$0xff]  ;;  %v11581_v27 = vld [vmem:[#allocation66_spill] sm:$0xff] }
 0x3d9   : > { %v10870_v58 = vrot.slane %v6196_v49, %v10615_v8  ;;  %v10873_v38 = vrot.slane %v6205_v43, %v10615_v8  ;;  %v10876_v14 = vrot.slane %v6214_v1, %v10615_v8  ;;  %v5543_v45 = vsel %vm5534_vm7, %v11566_v24, %v5542_v7  ;;  %v11578_v53 = vld [vmem:[#allocation27_spill] sm:$0xff] }
 0x3da   : > { %v6493_v30 = vcombine.low %v6485_v46, %v6492_v22  ;;  %v5599_v3 = vsel %vm5534_vm7, %v11568_v41, %v5598_v56  ;;  %v5655_v9 = vsel %vm5534_vm7, %v11570_v19, %v5654_v13  ;;  %v5544_v21 = vsel %vm5536_vm8, %v11566_v24, %v5543_v45 }
 0x3db   : > { %v7259_v42 = vcombine.high %v10867_v47, %v10870_v58  ;;  %v7260_v37 = vcombine.high %v10873_v38, %v10876_v14  ;;  %v5600_v57 = vsel %vm5536_vm8, %v11568_v41, %v5599_v3  ;;  %v5656_v51 = vsel %vm5536_vm8, %v11570_v19, %v5655_v9  ;;  %v11580_v41 = vld [vmem:[#allocation51_spill] sm:$0xff] }
 0x3dc   : > { %6494 = vrot.lane.b32.xlu0 %v6493_v30, %s7818_s21  ;;  %v5710_v59 = vsel %vm5532_vm6, %v11572_v28, %v11571_v11  ;;  %v5766_v52 = vsel %vm5532_vm6, %v11574_v34, %v11573_v63  ;;  %v5822_v54 = vsel %vm5532_vm6, %v11576_v20, %v11575_v4  ;;  %v5878_v46 = vsel %vm5532_vm6, %v11578_v53, %v11577_v12 }
 0x3dd   : > { %v6555_v10 = vrot.slane %v7259_v42, %v9418_v62  ;;  %v6562_v31 = vrot.slane %v7260_v37, %v9418_v62  ;;  %v5711_v18 = vsel %vm5534_vm7, %v11572_v28, %v5710_v59  ;;  %v5767_v25 = vsel %vm5534_vm7, %v11574_v34, %v5766_v52  ;;  %v11583_v37 = vld [vmem:[#allocation34_spill] sm:$0xff] }
 0x3de   : > { %v5712_v61 = vsel %vm5536_vm8, %v11572_v28, %v5711_v18  ;;  %v5768_v36 = vsel %vm5536_vm8, %v11574_v34, %v5767_v25  ;;  %v5823_v2 = vsel %vm5534_vm7, %v11576_v20, %v5822_v54  ;;  %v5879_v29 = vsel %vm5534_vm7, %v11578_v53, %v5878_v46  ;;  %v11585_v34 = vld [vmem:[#allocation20_spill] sm:$0xff]  ;;  %v11586_v52 = vld [vmem:[#allocation6_spill] sm:$0xff]  ;;  %v11590_v18 = vld [vmem:[#allocation93_spill] sm:$0xff] }
 0x3df   : > { %v6563_v26 = vcombine.low %v6555_v10, %v6562_v31  ;;  %v5824_v44 = vsel %vm5536_vm8, %v11576_v20, %v5823_v2  ;;  %v5934_v49 = vsel %vm5532_vm6, %v10528_v33, %v10540_v6  ;;  %v5880_v43 = vsel %vm5536_vm8, %v11578_v53, %v5879_v29  ;;  %v11582_v6 = vld [vmem:[#allocation64_spill] sm:$0xff]  ;;  %v11587_v20 = vld [vmem:[#allocation89_spill] sm:$0xff]  ;;  %v11589_v31 = vld [vmem:[#allocation95_spill] sm:$0xff] }
 0x3e0   : > { %v5935_v1 = vsel %vm5534_vm7, %v10528_v33, %v5934_v49  ;;  %v6079_v22 = vcombine.low %v5544_v21, %v5600_v57  ;;  %v6088_v5 = vcombine.low %v5656_v51, %v5712_v61  ;;  %v6097_v7 = vcombine.low %v5768_v36, %v5824_v44  ;;  %v11584_v21 = vld [vmem:[#allocation30_spill] sm:$0xff]  ;;  %v11588_v54 = vld [vmem:[#allocation8_spill] sm:$0xff]  ;;  %v11592_v29 = vld [vmem:[#allocation97_spill] sm:$0xff] }
 0x3e1   : > { %6564 = vrot.lane.b32.xlu1 %v6563_v26, %s7812_s24  ;;  %v5936_v24 = vsel %vm5536_vm8, %v10528_v33, %v5935_v1  ;;  %v5584_v56 = vsel %vm5532_vm6, %v11580_v41, %v11579_v17  ;;  %v5640_v19 = vsel %vm5532_vm6, %v11582_v6, %v11581_v27  ;;  %v5696_v57 = vsel %vm5532_vm6, %v11584_v21, %v11583_v37  ;;  %v11591_v44 = vld [vmem:[#allocation98_spill] sm:$0xff]  ;;  %s7821_s24 = smov 112  }
 0x3e2   : > { %v6086_v13 = vrot.slane %v6079_v22, %v10615_v8  ;;  %v6095_v30 = vrot.slane %v6088_v5, %v10615_v8  ;;  %v6106_v45 = vcombine.low %v5880_v43, %v5936_v24  ;;  %v5585_v3 = vsel %vm5534_vm7, %v11580_v41, %v5584_v56 }
 0x3e3   : > { %v6104_v9 = vrot.slane %v6097_v7, %v10615_v8  ;;  %v5586_v33 = vsel %vm5536_vm8, %v11580_v41, %v5585_v3  ;;  %v5641_v42 = vsel %vm5534_vm7, %v11582_v6, %v5640_v19  ;;  %v5697_v59 = vsel %vm5534_vm7, %v11584_v21, %v5696_v57  ;;  %v11596_v57 = vld [vmem:[#allocation68_spill] sm:$0xff] }
 0x3e4   : > { %v6113_v51 = vrot.slane %v6106_v45, %v10615_v8  ;;  %v6381_v11 = vcombine.low %v6086_v13, %v6095_v30  ;;  %v5642_v28 = vsel %vm5536_vm8, %v11582_v6, %v5641_v42  ;;  %v5698_v63 = vsel %vm5536_vm8, %v11584_v21, %v5697_v59  ;;  %v11593_v21 = vld [vmem:[#allocation56_spill] sm:$0xff] }
 0x3e5   : > { %v5752_v4 = vsel %vm5532_vm6, %v11586_v52, %v11585_v34  ;;  %v5808_v10 = vsel %vm5532_vm6, %v11588_v54, %v11587_v20  ;;  %v5864_v25 = vsel %vm5532_vm6, %v11590_v18, %v11589_v31  ;;  %v5920_v49 = vsel %vm5532_vm6, %v11592_v29, %v11591_v44  ;;  %v11603_v44 = vld [vmem:[#allocation96_spill] sm:$0xff] }
 0x3e6   : > { %v6382_v61 = vcombine.low %v6104_v9, %v6113_v51  ;;  %v6389_v36 = vrot.slane %v6381_v11, %v9418_v62  ;;  %v5753_v2 = vsel %vm5534_vm7, %v11586_v52, %v5752_v4  ;;  %v5809_v12 = vsel %vm5534_vm7, %v11588_v54, %v5808_v10  ;;  %v11598_v4 = vld [vmem:[#allocation76_spill] sm:$0xff]  ;;  %v11600_v10 = vld [vmem:[#allocation82_spill] sm:$0xff] }
 0x3e7   : > { %v5754_v53 = vsel %vm5536_vm8, %v11586_v52, %v5753_v2  ;;  %v5810_v46 = vsel %vm5536_vm8, %v11588_v54, %v5809_v12  ;;  %v5865_v26 = vsel %vm5534_vm7, %v11590_v18, %v5864_v25  ;;  %v5921_v22 = vsel %vm5534_vm7, %v11592_v29, %v5920_v49  ;;  %v11597_v52 = vld [vmem:[#allocation78_spill] sm:$0xff]  ;;  %v11599_v54 = vld [vmem:[#allocation84_spill] sm:$0xff] }
 0x3e8   : > { %v6396_v43 = vrot.slane %v6382_v61, %v9418_v62  ;;  %v5866_v1 = vsel %vm5536_vm8, %v11590_v18, %v5865_v26  ;;  %v5976_v5 = vsel %vm5532_vm6, %v10565_v55, %v10587_v39  ;;  %v5922_v24 = vsel %vm5536_vm8, %v11592_v29, %v5921_v22  ;;  %v11604_v29 = vld [vmem:[#allocation19_spill] sm:$0xff] }
 0x3e9   : > { %v5977_v7 = vsel %vm5534_vm7, %v10565_v55, %v5976_v5  ;;  %v6295_v17 = vcombine.low %v5586_v33, %v5642_v28  ;;  %v6304_v41 = vcombine.low %v5698_v63, %v5754_v53  ;;  %v6313_v6 = vcombine.low %v5810_v46, %v5866_v1  ;;  %v11601_v53 = vld [vmem:[#allocation90_spill] sm:$0xff] }
 0x3ea   : > { %v6397_v56 = vcombine.low %v6389_v36, %v6396_v43  ;;  %v5978_v27 = vsel %vm5536_vm8, %v10565_v55, %v5977_v7  ;;  %v7253_v19 = vcombine.high %v6086_v13, %v6095_v30  ;;  %v7254_v42 = vcombine.high %v6104_v9, %v6113_v51  ;;  %v11594_v55 = vld [vmem:[#allocation54_spill] sm:$0xff] }
 0x3eb   : > { %v10996_v45 = vrot.slane %v6295_v17, %v10615_v8  ;;  %v10999_v3 = vrot.slane %v6304_v41, %v10615_v8  ;;  %v6322_v39 = vcombine.low %v5922_v24, %v5978_v27  ;;  %v11003_v33 = vrot.slane %v6313_v6, %v10615_v8  ;;  %v11595_v30 = vld [vmem:[#allocation70_spill] sm:$0xff]  ;;  %v11605_v17 = vld [vmem:[#allocation101_spill] sm:$0xff]  ;;  %v11606_v41 = vld [vmem:[#allocation100_spill] sm:$0xff] }
 0x3ec   : > { %6398 = vrot.lane.b32.xlu0 %v6397_v56, %s7819_s22  ;;  %v6413_v37 = vrot.slane %v7253_v19, %v9418_v62  ;;  %v5570_v13 = vsel %vm5532_vm6, %v11594_v55, %v11593_v21  ;;  %v5626_v11 = vsel %vm5532_vm6, %v11596_v57, %v11595_v30  ;;  %v6420_v51 = vrot.slane %v7254_v42, %v9418_v62  ;;  %v11602_v46 = vld [vmem:[#allocation10_spill] sm:$0xff] }
 0x3ed   : > { %v11013_v28 = vrot.slane %v6322_v39, %v10615_v8  ;;  %v6667_v9 = vcombine.low %v10996_v45, %v10999_v3  ;;  %v5571_v59 = vsel %vm5534_vm7, %v11594_v55, %v5570_v13  ;;  %v5627_v34 = vsel %vm5534_vm7, %v11596_v57, %v5626_v11 }
 0x3ee   : > { %v5572_v63 = vsel %vm5536_vm8, %v11594_v55, %v5571_v59  ;;  %v5682_v20 = vsel %vm5532_vm6, %v11598_v4, %v11597_v52  ;;  %v5738_v31 = vsel %vm5532_vm6, %v11600_v10, %v11599_v54  ;;  %v6421_v61 = vcombine.low %v6413_v37, %v6420_v51 }
 0x3ef   : > { %v6668_v18 = vcombine.low %v11003_v33, %v11013_v28  ;;  %v6675_v25 = vrot.slane %v6667_v9, %v9418_v62  ;;  %v5628_v36 = vsel %vm5536_vm8, %v11596_v57, %v5627_v34  ;;  %v5683_v2 = vsel %vm5534_vm7, %v11598_v4, %v5682_v20 }
 0x3f0   : > { %v5739_v12 = vsel %vm5534_vm7, %v11600_v10, %v5738_v31  ;;  %v5794_v26 = vsel %vm5532_vm6, %v11602_v46, %v11601_v53  ;;  %v5850_v49 = vsel %vm5532_vm6, %v11604_v29, %v11603_v44  ;;  %6422 = vrot.lane.b32.xlu0 %v6421_v61, %s7820_s23  ;;  %v5684_v1 = vsel %vm5536_vm8, %v11598_v4, %v5683_v2 }
 0x3f1   : > { %v6682_v43 = vrot.slane %v6668_v18, %v9418_v62  ;;  %v5740_v22 = vsel %vm5536_vm8, %v11600_v10, %v5739_v12  ;;  %v5795_v5 = vsel %vm5534_vm7, %v11602_v46, %v5794_v26  ;;  %v5851_v7 = vsel %vm5534_vm7, %v11604_v29, %v5850_v49 }
 0x3f2   : > { %v5796_v24 = vsel %vm5536_vm8, %v11602_v46, %v5795_v5  ;;  %v5906_v56 = vsel %vm5532_vm6, %v11606_v41, %v11605_v17  ;;  %v5962_v27 = vsel %vm5532_vm6, %v10638_v15, %v10652_v16  ;;  %v5852_v19 = vsel %vm5536_vm8, %v11604_v29, %v5851_v7 }
 0x3f3   : > { %v6683_v6 = vcombine.low %v6675_v25, %v6682_v43  ;;  %v5907_v39 = vsel %vm5534_vm7, %v11606_v41, %v5906_v56  ;;  %v5963_v42 = vsel %vm5534_vm7, %v10638_v15, %v5962_v27  ;;  %v6223_v55 = vcombine.low %v5572_v63, %v5628_v36 }
 0x3f4   : > { %v5908_v37 = vsel %vm5536_vm8, %v11606_v41, %v5907_v39  ;;  %v5964_v21 = vsel %vm5536_vm8, %v10638_v15, %v5963_v42  ;;  %v6232_v13 = vcombine.low %v5684_v1, %v5740_v22  ;;  %v6241_v16 = vcombine.low %v5796_v24, %v5852_v19 }
 0x3f5   : > { %6684 = vrot.lane.b32.xlu1 %v6683_v6, %s7818_s21  ;;  %v6250_v30 = vcombine.low %v5908_v37, %v5964_v21  ;;  %v7257_v57 = vcombine.high %v10803_v32, %v10811_v60  ;;  %v7258_v11 = vcombine.high %v10814_v50, %v10831_v40  ;;  %v6230_v9 = vrot.slane %v6223_v55, %v10615_v8 }
 0x3f6   : > { %v6239_v51 = vrot.slane %v6232_v13, %v10615_v8  ;;  %v7265_v59 = vcombine.high %v10996_v45, %v10999_v3  ;;  %v6248_v15 = vrot.slane %v6241_v16, %v10615_v8  ;;  %v6335_v40 = vcombine.low %v10721_v0, %v10724_v23 }
 0x3f7   : > { %v6257_v63 = vrot.slane %v6250_v30, %v10615_v8  ;;  %v6509_v34 = vrot.slane %v7257_v57, %v9418_v62  ;;  %v6516_v52 = vrot.slane %v7258_v11, %v9418_v62  ;;  %v6336_v45 = vcombine.low %v10730_v48, %v10733_v35 }
 0x3f8   : > { %v6571_v4 = vcombine.low %v6230_v9, %v6239_v51  ;;  %v7261_v32 = vcombine.high %v6230_v9, %v6239_v51  ;;  %v6525_v31 = vcombine.low %v10867_v47, %v10870_v58  ;;  %v6343_v18 = vrot.slane %v6335_v40, %v9418_v62 }
 0x3f9   : > { %v6572_v60 = vcombine.low %v6248_v15, %v6257_v63  ;;  %v6517_v20 = vcombine.low %v6509_v34, %v6516_v52  ;;  %v7262_v50 = vcombine.high %v6248_v15, %v6257_v63  ;;  %v6350_v0 = vrot.slane %v6336_v45, %v9418_v62 }
 0x3fa   : > { %v6579_v54 = vrot.slane %v6571_v4, %v9418_v62  ;;  %v6603_v8 = vrot.slane %v7261_v32, %v9418_v62  ;;  %v6526_v23 = vcombine.low %v10873_v38, %v10876_v14  ;;  %v7266_v35 = vcombine.high %v11003_v33, %v11013_v28 }
 0x3fb   : > { %v6586_v3 = vrot.slane %v6572_v60, %v9418_v62  ;;  %6518 = vrot.lane.b32.xlu0 %v6517_v20, %s7821_s24  ;;  %v6610_v10 = vrot.slane %v7262_v50, %v9418_v62  ;;  %v6351_v61 = vcombine.low %v6343_v18, %v6350_v0  ;;  %v6533_v36 = vrot.slane %v6525_v31, %v9418_v62 }
 0x3fc   : > { %v6540_v2 = vrot.slane %v6526_v23, %v9418_v62  ;;  %v6706_v58 = vrot.slane %v7266_v35, %v9418_v62  ;;  %v6699_v12 = vrot.slane %v7265_v59, %v9418_v62 }
 0x3fd   : > { %v6587_v25 = vcombine.low %v6579_v54, %v6586_v3  ;;  %v6611_v48 = vcombine.low %v6603_v8, %v6610_v10 }
 0x3fe   : > { %v6541_v47 = vcombine.low %v6533_v36, %v6540_v2  ;;  %v6707_v38 = vcombine.low %v6699_v12, %v6706_v58 }
 0x3ff   : > { %6588 = vrot.lane.b32.xlu1 %v6587_v25, %s7819_s22 }
 0x403   : > { %6612 = vrot.lane.b32.xlu1 %v6611_v48, %s7820_s23 }
 0x407   : > { %6708 = vrot.lane.b32.xlu1 %v6707_v38, %s7821_s24 }
 0x432   : > { %v6447_v14 = vpop.permute.xlu0 %6446 }
 0x436   : > { %v6471_v53 = vpop.permute.xlu0 %6470 }
 0x43b   : > { %v6637_v28 = vpop.permute.xlu1 %6636 }
 0x43f   : > { %v6661_v44 = vpop.permute.xlu1 %6660 }
 0x442   : > { %v6375_v46 = vpop.permute.xlu0 %6374 }
 0x443   : > { %v6711_v29 = vsel %vm1080_vm3, %v6351_v61, %v6375_v46 }
 0x44e   : > { %v6495_v33 = vpop.permute.xlu0 %6494 }
 0x453   : > { %v6565_v1 = vpop.permute.xlu1 %6564 }
 0x454   : > { %v6724_v27 = vsel %vm1080_vm3, %v6541_v47, %v6565_v1 }
 0x45e   : > { %v6399_v26 = vpop.permute.xlu0 %6398 }
 0x45f   : > { %v6713_v49 = vsel %vm6712_vm9, %v6711_v29, %v6399_v26 }
 0x462   : > { %v6423_v43 = vpop.permute.xlu0 %6422 }
 0x463   : > { %v6715_v62 = vsel %vm6714_vm10, %v6713_v49, %v6423_v43 }
 0x464   : > { %v6717_v22 = vsel %vm6716_vm11, %v6715_v62, %v6447_v14 }
 0x465   : > { %v6719_v5 = vsel %vm6718_vm12, %v6717_v22, %v6471_v53 }
 0x466   : > { %v6721_v7 = vsel %vm6720_vm13, %v6719_v5, %v6495_v33 }
 0x467   : > { %v6685_v24 = vpop.permute.xlu1 %6684 }
 0x46d   : > { %v6519_v17 = vpop.permute.xlu0 %6518 }
 0x46e   : > { %v6723_v41 = vsel %vm6722_vm14, %v6721_v7, %v6519_v17 }
 0x46f   : > { %6731 = vst [vmem:[%s170_s28] sm:$0xff] %v6723_v41 }
 0x471   : > { %v6589_v56 = vpop.permute.xlu1 %6588 }
 0x472   : > { %v6725_v6 = vsel %vm6712_vm9, %v6724_v27, %v6589_v56 }
 0x475   : > { %v6613_v19 = vpop.permute.xlu1 %6612 }
 0x476   : > { %v6726_v39 = vsel %vm6714_vm10, %v6725_v6, %v6613_v19 }
 0x477   : > { %v6727_v42 = vsel %vm6716_vm11, %v6726_v39, %v6637_v28 }
 0x478   : > { %v6728_v37 = vsel %vm6718_vm12, %v6727_v42, %v6661_v44 }
 0x479   : > { %v6729_v21 = vsel %vm6720_vm13, %v6728_v37, %v6685_v24  ;;  %v6709_v55 = vpop.permute.xlu1 %6708 }
 0x47a   : > { %v6730_v13 = vsel %vm6722_vm14, %v6729_v21, %v6709_v55 }
 0x47b   : > { %6732 = vst [vmem:[%s170_s28 + $0x8] sm:$0xff] %v6730_v13 }
 0x47c PF: > { %s13_s12 = sadd.s32 1, %s7810_s12  }
 0x47d   : > { %p10_p4 = scmp.ge.s32.totalorder %s13_s12, 6  }
 0x47f   :  { %12 = sbr.rel (!%p10_p4) target bundleno = 1 (0x1), region = 64 }

</bundles_post_ra>
